<compile_context>
chip_gen: v7x
topology: tpu7x:2x2x1
jax: 0.10.0
libtpu: 0.0.40
codegen_flags: <defaults>
</compile_context>

<pallas_src>
import functools

import jax
import jax.numpy as jnp
from jax import lax
from jax.experimental import pallas as pl
from jax.experimental.pallas import tpu as pltpu


def _round_up(x, m):
    return ((x + m - 1) // m) * m


# ---------------------------------------------------------------------------
# Pallas kernels
# ---------------------------------------------------------------------------
def matmul_bn_stats_kernel(x_ref, s_ref, t_ref, w_ref, b_ref,
                           y_ref, st_ref, *, act, tm, m_true, need_mask):
    """(optional fused BN-affine + ReLU on the input) -> MXU matmul + bias.

    Writes the output tile and accumulates per-channel [sum; sum-of-squares]
    into a resident (2, Cout) output block across the row grid."""
    x = x_ref[...]
    if act:
        x = jnp.maximum(x * s_ref[...] + t_ref[...], 0.0)
    y = jnp.dot(x, w_ref[...], preferred_element_type=jnp.float32) + b_ref[...]
    y_ref[...] = y

    @pl.when(pl.program_id(0) == 0)
    def _():
        st_ref[...] = jnp.zeros_like(st_ref)

    if need_mask:
        rows = pl.program_id(0) * tm + lax.broadcasted_iota(jnp.int32, (tm, 1), 0)
        ym = jnp.where(rows < m_true, y, 0.0)
    else:
        ym = y
    s0 = jnp.sum(ym, axis=0, keepdims=True)
    s1 = jnp.sum(ym * ym, axis=0, keepdims=True)
    st_ref[...] += jnp.concatenate([s0, s1], axis=0)


def deconv_subpixel_kernel(y1_ref, s_ref, t_ref, w_ref, b_ref,
                           y2_ref, st_ref, *, H, W):
    """Fused BN1+ReLU + ConvTranspose2d(k=3, s=2, p=1, op=1) for one image.

    Sub-pixel decomposition with a single MXU dot: the activation and its
    right / down / down-right shifted copies are lane-concatenated to
    (HW, 4C) and multiplied by a (4C, 4*Cout) weight whose 4*Cout columns are
    the parity-packed outputs [ee | eo | oe | oo].  The (W+1)-row zero halo is
    built in VMEM (no HBM pad pass).  BN2 partial statistics are accumulated
    into a resident (2, 4*Cout) block across the batch grid axis.
    """
    HW = H * W
    C = y1_ref.shape[1]

    a = jnp.maximum(y1_ref[...] * s_ref[...] + t_ref[...], 0.0)        # (HW, C)
    zpad = jnp.zeros((W + 1, C), jnp.float32)
    ap = jnp.concatenate([a, zpad], axis=0)                            # (HW+W+1, C)

    col = lax.broadcasted_iota(jnp.int32, (HW, 1), 0) % W
    not_last_col = col < (W - 1)

    a00 = a                                                            # (m,   n)
    a01 = jnp.where(not_last_col, ap[1:HW + 1, :], 0.0)                # (m,   n+1)
    a10 = ap[W:HW + W, :]                                              # (m+1, n)
    a11 = jnp.where(not_last_col, ap[W + 1:HW + W + 1, :], 0.0)        # (m+1, n+1)

    acat = jnp.concatenate([a00, a01, a10, a11], axis=1)               # (HW, 4C)
    y2 = jnp.dot(acat, w_ref[...], preferred_element_type=jnp.float32) + b_ref[...]
    y2_ref[...] = y2

    @pl.when(pl.program_id(0) == 0)
    def _():
        st_ref[...] = jnp.zeros_like(st_ref)
    s0 = jnp.sum(y2, axis=0, keepdims=True)
    s1 = jnp.sum(y2 * y2, axis=0, keepdims=True)
    st_ref[...] += jnp.concatenate([s0, s1], axis=0)


def bn_relu_kernel(x_ref, s_ref, t_ref, o_ref):
    o_ref[...] = jnp.maximum(x_ref[...] * s_ref[...] + t_ref[...], 0.0)


# ---------------------------------------------------------------------------
# Pallas wrappers
# ---------------------------------------------------------------------------
def matmul_bn_stats_pallas(x2d, scale, shift, w, b, *, act, tm=1024):
    """Row-tiled (M, Cin) @ (Cin, Cout) + bias with optional fused BN+ReLU on
    the input; BN statistics of the output accumulate in-kernel."""
    M, cin = x2d.shape
    cout = w.shape[1]
    tm_eff = tm if M >= tm else _round_up(M, 8)
    G = pl.cdiv(M, tm_eff)
    need_mask = (M % tm_eff) != 0

    kern = functools.partial(matmul_bn_stats_kernel, act=act, tm=tm_eff,
                             m_true=M, need_mask=need_mask)
    y, st = pl.pallas_call(
        kern,
        out_shape=(jax.ShapeDtypeStruct((M, cout), jnp.float32),
                   jax.ShapeDtypeStruct((2, cout), jnp.float32)),
        grid=(G,),
        in_specs=[
            pl.BlockSpec((tm_eff, cin), lambda i: (i, 0)),
            pl.BlockSpec((1, cin), lambda i: (0, 0)),
            pl.BlockSpec((1, cin), lambda i: (0, 0)),
            pl.BlockSpec((cin, cout), lambda i: (0, 0)),
            pl.BlockSpec((1, cout), lambda i: (0, 0)),
        ],
        out_specs=(pl.BlockSpec((tm_eff, cout), lambda i: (i, 0)),
                   pl.BlockSpec((2, cout), lambda i: (0, 0))),
        # stats block is resident across the row axis -> "arbitrary".
        compiler_params=pltpu.CompilerParams(dimension_semantics=("arbitrary",)),
    )(x2d, scale, shift, w, b)
    return y, st[0], st[1]


def deconv_subpixel_pallas(y1_img, scale, shift, w_cat, b_cat, *, H, W):
    """Grid over batch images; each step: fused BN1+ReLU + sub-pixel transposed
    conv (single MXU dot) + accumulated BN2 statistics."""
    N, HW, C = y1_img.shape
    c4 = w_cat.shape[1]
    kern = functools.partial(deconv_subpixel_kernel, H=H, W=W)
    y2, st = pl.pallas_call(
        kern,
        out_shape=(jax.ShapeDtypeStruct((N, HW, c4), jnp.float32),
                   jax.ShapeDtypeStruct((2, c4), jnp.float32)),
        grid=(N,),
        in_specs=[
            pl.BlockSpec((None, HW, C), lambda n: (n, 0, 0)),
            pl.BlockSpec((1, C), lambda n: (0, 0)),
            pl.BlockSpec((1, C), lambda n: (0, 0)),
            pl.BlockSpec((4 * C, c4), lambda n: (0, 0)),
            pl.BlockSpec((1, c4), lambda n: (0, 0)),
        ],
        out_specs=(pl.BlockSpec((None, HW, c4), lambda n: (n, 0, 0)),
                   pl.BlockSpec((2, c4), lambda n: (0, 0))),
        compiler_params=pltpu.CompilerParams(dimension_semantics=("arbitrary",)),
    )(y1_img, scale, shift, w_cat, b_cat)
    return y2, st[0], st[1]


def bn_relu_pallas(x2d, scale, shift, tm=1024):
    M, c = x2d.shape
    tm_eff = tm if M >= tm else _round_up(M, 8)
    G = pl.cdiv(M, tm_eff)
    return pl.pallas_call(
        bn_relu_kernel,
        out_shape=jax.ShapeDtypeStruct((M, c), jnp.float32),
        grid=(G,),
        in_specs=[pl.BlockSpec((tm_eff, c), lambda i: (i, 0)),
                  pl.BlockSpec((1, c), lambda i: (0, 0)),
                  pl.BlockSpec((1, c), lambda i: (0, 0))],
        out_specs=pl.BlockSpec((tm_eff, c), lambda i: (i, 0)),
        compiler_params=pltpu.CompilerParams(dimension_semantics=("parallel",)),
    )(x2d, scale, shift)


# ---------------------------------------------------------------------------
# Glue: BN statistic folding and weight repacking (tiny per-channel math)
# ---------------------------------------------------------------------------
def _bn_fold(colsum, colsumsq, count, gamma, beta, eps=1e-5):
    mean = colsum / count
    var = colsumsq / count - mean * mean   # biased variance (PyTorch training mode)
    s = gamma * lax.rsqrt(var + eps)
    t = beta - mean * s
    return s.reshape(1, -1), t.reshape(1, -1)


def _deconv_subpixel_weights(wt2, b2):
    """ConvTranspose2d weight (Cin, Cout, 3, 3) -> single (4*Cin, 4*Cout)
    matmul matrix.  Rows are ordered by the shifted input it multiplies
    (x00 | x01 | x10 | x11); columns are the 4 output parities packed as
    [ee | eo | oe | oo], each Cout wide."""
    C, C2 = wt2.shape[0], wt2.shape[1]
    Z = jnp.zeros((C, C2), jnp.float32)
    Wk = lambda kh, kw: wt2[:, :, kh, kw]
    r00 = jnp.concatenate([Wk(1, 1), Wk(1, 2), Wk(2, 1), Wk(2, 2)], axis=1)
    r01 = jnp.concatenate([Z,        Wk(1, 0), Z,        Wk(2, 0)], axis=1)
    r10 = jnp.concatenate([Z,        Z,        Wk(0, 1), Wk(0, 2)], axis=1)
    r11 = jnp.concatenate([Z,        Z,        Z,        Wk(0, 0)], axis=1)
    w_cat = jnp.concatenate([r00, r01, r10, r11], axis=0)   # (4*Cin, 4*Cout)
    b_cat = jnp.tile(b2.reshape(1, -1), (1, 4))              # (1, 4*Cout)
    return w_cat, b_cat


# ---------------------------------------------------------------------------
# Full DecoderBlock forward (Pallas)
# ---------------------------------------------------------------------------
def decoder_block_pallas(x_nchw, P, eps=1e-5):
    N, Cin, H, W = x_nchw.shape
    Cm = P["w1"].shape[1]
    C3 = P["w3"].shape[1]
    HW = H * W

    # ---- stage 1: conv1 (1x1) with in-kernel BN1 batch statistics ----------
    x_flat = jnp.transpose(x_nchw, (0, 2, 3, 1)).reshape(N * HW, Cin)
    one_in = jnp.ones((1, Cin), jnp.float32)
    zero_in = jnp.zeros((1, Cin), jnp.float32)
    y1, s1, q1 = matmul_bn_stats_pallas(x_flat, one_in, zero_in,
                                        P["w1"], P["b1"], act=False)
    sc1, sh1 = _bn_fold(s1, q1, N * HW, P["g1"], P["be1"], eps)

    # ---- stage 2: BN1+ReLU fused with sub-pixel ConvTranspose2d (1 dot) ----
    w_cat, b_cat = _deconv_subpixel_weights(P["wt2"], P["b2"])
    y2, s2, q2 = deconv_subpixel_pallas(y1.reshape(N, HW, Cm), sc1, sh1,
                                        w_cat, b_cat, H=H, W=W)
    sc2, sh2 = _bn_fold(s2.reshape(4, Cm).sum(0), q2.reshape(4, Cm).sum(0),
                        N * HW * 4, P["g2"], P["be2"], eps)

    # ---- stage 3: BN2+ReLU fused with conv3 (1x1) on parity-unpacked rows --
    # (N*HW, 4*Cm) -> (4*N*HW, Cm) is a layout-free reshape (row-major view).
    y2_rows = y2.reshape(N * HW * 4, Cm)
    y3, s3, q3 = matmul_bn_stats_pallas(y2_rows, sc2, sh2,
                                        P["w3"], P["b3"], act=True)
    sc3, sh3 = _bn_fold(s3, q3, N * HW * 4, P["g3"], P["be3"], eps)

    # ---- stage 4: final BN3 + ReLU ------------------------------------------
    y4 = bn_relu_pallas(y3, sc3, sh3)

    # ---- unpack parities -> NCHW (single transpose, required by interface) --
    out = y4.reshape(N, H, W, 2, 2, C3)
    out = jnp.transpose(out, (0, 5, 1, 3, 2, 4)).reshape(N, C3, 2 * H, 2 * W)
    return out


# ---------------------------------------------------------------------------
# Pure-JAX reference (independent math via lax.conv_general_dilated)
# ---------------------------------------------------------------------------
def reference_forward(x, P, eps=1e-5):
    def bn_relu(y, g, b):
        m = y.mean(axis=(0, 2, 3), keepdims=True)
        v = ((y - m) ** 2).mean(axis=(0, 2, 3), keepdims=True)
        yn = (y - m) / jnp.sqrt(v + eps) * g.reshape(1, -1, 1, 1) + b.reshape(1, -1, 1, 1)
        return jnp.maximum(yn, 0.0)

    y = jnp.einsum("nchw,cd->ndhw", x, P["w1"],
                   precision=lax.Precision.HIGHEST) + P["b1"].reshape(1, -1, 1, 1)
    y = bn_relu(y, P["g1"], P["be1"])

    # ConvTranspose2d(k=3, s=2, p=1, op=1) == dilated conv with flipped kernel
    w2_oihw = jnp.transpose(P["wt2"], (1, 0, 2, 3))[:, :, ::-1, ::-1]
    y = lax.conv_general_dilated(
        y, w2_oihw, window_strides=(1, 1), padding=((1, 2), (1, 2)),
        lhs_dilation=(2, 2), dimension_numbers=("NCHW", "OIHW", "NCHW"),
        precision=lax.Precision.HIGHEST) + P["b2"].reshape(1, -1, 1, 1)
    y = bn_relu(y, P["g2"], P["be2"])

    y = jnp.einsum("nchw,cd->ndhw", y, P["w3"],
                   precision=lax.Precision.HIGHEST) + P["b3"].reshape(1, -1, 1, 1)
    y = bn_relu(y, P["g3"], P["be3"])
    return y


# ---------------------------------------------------------------------------
# Deterministic parameter construction
# ---------------------------------------------------------------------------
def make_params(key, in_channels, n_filters):
    cmid = in_channels // 4
    ks = jax.random.split(key, 12)
    return {
        "w1": 0.1 * jax.random.normal(ks[0], (in_channels, cmid), jnp.float32),
        "b1": 0.1 * jax.random.normal(ks[1], (1, cmid), jnp.float32),
        # ConvTranspose2d weight layout: (in_channels, out_channels, kH, kW)
        "wt2": 0.1 * jax.random.normal(ks[2], (cmid, cmid, 3, 3), jnp.float32),
        "b2": 0.1 * jax.random.normal(ks[3], (cmid,), jnp.float32),
        "w3": 0.1 * jax.random.normal(ks[4], (cmid, n_filters), jnp.float32),
        "b3": 0.1 * jax.random.normal(ks[5], (1, n_filters), jnp.float32),
        "g1": 1.0 + 0.1 * jax.random.normal(ks[6], (cmid,), jnp.float32),
        "be1": 0.1 * jax.random.normal(ks[7], (cmid,), jnp.float32),
        "g2": 1.0 + 0.1 * jax.random.normal(ks[8], (cmid,), jnp.float32),
        "be2": 0.1 * jax.random.normal(ks[9], (cmid,), jnp.float32),
        "g3": 1.0 + 0.1 * jax.random.normal(ks[10], (n_filters,), jnp.float32),
        "be3": 0.1 * jax.random.normal(ks[11], (n_filters,), jnp.float32),
    }


if __name__ == "__main__":
    in_channels, n_filters = 16, 8
    N, H, W = 2, 16, 16

    root = jax.random.PRNGKey(0)
    kx, kp = jax.random.split(root)
    x = jax.random.normal(kx, (N, in_channels, H, W), jnp.float32)  # NCHW like PyTorch
    P = make_params(kp, in_channels, n_filters)

    fwd = jax.jit(functools.partial(decoder_block_pallas, P=P))
    out = jax.block_until_ready(fwd(x))

    ref = jax.block_until_ready(reference_forward(x, P))
    assert out.shape == (N, n_filters, 2 * H, 2 * W), out.shape
    max_err = float(jnp.max(jnp.abs(out - ref)))
    assert jnp.allclose(out, ref, atol=2e-2, rtol=2e-2), max_err

    print("KERNEL_OK")
</pallas_src>

<mosaic_0001>
module attributes {stable_mosaic.version = 11 : i64} {
  func.func @deconv_subpixel_kernel(%arg0: i32, %arg1: memref<1x256x4xf32, #tpu.memory_space<vmem>>, %arg2: memref<1x4xf32, #tpu.memory_space<vmem>>, %arg3: memref<1x4xf32, #tpu.memory_space<vmem>>, %arg4: memref<16x16xf32, #tpu.memory_space<vmem>>, %arg5: memref<1x16xf32, #tpu.memory_space<vmem>>, %arg6: memref<1x256x16xf32, #tpu.memory_space<vmem>>, %arg7: memref<2x16xf32, #tpu.memory_space<vmem>>) attributes {dimension_semantics = [#tpu.dimension_semantics<arbitrary>], iteration_bounds = array<i64: 2>, scalar_prefetch = 0 : i64, scratch_operands = 0 : i64, tpu.core_type = #tpu.core_type<tc>, window_params = [{transform_indices = @transform_0, window_bounds = array<i64: 1, 256, 4>}, {pipeline_mode = #tpu.pipeline_mode<synchronous>, transform_indices = @transform_1, window_bounds = array<i64: 1, 4>}, {pipeline_mode = #tpu.pipeline_mode<synchronous>, transform_indices = @transform_2, window_bounds = array<i64: 1, 4>}, {pipeline_mode = #tpu.pipeline_mode<synchronous>, transform_indices = @transform_3, window_bounds = array<i64: 16, 16>}, {pipeline_mode = #tpu.pipeline_mode<synchronous>, transform_indices = @transform_4, window_bounds = array<i64: 1, 16>}, {transform_indices = @transform_5, window_bounds = array<i64: 1, 256, 16>}, {pipeline_mode = #tpu.pipeline_mode<synchronous>, transform_indices = @transform_6, window_bounds = array<i64: 2, 16>}]} {
    %c0 = arith.constant 0 : index
    %c0_0 = arith.constant 0 : index
    %c0_1 = arith.constant 0 : index
    %0 = vector.load %arg1[%c0, %c0_0, %c0_1] : memref<1x256x4xf32, #tpu.memory_space<vmem>>, vector<1x256x4xf32>
    %1 = vector.shape_cast %0 : vector<1x256x4xf32> to vector<256x4xf32>
    %c0_2 = arith.constant 0 : index
    %c0_3 = arith.constant 0 : index
    %2 = vector.load %arg2[%c0_2, %c0_3] : memref<1x4xf32, #tpu.memory_space<vmem>>, vector<1x4xf32>
    %3 = vector.broadcast %2 : vector<1x4xf32> to vector<256x4xf32>
    %4 = arith.mulf %1, %3 : vector<256x4xf32>
    %c0_4 = arith.constant 0 : index
    %c0_5 = arith.constant 0 : index
    %5 = vector.load %arg3[%c0_4, %c0_5] : memref<1x4xf32, #tpu.memory_space<vmem>>, vector<1x4xf32>
    %6 = vector.broadcast %5 : vector<1x4xf32> to vector<256x4xf32>
    %7 = arith.addf %4, %6 : vector<256x4xf32>
    %cst = arith.constant 0.000000e+00 : f32
    %8 = vector.broadcast %cst : f32 to vector<256x4xf32>
    %9 = arith.maximumf %7, %8 : vector<256x4xf32>
    %cst_6 = arith.constant 0.000000e+00 : f32
    %10 = vector.broadcast %cst_6 : f32 to vector<17x4xf32>
    %11 = tpu.concatenate %9, %10 in 0 : vector<256x4xf32>, vector<17x4xf32> -> vector<273x4xf32>
    %12 = tpu.iota {dimensions = array<i32: 0>} : vector<256x1xi32>
    %c16_i32 = arith.constant 16 : i32
    %c0_i32 = arith.constant 0 : i32
    %13 = arith.cmpi eq, %c16_i32, %c0_i32 : i32
    %c1_i32 = arith.constant 1 : i32
    %14 = arith.select %13, %c1_i32, %c16_i32 : i32
    %15 = vector.broadcast %14 : i32 to vector<256x1xi32>
    %16 = arith.remsi %12, %15 : vector<256x1xi32>
    %c0_i32_7 = arith.constant 0 : i32
    %17 = vector.broadcast %c0_i32_7 : i32 to vector<256x1xi32>
    %18 = arith.cmpi ne, %16, %17 : vector<256x1xi32>
    %c0_i32_8 = arith.constant 0 : i32
    %19 = vector.broadcast %c0_i32_8 : i32 to vector<256x1xi32>
    %20 = arith.cmpi slt, %16, %19 : vector<256x1xi32>
    %c0_i32_9 = arith.constant 0 : i32
    %21 = arith.cmpi slt, %14, %c0_i32_9 : i32
    %22 = vector.broadcast %21 : i1 to vector<256x1xi1>
    %23 = vector.broadcast %22 : vector<256x1xi1> to vector<256x1xi1>
    %24 = arith.xori %20, %23 : vector<256x1xi1>
    %25 = arith.andi %24, %18 : vector<256x1xi1>
    %26 = vector.broadcast %14 : i32 to vector<256x1xi32>
    %27 = arith.addi %16, %26 : vector<256x1xi32>
    %28 = arith.select %25, %27, %16 : vector<256x1xi1>, vector<256x1xi32>
    %c15_i32 = arith.constant 15 : i32
    %29 = vector.broadcast %c15_i32 : i32 to vector<256x1xi32>
    %30 = arith.cmpi slt, %28, %29 : vector<256x1xi32>
    %31 = vector.extract_strided_slice %11 {offsets = [1, 0], sizes = [256, 4], strides = [1, 1]} : vector<273x4xf32> to vector<256x4xf32>
    %cst_10 = arith.constant 0.000000e+00 : f32
    %32 = vector.shape_cast %30 : vector<256x1xi1> to vector<256x1xi1>
    %33 = vector.broadcast %32 : vector<256x1xi1> to vector<256x4xi1>
    %34 = vector.broadcast %cst_10 : f32 to vector<256x4xf32>
    %35 = arith.select %33, %31, %34 : vector<256x4xi1>, vector<256x4xf32>
    %36 = vector.extract_strided_slice %11 {offsets = [16, 0], sizes = [256, 4], strides = [1, 1]} : vector<273x4xf32> to vector<256x4xf32>
    %37 = vector.extract_strided_slice %11 {offsets = [17, 0], sizes = [256, 4], strides = [1, 1]} : vector<273x4xf32> to vector<256x4xf32>
    %cst_11 = arith.constant 0.000000e+00 : f32
    %38 = vector.shape_cast %30 : vector<256x1xi1> to vector<256x1xi1>
    %39 = vector.broadcast %38 : vector<256x1xi1> to vector<256x4xi1>
    %40 = vector.broadcast %cst_11 : f32 to vector<256x4xf32>
    %41 = arith.select %39, %37, %40 : vector<256x4xi1>, vector<256x4xf32>
    %42 = tpu.concatenate %9, %35, %36, %41 in 1 : vector<256x4xf32>, vector<256x4xf32>, vector<256x4xf32>, vector<256x4xf32> -> vector<256x16xf32>
    %c0_12 = arith.constant 0 : index
    %c0_13 = arith.constant 0 : index
    %43 = vector.load %arg4[%c0_12, %c0_13] : memref<16x16xf32, #tpu.memory_space<vmem>>, vector<16x16xf32>
    %cst_14 = arith.constant dense<0.000000e+00> : vector<256x16xf32>
    %44 = tpu.matmul %42, %43, %cst_14 {dimension_numbers = #tpu.dot_dimension_numbers<[1], [0], [0], [1], [0, 0, 1, 1], [], []>} : vector<256x16xf32>, vector<16x16xf32>, vector<256x16xf32> -> vector<256x16xf32>
    %c0_15 = arith.constant 0 : index
    %c0_16 = arith.constant 0 : index
    %45 = vector.load %arg5[%c0_15, %c0_16] : memref<1x16xf32, #tpu.memory_space<vmem>>, vector<1x16xf32>
    %46 = vector.broadcast %45 : vector<1x16xf32> to vector<256x16xf32>
    %47 = arith.addf %44, %46 : vector<256x16xf32>
    %c0_17 = arith.constant 0 : index
    %c0_18 = arith.constant 0 : index
    %c0_19 = arith.constant 0 : index
    %48 = vector.load %arg6[%c0_17, %c0_18, %c0_19] : memref<1x256x16xf32, #tpu.memory_space<vmem>>, vector<1x256x16xf32>
    %49 = vector.shape_cast %48 : vector<1x256x16xf32> to vector<256x16xf32>
    %50 = vector.shape_cast %47 : vector<256x16xf32> to vector<1x256x16xf32>
    tpu.vector_store %arg6[%c0_17, %c0_18, %c0_19], %50 {strides = array<i32>} : memref<1x256x16xf32, #tpu.memory_space<vmem>>, vector<1x256x16xf32>,
    %c0_i32_20 = arith.constant 0 : i32
    %51 = arith.cmpi eq, %arg0, %c0_i32_20 : i32
    %52 = arith.extui %51 : i1 to i32
    %c0_i32_21 = arith.constant 0 : i32
    %53 = arith.cmpi ne, %52, %c0_i32_21 : i32
    scf.if %53 {
      %cst_28 = arith.constant 0.000000e+00 : f32
      %63 = vector.broadcast %cst_28 : f32 to vector<2x16xf32>
      %c0_29 = arith.constant 0 : index
      %c0_30 = arith.constant 0 : index
      %64 = vector.load %arg7[%c0_29, %c0_30] : memref<2x16xf32, #tpu.memory_space<vmem>>, vector<2x16xf32>
      tpu.vector_store %arg7[%c0_29, %c0_30], %63 {strides = array<i32>} : memref<2x16xf32, #tpu.memory_space<vmem>>, vector<2x16xf32>,
    } else {
    }
    %cst_22 = arith.constant dense<0.000000e+00> : vector<16xf32>
    %54 = vector.multi_reduction <add>, %47, %cst_22 [0] : vector<256x16xf32> to vector<16xf32>
    %55 = vector.shape_cast %54 : vector<16xf32> to vector<1x16xf32>
    %56 = arith.mulf %47, %47 : vector<256x16xf32>
    %cst_23 = arith.constant dense<0.000000e+00> : vector<16xf32>
    %57 = vector.multi_reduction <add>, %56, %cst_23 [0] : vector<256x16xf32> to vector<16xf32>
    %58 = vector.shape_cast %57 : vector<16xf32> to vector<1x16xf32>
    %c0_24 = arith.constant 0 : index
    %c0_25 = arith.constant 0 : index
    %59 = vector.load %arg7[%c0_24, %c0_25] : memref<2x16xf32, #tpu.memory_space<vmem>>, vector<2x16xf32>
    %60 = tpu.concatenate %55, %58 in 0 : vector<1x16xf32>, vector<1x16xf32> -> vector<2x16xf32>
    %61 = arith.addf %59, %60 : vector<2x16xf32>
    %c0_26 = arith.constant 0 : index
    %c0_27 = arith.constant 0 : index
    %62 = vector.load %arg7[%c0_26, %c0_27] : memref<2x16xf32, #tpu.memory_space<vmem>>, vector<2x16xf32>
    tpu.vector_store %arg7[%c0_26, %c0_27], %61 {strides = array<i32>} : memref<2x16xf32, #tpu.memory_space<vmem>>, vector<2x16xf32>,
    return
  }
  func.func @transform_0(%arg0: i32) -> (i32, i32, i32) {
    %c0_i32 = arith.constant 0 : i32
    %c0_i32_0 = arith.constant 0 : i32
    %c0_i32_1 = arith.constant 0 : i32
    return %arg0, %c0_i32, %c0_i32_0 : i32, i32, i32
  }
  func.func @transform_1(%arg0: i32) -> (i32, i32) {
    %c0_i32 = arith.constant 0 : i32
    %c0_i32_0 = arith.constant 0 : i32
    %c0_i32_1 = arith.constant 0 : i32
    return %c0_i32, %c0_i32_0 : i32, i32
  }
  func.func @transform_2(%arg0: i32) -> (i32, i32) {
    %c0_i32 = arith.constant 0 : i32
    %c0_i32_0 = arith.constant 0 : i32
    %c0_i32_1 = arith.constant 0 : i32
    return %c0_i32, %c0_i32_0 : i32, i32
  }
  func.func @transform_3(%arg0: i32) -> (i32, i32) {
    %c0_i32 = arith.constant 0 : i32
    %c0_i32_0 = arith.constant 0 : i32
    %c0_i32_1 = arith.constant 0 : i32
    return %c0_i32, %c0_i32_0 : i32, i32
  }
  func.func @transform_4(%arg0: i32) -> (i32, i32) {
    %c0_i32 = arith.constant 0 : i32
    %c0_i32_0 = arith.constant 0 : i32
    %c0_i32_1 = arith.constant 0 : i32
    return %c0_i32, %c0_i32_0 : i32, i32
  }
  func.func @transform_5(%arg0: i32) -> (i32, i32, i32) {
    %c0_i32 = arith.constant 0 : i32
    %c0_i32_0 = arith.constant 0 : i32
    %c0_i32_1 = arith.constant 0 : i32
    return %arg0, %c0_i32, %c0_i32_0 : i32, i32, i32
  }
  func.func @transform_6(%arg0: i32) -> (i32, i32) {
    %c0_i32 = arith.constant 0 : i32
    %c0_i32_0 = arith.constant 0 : i32
    %c0_i32_1 = arith.constant 0 : i32
    return %c0_i32, %c0_i32_0 : i32, i32
  }
}

module attributes {stable_mosaic.version = 11 : i64} {
  func.func @matmul_bn_stats_kernel(%arg0: i32, %arg1: memref<512x16xf32, #tpu.memory_space<vmem>>, %arg2: memref<1x16xf32, #tpu.memory_space<vmem>>, %arg3: memref<1x16xf32, #tpu.memory_space<vmem>>, %arg4: memref<16x4xf32, #tpu.memory_space<vmem>>, %arg5: memref<1x4xf32, #tpu.memory_space<vmem>>, %arg6: memref<512x4xf32, #tpu.memory_space<vmem>>, %arg7: memref<2x4xf32, #tpu.memory_space<vmem>>) attributes {dimension_semantics = [#tpu.dimension_semantics<arbitrary>], iteration_bounds = array<i64: 1>, scalar_prefetch = 0 : i64, scratch_operands = 0 : i64, tpu.core_type = #tpu.core_type<tc>, window_params = [{transform_indices = @transform_0, window_bounds = array<i64: 512, 16>}, {pipeline_mode = #tpu.pipeline_mode<synchronous>, transform_indices = @transform_1, window_bounds = array<i64: 1, 16>}, {pipeline_mode = #tpu.pipeline_mode<synchronous>, transform_indices = @transform_2, window_bounds = array<i64: 1, 16>}, {pipeline_mode = #tpu.pipeline_mode<synchronous>, transform_indices = @transform_3, window_bounds = array<i64: 16, 4>}, {pipeline_mode = #tpu.pipeline_mode<synchronous>, transform_indices = @transform_4, window_bounds = array<i64: 1, 4>}, {transform_indices = @transform_5, window_bounds = array<i64: 512, 4>}, {pipeline_mode = #tpu.pipeline_mode<synchronous>, transform_indices = @transform_6, window_bounds = array<i64: 2, 4>}]} {
    %c0 = arith.constant 0 : index
    %c0_0 = arith.constant 0 : index
    %0 = vector.load %arg1[%c0, %c0_0] : memref<512x16xf32, #tpu.memory_space<vmem>>, vector<512x16xf32>
    %c0_1 = arith.constant 0 : index
    %c0_2 = arith.constant 0 : index
    %1 = vector.load %arg4[%c0_1, %c0_2] : memref<16x4xf32, #tpu.memory_space<vmem>>, vector<16x4xf32>
    %cst = arith.constant dense<0.000000e+00> : vector<512x4xf32>
    %2 = tpu.matmul %0, %1, %cst {dimension_numbers = #tpu.dot_dimension_numbers<[1], [0], [0], [1], [0, 0, 1, 1], [], []>} : vector<512x16xf32>, vector<16x4xf32>, vector<512x4xf32> -> vector<512x4xf32>
    %c0_3 = arith.constant 0 : index
    %c0_4 = arith.constant 0 : index
    %3 = vector.load %arg5[%c0_3, %c0_4] : memref<1x4xf32, #tpu.memory_space<vmem>>, vector<1x4xf32>
    %4 = vector.broadcast %3 : vector<1x4xf32> to vector<512x4xf32>
    %5 = arith.addf %2, %4 : vector<512x4xf32>
    %c0_5 = arith.constant 0 : index
    %c0_6 = arith.constant 0 : index
    %6 = vector.load %arg6[%c0_5, %c0_6] : memref<512x4xf32, #tpu.memory_space<vmem>>, vector<512x4xf32>
    tpu.vector_store %arg6[%c0_5, %c0_6], %5 {strides = array<i32>} : memref<512x4xf32, #tpu.memory_space<vmem>>, vector<512x4xf32>,
    %c0_i32 = arith.constant 0 : i32
    %7 = arith.cmpi eq, %arg0, %c0_i32 : i32
    %8 = arith.extui %7 : i1 to i32
    %c0_i32_7 = arith.constant 0 : i32
    %9 = arith.cmpi ne, %8, %c0_i32_7 : i32
    scf.if %9 {
      %cst_14 = arith.constant 0.000000e+00 : f32
      %19 = vector.broadcast %cst_14 : f32 to vector<2x4xf32>
      %c0_15 = arith.constant 0 : index
      %c0_16 = arith.constant 0 : index
      %20 = vector.load %arg7[%c0_15, %c0_16] : memref<2x4xf32, #tpu.memory_space<vmem>>, vector<2x4xf32>
      tpu.vector_store %arg7[%c0_15, %c0_16], %19 {strides = array<i32>} : memref<2x4xf32, #tpu.memory_space<vmem>>, vector<2x4xf32>,
    } else {
    }
    %cst_8 = arith.constant dense<0.000000e+00> : vector<4xf32>
    %10 = vector.multi_reduction <add>, %5, %cst_8 [0] : vector<512x4xf32> to vector<4xf32>
    %11 = vector.shape_cast %10 : vector<4xf32> to vector<1x4xf32>
    %12 = arith.mulf %5, %5 : vector<512x4xf32>
    %cst_9 = arith.constant dense<0.000000e+00> : vector<4xf32>
    %13 = vector.multi_reduction <add>, %12, %cst_9 [0] : vector<512x4xf32> to vector<4xf32>
    %14 = vector.shape_cast %13 : vector<4xf32> to vector<1x4xf32>
    %c0_10 = arith.constant 0 : index
    %c0_11 = arith.constant 0 : index
    %15 = vector.load %arg7[%c0_10, %c0_11] : memref<2x4xf32, #tpu.memory_space<vmem>>, vector<2x4xf32>
    %16 = tpu.concatenate %11, %14 in 0 : vector<1x4xf32>, vector<1x4xf32> -> vector<2x4xf32>
    %17 = arith.addf %15, %16 : vector<2x4xf32>
    %c0_12 = arith.constant 0 : index
    %c0_13 = arith.constant 0 : index
    %18 = vector.load %arg7[%c0_12, %c0_13] : memref<2x4xf32, #tpu.memory_space<vmem>>, vector<2x4xf32>
    tpu.vector_store %arg7[%c0_12, %c0_13], %17 {strides = array<i32>} : memref<2x4xf32, #tpu.memory_space<vmem>>, vector<2x4xf32>,
    return
  }
  func.func @transform_0(%arg0: i32) -> (i32, i32) {
    %c0_i32 = arith.constant 0 : i32
    %c0_i32_0 = arith.constant 0 : i32
    return %arg0, %c0_i32 : i32, i32
  }
  func.func @transform_1(%arg0: i32) -> (i32, i32) {
    %c0_i32 = arith.constant 0 : i32
    %c0_i32_0 = arith.constant 0 : i32
    %c0_i32_1 = arith.constant 0 : i32
    return %c0_i32, %c0_i32_0 : i32, i32
  }
  func.func @transform_2(%arg0: i32) -> (i32, i32) {
    %c0_i32 = arith.constant 0 : i32
    %c0_i32_0 = arith.constant 0 : i32
    %c0_i32_1 = arith.constant 0 : i32
    return %c0_i32, %c0_i32_0 : i32, i32
  }
  func.func @transform_3(%arg0: i32) -> (i32, i32) {
    %c0_i32 = arith.constant 0 : i32
    %c0_i32_0 = arith.constant 0 : i32
    %c0_i32_1 = arith.constant 0 : i32
    return %c0_i32, %c0_i32_0 : i32, i32
  }
  func.func @transform_4(%arg0: i32) -> (i32, i32) {
    %c0_i32 = arith.constant 0 : i32
    %c0_i32_0 = arith.constant 0 : i32
    %c0_i32_1 = arith.constant 0 : i32
    return %c0_i32, %c0_i32_0 : i32, i32
  }
  func.func @transform_5(%arg0: i32) -> (i32, i32) {
    %c0_i32 = arith.constant 0 : i32
    %c0_i32_0 = arith.constant 0 : i32
    return %arg0, %c0_i32 : i32, i32
  }
  func.func @transform_6(%arg0: i32) -> (i32, i32) {
    %c0_i32 = arith.constant 0 : i32
    %c0_i32_0 = arith.constant 0 : i32
    %c0_i32_1 = arith.constant 0 : i32
    return %c0_i32, %c0_i32_0 : i32, i32
  }
}

module attributes {stable_mosaic.version = 11 : i64} {
  func.func @matmul_bn_stats_kernel(%arg0: i32, %arg1: memref<1024x4xf32, #tpu.memory_space<vmem>>, %arg2: memref<1x4xf32, #tpu.memory_space<vmem>>, %arg3: memref<1x4xf32, #tpu.memory_space<vmem>>, %arg4: memref<4x8xf32, #tpu.memory_space<vmem>>, %arg5: memref<1x8xf32, #tpu.memory_space<vmem>>, %arg6: memref<1024x8xf32, #tpu.memory_space<vmem>>, %arg7: memref<2x8xf32, #tpu.memory_space<vmem>>) attributes {dimension_semantics = [#tpu.dimension_semantics<arbitrary>], iteration_bounds = array<i64: 2>, scalar_prefetch = 0 : i64, scratch_operands = 0 : i64, tpu.core_type = #tpu.core_type<tc>, window_params = [{transform_indices = @transform_0, window_bounds = array<i64: 1024, 4>}, {pipeline_mode = #tpu.pipeline_mode<synchronous>, transform_indices = @transform_1, window_bounds = array<i64: 1, 4>}, {pipeline_mode = #tpu.pipeline_mode<synchronous>, transform_indices = @transform_2, window_bounds = array<i64: 1, 4>}, {pipeline_mode = #tpu.pipeline_mode<synchronous>, transform_indices = @transform_3, window_bounds = array<i64: 4, 8>}, {pipeline_mode = #tpu.pipeline_mode<synchronous>, transform_indices = @transform_4, window_bounds = array<i64: 1, 8>}, {transform_indices = @transform_5, window_bounds = array<i64: 1024, 8>}, {pipeline_mode = #tpu.pipeline_mode<synchronous>, transform_indices = @transform_6, window_bounds = array<i64: 2, 8>}]} {
    %c0 = arith.constant 0 : index
    %c0_0 = arith.constant 0 : index
    %0 = vector.load %arg1[%c0, %c0_0] : memref<1024x4xf32, #tpu.memory_space<vmem>>, vector<1024x4xf32>
    %c0_1 = arith.constant 0 : index
    %c0_2 = arith.constant 0 : index
    %1 = vector.load %arg2[%c0_1, %c0_2] : memref<1x4xf32, #tpu.memory_space<vmem>>, vector<1x4xf32>
    %2 = vector.broadcast %1 : vector<1x4xf32> to vector<1024x4xf32>
    %3 = arith.mulf %0, %2 : vector<1024x4xf32>
    %c0_3 = arith.constant 0 : index
    %c0_4 = arith.constant 0 : index
    %4 = vector.load %arg3[%c0_3, %c0_4] : memref<1x4xf32, #tpu.memory_space<vmem>>, vector<1x4xf32>
    %5 = vector.broadcast %4 : vector<1x4xf32> to vector<1024x4xf32>
    %6 = arith.addf %3, %5 : vector<1024x4xf32>
    %cst = arith.constant 0.000000e+00 : f32
    %7 = vector.broadcast %cst : f32 to vector<1024x4xf32>
    %8 = arith.maximumf %6, %7 : vector<1024x4xf32>
    %c0_5 = arith.constant 0 : index
    %c0_6 = arith.constant 0 : index
    %9 = vector.load %arg4[%c0_5, %c0_6] : memref<4x8xf32, #tpu.memory_space<vmem>>, vector<4x8xf32>
    %cst_7 = arith.constant dense<0.000000e+00> : vector<1024x8xf32>
    %10 = tpu.matmul %8, %9, %cst_7 {dimension_numbers = #tpu.dot_dimension_numbers<[1], [0], [0], [1], [0, 0, 1, 1], [], []>} : vector<1024x4xf32>, vector<4x8xf32>, vector<1024x8xf32> -> vector<1024x8xf32>
    %c0_8 = arith.constant 0 : index
    %c0_9 = arith.constant 0 : index
    %11 = vector.load %arg5[%c0_8, %c0_9] : memref<1x8xf32, #tpu.memory_space<vmem>>, vector<1x8xf32>
    %12 = vector.broadcast %11 : vector<1x8xf32> to vector<1024x8xf32>
    %13 = arith.addf %10, %12 : vector<1024x8xf32>
    %c0_10 = arith.constant 0 : index
    %c0_11 = arith.constant 0 : index
    %14 = vector.load %arg6[%c0_10, %c0_11] : memref<1024x8xf32, #tpu.memory_space<vmem>>, vector<1024x8xf32>
    tpu.vector_store %arg6[%c0_10, %c0_11], %13 {strides = array<i32>} : memref<1024x8xf32, #tpu.memory_space<vmem>>, vector<1024x8xf32>,
    %c0_i32 = arith.constant 0 : i32
    %15 = arith.cmpi eq, %arg0, %c0_i32 : i32
    %16 = arith.extui %15 : i1 to i32
    %c0_i32_12 = arith.constant 0 : i32
    %17 = arith.cmpi ne, %16, %c0_i32_12 : i32
    scf.if %17 {
      %cst_19 = arith.constant 0.000000e+00 : f32
      %27 = vector.broadcast %cst_19 : f32 to vector<2x8xf32>
      %c0_20 = arith.constant 0 : index
      %c0_21 = arith.constant 0 : index
      %28 = vector.load %arg7[%c0_20, %c0_21] : memref<2x8xf32, #tpu.memory_space<vmem>>, vector<2x8xf32>
      tpu.vector_store %arg7[%c0_20, %c0_21], %27 {strides = array<i32>} : memref<2x8xf32, #tpu.memory_space<vmem>>, vector<2x8xf32>,
    } else {
    }
    %cst_13 = arith.constant dense<0.000000e+00> : vector<8xf32>
    %18 = vector.multi_reduction <add>, %13, %cst_13 [0] : vector<1024x8xf32> to vector<8xf32>
    %19 = vector.shape_cast %18 : vector<8xf32> to vector<1x8xf32>
    %20 = arith.mulf %13, %13 : vector<1024x8xf32>
    %cst_14 = arith.constant dense<0.000000e+00> : vector<8xf32>
    %21 = vector.multi_reduction <add>, %20, %cst_14 [0] : vector<1024x8xf32> to vector<8xf32>
    %22 = vector.shape_cast %21 : vector<8xf32> to vector<1x8xf32>
    %c0_15 = arith.constant 0 : index
    %c0_16 = arith.constant 0 : index
    %23 = vector.load %arg7[%c0_15, %c0_16] : memref<2x8xf32, #tpu.memory_space<vmem>>, vector<2x8xf32>
    %24 = tpu.concatenate %19, %22 in 0 : vector<1x8xf32>, vector<1x8xf32> -> vector<2x8xf32>
    %25 = arith.addf %23, %24 : vector<2x8xf32>
    %c0_17 = arith.constant 0 : index
    %c0_18 = arith.constant 0 : index
    %26 = vector.load %arg7[%c0_17, %c0_18] : memref<2x8xf32, #tpu.memory_space<vmem>>, vector<2x8xf32>
    tpu.vector_store %arg7[%c0_17, %c0_18], %25 {strides = array<i32>} : memref<2x8xf32, #tpu.memory_space<vmem>>, vector<2x8xf32>,
    return
  }
  func.func @transform_0(%arg0: i32) -> (i32, i32) {
    %c0_i32 = arith.constant 0 : i32
    %c0_i32_0 = arith.constant 0 : i32
    return %arg0, %c0_i32 : i32, i32
  }
  func.func @transform_1(%arg0: i32) -> (i32, i32) {
    %c0_i32 = arith.constant 0 : i32
    %c0_i32_0 = arith.constant 0 : i32
    %c0_i32_1 = arith.constant 0 : i32
    return %c0_i32, %c0_i32_0 : i32, i32
  }
  func.func @transform_2(%arg0: i32) -> (i32, i32) {
    %c0_i32 = arith.constant 0 : i32
    %c0_i32_0 = arith.constant 0 : i32
    %c0_i32_1 = arith.constant 0 : i32
    return %c0_i32, %c0_i32_0 : i32, i32
  }
  func.func @transform_3(%arg0: i32) -> (i32, i32) {
    %c0_i32 = arith.constant 0 : i32
    %c0_i32_0 = arith.constant 0 : i32
    %c0_i32_1 = arith.constant 0 : i32
    return %c0_i32, %c0_i32_0 : i32, i32
  }
  func.func @transform_4(%arg0: i32) -> (i32, i32) {
    %c0_i32 = arith.constant 0 : i32
    %c0_i32_0 = arith.constant 0 : i32
    %c0_i32_1 = arith.constant 0 : i32
    return %c0_i32, %c0_i32_0 : i32, i32
  }
  func.func @transform_5(%arg0: i32) -> (i32, i32) {
    %c0_i32 = arith.constant 0 : i32
    %c0_i32_0 = arith.constant 0 : i32
    return %arg0, %c0_i32 : i32, i32
  }
  func.func @transform_6(%arg0: i32) -> (i32, i32) {
    %c0_i32 = arith.constant 0 : i32
    %c0_i32_0 = arith.constant 0 : i32
    %c0_i32_1 = arith.constant 0 : i32
    return %c0_i32, %c0_i32_0 : i32, i32
  }
}

module attributes {stable_mosaic.version = 11 : i64} {
  func.func @bn_relu_kernel(%arg0: i32, %arg1: memref<1024x8xf32, #tpu.memory_space<vmem>>, %arg2: memref<1x8xf32, #tpu.memory_space<vmem>>, %arg3: memref<1x8xf32, #tpu.memory_space<vmem>>, %arg4: memref<1024x8xf32, #tpu.memory_space<vmem>>) attributes {dimension_semantics = [#tpu.dimension_semantics<parallel>], iteration_bounds = array<i64: 2>, scalar_prefetch = 0 : i64, scratch_operands = 0 : i64, tpu.core_type = #tpu.core_type<tc>, window_params = [{transform_indices = @transform_0, window_bounds = array<i64: 1024, 8>}, {pipeline_mode = #tpu.pipeline_mode<synchronous>, transform_indices = @transform_1, window_bounds = array<i64: 1, 8>}, {pipeline_mode = #tpu.pipeline_mode<synchronous>, transform_indices = @transform_2, window_bounds = array<i64: 1, 8>}, {transform_indices = @transform_3, window_bounds = array<i64: 1024, 8>}]} {
    %c0 = arith.constant 0 : index
    %c0_0 = arith.constant 0 : index
    %0 = vector.load %arg1[%c0, %c0_0] : memref<1024x8xf32, #tpu.memory_space<vmem>>, vector<1024x8xf32>
    %c0_1 = arith.constant 0 : index
    %c0_2 = arith.constant 0 : index
    %1 = vector.load %arg2[%c0_1, %c0_2] : memref<1x8xf32, #tpu.memory_space<vmem>>, vector<1x8xf32>
    %2 = vector.broadcast %1 : vector<1x8xf32> to vector<1024x8xf32>
    %3 = arith.mulf %0, %2 : vector<1024x8xf32>
    %c0_3 = arith.constant 0 : index
    %c0_4 = arith.constant 0 : index
    %4 = vector.load %arg3[%c0_3, %c0_4] : memref<1x8xf32, #tpu.memory_space<vmem>>, vector<1x8xf32>
    %5 = vector.broadcast %4 : vector<1x8xf32> to vector<1024x8xf32>
    %6 = arith.addf %3, %5 : vector<1024x8xf32>
    %cst = arith.constant 0.000000e+00 : f32
    %7 = vector.broadcast %cst : f32 to vector<1024x8xf32>
    %8 = arith.maximumf %6, %7 : vector<1024x8xf32>
    %c0_5 = arith.constant 0 : index
    %c0_6 = arith.constant 0 : index
    %9 = vector.load %arg4[%c0_5, %c0_6] : memref<1024x8xf32, #tpu.memory_space<vmem>>, vector<1024x8xf32>
    tpu.vector_store %arg4[%c0_5, %c0_6], %8 {strides = array<i32>} : memref<1024x8xf32, #tpu.memory_space<vmem>>, vector<1024x8xf32>,
    return
  }
  func.func @transform_0(%arg0: i32) -> (i32, i32) {
    %c0_i32 = arith.constant 0 : i32
    %c0_i32_0 = arith.constant 0 : i32
    return %arg0, %c0_i32 : i32, i32
  }
  func.func @transform_1(%arg0: i32) -> (i32, i32) {
    %c0_i32 = arith.constant 0 : i32
    %c0_i32_0 = arith.constant 0 : i32
    %c0_i32_1 = arith.constant 0 : i32
    return %c0_i32, %c0_i32_0 : i32, i32
  }
  func.func @transform_2(%arg0: i32) -> (i32, i32) {
    %c0_i32 = arith.constant 0 : i32
    %c0_i32_0 = arith.constant 0 : i32
    %c0_i32_1 = arith.constant 0 : i32
    return %c0_i32, %c0_i32_0 : i32, i32
  }
  func.func @transform_3(%arg0: i32) -> (i32, i32) {
    %c0_i32 = arith.constant 0 : i32
    %c0_i32_0 = arith.constant 0 : i32
    return %arg0, %c0_i32 : i32, i32
  }
}

</mosaic_0001>

<bundles_post_ra>
// kernel: squeeze.8
= control target key start
LH: loop header
LB: loop body
LE: loop exit
PB: predicated region body
PF: predicated region fallthrough
CT: control target
= control target key end

     0   :  { %s37_s8 = smov 116   ;;  %vm7_vm0 = vcmask 31744   ;;  %s38_s9 = smov 120   ;;  %s55_s0 = inlined_call_operand.vmem [shape: f32[16], index: 0, kind: input, shape index: {}]   ;;  %s56_s1 = inlined_call_operand.vmem [shape: f32[4,4], index: 1, kind: output, shape index: {}]  }
   0x1   :  { %v4_v0 = vld [vmem:[%s55_s0] sm:$0x1]  ;;  %s36_s0 = smov 124  }
   0x2   :  { %5 = vst [vmem:[#allocation1] sm:$0x1] %v4_v0 }
   0x9   :  { %v9_v1 = vld [vmem:[#allocation1] sm:$0x1]  }
   0xa   :  { %v21_v2 = vld [vmem:[#allocation1] sm:$0x1]   ;;  %10 = vrot.lane.b32.xlu0 %v9_v1, %s36_s0 }
   0xb   :  { %22 = vrot.lane.b32.xlu1 %v21_v2, %s37_s8  ;;  %v6_v3 = vld [vmem:[#allocation1] sm:$0x1]  }
   0xc   :  { %v15_v4 = vld [vmem:[#allocation1] sm:$0x1]   ;;  %8 = vst.msk [vmem:[#allocation0] sm:$0x1] %vm7_vm0, %v6_v3  }
   0xe   :  { %16 = vrot.lane.b32.xlu0 %v15_v4, %s38_s9 }
  0x7c   :  { %v11_v5 = vpop.permute.xlu0 %10  }
  0x7d   :  { %v23_v6 = vpop.permute.xlu1 %22   ;;  %14 = vst.msk [vmem:[#allocation0 + $0x1] sm:$0x1] %vm7_vm0, %v11_v5  }
  0x7e   :  { %26 = vst.msk [vmem:[#allocation0 + $0x3] sm:$0x1] %vm7_vm0, %v23_v6  }
  0x80   :  { %v17_v7 = vpop.permute.xlu0 %16  }
  0x81   :  { %20 = vst.msk [vmem:[#allocation0 + $0x2] sm:$0x1] %vm7_vm0, %v17_v7  }
  0x88   :  { %v30_v8 = vld [vmem:[#allocation0] sm:$0xf] }
  0x89   :  { %32 = vst [vmem:[%s56_s1] sm:$0xf] %v30_v8 }

// kernel: decoder_block_pallas.4
= control target key start
LH: loop header
LB: loop body
LE: loop exit
PB: predicated region body
PF: predicated region fallthrough
CT: control target
= control target key end

     0   :  { %vm95_vm0 = vcmask 130048   ;;  %vm742_vm1 = vcmask 25600   ;;  %vm673_vm2 = vcmask 31744   ;;  %vm1075_vm3 = vcmask 1040384   ;;  %s2355_s1 = inlined_call_operand.vmem [shape: f32[1,16], index: 1, kind: input, shape index: {}]   ;;  %s2356_s2 = inlined_call_operand.vmem [shape: f32[1,16], index: 2, kind: input, shape index: {}]   ;;  %s2357_s3 = inlined_call_operand.vmem [shape: f32[16,4], index: 3, kind: input, shape index: {}]   ;;  %s2358_s0 = inlined_call_operand.vmem [shape: f32[512,16], index: 0, kind: input, shape index: {}]   ;;  %s2359_s4 = inlined_call_operand.vmem [shape: f32[1,4], index: 4, kind: input, shape index: {}]   ;;  %s2360_s6 = inlined_call_operand.vmem [shape: f32[2,4], index: 6, kind: output, shape index: {1}]   ;;  %s2361_s5 = inlined_call_operand.vmem [shape: f32[512,4], index: 5, kind: output, shape index: {0}]  }
   0x1   :  { %v86_v0 = vld [vmem:[%s2357_s3] sm:$0xff]  ;;  %v87_v1 = vld [vmem:[%s2357_s3 + $0x8] sm:$0xff]  ;;  %v24_v5 = vld [vmem:[%s2358_s0 + $0x10] sm:$0xff] }
   0x2   :  { %v22_v2 = vld [vmem:[%s2358_s0] sm:$0xff]  ;;  %v1319_v3 = vpack.c.bf16 %v87_v1, %v86_v0  ;;  %v23_v4 = vld [vmem:[%s2358_s0 + $0x8] sm:$0xff]  ;;  %v25_v6 = vld [vmem:[%s2358_s0 + $0x18] sm:$0xff] }
   0x3   :  { %1223 = vmatprep.mubr.msk.f32.mxu0 %vm95_vm0, %v22_v2  ;;  %v26_v7 = vld [vmem:[%s2358_s0 + $0x20] sm:$0xff]  ;;  %v55_v9 = vld [vmem:[%s2358_s0 + $0x108] sm:$0xff]  ;;  %v56_v11 = vld [vmem:[%s2358_s0 + $0x110] sm:$0xff] }
   0x4   :  { %1320 = vmatprep.subr.bf16.mxu0 %v1319_v3  ;;  %1323 = vmatprep.subr.bf16.mxu1 %v1319_v3  ;;  %v54_v8 = vld [vmem:[%s2358_s0 + $0x100] sm:$0xff]  ;;  %v27_v10 = vld [vmem:[%s2358_s0 + $0x28] sm:$0xff]  ;;  %v28_v12 = vld [vmem:[%s2358_s0 + $0x30] sm:$0xff] }
   0x5   :  { %1322 = vmatpush3.bf16.msra.mxu0 %v1319_v3  ;;  %1324 = vmatpush3.bf16.msra.mxu1 %v1319_v3  ;;  %v57_v13 = vld [vmem:[%s2358_s0 + $0x118] sm:$0xff]  ;;  %v58_v14 = vld [vmem:[%s2358_s0 + $0x120] sm:$0xff]  ;;  %v59_v17 = vld [vmem:[%s2358_s0 + $0x128] sm:$0xff] }
   0x6   :  { %1271 = vmatprep.mubr.msk.f32.mxu1 %vm95_vm0, %v54_v8  ;;  %v29_v15 = vld [vmem:[%s2358_s0 + $0x38] sm:$0xff]  ;;  %v30_v16 = vld [vmem:[%s2358_s0 + $0x40] sm:$0xff]  ;;  %v60_v18 = vld [vmem:[%s2358_s0 + $0x130] sm:$0xff] }
   0x7   :  { %v31_v19 = vld [vmem:[%s2358_s0 + $0x48] sm:$0xff]  ;;  %v32_v20 = vld [vmem:[%s2358_s0 + $0x50] sm:$0xff]  ;;  %v61_v21 = vld [vmem:[%s2358_s0 + $0x138] sm:$0xff] }
   0x8   :  { %1224 = vmatmul.mubr.msk.f32.vlgmr.msra.gmra.mrb[0].mxu0 %vm95_vm0, %v23_v4  ;;  %1272 = vmatmul.mubr.msk.f32.vlgmr.msra.gmra.mrb[0].mxu1 %vm95_vm0, %v55_v9  ;;  %v62_v22 = vld [vmem:[%s2358_s0 + $0x140] sm:$0xff]  ;;  %v33_v23 = vld [vmem:[%s2358_s0 + $0x58] sm:$0xff]  ;;  %v63_v25 = vld [vmem:[%s2358_s0 + $0x148] sm:$0xff] }
   0x9   :  { %1226 = vmatprep.mubr.msk.f32.mxu0 %vm95_vm0, %v24_v5  ;;  %1274 = vmatprep.mubr.msk.f32.mxu1 %vm95_vm0, %v56_v11  ;;  %v34_v24 = vld [vmem:[%s2358_s0 + $0x60] sm:$0xff]  ;;  %v64_v26 = vld [vmem:[%s2358_s0 + $0x150] sm:$0xff]  ;;  %v35_v27 = vld [vmem:[%s2358_s0 + $0x68] sm:$0xff]  ;;  %v1326_v5 = vmov 0.0  }
   0xa   :  { %v36_v28 = vld [vmem:[%s2358_s0 + $0x70] sm:$0xff]  ;;  %v65_v29 = vld [vmem:[%s2358_s0 + $0x158] sm:$0xff]  ;;  %v66_v30 = vld [vmem:[%s2358_s0 + $0x160] sm:$0xff]  ;;  %743 = vst.msk [vmem:[%s2360_s6] sm:$0x3] %vm742_vm1, %v1326_v5 }
   0xb   :  { %v37_v31 = vld [vmem:[%s2358_s0 + $0x78] sm:$0xff]  ;;  %v38_v32 = vld [vmem:[%s2358_s0 + $0x80] sm:$0xff]  ;;  %v67_v33 = vld [vmem:[%s2358_s0 + $0x168] sm:$0xff] }
   0xc   :  { %1227 = vmatmul.mubr.msk.f32.gmra.mrb[2].mxu0 %vm95_vm0, %v25_v6  ;;  %1275 = vmatmul.mubr.msk.f32.gmra.mrb[2].mxu1 %vm95_vm0, %v57_v13  ;;  %v68_v34 = vld [vmem:[%s2358_s0 + $0x170] sm:$0xff]  ;;  %v39_v35 = vld [vmem:[%s2358_s0 + $0x88] sm:$0xff]  ;;  %v69_v37 = vld [vmem:[%s2358_s0 + $0x178] sm:$0xff] }
   0xd   :  { %1229 = vmatprep.mubr.msk.f32.mxu0 %vm95_vm0, %v26_v7  ;;  %1277 = vmatprep.mubr.msk.f32.mxu1 %vm95_vm0, %v58_v14  ;;  %v40_v36 = vld [vmem:[%s2358_s0 + $0x90] sm:$0xff]  ;;  %v70_v38 = vld [vmem:[%s2358_s0 + $0x180] sm:$0xff]  ;;  %v41_v39 = vld [vmem:[%s2358_s0 + $0x98] sm:$0xff] }
   0xe   :  { %v42_v40 = vld [vmem:[%s2358_s0 + $0xa0] sm:$0xff]  ;;  %v71_v41 = vld [vmem:[%s2358_s0 + $0x188] sm:$0xff]  ;;  %v72_v42 = vld [vmem:[%s2358_s0 + $0x190] sm:$0xff] }
   0xf   :  { %v43_v43 = vld [vmem:[%s2358_s0 + $0xa8] sm:$0xff]  ;;  %v44_v44 = vld [vmem:[%s2358_s0 + $0xb0] sm:$0xff]  ;;  %v73_v45 = vld [vmem:[%s2358_s0 + $0x198] sm:$0xff] }
  0x10   :  { %1230 = vmatmul.mubr.msk.f32.gmra.mrb[4].mxu0 %vm95_vm0, %v27_v10  ;;  %1278 = vmatmul.mubr.msk.f32.gmra.mrb[4].mxu1 %vm95_vm0, %v59_v17  ;;  %v74_v46 = vld [vmem:[%s2358_s0 + $0x1a0] sm:$0xff]  ;;  %v45_v47 = vld [vmem:[%s2358_s0 + $0xb8] sm:$0xff]  ;;  %v75_v49 = vld [vmem:[%s2358_s0 + $0x1a8] sm:$0xff] }
  0x11   :  { %1232 = vmatprep.mubr.msk.f32.mxu0 %vm95_vm0, %v28_v12  ;;  %1280 = vmatprep.mubr.msk.f32.mxu1 %vm95_vm0, %v60_v18  ;;  %v46_v48 = vld [vmem:[%s2358_s0 + $0xc0] sm:$0xff]  ;;  %v76_v50 = vld [vmem:[%s2358_s0 + $0x1b0] sm:$0xff]  ;;  %v47_v51 = vld [vmem:[%s2358_s0 + $0xc8] sm:$0xff] }
  0x12   :  { %v48_v52 = vld [vmem:[%s2358_s0 + $0xd0] sm:$0xff]  ;;  %v77_v53 = vld [vmem:[%s2358_s0 + $0x1b8] sm:$0xff]  ;;  %v78_v54 = vld [vmem:[%s2358_s0 + $0x1c0] sm:$0xff] }
  0x13   :  { %v49_v55 = vld [vmem:[%s2358_s0 + $0xd8] sm:$0xff]  ;;  %v50_v56 = vld [vmem:[%s2358_s0 + $0xe0] sm:$0xff]  ;;  %v79_v57 = vld [vmem:[%s2358_s0 + $0x1c8] sm:$0xff] }
  0x14   :  { %1233 = vmatmul.mubr.msk.f32.gmra.mrb[6].mxu0 %vm95_vm0, %v29_v15  ;;  %1281 = vmatmul.mubr.msk.f32.gmra.mrb[6].mxu1 %vm95_vm0, %v61_v21  ;;  %v80_v58 = vld [vmem:[%s2358_s0 + $0x1d0] sm:$0xff]  ;;  %v51_v59 = vld [vmem:[%s2358_s0 + $0xe8] sm:$0xff]  ;;  %v81_v61 = vld [vmem:[%s2358_s0 + $0x1d8] sm:$0xff] }
  0x15   :  { %1235 = vmatprep.mubr.msk.f32.mxu0 %vm95_vm0, %v30_v16  ;;  %1283 = vmatprep.mubr.msk.f32.mxu1 %vm95_vm0, %v62_v22  ;;  %v52_v60 = vld [vmem:[%s2358_s0 + $0xf0] sm:$0xff]  ;;  %v82_v62 = vld [vmem:[%s2358_s0 + $0x1e0] sm:$0xff]  ;;  %v53_v63 = vld [vmem:[%s2358_s0 + $0xf8] sm:$0xff] }
  0x16   :  { %v83_v0 = vld [vmem:[%s2358_s0 + $0x1e8] sm:$0xff]  ;;  %v84_v1 = vld [vmem:[%s2358_s0 + $0x1f0] sm:$0xff]  ;;  %v85_v2 = vld [vmem:[%s2358_s0 + $0x1f8] sm:$0xff] }
  0x17   :  { %v1627_v3 = vld [vmem:[%s2359_s4] ss:$0 sm:$0xff] }
  0x18   :  { %1236 = vmatmul.mubr.msk.f32.gmra.mrb[8].mxu0 %vm95_vm0, %v31_v19  ;;  %1284 = vmatmul.mubr.msk.f32.gmra.mrb[8].mxu1 %vm95_vm0, %v63_v25 }
  0x19   :  { %1238 = vmatprep.mubr.msk.f32.mxu0 %vm95_vm0, %v32_v20  ;;  %1286 = vmatprep.mubr.msk.f32.mxu1 %vm95_vm0, %v64_v26 }
  0x1c   :  { %1239 = vmatmul.mubr.msk.f32.gmra.mrb[10].mxu0 %vm95_vm0, %v33_v23  ;;  %1287 = vmatmul.mubr.msk.f32.gmra.mrb[10].mxu1 %vm95_vm0, %v65_v29 }
  0x1d   :  { %1241 = vmatprep.mubr.msk.f32.mxu0 %vm95_vm0, %v34_v24  ;;  %1289 = vmatprep.mubr.msk.f32.mxu1 %vm95_vm0, %v66_v30 }
  0x20   :  { %1242 = vmatmul.mubr.msk.f32.gmra.mrb[12].mxu0 %vm95_vm0, %v35_v27  ;;  %1290 = vmatmul.mubr.msk.f32.gmra.mrb[12].mxu1 %vm95_vm0, %v67_v33 }
  0x21   :  { %1244 = vmatprep.mubr.msk.f32.mxu0 %vm95_vm0, %v36_v28  ;;  %1292 = vmatprep.mubr.msk.f32.mxu1 %vm95_vm0, %v68_v34 }
  0x24   :  { %1245 = vmatmul.mubr.msk.f32.gmra.mrb[14].mxu0 %vm95_vm0, %v37_v31  ;;  %1293 = vmatmul.mubr.msk.f32.gmra.mrb[14].mxu1 %vm95_vm0, %v69_v37 }
  0x25   :  { %1247 = vmatprep.mubr.msk.f32.mxu0 %vm95_vm0, %v38_v32  ;;  %1295 = vmatprep.mubr.msk.f32.mxu1 %vm95_vm0, %v70_v38 }
  0x28   :  { %1248 = vmatmul.mubr.msk.f32.gmra.mrb[16].mxu0 %vm95_vm0, %v39_v35  ;;  %1296 = vmatmul.mubr.msk.f32.gmra.mrb[16].mxu1 %vm95_vm0, %v71_v41 }
  0x29   :  { %1250 = vmatprep.mubr.msk.f32.mxu0 %vm95_vm0, %v40_v36  ;;  %1298 = vmatprep.mubr.msk.f32.mxu1 %vm95_vm0, %v72_v42 }
  0x2c   :  { %1251 = vmatmul.mubr.msk.f32.gmra.mrb[18].mxu0 %vm95_vm0, %v41_v39  ;;  %1299 = vmatmul.mubr.msk.f32.gmra.mrb[18].mxu1 %vm95_vm0, %v73_v45 }
  0x2d   :  { %1253 = vmatprep.mubr.msk.f32.mxu0 %vm95_vm0, %v42_v40  ;;  %1301 = vmatprep.mubr.msk.f32.mxu1 %vm95_vm0, %v74_v46 }
  0x30   :  { %1254 = vmatmul.mubr.msk.f32.gmra.mrb[20].mxu0 %vm95_vm0, %v43_v43  ;;  %1302 = vmatmul.mubr.msk.f32.gmra.mrb[20].mxu1 %vm95_vm0, %v75_v49 }
  0x31   :  { %1256 = vmatprep.mubr.msk.f32.mxu0 %vm95_vm0, %v44_v44  ;;  %1304 = vmatprep.mubr.msk.f32.mxu1 %vm95_vm0, %v76_v50 }
  0x34   :  { %1257 = vmatmul.mubr.msk.f32.gmra.mrb[22].mxu0 %vm95_vm0, %v45_v47  ;;  %1305 = vmatmul.mubr.msk.f32.gmra.mrb[22].mxu1 %vm95_vm0, %v77_v53 }
  0x35   :  { %1259 = vmatprep.mubr.msk.f32.mxu0 %vm95_vm0, %v46_v48  ;;  %1307 = vmatprep.mubr.msk.f32.mxu1 %vm95_vm0, %v78_v54 }
  0x38   :  { %1260 = vmatmul.mubr.msk.f32.gmra.mrb[24].mxu0 %vm95_vm0, %v47_v51  ;;  %1308 = vmatmul.mubr.msk.f32.gmra.mrb[24].mxu1 %vm95_vm0, %v79_v57 }
  0x39   :  { %1262 = vmatprep.mubr.msk.f32.mxu0 %vm95_vm0, %v48_v52  ;;  %1310 = vmatprep.mubr.msk.f32.mxu1 %vm95_vm0, %v80_v58 }
  0x3c   :  { %1263 = vmatmul.mubr.msk.f32.gmra.mrb[26].mxu0 %vm95_vm0, %v49_v55  ;;  %1311 = vmatmul.mubr.msk.f32.gmra.mrb[26].mxu1 %vm95_vm0, %v81_v61 }
  0x3d   :  { %1265 = vmatprep.mubr.msk.f32.mxu0 %vm95_vm0, %v50_v56  ;;  %1313 = vmatprep.mubr.msk.f32.mxu1 %vm95_vm0, %v82_v62 }
  0x40   :  { %1266 = vmatmul.mubr.msk.f32.gmra.mrb[28].mxu0 %vm95_vm0, %v51_v59  ;;  %1314 = vmatmul.mubr.msk.f32.gmra.mrb[28].mxu1 %vm95_vm0, %v83_v0 }
  0x41   :  { %1268 = vmatprep.mubr.msk.f32.mxu0 %vm95_vm0, %v52_v60  ;;  %1316 = vmatprep.mubr.msk.f32.mxu1 %vm95_vm0, %v84_v1 }
  0x44   :  { %1269 = vmatmul.mubr.msk.f32.gmra.mrb[30].mxu0 %vm95_vm0, %v53_v63  ;;  %1317 = vmatmul.mubr.msk.f32.gmra.mrb[30].mxu1 %vm95_vm0, %v85_v2 }
  0xdb   :  { %v1225_v4 = vpop.f32.mrb[0].mxu0  ;;  %v1273_v20 = vpop.f32.mrb[0].mxu1 }
  0xdc   :  { %v360_v6 = vadd.f32 %v1225_v4, %v1627_v3  ;;  %v354_v7 = vpop.f32.mrb[1].mxu0  ;;  %v1654_v22 = vadd.f32 %v1273_v20, %v1627_v3  ;;  %v514_v23 = vpop.f32.mrb[1].mxu1 }
  0xdd   :  { %v355_v8 = vadd.f32 %v1627_v3, %v354_v7  ;;  %v1662_v28 = vadd.f32 %v1627_v3, %v514_v23 }
  0xde   :  { %675 = vst.msk [vmem:[%s2361_s5 + $0x8] sm:$0xff] %vm673_vm2, %v360_v6  ;;  %v745_v9 = vsel %vm673_vm2, %v360_v6, 0.0  ;;  %v878_v10 = vmul.f32 %v360_v6, %v360_v6  ;;  %707 = vst.msk [vmem:[%s2361_s5 + $0x108] sm:$0xff] %vm673_vm2, %v1654_v22 }
  0xdf   :  { %674 = vst.msk [vmem:[%s2361_s5] sm:$0xff] %vm673_vm2, %v355_v8  ;;  %v744_v11 = vsel %vm673_vm2, %v355_v8, 0.0  ;;  %v877_v12 = vmul.f32 %v355_v8, %v355_v8  ;;  %v1228_v13 = vpop.f32.mrb[2].mxu0  ;;  %706 = vst.msk [vmem:[%s2361_s5 + $0x100] sm:$0xff] %vm673_vm2, %v1662_v28  ;;  %v1276_v35 = vpop.f32.mrb[2].mxu1 }
  0xe0   :  { %v942_v14 = vsel %vm673_vm2, %v878_v10, 0.0  ;;  %v746_v15 = vadd.f32 %v745_v9, %v744_v11  ;;  %v370_v16 = vadd.f32 %v1228_v13, %v1627_v3  ;;  %v364_v17 = vpop.f32.mrb[3].mxu0  ;;  %v524_v38 = vpop.f32.mrb[3].mxu1  ;;  %v1693_v51 = vadd.f32 %v1276_v35, %v1627_v3 }
  0xe1   :  { %v941_v18 = vsel %vm673_vm2, %v877_v12, 0.0  ;;  %v365_v19 = vadd.f32 %v1627_v3, %v364_v17  ;;  %v1715_v5 = vadd.f32 %v1627_v3, %v524_v38 }
  0xe2   :  { %v943_v21 = vadd.f32 %v942_v14, %v941_v18  ;;  %677 = vst.msk [vmem:[%s2361_s5 + $0x18] sm:$0xff] %vm673_vm2, %v370_v16  ;;  %v880_v24 = vmul.f32 %v370_v16, %v370_v16  ;;  %v749_v32 = vsel %vm673_vm2, %v370_v16, 0.0  ;;  %709 = vst.msk [vmem:[%s2361_s5 + $0x118] sm:$0xff] %vm673_vm2, %v1693_v51 }
  0xe3   :  { %676 = vst.msk [vmem:[%s2361_s5 + $0x10] sm:$0xff] %vm673_vm2, %v365_v19  ;;  %v747_v25 = vsel %vm673_vm2, %v365_v19, 0.0  ;;  %v879_v26 = vmul.f32 %v365_v19, %v365_v19  ;;  %v1231_v27 = vpop.f32.mrb[4].mxu0  ;;  %v1279_v52 = vpop.f32.mrb[4].mxu1  ;;  %708 = vst.msk [vmem:[%s2361_s5 + $0x110] sm:$0xff] %vm673_vm2, %v1715_v5 }
  0xe4   :  { %v748_v29 = vadd.f32 %v747_v25, %v746_v15  ;;  %v380_v30 = vadd.f32 %v1231_v27, %v1627_v3  ;;  %v374_v31 = vpop.f32.mrb[5].mxu0  ;;  %v946_v39 = vsel %vm673_vm2, %v880_v24, 0.0  ;;  %v534_v55 = vpop.f32.mrb[5].mxu1  ;;  %v1739_v23 = vadd.f32 %v1279_v52, %v1627_v3 }
  0xe5   :  { %v944_v33 = vsel %vm673_vm2, %v879_v26, 0.0  ;;  %v375_v34 = vadd.f32 %v1627_v3, %v374_v31 }
  0xe6   :  { %v945_v36 = vadd.f32 %v944_v33, %v943_v21  ;;  %679 = vst.msk [vmem:[%s2361_s5 + $0x28] sm:$0xff] %vm673_vm2, %v380_v30  ;;  %v750_v37 = vadd.f32 %v749_v32, %v748_v29  ;;  %v882_v40 = vmul.f32 %v380_v30, %v380_v30  ;;  %v753_v48 = vsel %vm673_vm2, %v380_v30, 0.0  ;;  %711 = vst.msk [vmem:[%s2361_s5 + $0x128] sm:$0xff] %vm673_vm2, %v1739_v23 }
  0xe7   :  { %678 = vst.msk [vmem:[%s2361_s5 + $0x20] sm:$0xff] %vm673_vm2, %v375_v34  ;;  %v751_v41 = vsel %vm673_vm2, %v375_v34, 0.0  ;;  %v881_v42 = vmul.f32 %v375_v34, %v375_v34  ;;  %v1234_v43 = vpop.f32.mrb[6].mxu0  ;;  %v1282_v6 = vpop.f32.mrb[6].mxu1 }
  0xe8   :  { %v752_v44 = vadd.f32 %v751_v41, %v750_v37  ;;  %v947_v45 = vadd.f32 %v946_v39, %v945_v36  ;;  %v390_v46 = vadd.f32 %v1234_v43, %v1627_v3  ;;  %v384_v47 = vpop.f32.mrb[7].mxu0  ;;  %v950_v56 = vsel %vm673_vm2, %v882_v40, 0.0  ;;  %v1721_v9 = vpop.f32.mrb[7].mxu1 }
  0xe9   :  { %v948_v49 = vsel %vm673_vm2, %v881_v42, 0.0  ;;  %v385_v50 = vadd.f32 %v1627_v3, %v384_v47  ;;  %v1765_v41 = vadd.f32 %v1627_v3, %v534_v55 }
  0xea   :  { %v949_v53 = vadd.f32 %v948_v49, %v947_v45  ;;  %681 = vst.msk [vmem:[%s2361_s5 + $0x38] sm:$0xff] %vm673_vm2, %v390_v46  ;;  %v754_v54 = vadd.f32 %v753_v48, %v752_v44  ;;  %v884_v57 = vmul.f32 %v390_v46, %v390_v46  ;;  %v757_v1 = vsel %vm673_vm2, %v390_v46, 0.0 }
  0xeb   :  { %680 = vst.msk [vmem:[%s2361_s5 + $0x30] sm:$0xff] %vm673_vm2, %v385_v50  ;;  %v755_v58 = vsel %vm673_vm2, %v385_v50, 0.0  ;;  %v883_v59 = vmul.f32 %v385_v50, %v385_v50  ;;  %v1237_v60 = vpop.f32.mrb[8].mxu0  ;;  %v1741_v24 = vpop.f32.mrb[8].mxu1  ;;  %710 = vst.msk [vmem:[%s2361_s5 + $0x120] sm:$0xff] %vm673_vm2, %v1765_v41 }
  0xec   :  { %v756_v61 = vadd.f32 %v755_v58, %v754_v54  ;;  %v951_v62 = vadd.f32 %v950_v56, %v949_v53  ;;  %v400_v63 = vadd.f32 %v1237_v60, %v1627_v3  ;;  %v394_v0 = vpop.f32.mrb[9].mxu0  ;;  %v954_v10 = vsel %vm673_vm2, %v884_v57, 0.0  ;;  %v1747_v27 = vpop.f32.mrb[9].mxu1 }
  0xed   :  { %v952_v2 = vsel %vm673_vm2, %v883_v59, 0.0  ;;  %v395_v4 = vadd.f32 %v1627_v3, %v394_v0  ;;  %v1791_v59 = vadd.f32 %v1282_v6, %v1627_v3 }
  0xee   :  { %v953_v7 = vadd.f32 %v952_v2, %v951_v62  ;;  %683 = vst.msk [vmem:[%s2361_s5 + $0x48] sm:$0xff] %vm673_vm2, %v400_v63  ;;  %v758_v8 = vadd.f32 %v757_v1, %v756_v61  ;;  %v886_v11 = vmul.f32 %v400_v63, %v400_v63  ;;  %v761_v19 = vsel %vm673_vm2, %v400_v63, 0.0 }
  0xef   :  { %682 = vst.msk [vmem:[%s2361_s5 + $0x40] sm:$0xff] %vm673_vm2, %v395_v4  ;;  %v759_v12 = vsel %vm673_vm2, %v395_v4, 0.0  ;;  %v885_v13 = vmul.f32 %v395_v4, %v395_v4  ;;  %v1240_v14 = vpop.f32.mrb[10].mxu0  ;;  %v1767_v42 = vpop.f32.mrb[10].mxu1  ;;  %713 = vst.msk [vmem:[%s2361_s5 + $0x138] sm:$0xff] %vm673_vm2, %v1791_v59 }
  0xf0   :  { %v760_v15 = vadd.f32 %v759_v12, %v758_v8  ;;  %v955_v16 = vadd.f32 %v954_v10, %v953_v7  ;;  %v410_v17 = vadd.f32 %v1240_v14, %v1627_v3  ;;  %v404_v18 = vpop.f32.mrb[11].mxu0  ;;  %v958_v29 = vsel %vm673_vm2, %v886_v11, 0.0  ;;  %v1773_v45 = vpop.f32.mrb[11].mxu1 }
  0xf1   :  { %v956_v20 = vsel %vm673_vm2, %v885_v13, 0.0  ;;  %v405_v21 = vadd.f32 %v1627_v3, %v404_v18 }
  0xf2   :  { %v957_v25 = vadd.f32 %v956_v20, %v955_v16  ;;  %685 = vst.msk [vmem:[%s2361_s5 + $0x58] sm:$0xff] %vm673_vm2, %v410_v17  ;;  %v762_v26 = vadd.f32 %v761_v19, %v760_v15  ;;  %v888_v30 = vmul.f32 %v410_v17, %v410_v17  ;;  %v765_v38 = vsel %vm673_vm2, %v410_v17, 0.0 }
  0xf3   :  { %684 = vst.msk [vmem:[%s2361_s5 + $0x50] sm:$0xff] %vm673_vm2, %v405_v21  ;;  %v763_v31 = vsel %vm673_vm2, %v405_v21, 0.0  ;;  %v887_v32 = vmul.f32 %v405_v21, %v405_v21  ;;  %v1243_v33 = vpop.f32.mrb[12].mxu0  ;;  %v1793_v60 = vpop.f32.mrb[12].mxu1  ;;  %v1818_v15 = vadd.f32 %v1627_v3, %v1721_v9 }
  0xf4   :  { %v764_v34 = vadd.f32 %v763_v31, %v762_v26  ;;  %v959_v35 = vadd.f32 %v958_v29, %v957_v25  ;;  %v420_v36 = vadd.f32 %v1243_v33, %v1627_v3  ;;  %v414_v37 = vpop.f32.mrb[13].mxu0  ;;  %v962_v46 = vsel %vm673_vm2, %v888_v30, 0.0  ;;  %v1799_v63 = vpop.f32.mrb[13].mxu1 }
  0xf5   :  { %v960_v39 = vsel %vm673_vm2, %v887_v32, 0.0  ;;  %v415_v40 = vadd.f32 %v1627_v3, %v414_v37  ;;  %712 = vst.msk [vmem:[%s2361_s5 + $0x130] sm:$0xff] %vm673_vm2, %v1818_v15 }
  0xf6   :  { %v961_v43 = vadd.f32 %v960_v39, %v959_v35  ;;  %687 = vst.msk [vmem:[%s2361_s5 + $0x68] sm:$0xff] %vm673_vm2, %v420_v36  ;;  %v766_v44 = vadd.f32 %v765_v38, %v764_v34  ;;  %v890_v47 = vmul.f32 %v420_v36, %v420_v36  ;;  %v769_v56 = vsel %vm673_vm2, %v420_v36, 0.0 }
  0xf7   :  { %686 = vst.msk [vmem:[%s2361_s5 + $0x60] sm:$0xff] %vm673_vm2, %v415_v40  ;;  %v767_v48 = vsel %vm673_vm2, %v415_v40, 0.0  ;;  %v889_v49 = vmul.f32 %v415_v40, %v415_v40  ;;  %v1246_v50 = vpop.f32.mrb[14].mxu0  ;;  %v1820_v16 = vpop.f32.mrb[14].mxu1  ;;  %v1845_v36 = vadd.f32 %v1741_v24, %v1627_v3 }
  0xf8   :  { %v768_v52 = vadd.f32 %v767_v48, %v766_v44  ;;  %v963_v53 = vadd.f32 %v962_v46, %v961_v43  ;;  %v430_v54 = vadd.f32 %v1246_v50, %v1627_v3  ;;  %v424_v55 = vpop.f32.mrb[15].mxu0  ;;  %v966_v0 = vsel %vm673_vm2, %v890_v47, 0.0  ;;  %v1826_v19 = vpop.f32.mrb[15].mxu1 }
  0xf9   :  { %v964_v57 = vsel %vm673_vm2, %v889_v49, 0.0  ;;  %v425_v58 = vadd.f32 %v1627_v3, %v424_v55  ;;  %715 = vst.msk [vmem:[%s2361_s5 + $0x148] sm:$0xff] %vm673_vm2, %v1845_v36 }
  0xfa   :  { %v965_v61 = vadd.f32 %v964_v57, %v963_v53  ;;  %689 = vst.msk [vmem:[%s2361_s5 + $0x78] sm:$0xff] %vm673_vm2, %v430_v54  ;;  %v770_v62 = vadd.f32 %v769_v56, %v768_v52  ;;  %v892_v1 = vmul.f32 %v430_v54, %v430_v54  ;;  %v773_v12 = vsel %vm673_vm2, %v430_v54, 0.0 }
  0xfb   :  { %688 = vst.msk [vmem:[%s2361_s5 + $0x70] sm:$0xff] %vm673_vm2, %v425_v58  ;;  %v771_v2 = vsel %vm673_vm2, %v425_v58, 0.0  ;;  %v891_v4 = vmul.f32 %v425_v58, %v425_v58  ;;  %v1249_v6 = vpop.f32.mrb[16].mxu0  ;;  %v1847_v37 = vpop.f32.mrb[16].mxu1  ;;  %v1872_v56 = vadd.f32 %v1627_v3, %v1747_v27 }
  0xfc   :  { %v772_v7 = vadd.f32 %v771_v2, %v770_v62  ;;  %v967_v8 = vadd.f32 %v966_v0, %v965_v61  ;;  %v440_v10 = vadd.f32 %v1249_v6, %v1627_v3  ;;  %v434_v11 = vpop.f32.mrb[17].mxu0  ;;  %v970_v20 = vsel %vm673_vm2, %v892_v1, 0.0  ;;  %v1853_v40 = vpop.f32.mrb[17].mxu1 }
  0xfd   :  { %v968_v13 = vsel %vm673_vm2, %v891_v4, 0.0  ;;  %v435_v14 = vadd.f32 %v1627_v3, %v434_v11  ;;  %714 = vst.msk [vmem:[%s2361_s5 + $0x140] sm:$0xff] %vm673_vm2, %v1872_v56 }
  0xfe   :  { %v969_v17 = vadd.f32 %v968_v13, %v967_v8  ;;  %691 = vst.msk [vmem:[%s2361_s5 + $0x88] sm:$0xff] %vm673_vm2, %v440_v10  ;;  %v774_v18 = vadd.f32 %v773_v12, %v772_v7  ;;  %v894_v21 = vmul.f32 %v440_v10, %v440_v10  ;;  %v777_v33 = vsel %vm673_vm2, %v440_v10, 0.0 }
  0xff   :  { %690 = vst.msk [vmem:[%s2361_s5 + $0x80] sm:$0xff] %vm673_vm2, %v435_v14  ;;  %v775_v9 = vsel %vm673_vm2, %v435_v14, 0.0  ;;  %v893_v25 = vmul.f32 %v435_v14, %v435_v14  ;;  %v1252_v26 = vpop.f32.mrb[18].mxu0  ;;  %v1874_v57 = vpop.f32.mrb[18].mxu1  ;;  %v1899_v14 = vadd.f32 %v1767_v42, %v1627_v3 }
 0x100   :  { %v776_v29 = vadd.f32 %v775_v9, %v774_v18  ;;  %v971_v30 = vadd.f32 %v970_v20, %v969_v17  ;;  %v450_v31 = vadd.f32 %v1252_v26, %v1627_v3  ;;  %v444_v32 = vpop.f32.mrb[19].mxu0  ;;  %v974_v43 = vsel %vm673_vm2, %v894_v21, 0.0  ;;  %v1880_v62 = vpop.f32.mrb[19].mxu1 }
 0x101   :  { %v972_v34 = vsel %vm673_vm2, %v893_v25, 0.0  ;;  %v445_v35 = vadd.f32 %v1627_v3, %v444_v32  ;;  %717 = vst.msk [vmem:[%s2361_s5 + $0x158] sm:$0xff] %vm673_vm2, %v1899_v14 }
 0x102   :  { %v973_v38 = vadd.f32 %v972_v34, %v971_v30  ;;  %693 = vst.msk [vmem:[%s2361_s5 + $0x98] sm:$0xff] %vm673_vm2, %v450_v31  ;;  %v778_v39 = vadd.f32 %v777_v33, %v776_v29  ;;  %v896_v44 = vmul.f32 %v450_v31, %v450_v31  ;;  %v781_v53 = vsel %vm673_vm2, %v450_v31, 0.0 }
 0x103   :  { %692 = vst.msk [vmem:[%s2361_s5 + $0x90] sm:$0xff] %vm673_vm2, %v445_v35  ;;  %v779_v24 = vsel %vm673_vm2, %v445_v35, 0.0  ;;  %v895_v46 = vmul.f32 %v445_v35, %v445_v35  ;;  %v1255_v47 = vpop.f32.mrb[20].mxu0  ;;  %v1901_v17 = vpop.f32.mrb[20].mxu1 }
 0x104   :  { %v780_v48 = vadd.f32 %v779_v24, %v778_v39  ;;  %v975_v49 = vadd.f32 %v974_v43, %v973_v38  ;;  %v460_v50 = vadd.f32 %v1255_v47, %v1627_v3  ;;  %v454_v52 = vpop.f32.mrb[21].mxu0  ;;  %v978_v0 = vsel %vm673_vm2, %v896_v44, 0.0  ;;  %v1907_v21 = vpop.f32.mrb[21].mxu1 }
 0x105   :  { %v976_v54 = vsel %vm673_vm2, %v895_v46, 0.0  ;;  %v455_v55 = vadd.f32 %v1627_v3, %v454_v52  ;;  %v1926_v39 = vadd.f32 %v1627_v3, %v1773_v45 }
 0x106   :  { %v977_v58 = vadd.f32 %v976_v54, %v975_v49  ;;  %695 = vst.msk [vmem:[%s2361_s5 + $0xa8] sm:$0xff] %vm673_vm2, %v460_v50  ;;  %v782_v61 = vadd.f32 %v781_v53, %v780_v48  ;;  %v898_v1 = vmul.f32 %v460_v50, %v460_v50  ;;  %v785_v11 = vsel %vm673_vm2, %v460_v50, 0.0 }
 0x107   :  { %694 = vst.msk [vmem:[%s2361_s5 + $0xa0] sm:$0xff] %vm673_vm2, %v455_v55  ;;  %v783_v27 = vsel %vm673_vm2, %v455_v55, 0.0  ;;  %v897_v2 = vmul.f32 %v455_v55, %v455_v55  ;;  %v1258_v4 = vpop.f32.mrb[22].mxu0  ;;  %v1928_v43 = vpop.f32.mrb[22].mxu1  ;;  %716 = vst.msk [vmem:[%s2361_s5 + $0x150] sm:$0xff] %vm673_vm2, %v1926_v39 }
 0x108   :  { %v784_v6 = vadd.f32 %v783_v27, %v782_v61  ;;  %v979_v7 = vadd.f32 %v978_v0, %v977_v58  ;;  %v470_v8 = vadd.f32 %v1258_v4, %v1627_v3  ;;  %v464_v10 = vpop.f32.mrb[23].mxu0  ;;  %v982_v9 = vsel %vm673_vm2, %v898_v1, 0.0  ;;  %v1934_v46 = vpop.f32.mrb[23].mxu1 }
 0x109   :  { %v980_v12 = vsel %vm673_vm2, %v897_v2, 0.0  ;;  %v465_v13 = vadd.f32 %v1627_v3, %v464_v10  ;;  %v1953_v1 = vadd.f32 %v1793_v60, %v1627_v3 }
 0x10a   :  { %v981_v18 = vadd.f32 %v980_v12, %v979_v7  ;;  %697 = vst.msk [vmem:[%s2361_s5 + $0xb8] sm:$0xff] %vm673_vm2, %v470_v8  ;;  %v786_v20 = vadd.f32 %v785_v11, %v784_v6  ;;  %v900_v25 = vmul.f32 %v470_v8, %v470_v8  ;;  %v789_v34 = vsel %vm673_vm2, %v470_v8, 0.0 }
 0x10b   :  { %696 = vst.msk [vmem:[%s2361_s5 + $0xb0] sm:$0xff] %vm673_vm2, %v465_v13  ;;  %v787_v42 = vsel %vm673_vm2, %v465_v13, 0.0  ;;  %v899_v26 = vmul.f32 %v465_v13, %v465_v13  ;;  %v1261_v29 = vpop.f32.mrb[24].mxu0  ;;  %v1955_v27 = vpop.f32.mrb[24].mxu1  ;;  %719 = vst.msk [vmem:[%s2361_s5 + $0x168] sm:$0xff] %vm673_vm2, %v1953_v1 }
 0x10c   :  { %v788_v30 = vadd.f32 %v787_v42, %v786_v20  ;;  %v983_v31 = vadd.f32 %v982_v9, %v981_v18  ;;  %v480_v32 = vadd.f32 %v1261_v29, %v1627_v3  ;;  %v474_v33 = vpop.f32.mrb[25].mxu0  ;;  %v986_v47 = vsel %vm673_vm2, %v900_v25, 0.0  ;;  %v1961_v6 = vpop.f32.mrb[25].mxu1 }
 0x10d   :  { %v984_v35 = vsel %vm673_vm2, %v899_v26, 0.0  ;;  %v475_v38 = vadd.f32 %v1627_v3, %v474_v33  ;;  %v1980_v26 = vadd.f32 %v1627_v3, %v1799_v63 }
 0x10e   :  { %v985_v44 = vadd.f32 %v984_v35, %v983_v31  ;;  %699 = vst.msk [vmem:[%s2361_s5 + $0xc8] sm:$0xff] %vm673_vm2, %v480_v32  ;;  %v790_v24 = vadd.f32 %v789_v34, %v788_v30  ;;  %v902_v48 = vmul.f32 %v480_v32, %v480_v32  ;;  %v793_v58 = vsel %vm673_vm2, %v480_v32, 0.0 }
 0x10f   :  { %698 = vst.msk [vmem:[%s2361_s5 + $0xc0] sm:$0xff] %vm673_vm2, %v475_v38  ;;  %v791_v45 = vsel %vm673_vm2, %v475_v38, 0.0  ;;  %v901_v49 = vmul.f32 %v475_v38, %v475_v38  ;;  %v1264_v50 = vpop.f32.mrb[26].mxu0  ;;  %v1982_v29 = vpop.f32.mrb[26].mxu1  ;;  %718 = vst.msk [vmem:[%s2361_s5 + $0x160] sm:$0xff] %vm673_vm2, %v1980_v26 }
 0x110   :  { %v792_v52 = vadd.f32 %v791_v45, %v790_v24  ;;  %v987_v53 = vadd.f32 %v986_v47, %v985_v44  ;;  %v490_v54 = vadd.f32 %v1264_v50, %v1627_v3  ;;  %v484_v55 = vpop.f32.mrb[27].mxu0  ;;  %v990_v7 = vsel %vm673_vm2, %v902_v48, 0.0  ;;  %v1988_v32 = vpop.f32.mrb[27].mxu1 }
 0x111   :  { %v988_v61 = vsel %vm673_vm2, %v901_v49, 0.0  ;;  %v485_v0 = vadd.f32 %v1627_v3, %v484_v55 }
 0x112   :  { %v989_v2 = vadd.f32 %v988_v61, %v987_v53  ;;  %701 = vst.msk [vmem:[%s2361_s5 + $0xd8] sm:$0xff] %vm673_vm2, %v490_v54  ;;  %v794_v4 = vadd.f32 %v793_v58, %v792_v52  ;;  %v904_v8 = vmul.f32 %v490_v54, %v490_v54  ;;  %v797_v9 = vsel %vm673_vm2, %v490_v54, 0.0 }
 0x113   :  { %700 = vst.msk [vmem:[%s2361_s5 + $0xd0] sm:$0xff] %vm673_vm2, %v485_v0  ;;  %v795_v60 = vsel %vm673_vm2, %v485_v0, 0.0  ;;  %v903_v10 = vmul.f32 %v485_v0, %v485_v0  ;;  %v1267_v11 = vpop.f32.mrb[28].mxu0  ;;  %v2007_v52 = vadd.f32 %v1820_v16, %v1627_v3  ;;  %v2009_v53 = vpop.f32.mrb[28].mxu1  ;;  %v909_v58 = vmul.f32 %v1662_v28, %v1662_v28 }
 0x114   :  { %v796_v12 = vadd.f32 %v795_v60, %v794_v4  ;;  %v991_v13 = vadd.f32 %v990_v7, %v989_v2  ;;  %v500_v18 = vadd.f32 %v1267_v11, %v1627_v3  ;;  %v494_v20 = vpop.f32.mrb[29].mxu0  ;;  %v994_v33 = vsel %vm673_vm2, %v904_v8, 0.0  ;;  %v2017_v61 = vpop.f32.mrb[29].mxu1 }
 0x115   :  { %v992_v25 = vsel %vm673_vm2, %v903_v10, 0.0  ;;  %v495_v42 = vadd.f32 %v1627_v3, %v494_v20  ;;  %721 = vst.msk [vmem:[%s2361_s5 + $0x178] sm:$0xff] %vm673_vm2, %v2007_v52  ;;  %v807_v60 = vsel %vm673_vm2, %v1662_v28, 0.0  ;;  %v2034_v10 = vadd.f32 %v1627_v3, %v1826_v19 }
 0x116   :  { %v993_v30 = vadd.f32 %v992_v25, %v991_v13  ;;  %703 = vst.msk [vmem:[%s2361_s5 + $0xe8] sm:$0xff] %vm673_vm2, %v500_v18  ;;  %v798_v31 = vadd.f32 %v797_v9, %v796_v12  ;;  %v906_v34 = vmul.f32 %v500_v18, %v500_v18  ;;  %v801_v45 = vsel %vm673_vm2, %v500_v18, 0.0 }
 0x117   :  { %702 = vst.msk [vmem:[%s2361_s5 + $0xe0] sm:$0xff] %vm673_vm2, %v495_v42  ;;  %v799_v63 = vsel %vm673_vm2, %v495_v42, 0.0  ;;  %v905_v35 = vmul.f32 %v495_v42, %v495_v42  ;;  %v1270_v38 = vpop.f32.mrb[30].mxu0  ;;  %v2040_v13 = vadd.f32 %v1847_v37, %v1627_v3  ;;  %v2044_v18 = vadd.f32 %v1627_v3, %v1853_v40  ;;  %v2046_v20 = vpop.f32.mrb[30].mxu1  ;;  %720 = vst.msk [vmem:[%s2361_s5 + $0x170] sm:$0xff] %vm673_vm2, %v2034_v10 }
 0x118   :  { %v800_v44 = vadd.f32 %v799_v63, %v798_v31  ;;  %v995_v24 = vadd.f32 %v994_v33, %v993_v30  ;;  %v510_v47 = vadd.f32 %v1270_v38, %v1627_v3  ;;  %v504_v48 = vpop.f32.mrb[31].mxu0  ;;  %v998_v0 = vsel %vm673_vm2, %v906_v34, 0.0  ;;  %v2053_v19 = vpop.f32.mrb[31].mxu1 }
 0x119   :  { %v996_v49 = vsel %vm673_vm2, %v905_v35, 0.0  ;;  %v505_v50 = vadd.f32 %v1627_v3, %v504_v48  ;;  %v910_v37 = vmul.f32 %v1654_v22, %v1654_v22  ;;  %v1004_v40 = vsel %vm673_vm2, %v909_v58, 0.0  ;;  %723 = vst.msk [vmem:[%s2361_s5 + $0x188] sm:$0xff] %vm673_vm2, %v2040_v13  ;;  %722 = vst.msk [vmem:[%s2361_s5 + $0x180] sm:$0xff] %vm673_vm2, %v2044_v18 }
 0x11a   :  { %v997_v54 = vadd.f32 %v996_v49, %v995_v24  ;;  %705 = vst.msk [vmem:[%s2361_s5 + $0xf8] sm:$0xff] %vm673_vm2, %v510_v47  ;;  %v802_v55 = vadd.f32 %v801_v45, %v800_v44  ;;  %v908_v2 = vmul.f32 %v510_v47, %v510_v47  ;;  %v805_v11 = vsel %vm673_vm2, %v510_v47, 0.0 }
 0x11b   :  { %704 = vst.msk [vmem:[%s2361_s5 + $0xf0] sm:$0xff] %vm673_vm2, %v505_v50  ;;  %v803_v16 = vsel %vm673_vm2, %v505_v50, 0.0  ;;  %v907_v4 = vmul.f32 %v505_v50, %v505_v50  ;;  %v911_v42 = vmul.f32 %v1715_v5, %v1715_v5  ;;  %v2073_v33 = vadd.f32 %v1874_v57, %v1627_v3 }
 0x11c   :  { %v804_v7 = vadd.f32 %v803_v16, %v802_v55  ;;  %v999_v8 = vadd.f32 %v998_v0, %v997_v54  ;;  %v1002_v25 = vsel %vm673_vm2, %v908_v2, 0.0  ;;  %v809_v34 = vsel %vm673_vm2, %v1654_v22, 0.0 }
 0x11d   :  { %v1000_v12 = vsel %vm673_vm2, %v907_v4, 0.0  ;;  %v811_v63 = vsel %vm673_vm2, %v1715_v5, 0.0  ;;  %v2081_v35 = vadd.f32 %v1627_v3, %v1880_v62  ;;  %v2085_v38 = vadd.f32 %v1901_v17, %v1627_v3  ;;  %725 = vst.msk [vmem:[%s2361_s5 + $0x198] sm:$0xff] %vm673_vm2, %v2073_v33 }
 0x11e   :  { %v1001_v9 = vadd.f32 %v1000_v12, %v999_v8  ;;  %v806_v28 = vadd.f32 %v805_v11, %v804_v7  ;;  %v1006_v22 = vsel %vm673_vm2, %v910_v37, 0.0  ;;  %v912_v5 = vmul.f32 %v1693_v51, %v1693_v51 }
 0x11f   :  { %v1008_v57 = vsel %vm673_vm2, %v911_v42, 0.0  ;;  %v913_v62 = vmul.f32 %v1765_v41, %v1765_v41  ;;  %724 = vst.msk [vmem:[%s2361_s5 + $0x190] sm:$0xff] %vm673_vm2, %v2081_v35  ;;  %727 = vst.msk [vmem:[%s2361_s5 + $0x1a8] sm:$0xff] %vm673_vm2, %v2085_v38  ;;  %v2110_v48 = vadd.f32 %v1627_v3, %v1907_v21  ;;  %v813_v45 = vsel %vm673_vm2, %v1693_v51, 0.0 }
 0x120   :  { %v808_v30 = vadd.f32 %v807_v60, %v806_v28  ;;  %v1003_v31 = vadd.f32 %v1002_v25, %v1001_v9  ;;  %v815_v49 = vsel %vm673_vm2, %v1765_v41, 0.0  ;;  %v2118_v50 = vadd.f32 %v1928_v43, %v1627_v3 }
 0x121   :  { %v2122_v54 = vadd.f32 %v1627_v3, %v1934_v46  ;;  %726 = vst.msk [vmem:[%s2361_s5 + $0x1a0] sm:$0xff] %vm673_vm2, %v2110_v48  ;;  %v1010_v51 = vsel %vm673_vm2, %v912_v5, 0.0  ;;  %v914_v41 = vmul.f32 %v1739_v23, %v1739_v23  ;;  %v1012_v21 = vsel %vm673_vm2, %v913_v62, 0.0 }
 0x122   :  { %v1005_v44 = vadd.f32 %v1004_v40, %v1003_v31  ;;  %v810_v24 = vadd.f32 %v809_v34, %v808_v30  ;;  %v915_v43 = vmul.f32 %v1818_v15, %v1818_v15  ;;  %729 = vst.msk [vmem:[%s2361_s5 + $0x1b8] sm:$0xff] %vm673_vm2, %v2118_v50  ;;  %v2147_v2 = vadd.f32 %v1955_v27, %v1627_v3 }
 0x123   :  { %728 = vst.msk [vmem:[%s2361_s5 + $0x1b0] sm:$0xff] %vm673_vm2, %v2122_v54  ;;  %v817_v16 = vsel %vm673_vm2, %v1739_v23, 0.0  ;;  %v819_v4 = vsel %vm673_vm2, %v1818_v15, 0.0  ;;  %v2155_v7 = vadd.f32 %v1627_v3, %v1961_v6  ;;  %v2159_v8 = vadd.f32 %v1982_v29, %v1627_v3 }
 0x124   :  { %v812_v17 = vadd.f32 %v811_v63, %v810_v24  ;;  %v1007_v47 = vadd.f32 %v1006_v22, %v1005_v44  ;;  %731 = vst.msk [vmem:[%s2361_s5 + $0x1c8] sm:$0xff] %vm673_vm2, %v2147_v2  ;;  %v1014_v23 = vsel %vm673_vm2, %v914_v41, 0.0  ;;  %v916_v15 = vmul.f32 %v1791_v59, %v1791_v59 }
 0x125   :  { %v1016_v27 = vsel %vm673_vm2, %v915_v43, 0.0  ;;  %v917_v6 = vmul.f32 %v1872_v56, %v1872_v56  ;;  %730 = vst.msk [vmem:[%s2361_s5 + $0x1c0] sm:$0xff] %vm673_vm2, %v2155_v7  ;;  %733 = vst.msk [vmem:[%s2361_s5 + $0x1d8] sm:$0xff] %vm673_vm2, %v2159_v8  ;;  %v2184_v9 = vadd.f32 %v1627_v3, %v1988_v32  ;;  %v821_v28 = vsel %vm673_vm2, %v1791_v59, 0.0 }
 0x126   :  { %v1009_v55 = vadd.f32 %v1008_v57, %v1007_v47  ;;  %v814_v58 = vadd.f32 %v813_v45, %v812_v17  ;;  %v823_v25 = vsel %vm673_vm2, %v1872_v56, 0.0  ;;  %v2192_v37 = vadd.f32 %v2009_v53, %v1627_v3 }
 0x127   :  { %v2196_v40 = vadd.f32 %v1627_v3, %v2017_v61  ;;  %732 = vst.msk [vmem:[%s2361_s5 + $0x1d0] sm:$0xff] %vm673_vm2, %v2184_v9  ;;  %v1018_v59 = vsel %vm673_vm2, %v916_v15, 0.0  ;;  %v918_v56 = vmul.f32 %v1845_v36, %v1845_v36  ;;  %v1020_v32 = vsel %vm673_vm2, %v917_v6, 0.0 }
 0x128   :  { %v816_v46 = vadd.f32 %v815_v49, %v814_v58  ;;  %v1011_v0 = vadd.f32 %v1010_v51, %v1009_v55  ;;  %v919_v53 = vmul.f32 %v1926_v39, %v1926_v39  ;;  %735 = vst.msk [vmem:[%s2361_s5 + $0x1e8] sm:$0xff] %vm673_vm2, %v2192_v37  ;;  %v2221_v34 = vadd.f32 %v2046_v20, %v1627_v3 }
 0x129   :  { %734 = vst.msk [vmem:[%s2361_s5 + $0x1e0] sm:$0xff] %vm673_vm2, %v2196_v40  ;;  %v825_v63 = vsel %vm673_vm2, %v1845_v36, 0.0  ;;  %v827_v44 = vsel %vm673_vm2, %v1926_v39, 0.0  ;;  %v2229_v24 = vadd.f32 %v1627_v3, %v2053_v19  ;;  %v1022_v20 = vsel %vm673_vm2, %v918_v56, 0.0 }
 0x12a   :  { %v1013_v60 = vadd.f32 %v1012_v21, %v1011_v0  ;;  %v818_v11 = vadd.f32 %v817_v16, %v816_v46  ;;  %737 = vst.msk [vmem:[%s2361_s5 + $0x1f8] sm:$0xff] %vm673_vm2, %v2221_v34  ;;  %v920_v36 = vmul.f32 %v1899_v14, %v1899_v14  ;;  %v1024_v57 = vsel %vm673_vm2, %v919_v53, 0.0 }
 0x12b   :  { %v921_v39 = vmul.f32 %v1980_v26, %v1980_v26  ;;  %736 = vst.msk [vmem:[%s2361_s5 + $0x1f0] sm:$0xff] %vm673_vm2, %v2229_v24  ;;  %v829_v62 = vsel %vm673_vm2, %v1899_v14, 0.0  ;;  %v831_v17 = vsel %vm673_vm2, %v1980_v26, 0.0  ;;  %v922_v55 = vmul.f32 %v1953_v1, %v1953_v1 }
 0x12c   :  { %v820_v29 = vadd.f32 %v819_v4, %v818_v11  ;;  %v1015_v12 = vadd.f32 %v1014_v23, %v1013_v60  ;;  %v1026_v49 = vsel %vm673_vm2, %v920_v36, 0.0  ;;  %v923_v51 = vmul.f32 %v2034_v10, %v2034_v10 }
 0x12d   :  { %v1028_v58 = vsel %vm673_vm2, %v921_v39, 0.0  ;;  %v833_v14 = vsel %vm673_vm2, %v1953_v1, 0.0  ;;  %v835_v26 = vsel %vm673_vm2, %v2034_v10, 0.0  ;;  %v1030_v0 = vsel %vm673_vm2, %v922_v55, 0.0 }
 0x12e   :  { %v1017_v42 = vadd.f32 %v1016_v27, %v1015_v12  ;;  %v822_v30 = vadd.f32 %v821_v28, %v820_v29  ;;  %v924_v16 = vmul.f32 %v2007_v52, %v2007_v52  ;;  %v1032_v4 = vsel %vm673_vm2, %v923_v51, 0.0 }
 0x12f   :  { %v925_v60 = vmul.f32 %v2044_v18, %v2044_v18  ;;  %v837_v1 = vsel %vm673_vm2, %v2007_v52, 0.0  ;;  %v839_v10 = vsel %vm673_vm2, %v2044_v18, 0.0  ;;  %v926_v29 = vmul.f32 %v2040_v13, %v2040_v13 }
 0x130   :  { %v824_v61 = vadd.f32 %v823_v25, %v822_v30  ;;  %v1019_v31 = vadd.f32 %v1018_v59, %v1017_v42  ;;  %v1034_v6 = vsel %vm673_vm2, %v924_v16, 0.0  ;;  %v927_v28 = vmul.f32 %v2081_v35, %v2081_v35 }
 0x131   :  { %v1036_v12 = vsel %vm673_vm2, %v925_v60, 0.0  ;;  %v841_v52 = vsel %vm673_vm2, %v2040_v13, 0.0  ;;  %v843_v18 = vsel %vm673_vm2, %v2081_v35, 0.0  ;;  %v1038_v56 = vsel %vm673_vm2, %v926_v29, 0.0 }
 0x132   :  { %v1021_v22 = vadd.f32 %v1020_v32, %v1019_v31  ;;  %v826_v5 = vadd.f32 %v825_v63, %v824_v61  ;;  %v928_v32 = vmul.f32 %v2073_v33, %v2073_v33  ;;  %v1040_v53 = vsel %vm673_vm2, %v927_v28, 0.0 }
 0x133   :  { %v929_v61 = vmul.f32 %v2110_v48, %v2110_v48  ;;  %v845_v13 = vsel %vm673_vm2, %v2073_v33, 0.0  ;;  %v847_v35 = vsel %vm673_vm2, %v2110_v48, 0.0  ;;  %v849_v33 = vsel %vm673_vm2, %v2085_v38, 0.0 }
 0x134   :  { %v828_v3 = vadd.f32 %v827_v44, %v826_v5  ;;  %v1023_v19 = vadd.f32 %v1022_v20, %v1021_v22  ;;  %v1042_v5 = vsel %vm673_vm2, %v928_v32, 0.0  ;;  %v930_v20 = vmul.f32 %v2085_v38, %v2085_v38 }
 0x135   :  { %v1044_v36 = vsel %vm673_vm2, %v929_v61, 0.0  ;;  %v851_v48 = vsel %vm673_vm2, %v2122_v54, 0.0  ;;  %v853_v38 = vsel %vm673_vm2, %v2118_v50, 0.0 }
 0x136   :  { %v1025_v47 = vadd.f32 %v1024_v57, %v1023_v19  ;;  %v830_v45 = vadd.f32 %v829_v62, %v828_v3  ;;  %v931_v57 = vmul.f32 %v2122_v54, %v2122_v54  ;;  %v855_v54 = vsel %vm673_vm2, %v2155_v7, 0.0 }
 0x138   :  { %v832_v41 = vadd.f32 %v831_v17, %v830_v45  ;;  %v1027_v21 = vadd.f32 %v1026_v49, %v1025_v47  ;;  %v1046_v17 = vsel %vm673_vm2, %v930_v20, 0.0  ;;  %v932_v47 = vmul.f32 %v2118_v50, %v2118_v50 }
 0x139   :  { %v1048_v45 = vsel %vm673_vm2, %v931_v57, 0.0  ;;  %v933_v49 = vmul.f32 %v2155_v7, %v2155_v7  ;;  %v857_v50 = vsel %vm673_vm2, %v2147_v2, 0.0  ;;  %v859_v7 = vsel %vm673_vm2, %v2184_v9, 0.0 }
 0x13a   :  { %v1029_v43 = vadd.f32 %v1028_v58, %v1027_v21  ;;  %v834_v46 = vadd.f32 %v833_v14, %v832_v41  ;;  %v1050_v21 = vsel %vm673_vm2, %v932_v47, 0.0  ;;  %v934_v14 = vmul.f32 %v2147_v2, %v2147_v2 }
 0x13b   :  { %v861_v2 = vsel %vm673_vm2, %v2159_v8, 0.0 }
 0x13c   :  { %v836_v11 = vadd.f32 %v835_v26, %v834_v46  ;;  %v1031_v23 = vadd.f32 %v1030_v0, %v1029_v43  ;;  %v1052_v26 = vsel %vm673_vm2, %v933_v49, 0.0  ;;  %v935_v43 = vmul.f32 %v2184_v9, %v2184_v9 }
 0x13d   :  { %v1054_v60 = vsel %vm673_vm2, %v934_v14, 0.0  ;;  %v863_v9 = vsel %vm673_vm2, %v2196_v40, 0.0 }
 0x13e   :  { %v1033_v15 = vadd.f32 %v1032_v4, %v1031_v23  ;;  %v838_v27 = vadd.f32 %v837_v1, %v836_v11  ;;  %v936_v11 = vmul.f32 %v2159_v8, %v2159_v8  ;;  %v1056_v23 = vsel %vm673_vm2, %v935_v43, 0.0 }
 0x13f   :  { %v937_v1 = vmul.f32 %v2196_v40, %v2196_v40  ;;  %v865_v8 = vsel %vm673_vm2, %v2192_v37, 0.0  ;;  %v867_v40 = vsel %vm673_vm2, %v2229_v24, 0.0 }
 0x140   :  { %v840_v25 = vadd.f32 %v839_v10, %v838_v27  ;;  %v1035_v42 = vadd.f32 %v1034_v6, %v1033_v15  ;;  %v1058_v29 = vsel %vm673_vm2, %v936_v11, 0.0 }
 0x141   :  { %v1060_v28 = vsel %vm673_vm2, %v937_v1, 0.0 }
 0x142   :  { %v1037_v30 = vadd.f32 %v1036_v12, %v1035_v42  ;;  %v842_v59 = vadd.f32 %v841_v52, %v840_v25  ;;  %v938_v12 = vmul.f32 %v2192_v37, %v2192_v37  ;;  %v939_v25 = vmul.f32 %v2229_v24, %v2229_v24 }
 0x144   :  { %v844_v31 = vadd.f32 %v843_v18, %v842_v59  ;;  %v1039_v63 = vadd.f32 %v1038_v56, %v1037_v30  ;;  %v1062_v59 = vsel %vm673_vm2, %v938_v12, 0.0  ;;  %v940_v56 = vmul.f32 %v2221_v34, %v2221_v34 }
 0x145   :  { %v1064_v32 = vsel %vm673_vm2, %v939_v25, 0.0 }
 0x146   :  { %v1041_v44 = vadd.f32 %v1040_v53, %v1039_v63  ;;  %v846_v22 = vadd.f32 %v845_v13, %v844_v31  ;;  %v869_v31 = vsel %vm673_vm2, %v2221_v34, 0.0  ;;  %v1066_v37 = vsel %vm673_vm2, %v940_v56, 0.0  ;;  %v1074_v34 = vld [vmem:[%s2360_s6] sm:$0x3] }
 0x148   :  { %v848_v39 = vadd.f32 %v847_v35, %v846_v22  ;;  %v1043_v3 = vadd.f32 %v1042_v5, %v1041_v44 }
 0x14a   :  { %v1045_v19 = vadd.f32 %v1044_v36, %v1043_v3  ;;  %v850_v62 = vadd.f32 %v849_v33, %v848_v39 }
 0x14c   :  { %v852_v55 = vadd.f32 %v851_v48, %v850_v62  ;;  %v1047_v58 = vadd.f32 %v1046_v17, %v1045_v19 }
 0x14e   :  { %v1049_v51 = vadd.f32 %v1048_v45, %v1047_v58  ;;  %v854_v41 = vadd.f32 %v853_v38, %v852_v55 }
 0x150   :  { %v856_v46 = vadd.f32 %v855_v54, %v854_v41  ;;  %v1051_v0 = vadd.f32 %v1050_v21, %v1049_v51 }
 0x152   :  { %v1053_v16 = vadd.f32 %v1052_v26, %v1051_v0  ;;  %v858_v4 = vadd.f32 %v857_v50, %v856_v46 }
 0x154   :  { %v860_v10 = vadd.f32 %v859_v7, %v858_v4  ;;  %v1055_v15 = vadd.f32 %v1054_v60, %v1053_v16 }
 0x156   :  { %v1057_v27 = vadd.f32 %v1056_v23, %v1055_v15  ;;  %v862_v6 = vadd.f32 %v861_v2, %v860_v10 }
 0x158   :  { %v864_v42 = vadd.f32 %v863_v9, %v862_v6  ;;  %v1059_v52 = vadd.f32 %v1058_v29, %v1057_v27 }
 0x15a   :  { %v1061_v18 = vadd.f32 %v1060_v28, %v1059_v52  ;;  %v866_v30 = vadd.f32 %v865_v8, %v864_v42 }
 0x15c   :  { %v868_v53 = vadd.f32 %v867_v40, %v866_v30  ;;  %v1063_v61 = vadd.f32 %v1062_v59, %v1061_v18 }
 0x15e   :  { %v870_v63 = vadd.f32 %v869_v31, %v868_v53  ;;  %v1065_v13 = vadd.f32 %v1064_v32, %v1063_v61 }
 0x160   :  { %v871_v35 = vrot.slane %v870_v63, 4  ;;  %v1067_v24 = vadd.f32 %v1066_v37, %v1065_v13 }
 0x162   :  { %v872_v44 = vadd.f32 %v871_v35, %v870_v63  ;;  %v1068_v22 = vrot.slane %v1067_v24, 4 }
 0x164   :  { %v873_v5 = vrot.slane %v872_v44, 2  ;;  %v1069_v20 = vadd.f32 %v1068_v22, %v1067_v24 }
 0x166   :  { %v874_v36 = vadd.f32 %v873_v5, %v872_v44  ;;  %v1070_v57 = vrot.slane %v1069_v20, 2 }
 0x168   :  { %v875_v39 = vrot.slane %v874_v36, 1  ;;  %v1071_v3 = vadd.f32 %v1070_v57, %v1069_v20 }
 0x16a   :  { %v1072_v33 = vrot.slane %v1071_v3, 1  ;;  %v876_v48 = vadd.f32 %v875_v39, %v874_v36 }
 0x16c   :  { %v1073_v19 = vadd.f32 %v1072_v33, %v1071_v3 }
 0x16e   :  { %v1076_v62 = vsel %vm1075_vm3, %v876_v48, %v1073_v19 }
 0x16f   :  { %v1077_v17 = vadd.f32 %v1076_v62, %v1074_v34 }
 0x171   :  { %1079 = vst.msk [vmem:[%s2360_s6] sm:$0x3] %vm742_vm1, %v1077_v17 }

// kernel: decoder_block_pallas.5
= control target key start
LH: loop header
LB: loop body
LE: loop exit
PB: predicated region body
PF: predicated region fallthrough
CT: control target
= control target key end

     0   :  { %s2363_s21 = smov 0   ;;  %s3672_s0 = inlined_call_operand.vmem [shape: f32[2,256,4], index: 0, kind: input, shape index: {}]   ;;  %s3673_s1 = inlined_call_operand.vmem [shape: f32[1,4], index: 1, kind: input, shape index: {}]   ;;  %s3674_s2 = inlined_call_operand.vmem [shape: f32[1,4], index: 2, kind: input, shape index: {}]   ;;  %s3675_s3 = inlined_call_operand.vmem [shape: f32[16,16], index: 3, kind: input, shape index: {}]   ;;  %s3676_s4 = inlined_call_operand.vmem [shape: f32[1,16], index: 4, kind: input, shape index: {}]   ;;  %s3677_s5 = inlined_call_operand.vmem [shape: f32[2,256,16], index: 5, kind: output, shape index: {0}]   ;;  %s3678_s6 = inlined_call_operand.vmem [shape: f32[2,16], index: 6, kind: output, shape index: {1}]  }
   0x1 LB: > { %s2369_s22 = sadd.s32 4294967295, %s2321_s21   ;;  %p2160_p0 = scmp.ge.s32.totalorder %s2321_s21, 1  ;;  %s2321_s21 = sphi %s2363_s21, %s17_s21  }
   0x2   : > { %p210_p1 = scmp.lt.s32.totalorder %s2321_s21, 3 }
   0x4   : > { %p211_p2 = pnand %p2160_p0, %p210_p1 }
   0x6   : > { %214 = sbr.rel (%p211_p2) target bundleno = 630 (0x276), region = 40 }
   0xd   : > { %p240_p3 = scmp.lt.s32.totalorder %s2369_s22, 1  ;;  %v392_v0 = vlaneseq  ;;  %v2381_v1 = vld [vmem:[%s3673_s1] ss:$0 sm:$0xff]  ;;  %s2323_s8 = smov 8   ;;  %vm938_vm0 = vcmask 1046528  }
   0xe   : > { %v2395_v3 = vld [vmem:[%s3674_s2] ss:$0 sm:$0xff]  ;;  %s2324_s9 = smov 12   ;;  %s2325_s10 = smov 4  }
   0xf   : > { %s2375_s23 = scalar_select %p240_p3, %s2369_s22, 1  ;;  %v2383_v2 = vshrl.u32 %v392_v0, 7 }
  0x10   : > { %p2200_p4 = scmp.ne.s32.totalorder %s2369_s22, 0 }
  0x11   : > { %s2203_s24 = sshll.u32 %s2375_s23, 8  ;;  %v394_v16 = vadd.s32 8, %v2383_v2  ;;  %v410_v45 = vadd.s32 136, %v2383_v2  ;;  %v412_v0 = vadd.s32 152, %v2383_v2 }
  0x12   : > { %s2390_s29 = scalar_lea.vmem %s3672_s0, %s2203_s24  ;;  %s3305_s19 = scalar_lea.vmem %s3677_s5, %s2203_s24 }
  0x13   : > { %v268_v4 = vld [vmem:[%s2390_s29 + $0x90] sm:$0xff]  ;;  %v269_v6 = vld [vmem:[%s2390_s29 + $0x98] sm:$0xff]  ;;  %v250_v11 = vld [vmem:[%s2390_s29] sm:$0xff]  ;;  %v436_v43 = vand.u32 15, %v394_v16  ;;  %v548_v57 = vand.u32 15, %v410_v45  ;;  %v2550_v45 = vadd.s32 40, %v2383_v2 }
  0x14   : > { %v252_v5 = vld [vmem:[%s2390_s29 + $0x10] sm:$0xff]  ;;  %v307_v7 = vmul.f32 %v2381_v1, %v268_v4  ;;  %v308_v9 = vmul.f32 %v2381_v1, %v269_v6  ;;  %v253_v10 = vld [vmem:[%s2390_s29 + $0x18] sm:$0xff]  ;;  %v251_v12 = vld [vmem:[%s2390_s29 + $0x8] sm:$0xff]  ;;  %v289_v14 = vmul.f32 %v2381_v1, %v250_v11  ;;  %v396_v4 = vadd.s32 24, %v2383_v2 }
  0x15   : > { %v291_v8 = vmul.f32 %v2381_v1, %v252_v5  ;;  %v292_v13 = vmul.f32 %v2381_v1, %v253_v10  ;;  %v290_v15 = vmul.f32 %v2381_v1, %v251_v12  ;;  %v266_v17 = vld [vmem:[%s2390_s29 + $0x80] sm:$0xff]  ;;  %v267_v18 = vld [vmem:[%s2390_s29 + $0x88] sm:$0xff]  ;;  %vm2469_vm1 = vcmp.lt.s32.totalorder %v436_v43, 15  ;;  %v272_v59 = vld [vmem:[%s2390_s29 + $0xb0] sm:$0xff] }
  0x16   : > { %v346_v19 = vadd.f32 %v2395_v3, %v307_v7  ;;  %v347_v21 = vadd.f32 %v2395_v3, %v308_v9  ;;  %v305_v22 = vmul.f32 %v2381_v1, %v266_v17  ;;  %v2418_v24 = vadd.f32 %v2395_v3, %v289_v14  ;;  %v270_v34 = vld [vmem:[%s2390_s29 + $0xa0] sm:$0xff]  ;;  %v271_v50 = vld [vmem:[%s2390_s29 + $0xa8] sm:$0xff]  ;;  %v256_v60 = vld [vmem:[%s2390_s29 + $0x30] sm:$0xff] }
  0x17   : > { %v330_v20 = vadd.f32 %v2395_v3, %v291_v8  ;;  %v331_v23 = vadd.f32 %v2395_v3, %v292_v13  ;;  %v2421_v25 = vadd.f32 %v2395_v3, %v290_v15  ;;  %v306_v26 = vmul.f32 %v2381_v1, %v267_v18  ;;  %v254_v38 = vld [vmem:[%s2390_s29 + $0x20] sm:$0xff]  ;;  %v255_v5 = vld [vmem:[%s2390_s29 + $0x28] sm:$0xff] }
  0x18   : > { %v2424_v27 = vmax.f32 %v346_v19, 0.0  ;;  %v2428_v29 = vmax.f32 %v347_v21, 0.0  ;;  %v344_v30 = vadd.f32 %v2395_v3, %v305_v22  ;;  %v3680_v31 = vmax.f32 %v2418_v24, 0.0  ;;  %v274_v16 = vld [vmem:[%s2390_s29 + $0xc0] sm:$0xff] }
  0x19   : > { %v2426_v28 = vmax.f32 %v330_v20, 0.0  ;;  %v3679_v32 = vmax.f32 %v2421_v25, 0.0  ;;  %v345_v33 = vadd.f32 %v2395_v3, %v306_v26  ;;  %v2439_v35 = vmax.f32 %v331_v23, 0.0  ;;  %v258_v17 = vld [vmem:[%s2390_s29 + $0x40] sm:$0xff] }
  0x1a   : > { %1262 = vrot.lane.b32.xlu1 %v2424_v27, %s2323_s8  ;;  %v974_v36 = vrot.slane %v2424_v27, 1  ;;  %v976_v37 = vrot.slane %v2428_v29, 1  ;;  %v939_v39 = vrot.slane %v3680_v31, 1  ;;  %v2448_v41 = vmax.f32 %v344_v30, 0.0 }
  0x1b   : > { %1230 = vrot.lane.b32.xlu0 %v2426_v28, %s2323_s8  ;;  %v940_v40 = vrot.slane %v3679_v32, 1  ;;  %v2450_v42 = vmax.f32 %v345_v33, 0.0  ;;  %v942_v44 = vrot.slane %v2426_v28, 1  ;;  %v309_v46 = vmul.f32 %v2381_v1, %v270_v34  ;;  %v279_v32 = vld [vmem:[%s2390_s29 + $0xe8] sm:$0xff] }
  0x1c   : > { %v293_v47 = vmul.f32 %v2381_v1, %v254_v38  ;;  %v2461_v48 = vsel %vm938_vm0, %v974_v36, %v976_v37  ;;  %v3691_v52 = vrot.slane %v2448_v41, 1  ;;  %v310_v62 = vmul.f32 %v2381_v1, %v271_v50 }
  0x1d   : > { %v348_v49 = vadd.f32 %v2395_v3, %v309_v46  ;;  %v941_v51 = vsel %vm938_vm0, %v939_v39, %v940_v40  ;;  %v972_v53 = vrot.slane %v2450_v42, 1  ;;  %v943_v56 = vsel %vm938_vm0, %v940_v40, %v942_v44  ;;  %v275_v46 = vld [vmem:[%s2390_s29 + $0xc8] sm:$0xff] }
  0x1e   : > { %1264 = vrot.lane.b32.xlu1 %v2428_v29, %s2323_s8  ;;  %v332_v54 = vadd.f32 %v2395_v3, %v293_v47  ;;  %v944_v63 = vrot.slane %v2439_v35, 1  ;;  %v1037_v6 = vsel %vm2469_vm1, %v943_v56, 0.0  ;;  %v311_v8 = vmul.f32 %v2381_v1, %v272_v59  ;;  %v259_v47 = vld [vmem:[%s2390_s29 + $0x48] sm:$0xff] }
  0x1f   : > { %1232 = vrot.lane.b32.xlu0 %v2439_v35, %s2323_s8  ;;  %v2474_v58 = vmax.f32 %v348_v49, 0.0  ;;  %v2493_v7 = vsel %vm938_vm0, %v3691_v52, %v972_v53  ;;  %v295_v9 = vmul.f32 %v2381_v1, %v256_v60  ;;  %vm2497_vm2 = vcmp.lt.s32.totalorder %v548_v57, 15  ;;  %v273_v60 = vld [vmem:[%s2390_s29 + $0xb8] sm:$0xff]  ;;  %v280_v49 = vld [vmem:[%s2390_s29 + $0xf0] sm:$0xff] }
  0x20   : > { %v2478_v61 = vmax.f32 %v332_v54, 0.0  ;;  %3704 = vst [vmem:[#allocation2_spill] sm:$0xff] %v2493_v7  ;;  %v2502_v11 = vsel %vm938_vm0, %v972_v53, %v974_v36  ;;  %v349_v14 = vadd.f32 %v2395_v3, %v310_v62  ;;  %v294_v15 = vmul.f32 %v2381_v1, %v255_v5  ;;  %v276_v54 = vld [vmem:[%s2390_s29 + $0xd0] sm:$0xff] }
  0x21   : > { %v978_v12 = vrot.slane %v2474_v58, 1  ;;  %v562_v18 = vand.u32 15, %v412_v0  ;;  %v450_v19 = vand.u32 15, %v396_v4  ;;  %v1053_v20 = vsel %vm2497_vm2, %v2502_v11, 0.0 }
  0x22   : > { %1387 = vrot.lane.b32.xlu1 %v2461_v48, %s2324_s9  ;;  %v946_v13 = vrot.slane %v2478_v61, 1  ;;  %v945_v21 = vsel %vm938_vm0, %v942_v44, %v944_v63  ;;  %v350_v22 = vadd.f32 %v2395_v3, %v311_v8  ;;  %v334_v23 = vadd.f32 %v2395_v3, %v295_v9  ;;  %v260_v9 = vld [vmem:[%s2390_s29 + $0x50] sm:$0xff] }
  0x23   : > { %1134 = vrot.lane.b32.xlu0 %v941_v51, %s2325_s10  ;;  %v2520_v26 = vsel %vm938_vm0, %v976_v37, %v978_v12  ;;  %v313_v33 = vmul.f32 %v2381_v1, %v274_v16  ;;  %v297_v34 = vmul.f32 %v2381_v1, %v258_v17  ;;  %v2529_v36 = vmax.f32 %v349_v14, 0.0  ;;  %v277_v17 = vld [vmem:[%s2390_s29 + $0xd8] sm:$0xff] }
  0x24   : > { %v2525_v30 = vsel %vm938_vm0, %v944_v63, %v946_v13  ;;  %v333_v38 = vadd.f32 %v2395_v3, %v294_v15  ;;  %v2535_v37 = vadd.s32 168, %v2383_v2  ;;  %v1087_v43 = vsel %vm2497_vm2, %v2520_v26, 0.0 }
  0x25   : > { %3707 = vst [vmem:[#allocation3_spill] sm:$0xff] %v2529_v36  ;;  %v2538_v39 = vadd.f32 %v2395_v3, %v313_v33  ;;  %v2541_v40 = vadd.f32 %v2395_v3, %v297_v34  ;;  %v1071_v44 = vsel %vm2469_vm1, %v2525_v30, 0.0  ;;  %vm2554_vm3 = vcmp.lt.s32.totalorder %v562_v18, 15  ;;  %v261_v18 = vld [vmem:[%s2390_s29 + $0x58] sm:$0xff] }
  0x26   : > { %1136 = vrot.lane.b32.xlu1 %v1037_v6, %s2325_s10  ;;  %vm2558_vm4 = vcmp.lt.s32.totalorder %v450_v19, 15  ;;  %v2562_v51 = vmax.f32 %v350_v22, 0.0  ;;  %v2564_v53 = vmax.f32 %v334_v23, 0.0  ;;  %v2567_v55 = vmax.f32 %v333_v38, 0.0 }
  0x27   : > { %1166 = vrot.lane.b32.xlu0 %v2493_v7, %s2325_s10  ;;  %v980_v56 = vrot.slane %v2529_v36, 1  ;;  %v416_v57 = vadd.s32 184, %v2383_v2  ;;  %v576_v59 = vand.u32 15, %v2535_v37  ;;  %v400_v62 = vadd.s32 56, %v2383_v2 }
  0x28   : > { %3712 = vst [vmem:[#allocation4_spill] sm:$0xff] %v2567_v55  ;;  %v314_v63 = vmul.f32 %v2381_v1, %v275_v46  ;;  %v298_v0 = vmul.f32 %v2381_v1, %v259_v47  ;;  %v1055_v4 = vsel %vm2554_vm3, %v2520_v26, 0.0  ;;  %v1039_v5 = vsel %vm2558_vm4, %v2525_v30, 0.0 }
  0x29   : > { %v464_v6 = vand.u32 15, %v2550_v45  ;;  %v315_v8 = vmul.f32 %v2381_v1, %v276_v54  ;;  %v3690_v10 = vrot.slane %v2562_v51, 1  ;;  %v3685_v14 = vrot.slane %v2564_v53, 1 }
  0x2a   : > { %1168 = vrot.lane.b32.xlu1 %v1053_v20, %s2325_s10  ;;  %v353_v15 = vadd.f32 %v2395_v3, %v314_v63  ;;  %v337_v16 = vadd.f32 %v2395_v3, %v298_v0  ;;  %v2594_v19 = vsel %vm938_vm0, %v978_v12, %v980_v56  ;;  %v948_v20 = vrot.slane %v2567_v55, 1  ;;  %v278_v0 = vld [vmem:[%s2390_s29 + $0xe0] sm:$0xff] }
  0x2b   : > { %1355 = vrot.lane.b32.xlu0 %v945_v21, %s2324_s9  ;;  %v2598_v22 = vmul.f32 %v2381_v1, %v273_v60  ;;  %v590_v23 = vand.u32 15, %v416_v57  ;;  %v354_v12 = vadd.f32 %v2395_v3, %v315_v8  ;;  %v299_v33 = vmul.f32 %v2381_v1, %v260_v9  ;;  %v262_v8 = vld [vmem:[%s2390_s29 + $0x60] sm:$0xff] }
  0x2c   : > { %v2603_v26 = vmax.f32 %v353_v15, 0.0  ;;  %v2605_v30 = vmax.f32 %v337_v16, 0.0  ;;  %v418_v34 = vadd.s32 200, %v2383_v2  ;;  %v402_v38 = vadd.s32 72, %v2383_v2 }
  0x2d   : > { %v2623_v46 = vmax.f32 %v354_v12, 0.0  ;;  %v338_v47 = vadd.f32 %v2395_v3, %v299_v33  ;;  %vm2636_vm5 = vcmp.lt.s32.totalorder %v590_v23, 15  ;;  %v317_v23 = vmul.f32 %v2381_v1, %v278_v0  ;;  %v1551_v0 = vld [vmem:[%s3675_s3 + $0x8] sm:$0xff] }
  0x2e   : > { %1389 = vrot.lane.b32.xlu1 %v1087_v43, %s2324_s9  ;;  %v316_v43 = vmul.f32 %v2381_v1, %v277_v17  ;;  %v604_v54 = vand.u32 15, %v418_v34  ;;  %v492_v57 = vand.u32 15, %v402_v38  ;;  %v3684_v9 = vrot.slane %v2603_v26, 1 }
  0x2f   : > { %1357 = vrot.lane.b32.xlu0 %v1071_v44, %s2324_s9  ;;  %v2621_v44 = vsel %vm938_vm0, %v948_v20, %v3685_v14  ;;  %v3682_v15 = vrot.slane %v2623_v46, 1  ;;  %v2634_v16 = vmax.f32 %v338_v47, 0.0  ;;  %v301_v33 = vmul.f32 %v2381_v1, %v262_v8 }
  0x30   : > { %v355_v60 = vadd.f32 %v2395_v3, %v316_v43  ;;  %vm2641_vm6 = vcmp.lt.s32.totalorder %v604_v54, 15  ;;  %vm2645_vm7 = vcmp.lt.s32.totalorder %v492_v57, 15  ;;  %v356_v57 = vadd.f32 %v2395_v3, %v317_v23 }
  0x31   : > { %v2695_v8 = vsel %vm938_vm0, %v946_v13, %v948_v20  ;;  %v420_v13 = vadd.s32 216, %v2383_v2  ;;  %v404_v20 = vadd.s32 88, %v2383_v2  ;;  %v1073_v38 = vsel %vm2558_vm4, %v2621_v44, 0.0 }
  0x32   : > { %1170 = vrot.lane.b32.xlu1 %v2461_v48, %s2325_s10  ;;  %v300_v48 = vmul.f32 %v2381_v1, %v261_v18  ;;  %v3683_v18 = vrot.slane %v2605_v30, 1  ;;  %v2665_v43 = vmax.f32 %v355_v60, 0.0  ;;  %v340_v60 = vadd.f32 %v2395_v3, %v301_v33 }
  0x33   : > { %1138 = vrot.lane.b32.xlu0 %v945_v21, %s2325_s10  ;;  %v2616_v21 = vsel %vm938_vm0, %v980_v56, %v3690_v10  ;;  %v478_v56 = vand.u32 15, %v400_v62  ;;  %v2654_v62 = vsel %vm938_vm0, %v3684_v9, %v3682_v15  ;;  %v2707_v31 = vmax.f32 %v356_v57, 0.0  ;;  %v263_v15 = vld [vmem:[%s2390_s29 + $0x68] sm:$0xff] }
  0x34   : > { %v339_v63 = vadd.f32 %v2395_v3, %v300_v48  ;;  %v3687_v23 = vrot.slane %v2665_v43, 1  ;;  %v506_v9 = vand.u32 15, %v404_v20  ;;  %vm2728_vm9 = vcmp.lt.s32.totalorder %v576_v59, 15  ;;  %v281_v20 = vld [vmem:[%s2390_s29 + $0xf8] sm:$0xff] }
  0x35   : > { %vm2673_vm8 = vcmp.lt.s32.totalorder %v478_v56, 15  ;;  %v1089_v56 = vsel %vm2554_vm3, %v2616_v21, 0.0  ;;  %v3686_v57 = vrot.slane %v2707_v31, 1  ;;  %v319_v14 = vmul.f32 %v2381_v1, %v280_v49  ;;  %v265_v49 = vld [vmem:[%s2390_s29 + $0x78] sm:$0xff] }
  0x36   : > { %1172 = vrot.lane.b32.xlu1 %v1055_v4, %s2325_s10  ;;  %v2667_v48 = vmax.f32 %v339_v63, 0.0  ;;  %v1550_v63 = vld [vmem:[%s3675_s3] sm:$0xff]  ;;  %vm2738_vm10 = vcmp.lt.s32.totalorder %v464_v6, 15  ;;  %vm2760_vm12 = vcmp.lt.s32.totalorder %v506_v9, 15  ;;  %v406_v9 = vadd.s32 104, %v2383_v2 }
  0x37   : > { %1140 = vrot.lane.b32.xlu0 %v1039_v5, %s2325_s10  ;;  %v3681_v5 = vrot.slane %v2634_v16, 1  ;;  %v2291_v33 = vpack.c.bf16 %v1551_v0, %v1550_v63  ;;  %v318_v63 = vmul.f32 %v2381_v1, %v279_v32  ;;  %v302_v0 = vmul.f32 %v2381_v1, %v263_v15  ;;  %v264_v15 = vld [vmem:[%s2390_s29 + $0x70] sm:$0xff] }
  0x38   : > { %v3689_v34 = vrot.slane %v2667_v48, 1  ;;  %v2747_v59 = vsel %vm938_vm0, %v3687_v23, %v3686_v57  ;;  %v257_v57 = vld [vmem:[%s2390_s29 + $0x38] sm:$0xff]  ;;  %v303_v10 = vmul.f32 %v2381_v1, %v264_v15  ;;  %v320_v52 = vmul.f32 %v2381_v1, %v281_v20 }
  0x39   : > { %v2682_v54 = vsel %vm938_vm0, %v3683_v18, %v3681_v5  ;;  %v2709_v5 = vmax.f32 %v340_v60, 0.0  ;;  %v618_v18 = vand.u32 15, %v420_v13  ;;  %2292 = vmatprep.subr.bf16.mxu0 %v2291_v33  ;;  %2295 = vmatprep.subr.bf16.mxu1 %v2291_v33  ;;  %v422_v13 = vadd.s32 232, %v2383_v2 }
  0x3a   : > { %1266 = vrot.lane.b32.xlu1 %v2474_v58, %s2323_s8  ;;  %2294 = vmatpush3.bf16.msra.mxu0 %v2291_v33  ;;  %v341_v23 = vadd.f32 %v2395_v3, %v302_v0  ;;  %v342_v0 = vadd.f32 %v2395_v3, %v303_v10  ;;  %v351_v10 = vadd.f32 %v2395_v3, %v2598_v22  ;;  %v3695_v22 = vmov 0.0  }
  0x3b   : > { %1234 = vrot.lane.b32.xlu0 %v2478_v61, %s2323_s8  ;;  %v3688_v60 = vrot.slane %v2709_v5, 1  ;;  %vm2756_vm11 = vcmp.lt.s32.totalorder %v618_v18, 15  ;;  %2296 = vmatpush3.bf16.msra.mxu1 %v2291_v33  ;;  %v358_v18 = vadd.f32 %v2395_v3, %v319_v14  ;;  %v304_v33 = vmul.f32 %v2381_v1, %v265_v49 }
  0x3c   : > { %v2794_v7 = vmax.f32 %v341_v23, 0.0  ;;  %v520_v14 = vand.u32 15, %v406_v9  ;;  %v2830_v49 = vrot.slane %v3695_v22, 1  ;;  %v408_v22 = vadd.s32 120, %v2383_v2 }
  0x3d   : > { %v2754_v32 = vsel %vm938_vm0, %v3689_v34, %v3688_v60  ;;  %v357_v60 = vadd.f32 %v2395_v3, %v318_v63  ;;  %v632_v34 = vand.u32 15, %v422_v13  ;;  %v2796_v63 = vmax.f32 %v358_v18, 0.0 }
  0x3e   : > { %1268 = vrot.lane.b32.xlu1 %v2529_v36, %s2323_s8  ;;  %v359_v13 = vadd.f32 %v2395_v3, %v320_v52  ;;  %v343_v15 = vadd.f32 %v2395_v3, %v304_v33  ;;  %vm2825_vm14 = vcmp.lt.s32.totalorder %v520_v14, 15  ;;  %v1057_v14 = vsel %vm2728_vm9, %v2616_v21, 0.0 }
  0x3f   : > { %1236 = vrot.lane.b32.xlu0 %v2567_v55, %s2323_s8  ;;  %v296_v55 = vmul.f32 %v2381_v1, %v257_v57  ;;  %v2792_v36 = vmax.f32 %v357_v60, 0.0  ;;  %v3696_v1 = vrot.slane %v2796_v63, 1  ;;  %vm2805_vm13 = vcmp.lt.s32.totalorder %v632_v34, 15 }
  0x40   : > { %v2811_v57 = vmax.f32 %v342_v0, 0.0  ;;  %v2813_v52 = vmax.f32 %v359_v13, 0.0  ;;  %v2815_v60 = vmax.f32 %v343_v15, 0.0  ;;  %v424_v15 = vadd.s32 248, %v2383_v2 }
  0x41   : > { %v3701_v20 = vrot.slane %v2792_v36, 1  ;;  %v335_v13 = vadd.f32 %v2395_v3, %v296_v55  ;;  %v534_v33 = vand.u32 15, %v408_v22  ;;  %v2888_v2 = vmax.f32 %v351_v10, 0.0 }
  0x42   : > { %1391 = vrot.lane.b32.xlu1 %v2594_v19, %s2324_s9  ;;  %v3697_v9 = vrot.slane %v2811_v57, 1  ;;  %v3698_v0 = vrot.slane %v2813_v52, 1  ;;  %v2901_v22 = vmax.f32 %v2538_v39, 0.0  ;;  %v3740_v50 = vrot.slane %v2603_v26, 1 }
  0x43   : > { %1359 = vrot.lane.b32.xlu0 %v2695_v8, %s2324_s9  ;;  %v2823_v34 = vsel %vm938_vm0, %v3701_v20, %v3696_v1  ;;  %v1041_v1 = vsel %vm2738_vm10, %v2621_v44, 0.0  ;;  %v3733_v44 = vrot.slane %v2448_v41, 1  ;;  %v2890_v21 = vmax.f32 %v335_v13, 0.0 }
  0x44   : > { %v2865_v3 = vsel %vm938_vm0, %v3698_v0, %v2830_v49  ;;  %v646_v0 = vand.u32 15, %v424_v15  ;;  %vm2896_vm1 = vcmp.lt.s32.totalorder %v534_v33, 15  ;;  %v984_v39 = vrot.slane %v2888_v2, 1 }
  0x45   : > { %v3738_v15 = vrot.slane %v2562_v51, 1  ;;  %v3745_v17 = vsel %vm2645_vm7, %v2682_v54, 0.0  ;;  %v3747_v47 = vrot.slane %v2623_v46, 1  ;;  %vm1451_vm2 = vcmask 31744  }
  0x46   : > { %1393 = vrot.lane.b32.xlu1 %v1089_v56, %s2324_s9  ;;  %v3700_v56 = vrot.slane %v2794_v7, 1  ;;  %vm2892_vm15 = vcmp.lt.s32.totalorder %v646_v0, 15  ;;  %v3739_v0 = vrot.slane %v2564_v53, 1  ;;  %v3752_v12 = vsel %vm2756_vm11, %v2747_v59, 0.0 }
  0x47   : > { %1361 = vrot.lane.b32.xlu0 %v1073_v38, %s2324_s9  ;;  %v985_v33 = vsel %vm938_vm0, %v3738_v15, %v984_v39  ;;  %v3753_v4 = vsel %vm2760_vm12, %v2754_v32, 0.0  ;;  %vm1517_vm3 = vcmask 97280   ;;  %vm1484_vm4 = vcmask 64512  }
  0x48   : > { %v3762_v45 = vsel %vm2805_vm13, %v2823_v34, 0.0  ;;  %v3770_v23 = vsel %vm2892_vm15, %v2865_v3, 0.0 }
  0x4a   : > { %1174 = vrot.lane.b32.xlu1 %v2594_v19, %s2325_s10  ;;  %v2858_v19 = vsel %vm938_vm0, %v3700_v56, %v3697_v9 }
  0x4b   : > { %1142 = vrot.lane.b32.xlu0 %v2695_v8, %s2325_s10  ;;  %v3699_v8 = vrot.slane %v2815_v60, 1  ;;  %v3763_v6 = vsel %vm2825_vm14, %v2858_v19, 0.0 }
  0x4d   : > { %v2881_v9 = vsel %vm938_vm0, %v3699_v8, %v3733_v44 }
  0x4e   : > { %1176 = vrot.lane.b32.xlu1 %v1057_v14, %s2325_s10  ;;  %v986_v14 = vrot.slane %v2901_v22, 1  ;;  %v3771_v38 = vsel %vm2896_vm1, %v2881_v9, 0.0 }
  0x4f   : > { %1144 = vrot.lane.b32.xlu0 %v1041_v1, %s2325_s10  ;;  %v2904_v1 = vmax.f32 %v2541_v40, 0.0  ;;  %v952_v40 = vrot.slane %v2890_v21, 1 }
  0x50   : > { %v987_v55 = vsel %vm938_vm0, %v984_v39, %v986_v14  ;;  %v989_v37 = vsel %vm938_vm0, %v986_v14, %v3740_v50 }
  0x51   : > { %v954_v13 = vrot.slane %v2904_v1, 1  ;;  %v953_v10 = vsel %vm938_vm0, %v3739_v0, %v952_v40  ;;  %v1091_v56 = vsel %vm2728_vm9, %v987_v55, 0.0  ;;  %v1059_v0 = vsel %vm2636_vm5, %v987_v55, 0.0 }
  0x52   : > { %1270 = vrot.lane.b32.xlu1 %v2562_v51, %s2323_s8  ;;  %v3743_v55 = vsel %vm2673_vm8, %v2682_v54, 0.0  ;;  %v3748_v54 = vrot.slane %v2667_v48, 1 }
  0x53   : > { %1238 = vrot.lane.b32.xlu0 %v2564_v53, %s2323_s8  ;;  %v955_v8 = vsel %vm938_vm0, %v952_v40, %v954_v13  ;;  %v3749_v40 = vrot.slane %v2634_v16, 1 }
  0x54   : > { %v1075_v20 = vsel %vm2738_vm10, %v955_v8, 0.0  ;;  %v1043_v39 = vsel %vm2673_vm8, %v955_v8, 0.0  ;;  %v3742_v8 = vsel %vm2636_vm5, %v2654_v62, 0.0  ;;  %vm1559_vm5 = vcmask 130048  }
  0x55   : > { %v961_v14 = vsel %vm938_vm0, %v3749_v40, %v3748_v54  ;;  %v3755_v54 = vmax.f32 %v2421_v25, 0.0 }
  0x56   : > { %1272 = vrot.lane.b32.xlu1 %v2888_v2, %s2323_s8 }
  0x57   : > { %1240 = vrot.lane.b32.xlu0 %v2890_v21, %s2323_s8 }
  0x5a   : > { %1395 = vrot.lane.b32.xlu1 %v985_v33, %s2324_s9 }
  0x5b   : > { %1363 = vrot.lane.b32.xlu0 %v953_v10, %s2324_s9 }
  0x5e   : > { %1397 = vrot.lane.b32.xlu1 %v1091_v56, %s2324_s9 }
  0x5f   : > { %1365 = vrot.lane.b32.xlu0 %v1075_v20, %s2324_s9  ;;  %v3741_v20 = vrot.slane %v2605_v30, 1 }
  0x61   : > { %v957_v56 = vsel %vm938_vm0, %v954_v13, %v3741_v20 }
  0x62   : > { %1178 = vrot.lane.b32.xlu1 %v985_v33, %s2325_s10 }
  0x63   : > { %1146 = vrot.lane.b32.xlu0 %v953_v10, %s2325_s10  ;;  %v3744_v10 = vsel %vm2641_vm6, %v2654_v62, 0.0  ;;  %v3746_v62 = vrot.slane %v2665_v43, 1 }
  0x65   : > { %v993_v33 = vsel %vm938_vm0, %v3747_v47, %v3746_v62 }
  0x66   : > { %1180 = vrot.lane.b32.xlu1 %v1059_v0, %s2325_s10  ;;  %v3750_v0 = vsel %vm2641_vm6, %v2747_v59, 0.0 }
  0x67   : > { %1148 = vrot.lane.b32.xlu0 %v1043_v39, %s2325_s10  ;;  %v3751_v39 = vsel %vm2645_vm7, %v2754_v32, 0.0 }
  0x6a   : > { %1274 = vrot.lane.b32.xlu1 %v2901_v22, %s2323_s8 }
  0x6b   : > { %1242 = vrot.lane.b32.xlu0 %v2904_v1, %s2323_s8 }
  0x6e   : > { %1276 = vrot.lane.b32.xlu1 %v2603_v26, %s2323_s8 }
  0x6f   : > { %1244 = vrot.lane.b32.xlu0 %v2605_v30, %s2323_s8 }
  0x72   : > { %1399 = vrot.lane.b32.xlu1 %v989_v37, %s2324_s9 }
  0x73   : > { %1367 = vrot.lane.b32.xlu0 %v957_v56, %s2324_s9 }
  0x76   : > { %1401 = vrot.lane.b32.xlu1 %v3742_v8, %s2324_s9 }
  0x77   : > { %1369 = vrot.lane.b32.xlu0 %v3743_v55, %s2324_s9 }
  0x7a   : > { %1182 = vrot.lane.b32.xlu1 %v989_v37, %s2325_s10 }
  0x7b   : > { %1150 = vrot.lane.b32.xlu0 %v957_v56, %s2325_s10 }
  0x7e   : > { %1184 = vrot.lane.b32.xlu1 %v3744_v10, %s2325_s10  ;;  %v3754_v10 = vmax.f32 %v2418_v24, 0.0 }
  0x7f   : > { %1152 = vrot.lane.b32.xlu0 %v3745_v17, %s2325_s10 }
  0x82   : > { %1278 = vrot.lane.b32.xlu1 %v2623_v46, %s2323_s8 }
  0x83   : > { %1246 = vrot.lane.b32.xlu0 %v2634_v16, %s2323_s8 }
  0x86   : > { %1280 = vrot.lane.b32.xlu1 %v2665_v43, %s2323_s8 }
  0x87   : > { %1248 = vrot.lane.b32.xlu0 %v2667_v48, %s2323_s8 }
  0x8a   : > { %1403 = vrot.lane.b32.xlu1 %v993_v33, %s2324_s9 }
  0x8b   : > { %1371 = vrot.lane.b32.xlu0 %v961_v14, %s2324_s9 }
  0x8c   : > { %v1263_v13 = vpop.permute.xlu1 %1262 }
  0x8d   : > { %v1231_v15 = vpop.permute.xlu0 %1230 }
  0x8e   : > { %1405 = vrot.lane.b32.xlu1 %v3750_v0, %s2324_s9 }
  0x8f   : > { %1373 = vrot.lane.b32.xlu0 %v3751_v39, %s2324_s9  ;;  %v3758_v39 = vrot.slane %v2794_v7, 1 }
  0x90   : > { %v1265_v50 = vpop.permute.xlu1 %1264 }
  0x91   : > { %v1233_v37 = vpop.permute.xlu0 %1232 }
  0x92   : > { %1186 = vrot.lane.b32.xlu1 %v993_v33, %s2325_s10 }
  0x93   : > { %1154 = vrot.lane.b32.xlu0 %v961_v14, %s2325_s10 }
  0x94   : > { %v1388_v20 = vpop.permute.xlu1 %1387 }
  0x95   : > { %v1135_v56 = vpop.permute.xlu0 %1134 }
  0x96   : > { %1188 = vrot.lane.b32.xlu1 %v3752_v12, %s2325_s10  ;;  %v1452_v17 = vsel %vm1451_vm2, %v3754_v10, %v1135_v56 }
  0x97   : > { %1156 = vrot.lane.b32.xlu0 %v3753_v4, %s2325_s10  ;;  %v1485_v33 = vsel %vm1484_vm4, %v1452_v17, %v1231_v15  ;;  %v3757_v15 = vrot.slane %v2707_v31, 1 }
  0x98   : > { %v1137_v8 = vpop.permute.xlu1 %1136 }
  0x99   : > { %v1167_v55 = vpop.permute.xlu0 %1166  ;;  %v1453_v40 = vsel %vm1451_vm2, %v3755_v54, %v1137_v8 }
  0x9a   : > { %v1468_v62 = vsel %vm1451_vm2, %v2448_v41, %v1167_v55  ;;  %1282 = vrot.lane.b32.xlu1 %v2707_v31, %s2323_s8  ;;  %v1486_v8 = vsel %vm1484_vm4, %v1453_v40, %v1233_v37  ;;  %v3761_v37 = vsel %vm2760_vm12, %v2858_v19, 0.0 }
  0x9b   : > { %1250 = vrot.lane.b32.xlu0 %v2709_v5, %s2323_s8  ;;  %v1501_v59 = vsel %vm1484_vm4, %v1468_v62, %v1263_v13  ;;  %v3756_v13 = vrot.slane %v2792_v36, 1 }
  0x9c   : > { %v1534_v32 = vsel %vm1517_vm3, %v1501_v59, %v1388_v20  ;;  %v1169_v47 = vpop.permute.xlu1 %1168  ;;  %v3759_v20 = vrot.slane %v2709_v5, 1 }
  0x9d   : > { %2267 = vmatprep.mubr.msk.f32.mxu1 %vm1559_vm5, %v1534_v32  ;;  %v1356_v24 = vpop.permute.xlu0 %1355  ;;  %v1469_v14 = vsel %vm1451_vm2, %v2450_v42, %v1169_v47  ;;  %v997_v25 = vsel %vm938_vm0, %v3757_v15, %v3756_v13 }
  0x9e   : > { %v1518_v0 = vsel %vm1517_vm3, %v1485_v33, %v1356_v24  ;;  %1284 = vrot.lane.b32.xlu1 %v2792_v36, %s2323_s8  ;;  %v965_v56 = vsel %vm938_vm0, %v3759_v20, %v3758_v39  ;;  %v1502_v12 = vsel %vm1484_vm4, %v1469_v14, %v1265_v50  ;;  %v3760_v50 = vsel %vm2756_vm11, %v2823_v34, 0.0 }
  0x9f   : > { %1252 = vrot.lane.b32.xlu0 %v2794_v7, %s2323_s8  ;;  %2243 = vmatprep.mubr.msk.f32.mxu0 %vm1559_vm5, %v1518_v0 }
  0xa0   : > { %v1390_v4 = vpop.permute.xlu1 %1389 }
  0xa1   : > { %v1358_v55 = vpop.permute.xlu0 %1357  ;;  %v1535_v10 = vsel %vm1517_vm3, %v1502_v12, %v1390_v4  ;;  %v3766_v4 = vrot.slane %v2815_v60, 1 }
  0xa2   : > { %v1519_v17 = vsel %vm1517_vm3, %v1486_v8, %v1358_v55  ;;  %1407 = vrot.lane.b32.xlu1 %v997_v25, %s2324_s9  ;;  %2268 = vmatmul.mubr.msk.f32.vlgmr.msra.gmra.mrb[0].mxu1 %vm1559_vm5, %v1535_v10  ;;  %v3767_v8 = vrot.slane %v2811_v57, 1 }
  0xa3   : > { %1375 = vrot.lane.b32.xlu0 %v965_v56, %s2324_s9  ;;  %2244 = vmatmul.mubr.msk.f32.vlgmr.msra.gmra.mrb[0].mxu0 %vm1559_vm5, %v1519_v17 }
  0xa4   : > { %v1171_v62 = vpop.permute.xlu1 %1170  ;;  %v969_v55 = vsel %vm938_vm0, %v3767_v8, %v3766_v4  ;;  %v3776_v8 = vsel %vm2896_vm1, %v2502_v11, 0.0 }
  0xa5   : > { %v1139_v59 = vpop.permute.xlu0 %1138  ;;  %v1470_v14 = vsel %vm1451_vm2, %v2424_v27, %v1171_v62  ;;  %v3764_v27 = vrot.slane %v2813_v52, 1 }
  0xa6   : > { %1409 = vrot.lane.b32.xlu1 %v3760_v50, %s2324_s9  ;;  %v1454_v34 = vsel %vm1451_vm2, %v2426_v28, %v1139_v59  ;;  %v3765_v28 = vrot.slane %v2796_v63, 1 }
  0xa7   : > { %1377 = vrot.lane.b32.xlu0 %v3761_v37, %s2324_s9 }
  0xa8   : > { %v1173_v32 = vpop.permute.xlu1 %1172  ;;  %v1001_v20 = vsel %vm938_vm0, %v3765_v28, %v3764_v27  ;;  %v3775_v27 = vld [vmem:[#allocation4_spill] sm:$0xff]  ;;  %vm1917_vm0 = vcmask (!%p2200_p4), 123904  }
  0xa9   : > { %v1141_v47 = vpop.permute.xlu0 %1140 }
  0xaa   : > { %1190 = vrot.lane.b32.xlu1 %v997_v25, %s2325_s10  ;;  %v1455_v12 = vsel %vm1451_vm2, %v2439_v35, %v1141_v47  ;;  %v3769_v47 = vsel %vm2825_vm14, %v2881_v9, 0.0 }
  0xab   : > { %1158 = vrot.lane.b32.xlu0 %v965_v56, %s2325_s10  ;;  %v1471_v56 = vsel %vm1451_vm2, %v2428_v29, %v1173_v32  ;;  %v3768_v32 = vsel %vm2805_vm13, %v2865_v3, 0.0 }
  0xac   : > { %v1267_v24 = vpop.permute.xlu1 %1266 }
  0xad   : > { %v1235_v33 = vpop.permute.xlu0 %1234  ;;  %v1503_v0 = vsel %vm1484_vm4, %v1470_v14, %v1267_v24  ;;  %v3772_v14 = vmov 0.0  }
  0xae   : > { %1192 = vrot.lane.b32.xlu1 %v3762_v45, %s2325_s10  ;;  %v1487_v13 = vsel %vm1484_vm4, %v1454_v34, %v1235_v33 }
  0xaf   : > { %1160 = vrot.lane.b32.xlu0 %v3763_v6, %s2325_s10 }
  0xb0   : > { %v1269_v54 = vpop.permute.xlu1 %1268 }
  0xb1   : > { %v1237_v40 = vpop.permute.xlu0 %1236  ;;  %v1504_v10 = vsel %vm1484_vm4, %v1471_v56, %v1269_v54 }
  0xb2   : > { %1286 = vrot.lane.b32.xlu1 %v2796_v63, %s2323_s8  ;;  %v1488_v17 = vsel %vm1484_vm4, %v1455_v12, %v1237_v40 }
  0xb3   : > { %1254 = vrot.lane.b32.xlu0 %v2811_v57, %s2323_s8 }
  0xb4   : > { %v1392_v19 = vpop.permute.xlu1 %1391 }
  0xb5   : > { %v1360_v15 = vpop.permute.xlu0 %1359  ;;  %v1536_v25 = vsel %vm1517_vm3, %v1503_v0, %v1392_v19  ;;  %v1101_v0 = vsel %vm2892_vm15, %v2830_v49, 0.0 }
  0xb6   : > { %v1520_v39 = vsel %vm1517_vm3, %v1487_v13, %v1360_v15  ;;  %1288 = vrot.lane.b32.xlu1 %v2813_v52, %s2323_s8  ;;  %2270 = vmatprep.mubr.msk.f32.mxu1 %vm1559_vm5, %v1536_v25 }
  0xb7   : > { %1256 = vrot.lane.b32.xlu0 %v2815_v60, %s2323_s8  ;;  %2246 = vmatprep.mubr.msk.f32.mxu0 %vm1559_vm5, %v1520_v39  ;;  %v3773_v39 = vld [vmem:[#allocation2_spill] sm:$0xff] }
  0xb8   : > { %v1394_v62 = vpop.permute.xlu1 %1393 }
  0xb9   : > { %v1362_v59 = vpop.permute.xlu0 %1361  ;;  %v1537_v29 = vsel %vm1517_vm3, %v1504_v10, %v1394_v62 }
  0xba   : > { %v1521_v35 = vsel %vm1517_vm3, %v1488_v17, %v1362_v59  ;;  %1411 = vrot.lane.b32.xlu1 %v1001_v20, %s2324_s9  ;;  %2271 = vmatmul.mubr.msk.f32.gmra.mrb[2].mxu1 %vm1559_vm5, %v1537_v29 }
  0xbb   : > { %1379 = vrot.lane.b32.xlu0 %v969_v55, %s2324_s9  ;;  %2247 = vmatmul.mubr.msk.f32.gmra.mrb[2].mxu0 %vm1559_vm5, %v1521_v35 }
  0xbc   : > { %v1175_v50 = vpop.permute.xlu1 %1174 }
  0xbd   : > { %v1143_v37 = vpop.permute.xlu0 %1142  ;;  %v1472_v34 = vsel %vm1451_vm2, %v2474_v58, %v1175_v50  ;;  %v2310_v58 = vpack.i.bf16 %v1101_v0, %v2830_v49 }
  0xbe   : > { %1413 = vrot.lane.b32.xlu1 %v3768_v32, %s2324_s9  ;;  %v1456_v3 = vsel %vm1451_vm2, %v2478_v61, %v1143_v37  ;;  %v3774_v61 = vld [vmem:[#allocation3_spill] sm:$0xff] }
  0xbf   : > { %1381 = vrot.lane.b32.xlu0 %v3769_v47, %s2324_s9 }
  0xc0   : > { %v1177_v24 = vpop.permute.xlu1 %1176 }
  0xc1   : > { %v1145_v33 = vpop.permute.xlu0 %1144  ;;  %v1473_v18 = vsel %vm1451_vm2, %v3774_v61, %v1177_v24 }
  0xc2   : > { %1194 = vrot.lane.b32.xlu1 %v1001_v20, %s2325_s10  ;;  %v1457_v28 = vsel %vm1451_vm2, %v3775_v27, %v1145_v33 }
  0xc3   : > { %1162 = vrot.lane.b32.xlu0 %v969_v55, %s2325_s10 }
  0xc4   : > { %v1271_v45 = vpop.permute.xlu1 %1270 }
  0xc5   : > { %v1239_v6 = vpop.permute.xlu0 %1238  ;;  %v1505_v9 = vsel %vm1484_vm4, %v1472_v34, %v1271_v45 }
  0xc6   : > { %1196 = vrot.lane.b32.xlu1 %v3770_v23, %s2325_s10  ;;  %v1489_v13 = vsel %vm1484_vm4, %v1456_v3, %v1239_v6 }
  0xc7   : > { %1164 = vrot.lane.b32.xlu0 %v3771_v38, %s2325_s10 }
  0xc8   : > { %v1273_v54 = vpop.permute.xlu1 %1272 }
  0xc9   : > { %v1241_v40 = vpop.permute.xlu0 %1240  ;;  %v1506_v20 = vsel %vm1484_vm4, %v1473_v18, %v1273_v54 }
  0xca   : > { %1290 = vrot.lane.b32.xlu1 %v3772_v14, %s2323_s8  ;;  %v1490_v56 = vsel %vm1484_vm4, %v1457_v28, %v1241_v40 }
  0xcb   : > { %1258 = vrot.lane.b32.xlu0 %v2448_v41, %s2323_s8 }
  0xcc   : > { %v1396_v19 = vpop.permute.xlu1 %1395 }
  0xcd   : > { %v1364_v15 = vpop.permute.xlu0 %1363  ;;  %v1538_v25 = vsel %vm1517_vm3, %v1505_v9, %v1396_v19 }
  0xce   : > { %v1522_v41 = vsel %vm1517_vm3, %v1489_v13, %v1364_v15  ;;  %1383 = vrot.lane.b32.xlu1 %v3773_v39, %s2324_s9  ;;  %2273 = vmatprep.mubr.msk.f32.mxu1 %vm1559_vm5, %v1538_v25 }
  0xcf   : > { %1260 = vrot.lane.b32.xlu0 %v2450_v42, %s2323_s8  ;;  %2249 = vmatprep.mubr.msk.f32.mxu0 %vm1559_vm5, %v1522_v41 }
  0xd0   : > { %v1398_v12 = vpop.permute.xlu1 %1397 }
  0xd1   : > { %v1366_v4 = vpop.permute.xlu0 %1365  ;;  %v1539_v42 = vsel %vm1517_vm3, %v1506_v20, %v1398_v12 }
  0xd2   : > { %v1523_v49 = vsel %vm1517_vm3, %v1490_v56, %v1366_v4  ;;  %1385 = vrot.lane.b32.xlu1 %v3776_v8, %s2324_s9  ;;  %2274 = vmatmul.mubr.msk.f32.gmra.mrb[4].mxu1 %vm1559_vm5, %v1539_v42 }
  0xd3   : > { %2311 = vrot.lane.b32.xlu0 %v2310_v58, %s2324_s9  ;;  %2250 = vmatmul.mubr.msk.f32.gmra.mrb[4].mxu0 %vm1559_vm5, %v1523_v49 }
  0xd4   : > { %v1179_v55 = vpop.permute.xlu1 %1178 }
  0xd5   : > { %v1147_v10 = vpop.permute.xlu0 %1146  ;;  %v1474_v44 = vsel %vm1451_vm2, %v2562_v51, %v1179_v55 }
  0xd6   : > { %v1458_v11 = vsel %vm1451_vm2, %v2564_v53, %v1147_v10 }
  0xd8   : > { %v1181_v17 = vpop.permute.xlu1 %1180 }
  0xd9   : > { %v1149_v62 = vpop.permute.xlu0 %1148  ;;  %v1475_v51 = vsel %vm1451_vm2, %v2888_v2, %v1181_v17 }
  0xda   : > { %v1459_v53 = vsel %vm1451_vm2, %v2890_v21, %v1149_v62 }
  0xdc   : > { %v1275_v59 = vpop.permute.xlu1 %1274 }
  0xdd   : > { %v1243_v29 = vpop.permute.xlu0 %1242  ;;  %v1507_v37 = vsel %vm1484_vm4, %v1474_v44, %v1275_v59 }
  0xde   : > { %v1491_v32 = vsel %vm1484_vm4, %v1458_v11, %v1243_v29 }
  0xe0   : > { %v1277_v35 = vpop.permute.xlu1 %1276 }
  0xe1   : > { %v1245_v50 = vpop.permute.xlu0 %1244  ;;  %v1508_v6 = vsel %vm1484_vm4, %v1475_v51, %v1277_v35 }
  0xe2   : > { %v1492_v23 = vsel %vm1484_vm4, %v1459_v53, %v1245_v50 }
  0xe4   : > { %v1400_v47 = vpop.permute.xlu1 %1399 }
  0xe5   : > { %v1368_v24 = vpop.permute.xlu0 %1367  ;;  %v1540_v33 = vsel %vm1517_vm3, %v1507_v37, %v1400_v47 }
  0xe6   : > { %v1524_v45 = vsel %vm1517_vm3, %v1491_v32, %v1368_v24  ;;  %2276 = vmatprep.mubr.msk.f32.mxu1 %vm1559_vm5, %v1540_v33 }
  0xe7   : > { %2252 = vmatprep.mubr.msk.f32.mxu0 %vm1559_vm5, %v1524_v45 }
  0xe8   : > { %v1402_v38 = vpop.permute.xlu1 %1401 }
  0xe9   : > { %v1370_v54 = vpop.permute.xlu0 %1369  ;;  %v1541_v40 = vsel %vm1517_vm3, %v1508_v6, %v1402_v38 }
  0xea   : > { %v1525_v14 = vsel %vm1517_vm3, %v1492_v23, %v1370_v54  ;;  %2277 = vmatmul.mubr.msk.f32.gmra.mrb[6].mxu1 %vm1559_vm5, %v1541_v40 }
  0xeb   : > { %2253 = vmatmul.mubr.msk.f32.gmra.mrb[6].mxu0 %vm1559_vm5, %v1525_v14 }
  0xec   : > { %v1183_v34 = vpop.permute.xlu1 %1182 }
  0xed   : > { %v1151_v3 = vpop.permute.xlu0 %1150  ;;  %v1476_v15 = vsel %vm1451_vm2, %v2901_v22, %v1183_v34 }
  0xee   : > { %v1460_v25 = vsel %vm1451_vm2, %v2904_v1, %v1151_v3 }
  0xf0   : > { %v1185_v2 = vpop.permute.xlu1 %1184 }
  0xf1   : > { %v1153_v0 = vpop.permute.xlu0 %1152  ;;  %v1477_v22 = vsel %vm1451_vm2, %v2603_v26, %v1185_v2 }
  0xf2   : > { %v1461_v1 = vsel %vm1451_vm2, %v2605_v30, %v1153_v0 }
  0xf4   : > { %v1279_v9 = vpop.permute.xlu1 %1278 }
  0xf5   : > { %v1247_v21 = vpop.permute.xlu0 %1246  ;;  %v1509_v41 = vsel %vm1484_vm4, %v1476_v15, %v1279_v9 }
  0xf6   : > { %v1493_v39 = vsel %vm1484_vm4, %v1460_v25, %v1247_v21 }
  0xf8   : > { %v1281_v13 = vpop.permute.xlu1 %1280 }
  0xf9   : > { %v1249_v19 = vpop.permute.xlu0 %1248  ;;  %v1510_v28 = vsel %vm1484_vm4, %v1477_v22, %v1281_v13 }
  0xfa   : > { %v1494_v20 = vsel %vm1484_vm4, %v1461_v1, %v1249_v19 }
  0xfc   : > { %v1404_v58 = vpop.permute.xlu1 %1403 }
  0xfd   : > { %v1372_v61 = vpop.permute.xlu0 %1371  ;;  %v1542_v18 = vsel %vm1517_vm3, %v1509_v41, %v1404_v58 }
  0xfe   : > { %v1526_v27 = vsel %vm1517_vm3, %v1493_v39, %v1372_v61  ;;  %2279 = vmatprep.mubr.msk.f32.mxu1 %vm1559_vm5, %v1542_v18 }
  0xff   : > { %2255 = vmatprep.mubr.msk.f32.mxu0 %vm1559_vm5, %v1526_v27 }
 0x100   : > { %v1406_v56 = vpop.permute.xlu1 %1405 }
 0x101   : > { %v1374_v12 = vpop.permute.xlu0 %1373  ;;  %v1543_v4 = vsel %vm1517_vm3, %v1510_v28, %v1406_v56 }
 0x102   : > { %v1527_v42 = vsel %vm1517_vm3, %v1494_v20, %v1374_v12  ;;  %2280 = vmatmul.mubr.msk.f32.gmra.mrb[8].mxu1 %vm1559_vm5, %v1543_v4 }
 0x103   : > { %2256 = vmatmul.mubr.msk.f32.gmra.mrb[8].mxu0 %vm1559_vm5, %v1527_v42 }
 0x104   : > { %v1187_v49 = vpop.permute.xlu1 %1186 }
 0x105   : > { %v1155_v8 = vpop.permute.xlu0 %1154  ;;  %v1478_v59 = vsel %vm1451_vm2, %v2623_v46, %v1187_v49 }
 0x106   : > { %v1462_v29 = vsel %vm1451_vm2, %v2634_v16, %v1155_v8 }
 0x108   : > { %v1189_v26 = vpop.permute.xlu1 %1188 }
 0x109   : > { %v1157_v55 = vpop.permute.xlu0 %1156  ;;  %v1479_v46 = vsel %vm1451_vm2, %v2665_v43, %v1189_v26 }
 0x10a   : > { %v1463_v16 = vsel %vm1451_vm2, %v2667_v48, %v1157_v55 }
 0x10c   : > { %v1283_v10 = vpop.permute.xlu1 %1282 }
 0x10d   : > { %v1251_v30 = vpop.permute.xlu0 %1250  ;;  %v1511_v35 = vsel %vm1484_vm4, %v1478_v59, %v1283_v10 }
 0x10e   : > { %v1495_v50 = vsel %vm1484_vm4, %v1462_v29, %v1251_v30 }
 0x110   : > { %v1285_v17 = vpop.permute.xlu1 %1284 }
 0x111   : > { %v1253_v62 = vpop.permute.xlu0 %1252  ;;  %v1512_v47 = vsel %vm1484_vm4, %v1479_v46, %v1285_v17 }
 0x112   : > { %v1496_v24 = vsel %vm1484_vm4, %v1463_v16, %v1253_v62 }
 0x114   : > { %v1408_v44 = vpop.permute.xlu1 %1407 }
 0x115   : > { %v1376_v11 = vpop.permute.xlu0 %1375  ;;  %v1544_v37 = vsel %vm1517_vm3, %v1511_v35, %v1408_v44 }
 0x116   : > { %v1528_v32 = vsel %vm1517_vm3, %v1495_v50, %v1376_v11  ;;  %2282 = vmatprep.mubr.msk.f32.mxu1 %vm1559_vm5, %v1544_v37 }
 0x117   : > { %2258 = vmatprep.mubr.msk.f32.mxu0 %vm1559_vm5, %v1528_v32 }
 0x118   : > { %v1410_v33 = vpop.permute.xlu1 %1409 }
 0x119   : > { %v1378_v45 = vpop.permute.xlu0 %1377  ;;  %v1545_v51 = vsel %vm1517_vm3, %v1512_v47, %v1410_v33 }
 0x11a   : > { %v1529_v53 = vsel %vm1517_vm3, %v1496_v24, %v1378_v45  ;;  %2283 = vmatmul.mubr.msk.f32.gmra.mrb[10].mxu1 %vm1559_vm5, %v1545_v51 }
 0x11b   : > { %2259 = vmatmul.mubr.msk.f32.gmra.mrb[10].mxu0 %vm1559_vm5, %v1529_v53 }
 0x11c   : > { %v1191_v6 = vpop.permute.xlu1 %1190 }
 0x11d   : > { %v1159_v23 = vpop.permute.xlu0 %1158  ;;  %v1480_v34 = vsel %vm1451_vm2, %v2707_v31, %v1191_v6 }
 0x11e   : > { %v1464_v3 = vsel %vm1451_vm2, %v2709_v5, %v1159_v23 }
 0x120   : > { %v1193_v43 = vpop.permute.xlu1 %1192 }
 0x121   : > { %v1161_v38 = vpop.permute.xlu0 %1160  ;;  %v1481_v31 = vsel %vm1451_vm2, %v2792_v36, %v1193_v43 }
 0x122   : > { %v1465_v5 = vsel %vm1451_vm2, %v2794_v7, %v1161_v38 }
 0x124   : > { %v1287_v54 = vpop.permute.xlu1 %1286 }
 0x125   : > { %v1255_v48 = vpop.permute.xlu0 %1254  ;;  %v1513_v2 = vsel %vm1484_vm4, %v1480_v34, %v1287_v54 }
 0x126   : > { %v1497_v0 = vsel %vm1484_vm4, %v1464_v3, %v1255_v48 }
 0x128   : > { %v1289_v40 = vpop.permute.xlu1 %1288 }
 0x129   : > { %v1257_v14 = vpop.permute.xlu0 %1256  ;;  %v1514_v15 = vsel %vm1484_vm4, %v1481_v31, %v1289_v40 }
 0x12a   : > { %v1498_v25 = vsel %vm1484_vm4, %v1465_v5, %v1257_v14 }
 0x12c   : > { %v1412_v9 = vpop.permute.xlu1 %1411 }
 0x12d   : > { %v1380_v21 = vpop.permute.xlu0 %1379  ;;  %v1546_v13 = vsel %vm1517_vm3, %v1513_v2, %v1412_v9 }
 0x12e   : > { %v1530_v19 = vsel %vm1517_vm3, %v1497_v0, %v1380_v21  ;;  %2285 = vmatprep.mubr.msk.f32.mxu1 %vm1559_vm5, %v1546_v13 }
 0x12f   : > { %2261 = vmatprep.mubr.msk.f32.mxu0 %vm1559_vm5, %v1530_v19 }
 0x130   : > { %v1414_v41 = vpop.permute.xlu1 %1413 }
 0x131   : > { %v1382_v39 = vpop.permute.xlu0 %1381  ;;  %v1547_v58 = vsel %vm1517_vm3, %v1514_v15, %v1414_v41 }
 0x132   : > { %v1531_v61 = vsel %vm1517_vm3, %v1498_v25, %v1382_v39  ;;  %2286 = vmatmul.mubr.msk.f32.gmra.mrb[12].mxu1 %vm1559_vm5, %v1547_v58 }
 0x133   : > { %2262 = vmatmul.mubr.msk.f32.gmra.mrb[12].mxu0 %vm1559_vm5, %v1531_v61 }
 0x134   : > { %v1195_v18 = vpop.permute.xlu1 %1194 }
 0x135   : > { %v1163_v27 = vpop.permute.xlu0 %1162 }
 0x136   : > { %v1466_v28 = vsel %vm1451_vm2, %v2811_v57, %v1163_v27  ;;  %v1482_v57 = vsel %vm1451_vm2, %v2796_v63, %v1195_v18  ;;  %v3298_v63 = vld [vmem:[%s3676_s4] ss:$0 sm:$0xff] }
 0x138   : > { %v1197_v36 = vpop.permute.xlu1 %1196 }
 0x139   : > { %v1165_v22 = vpop.permute.xlu0 %1164  ;;  %v1483_v42 = vsel %vm1451_vm2, %v2813_v52, %v1197_v36 }
 0x13a   : > { %v1467_v49 = vsel %vm1451_vm2, %v2815_v60, %v1165_v22 }
 0x13c   : > { %v1291_v1 = vpop.permute.xlu1 %1290 }
 0x13d   : > { %v1259_v7 = vpop.permute.xlu0 %1258  ;;  %v1515_v62 = vsel %vm1484_vm4, %v1482_v57, %v1291_v1  ;;  %v1516_v59 = vsel %vm1484_vm4, %v1483_v42, %v1291_v1 }
 0x13e   : > { %v1499_v20 = vsel %vm1484_vm4, %v1466_v28, %v1259_v7 }
 0x140   : > { %v1384_v56 = vpop.permute.xlu1 %1383 }
 0x141   : > { %v1261_v12 = vpop.permute.xlu0 %1260  ;;  %v1532_v4 = vsel %vm1517_vm3, %v1499_v20, %v1384_v56 }
 0x142   : > { %2264 = vmatprep.mubr.msk.f32.mxu0 %vm1559_vm5, %v1532_v4  ;;  %v1500_v8 = vsel %vm1484_vm4, %v1467_v49, %v1261_v12 }
 0x144   : > { %v1386_v26 = vpop.permute.xlu1 %1385 }
 0x145   : > { %v2312_v55 = vpop.permute.xlu0 %2311  ;;  %v1533_v10 = vsel %vm1517_vm3, %v1500_v8, %v1386_v26 }
 0x146   : > { %v2314_v30 = vunpack.i.h.bf16 %v2312_v55  ;;  %v2313_v17 = vunpack.i.l.bf16 %v2312_v55  ;;  %2265 = vmatmul.mubr.msk.f32.gmra.mrb[14].mxu0 %vm1559_vm5, %v1533_v10 }
 0x148   : > { %v1548_v52 = vsel %vm1517_vm3, %v1515_v62, %v2313_v17  ;;  %v1549_v60 = vsel %vm1517_vm3, %v1516_v59, %v2314_v30 }
 0x149   : > { %2288 = vmatprep.mubr.msk.f32.mxu1 %vm1559_vm5, %v1548_v52 }
 0x14a   : > { %2289 = vmatmul.mubr.msk.f32.gmra.mrb[14].mxu1 %vm1559_vm5, %v1549_v60 }
 0x175   : > { %v2269_v35 = vpop.f32.mrb[0].mxu1 }
 0x176   : > { %v2245_v29 = vpop.f32.mrb[0].mxu0  ;;  %v3311_v44 = vadd.f32 %v2269_v35, %v3298_v63  ;;  %v1802_v37 = vpop.f32.mrb[1].mxu1  ;;  %v2327_v35 = vmov (!%p2200_p4), 0.0  }
 0x177   : > { %v3308_v50 = vadd.f32 %v2245_v29, %v3298_v63  ;;  %v1722_v11 = vpop.f32.mrb[1].mxu0  ;;  %v3317_v46 = vadd.f32 %v3298_v63, %v1802_v37  ;;  %1918 = vst.msk [vmem:[%s3678_s6] sm:$0x3] (!%p2200_p4), %vm1917_vm0, %v2327_v35 }
 0x178   : > { %v3314_v32 = vadd.f32 %v3298_v63, %v1722_v11  ;;  %1898 = vst.msk [vmem:[%s3305_s19 + $0x88] sm:$0xff] %vm1559_vm5, %v3311_v44 }
 0x179   : > { %1882 = vst.msk [vmem:[%s3305_s19 + $0x8] sm:$0xff] %vm1559_vm5, %v3308_v50  ;;  %1897 = vst.msk [vmem:[%s3305_s19 + $0x80] sm:$0xff] %vm1559_vm5, %v3317_v46 }
 0x17a   : > { %1881 = vst.msk [vmem:[%s3305_s19] sm:$0xff] %vm1559_vm5, %v3314_v32 }
 0x18d   : > { %v2272_v47 = vpop.f32.mrb[2].mxu1 }
 0x18e   : > { %v2248_v16 = vpop.f32.mrb[2].mxu0  ;;  %v3335_v33 = vadd.f32 %v2272_v47, %v3298_v63  ;;  %v1812_v51 = vpop.f32.mrb[3].mxu1 }
 0x18f   : > { %v3332_v24 = vadd.f32 %v2248_v16, %v3298_v63  ;;  %v1732_v45 = vpop.f32.mrb[3].mxu0  ;;  %v3341_v6 = vadd.f32 %v3298_v63, %v1812_v51 }
 0x190   : > { %v3338_v53 = vadd.f32 %v3298_v63, %v1732_v45  ;;  %1900 = vst.msk [vmem:[%s3305_s19 + $0x98] sm:$0xff] %vm1559_vm5, %v3335_v33 }
 0x191   : > { %1884 = vst.msk [vmem:[%s3305_s19 + $0x18] sm:$0xff] %vm1559_vm5, %v3332_v24  ;;  %1899 = vst.msk [vmem:[%s3305_s19 + $0x90] sm:$0xff] %vm1559_vm5, %v3341_v6 }
 0x192   : > { %1883 = vst.msk [vmem:[%s3305_s19 + $0x10] sm:$0xff] %vm1559_vm5, %v3338_v53 }
 0x1a5   : > { %v2275_v43 = vpop.f32.mrb[4].mxu1 }
 0x1a6   : > { %v2251_v23 = vpop.f32.mrb[4].mxu0  ;;  %v3359_v54 = vadd.f32 %v2275_v43, %v3298_v63  ;;  %v1822_v40 = vpop.f32.mrb[5].mxu1 }
 0x1a7   : > { %v3356_v38 = vadd.f32 %v2251_v23, %v3298_v63  ;;  %v1742_v48 = vpop.f32.mrb[5].mxu0  ;;  %v3365_v34 = vadd.f32 %v3298_v63, %v1822_v40 }
 0x1a8   : > { %v3362_v14 = vadd.f32 %v3298_v63, %v1742_v48  ;;  %1902 = vst.msk [vmem:[%s3305_s19 + $0xa8] sm:$0xff] %vm1559_vm5, %v3359_v54 }
 0x1a9   : > { %1886 = vst.msk [vmem:[%s3305_s19 + $0x28] sm:$0xff] %vm1559_vm5, %v3356_v38  ;;  %1901 = vst.msk [vmem:[%s3305_s19 + $0xa0] sm:$0xff] %vm1559_vm5, %v3365_v34 }
 0x1aa   : > { %1885 = vst.msk [vmem:[%s3305_s19 + $0x20] sm:$0xff] %vm1559_vm5, %v3362_v14 }
 0x1bd   : > { %v2278_v2 = vpop.f32.mrb[6].mxu1 }
 0x1be   : > { %v2254_v3 = vpop.f32.mrb[6].mxu0  ;;  %v3383_v9 = vadd.f32 %v2278_v2, %v3298_v63  ;;  %v1832_v13 = vpop.f32.mrb[7].mxu1 }
 0x1bf   : > { %v3380_v0 = vadd.f32 %v2254_v3, %v3298_v63  ;;  %v1752_v21 = vpop.f32.mrb[7].mxu0  ;;  %v3389_v31 = vadd.f32 %v3298_v63, %v1832_v13 }
 0x1c0   : > { %v3386_v19 = vadd.f32 %v3298_v63, %v1752_v21  ;;  %1904 = vst.msk [vmem:[%s3305_s19 + $0xb8] sm:$0xff] %vm1559_vm5, %v3383_v9 }
 0x1c1   : > { %1888 = vst.msk [vmem:[%s3305_s19 + $0x38] sm:$0xff] %vm1559_vm5, %v3380_v0  ;;  %1903 = vst.msk [vmem:[%s3305_s19 + $0xb0] sm:$0xff] %vm1559_vm5, %v3389_v31 }
 0x1c2   : > { %1887 = vst.msk [vmem:[%s3305_s19 + $0x30] sm:$0xff] %vm1559_vm5, %v3386_v19 }
 0x1d5   : > { %v2281_v15 = vpop.f32.mrb[8].mxu1 }
 0x1d6   : > { %v2257_v5 = vpop.f32.mrb[8].mxu0  ;;  %v3407_v41 = vadd.f32 %v2281_v15, %v3298_v63  ;;  %v1842_v58 = vpop.f32.mrb[9].mxu1 }
 0x1d7   : > { %v3404_v25 = vadd.f32 %v2257_v5, %v3298_v63  ;;  %v1762_v39 = vpop.f32.mrb[9].mxu0  ;;  %v3413_v18 = vadd.f32 %v3298_v63, %v1842_v58 }
 0x1d8   : > { %v3410_v61 = vadd.f32 %v3298_v63, %v1762_v39  ;;  %1906 = vst.msk [vmem:[%s3305_s19 + $0xc8] sm:$0xff] %vm1559_vm5, %v3407_v41 }
 0x1d9   : > { %1890 = vst.msk [vmem:[%s3305_s19 + $0x48] sm:$0xff] %vm1559_vm5, %v3404_v25  ;;  %1905 = vst.msk [vmem:[%s3305_s19 + $0xc0] sm:$0xff] %vm1559_vm5, %v3413_v18 }
 0x1da   : > { %1889 = vst.msk [vmem:[%s3305_s19 + $0x40] sm:$0xff] %vm1559_vm5, %v3410_v61 }
 0x1ed   : > { %v2284_v36 = vpop.f32.mrb[10].mxu1 }
 0x1ee   : > { %v2260_v27 = vpop.f32.mrb[10].mxu0  ;;  %v3431_v1 = vadd.f32 %v2284_v36, %v3298_v63  ;;  %v1852_v28 = vpop.f32.mrb[11].mxu1 }
 0x1ef   : > { %v3428_v22 = vadd.f32 %v2260_v27, %v3298_v63  ;;  %v1772_v7 = vpop.f32.mrb[11].mxu0  ;;  %v3437_v56 = vadd.f32 %v3298_v63, %v1852_v28 }
 0x1f0   : > { %v3434_v20 = vadd.f32 %v3298_v63, %v1772_v7  ;;  %1908 = vst.msk [vmem:[%s3305_s19 + $0xd8] sm:$0xff] %vm1559_vm5, %v3431_v1 }
 0x1f1   : > { %1892 = vst.msk [vmem:[%s3305_s19 + $0x58] sm:$0xff] %vm1559_vm5, %v3428_v22  ;;  %1907 = vst.msk [vmem:[%s3305_s19 + $0xd0] sm:$0xff] %vm1559_vm5, %v3437_v56 }
 0x1f2   : > { %1891 = vst.msk [vmem:[%s3305_s19 + $0x50] sm:$0xff] %vm1559_vm5, %v3434_v20 }
 0x205   : > { %v2287_v4 = vpop.f32.mrb[12].mxu1 }
 0x206   : > { %v2263_v12 = vpop.f32.mrb[12].mxu0  ;;  %v3455_v49 = vadd.f32 %v2287_v4, %v3298_v63  ;;  %v1862_v26 = vpop.f32.mrb[13].mxu1 }
 0x207   : > { %v3452_v42 = vadd.f32 %v2263_v12, %v3298_v63  ;;  %v1782_v8 = vpop.f32.mrb[13].mxu0  ;;  %v3461_v57 = vadd.f32 %v3298_v63, %v1862_v26 }
 0x208   : > { %v3458_v55 = vadd.f32 %v3298_v63, %v1782_v8  ;;  %1910 = vst.msk [vmem:[%s3305_s19 + $0xe8] sm:$0xff] %vm1559_vm5, %v3455_v49 }
 0x209   : > { %1894 = vst.msk [vmem:[%s3305_s19 + $0x68] sm:$0xff] %vm1559_vm5, %v3452_v42  ;;  %1909 = vst.msk [vmem:[%s3305_s19 + $0xe0] sm:$0xff] %vm1559_vm5, %v3461_v57 }
 0x20a   : > { %1893 = vst.msk [vmem:[%s3305_s19 + $0x60] sm:$0xff] %vm1559_vm5, %v3458_v55 }
 0x219   : > { %v2266_v10 = vpop.f32.mrb[14].mxu0 }
 0x21a   : > { %v3476_v30 = vadd.f32 %v2266_v10, %v3298_v63  ;;  %v1792_v17 = vpop.f32.mrb[15].mxu0 }
 0x21b   : > { %v3479_v62 = vadd.f32 %v3298_v63, %v1792_v17  ;;  %1916 = sbr.rel (%p2200_p4) target bundleno = 546 (0x222), region = 44 }
 0x21c   : > { %1896 = vst.msk [vmem:[%s3305_s19 + $0x78] sm:$0xff] %vm1559_vm5, %v3476_v30 }
 0x21d   : > { %v2290_v59 = vpop.f32.mrb[14].mxu1  ;;  %1895 = vst.msk [vmem:[%s3305_s19 + $0x70] sm:$0xff] %vm1559_vm5, %v3479_v62 }
 0x21e   : > { %v3488_v52 = vadd.f32 %v2290_v59, %v3298_v63  ;;  %v1872_v60 = vpop.f32.mrb[15].mxu1 }
 0x21f   : > { %v3491_v29 = vadd.f32 %v3298_v63, %v1872_v60 }
 0x220   : > { %1912 = vst.msk [vmem:[%s3305_s19 + $0xf8] sm:$0xff] %vm1559_vm5, %v3488_v52 }
 0x221   : > { %1911 = vst.msk [vmem:[%s3305_s19 + $0xf0] sm:$0xff] %vm1559_vm5, %v3491_v29 }
 0x222 PF: > { %v1919_v63 = vsel %vm1559_vm5, %v3314_v32, 0.0  ;;  %v1920_v11 = vsel %vm1559_vm5, %v3308_v50, 0.0  ;;  %v1922_v37 = vsel %vm1559_vm5, %v3338_v53, 0.0  ;;  %v1924_v47 = vsel %vm1559_vm5, %v3332_v24, 0.0 }
 0x223   : > { %v1921_v16 = vadd.f32 %v1920_v11, %v1919_v63  ;;  %v1926_v51 = vsel %vm1559_vm5, %v3362_v14, 0.0  ;;  %v1928_v43 = vsel %vm1559_vm5, %v3356_v38, 0.0  ;;  %v1930_v40 = vsel %vm1559_vm5, %v3386_v19, 0.0 }
 0x224   : > { %v1932_v2 = vsel %vm1559_vm5, %v3380_v0, 0.0  ;;  %v1934_v13 = vsel %vm1559_vm5, %v3410_v61, 0.0  ;;  %v1936_v15 = vsel %vm1559_vm5, %v3404_v25, 0.0  ;;  %v1988_v39 = vmul.f32 %v3314_v32, %v3314_v32 }
 0x225   : > { %v1923_v45 = vadd.f32 %v1922_v37, %v1921_v16  ;;  %v1989_v58 = vmul.f32 %v3308_v50, %v3308_v50  ;;  %v1990_v27 = vmul.f32 %v3338_v53, %v3338_v53  ;;  %v1938_v7 = vsel %vm1559_vm5, %v3434_v20, 0.0 }
 0x226   : > { %v1991_v28 = vmul.f32 %v3332_v24, %v3332_v24  ;;  %v1940_v4 = vsel %vm1559_vm5, %v3428_v22, 0.0  ;;  %v1992_v32 = vmul.f32 %v3362_v14, %v3362_v14  ;;  %v2020_v8 = vsel %vm1559_vm5, %v1988_v39, 0.0 }
 0x227   : > { %v1925_v23 = vadd.f32 %v1924_v47, %v1923_v45  ;;  %v2021_v50 = vsel %vm1559_vm5, %v1989_v58, 0.0  ;;  %v2023_v53 = vsel %vm1559_vm5, %v1990_v27, 0.0  ;;  %v1942_v17 = vsel %vm1559_vm5, %v3458_v55, 0.0 }
 0x228   : > { %v2022_v10 = vadd.f32 %v2021_v50, %v2020_v8  ;;  %v1993_v24 = vmul.f32 %v3356_v38, %v3356_v38  ;;  %v2025_v59 = vsel %vm1559_vm5, %v1991_v28, 0.0  ;;  %v1944_v14 = vsel %vm1559_vm5, %v3452_v42, 0.0 }
 0x229   : > { %v1927_v48 = vadd.f32 %v1926_v51, %v1925_v23  ;;  %v1994_v63 = vmul.f32 %v3386_v19, %v3386_v19  ;;  %v2027_v11 = vsel %vm1559_vm5, %v1992_v32, 0.0  ;;  %v1946_v47 = vsel %vm1559_vm5, %v3479_v62, 0.0 }
 0x22a   : > { %v2024_v35 = vadd.f32 %v2023_v53, %v2022_v10  ;;  %v1995_v38 = vmul.f32 %v3380_v0, %v3380_v0  ;;  %v2029_v45 = vsel %vm1559_vm5, %v1993_v24, 0.0  ;;  %v1996_v19 = vmul.f32 %v3410_v61, %v3410_v61 }
 0x22b   : > { %v1929_v3 = vadd.f32 %v1928_v43, %v1927_v48  ;;  %v1948_v43 = vsel %vm1559_vm5, %v3476_v30, 0.0  ;;  %v2031_v48 = vsel %vm1559_vm5, %v1994_v63, 0.0  ;;  %v1997_v0 = vmul.f32 %v3404_v25, %v3404_v25 }
 0x22c   : > { %v2026_v16 = vadd.f32 %v2025_v59, %v2024_v35  ;;  %v1998_v61 = vmul.f32 %v3434_v20, %v3434_v20  ;;  %v2035_v39 = vsel %vm1559_vm5, %v1996_v19, 0.0  ;;  %v1999_v25 = vmul.f32 %v3428_v22, %v3428_v22 }
 0x22d   : > { %v1931_v21 = vadd.f32 %v1930_v40, %v1929_v3  ;;  %v2000_v20 = vmul.f32 %v3458_v55, %v3458_v55  ;;  %v1958_v53 = vsel %vm1559_vm5, %v3365_v34, 0.0  ;;  %v2001_v22 = vmul.f32 %v3452_v42, %v3452_v42 }
 0x22e   : > { %v2028_v23 = vadd.f32 %v2027_v11, %v2026_v16  ;;  %v2039_v32 = vsel %vm1559_vm5, %v1998_v61, 0.0  ;;  %v1960_v24 = vsel %vm1559_vm5, %v3359_v54, 0.0  ;;  %v2002_v55 = vmul.f32 %v3479_v62, %v3479_v62 }
 0x22f   : > { %v1933_v5 = vadd.f32 %v1932_v2, %v1931_v21  ;;  %v1950_v2 = vsel %vm1559_vm5, %v3317_v46, 0.0  ;;  %v2033_v21 = vsel %vm1559_vm5, %v1995_v38, 0.0  ;;  %v2043_v59 = vsel %vm1559_vm5, %v2000_v20, 0.0 }
 0x230   : > { %v2030_v3 = vadd.f32 %v2029_v45, %v2028_v23  ;;  %v2003_v42 = vmul.f32 %v3476_v30, %v3476_v30  ;;  %v2045_v63 = vsel %vm1559_vm5, %v2001_v22, 0.0  ;;  %v1964_v16 = vsel %vm1559_vm5, %v3383_v9, 0.0 }
 0x231   : > { %v1935_v36 = vadd.f32 %v1934_v13, %v1933_v5  ;;  %v2004_v62 = vmul.f32 %v3317_v46, %v3317_v46  ;;  %v2005_v30 = vmul.f32 %v3311_v44, %v3311_v44  ;;  %v2006_v46 = vmul.f32 %v3341_v6, %v3341_v6 }
 0x232   : > { %v2032_v5 = vadd.f32 %v2031_v48, %v2030_v3  ;;  %v2049_v23 = vsel %vm1559_vm5, %v2003_v42, 0.0  ;;  %v1968_v48 = vsel %vm1559_vm5, %v3407_v41, 0.0  ;;  %v2012_v22 = vmul.f32 %v3413_v18, %v3413_v18 }
 0x233   : > { %v1937_v12 = vadd.f32 %v1936_v15, %v1935_v36  ;;  %v1952_v15 = vsel %vm1559_vm5, %v3311_v44, 0.0  ;;  %v1954_v36 = vsel %vm1559_vm5, %v3341_v6, 0.0  ;;  %v2007_v44 = vmul.f32 %v3335_v33, %v3335_v33 }
 0x234   : > { %v2034_v27 = vadd.f32 %v2033_v21, %v2032_v5  ;;  %v2053_v21 = vsel %vm1559_vm5, %v2005_v30, 0.0  ;;  %v2008_v6 = vmul.f32 %v3365_v34, %v3365_v34  ;;  %v2055_v61 = vsel %vm1559_vm5, %v2006_v46, 0.0 }
 0x235   : > { %v1939_v26 = vadd.f32 %v1938_v7, %v1937_v12  ;;  %v2037_v7 = vsel %vm1559_vm5, %v1997_v0, 0.0  ;;  %v1970_v0 = vsel %vm1559_vm5, %v3437_v56, 0.0  ;;  %v2010_v34 = vmul.f32 %v3389_v31, %v3389_v31 }
 0x236   : > { %v2036_v12 = vadd.f32 %v2035_v39, %v2034_v27  ;;  %v1974_v27 = vsel %vm1559_vm5, %v3461_v57, 0.0  ;;  %vm2090_vm6 = vcmask 1040384   ;;  %vm2093_vm7 = vcmask 123904  }
 0x237   : > { %v1941_v60 = vadd.f32 %v1940_v4, %v1939_v26  ;;  %v1956_v4 = vsel %vm1559_vm5, %v3335_v33, 0.0  ;;  %v2041_v26 = vsel %vm1559_vm5, %v1999_v25, 0.0  ;;  %v2009_v33 = vmul.f32 %v3359_v54, %v3359_v54 }
 0x238   : > { %v2038_v50 = vadd.f32 %v2037_v7, %v2036_v12  ;;  %v2059_v12 = vsel %vm1559_vm5, %v2008_v6, 0.0 }
 0x239   : > { %v1943_v37 = vadd.f32 %v1942_v17, %v1941_v60 }
 0x23a   : > { %v2040_v17 = vadd.f32 %v2039_v32, %v2038_v50  ;;  %v2011_v32 = vmul.f32 %v3383_v9, %v3383_v9 }
 0x23b   : > { %v1945_v51 = vadd.f32 %v1944_v14, %v1943_v37  ;;  %v1962_v14 = vsel %vm1559_vm5, %v3389_v31, 0.0 }
 0x23c   : > { %v2042_v35 = vadd.f32 %v2041_v26, %v2040_v17  ;;  %v2063_v26 = vsel %vm1559_vm5, %v2010_v34, 0.0  ;;  %v2065_v17 = vsel %vm1559_vm5, %v2011_v32, 0.0 }
 0x23d   : > { %v1947_v40 = vadd.f32 %v1946_v47, %v1945_v51  ;;  %v2047_v47 = vsel %vm1559_vm5, %v2002_v55, 0.0  ;;  %v1966_v51 = vsel %vm1559_vm5, %v3413_v18, 0.0  ;;  %v1980_v55 = vsel %vm1559_vm5, %v3488_v52, 0.0 }
 0x23e   : > { %v2044_v37 = vadd.f32 %v2043_v59, %v2042_v35  ;;  %v2014_v59 = vmul.f32 %v3437_v56, %v3437_v56  ;;  %v2015_v18 = vmul.f32 %v3431_v1, %v3431_v1 }
 0x23f   : > { %v1949_v13 = vadd.f32 %v1948_v43, %v1947_v40  ;;  %v2051_v40 = vsel %vm1559_vm5, %v2004_v62, 0.0 }
 0x240   : > { %v2046_v45 = vadd.f32 %v2045_v63, %v2044_v37  ;;  %v2016_v63 = vmul.f32 %v3461_v57, %v3461_v57  ;;  %v2073_v56 = vsel %vm1559_vm5, %v2015_v18, 0.0 }
 0x241   : > { %v1951_v58 = vadd.f32 %v1950_v2, %v1949_v13 }
 0x242   : > { %v2048_v19 = vadd.f32 %v2047_v47, %v2046_v45 }
 0x243   : > { %v1953_v28 = vadd.f32 %v1952_v15, %v1951_v58  ;;  %v1972_v15 = vsel %vm1559_vm5, %v3431_v1, 0.0  ;;  %v2018_v1 = vmul.f32 %v3491_v29, %v3491_v29 }
 0x244   : > { %v2050_v2 = vadd.f32 %v2049_v23, %v2048_v19 }
 0x245   : > { %v1955_v8 = vadd.f32 %v1954_v36, %v1953_v28  ;;  %v2057_v36 = vsel %vm1559_vm5, %v2007_v44, 0.0  ;;  %v1976_v28 = vsel %vm1559_vm5, %v3455_v49, 0.0 }
 0x246   : > { %v2052_v5 = vadd.f32 %v2051_v40, %v2050_v2 }
 0x247   : > { %v1957_v10 = vadd.f32 %v1956_v4, %v1955_v8  ;;  %v2061_v8 = vsel %vm1559_vm5, %v2009_v33, 0.0 }
 0x248   : > { %v2054_v58 = vadd.f32 %v2053_v21, %v2052_v5 }
 0x249   : > { %v1959_v60 = vadd.f32 %v1958_v53, %v1957_v10  ;;  %v1978_v53 = vsel %vm1559_vm5, %v3491_v29, 0.0  ;;  %v2013_v10 = vmul.f32 %v3407_v41, %v3407_v41 }
 0x24a   : > { %v2056_v7 = vadd.f32 %v2055_v61, %v2054_v58 }
 0x24b   : > { %v1961_v11 = vadd.f32 %v1960_v24, %v1959_v60  ;;  %v2067_v60 = vsel %vm1559_vm5, %v2012_v22, 0.0 }
 0x24c   : > { %v2058_v20 = vadd.f32 %v2057_v36, %v2056_v7 }
 0x24d   : > { %v1963_v38 = vadd.f32 %v1962_v14, %v1961_v11  ;;  %v2069_v14 = vsel %vm1559_vm5, %v2013_v10, 0.0  ;;  %v2071_v11 = vsel %vm1559_vm5, %v2014_v59, 0.0 }
 0x24e   : > { %v2060_v50 = vadd.f32 %v2059_v12, %v2058_v20 }
 0x24f   : > { %v1965_v43 = vadd.f32 %v1964_v16, %v1963_v38  ;;  %v2017_v16 = vmul.f32 %v3455_v49, %v3455_v49  ;;  %v2075_v38 = vsel %vm1559_vm5, %v2016_v63, 0.0 }
 0x250   : > { %v2062_v31 = vadd.f32 %v2061_v8, %v2060_v50 }
 0x251   : > { %v1967_v3 = vadd.f32 %v1966_v51, %v1965_v43  ;;  %v2019_v51 = vmul.f32 %v3488_v52, %v3488_v52  ;;  %v2077_v57 = vsel %vm1559_vm5, %v2017_v16, 0.0  ;;  %v2079_v43 = vsel %vm1559_vm5, %v2018_v1, 0.0 }
 0x252   : > { %v2064_v9 = vadd.f32 %v2063_v26, %v2062_v31 }
 0x253   : > { %v1969_v13 = vadd.f32 %v1968_v48, %v1967_v3  ;;  %v2081_v19 = vsel %vm1559_vm5, %v2019_v51, 0.0 }
 0x254   : > { %v2066_v35 = vadd.f32 %v2065_v17, %v2064_v9 }
 0x255   : > { %v1971_v39 = vadd.f32 %v1970_v0, %v1969_v13 }
 0x256   : > { %v2068_v41 = vadd.f32 %v2067_v60, %v2066_v35 }
 0x257   : > { %v1973_v25 = vadd.f32 %v1972_v15, %v1971_v39  ;;  %v2089_v15 = vld [vmem:[%s3678_s6] sm:$0x3] }
 0x258   : > { %v2070_v37 = vadd.f32 %v2069_v14, %v2068_v41 }
 0x259   : > { %v1975_v4 = vadd.f32 %v1974_v27, %v1973_v25 }
 0x25a   : > { %v2072_v47 = vadd.f32 %v2071_v11, %v2070_v37 }
 0x25b   : > { %v1977_v54 = vadd.f32 %v1976_v28, %v1975_v4 }
 0x25c   : > { %v2074_v45 = vadd.f32 %v2073_v56, %v2072_v47 }
 0x25d   : > { %v1979_v24 = vadd.f32 %v1978_v53, %v1977_v54 }
 0x25e   : > { %v2076_v23 = vadd.f32 %v2075_v38, %v2074_v45 }
 0x25f   : > { %v1981_v42 = vadd.f32 %v1980_v55, %v1979_v24 }
 0x260   : > { %v2078_v49 = vadd.f32 %v2077_v57, %v2076_v23 }
 0x261   : > { %v1982_v62 = vrot.slane %v1981_v42, 4 }
 0x262   : > { %v2080_v46 = vadd.f32 %v2079_v43, %v2078_v49 }
 0x263   : > { %v1983_v30 = vadd.f32 %v1982_v62, %v1981_v42 }
 0x264   : > { %v2082_v40 = vadd.f32 %v2081_v19, %v2080_v46 }
 0x265   : > { %v1984_v48 = vrot.slane %v1983_v30, 2 }
 0x266   : > { %v2083_v29 = vrot.slane %v2082_v40, 4 }
 0x267   : > { %v1985_v3 = vadd.f32 %v1984_v48, %v1983_v30 }
 0x268   : > { %v2084_v2 = vadd.f32 %v2083_v29, %v2082_v40 }
 0x269   : > { %v1986_v0 = vrot.slane %v1985_v3, 1 }
 0x26a   : > { %v2085_v44 = vrot.slane %v2084_v2, 2 }
 0x26b   : > { %v1987_v13 = vadd.f32 %v1986_v0, %v1985_v3 }
 0x26c   : > { %v2086_v21 = vadd.f32 %v2085_v44, %v2084_v2 }
 0x26e   : > { %v2087_v52 = vrot.slane %v2086_v21, 1 }
 0x270   : > { %v2088_v5 = vadd.f32 %v2087_v52, %v2086_v21 }
 0x272   : > { %v2091_v6 = vsel %vm2090_vm6, %v1987_v13, %v2088_v5 }
 0x273   : > { %v2092_v61 = vadd.f32 %v2091_v6, %v2089_v15 }
 0x275   : > { %2094 = vst.msk [vmem:[%s3678_s6] sm:$0x3] %vm2093_vm7, %v2092_v61 }
 0x276 PF: > { %s17_s21 = sadd.s32 1, %s2321_s21  }
 0x277   : > { %p14_p5 = scmp.ge.s32.totalorder %s17_s21, 4  }
 0x279   :  { %16 = sbr.rel (!%p14_p5) target bundleno = 1 (0x1), region = 82 }

// kernel: decoder_block_pallas.7
= control target key start
LH: loop header
LB: loop body
LE: loop exit
PB: predicated region body
PF: predicated region fallthrough
CT: control target
= control target key end

     0   :  { %s936_s12 = smov 0   ;;  %s1617_s0 = inlined_call_operand.vmem [shape: f32[2048,8], index: 0, kind: input, shape index: {}]   ;;  %s1618_s1 = inlined_call_operand.vmem [shape: f32[1,8], index: 1, kind: input, shape index: {}]   ;;  %s1619_s2 = inlined_call_operand.vmem [shape: f32[1,8], index: 2, kind: input, shape index: {}]   ;;  %s1620_s3 = inlined_call_operand.vmem [shape: f32[2048,8], index: 3, kind: output, shape index: {}]  }
   0x1 LB: > { %s885_s13 = sadd.s32 4294967295, %s914_s12   ;;  %p889_p0 = scmp.ge.s32.totalorder %s914_s12, 1  ;;  %s914_s12 = sphi %s936_s12, %s13_s12  }
   0x2   : > { %p138_p1 = scmp.lt.s32.totalorder %s914_s12, 3 }
   0x4   : > { %p139_p2 = pnand %p889_p0, %p138_p1 }
   0x5   : > { %s890_s14 = sshll.u32 (!%p139_p2), %s885_s13, 7  ;;  %v947_v0 = vld [vmem:[%s1618_s1] ss:$0 sm:$0xff] (!%p139_p2)  ;;  %vm700_vm0 = vcmask (!%p139_p2), 64512  }
   0x6   : > { %142 = sbr.rel (%p139_p2) target bundleno = 118 (0x76), region = 32  ;;  %p163_p3 = scmp.lt.s32.totalorder (!%p139_p2), %s890_s14, 255  ;;  %v957_v1 = vld [vmem:[%s1619_s2] ss:$0 sm:$0xff] (!%p139_p2) }
   0xd   : > { %s1622_s14 = smov (!%p163_p3, %s890_s14), 255 }
   0xe   : > { %s891_s15 = sshll.u32 %s1622_s14, 3 }
   0xf   : > { %s952_s20 = scalar_lea.vmem %s1617_s0, %s891_s15  ;;  %s980_s25 = scalar_lea.vmem %s1620_s3, %s891_s15 }
  0x10   : > { %v174_v2 = vld [vmem:[%s952_s20] sm:$0xff]  ;;  %v175_v3 = vld [vmem:[%s952_s20 + $0x8] sm:$0xff]  ;;  %v176_v4 = vld [vmem:[%s952_s20 + $0x10] sm:$0xff] }
  0x11   : > { %v309_v5 = vmul.f32 %v947_v0, %v174_v2  ;;  %v310_v6 = vmul.f32 %v947_v0, %v175_v3  ;;  %v311_v7 = vmul.f32 %v947_v0, %v176_v4  ;;  %v177_v8 = vld [vmem:[%s952_s20 + $0x18] sm:$0xff]  ;;  %v178_v9 = vld [vmem:[%s952_s20 + $0x20] sm:$0xff]  ;;  %v179_v10 = vld [vmem:[%s952_s20 + $0x28] sm:$0xff] }
  0x12   : > { %v312_v11 = vmul.f32 %v947_v0, %v177_v8  ;;  %v313_v12 = vmul.f32 %v947_v0, %v178_v9  ;;  %v314_v13 = vmul.f32 %v947_v0, %v179_v10  ;;  %v180_v14 = vld [vmem:[%s952_s20 + $0x30] sm:$0xff]  ;;  %v181_v15 = vld [vmem:[%s952_s20 + $0x38] sm:$0xff]  ;;  %v182_v24 = vld [vmem:[%s952_s20 + $0x40] sm:$0xff] }
  0x13   : > { %v444_v16 = vadd.f32 %v957_v1, %v309_v5  ;;  %v445_v17 = vadd.f32 %v957_v1, %v310_v6  ;;  %v446_v18 = vadd.f32 %v957_v1, %v311_v7  ;;  %v315_v19 = vmul.f32 %v947_v0, %v180_v14  ;;  %v183_v25 = vld [vmem:[%s952_s20 + $0x48] sm:$0xff]  ;;  %v184_v26 = vld [vmem:[%s952_s20 + $0x50] sm:$0xff]  ;;  %v185_v31 = vld [vmem:[%s952_s20 + $0x58] sm:$0xff] }
  0x14   : > { %v447_v20 = vadd.f32 %v957_v1, %v312_v11  ;;  %v448_v21 = vadd.f32 %v957_v1, %v313_v12  ;;  %v449_v22 = vadd.f32 %v957_v1, %v314_v13  ;;  %v316_v23 = vmul.f32 %v947_v0, %v181_v15  ;;  %v186_v32 = vld [vmem:[%s952_s20 + $0x60] sm:$0xff]  ;;  %v187_v33 = vld [vmem:[%s952_s20 + $0x68] sm:$0xff]  ;;  %v188_v38 = vld [vmem:[%s952_s20 + $0x70] sm:$0xff] }
  0x15   : > { %v572_v27 = vmax.f32 %v444_v16, 0.0  ;;  %v573_v28 = vmax.f32 %v445_v17, 0.0  ;;  %v574_v29 = vmax.f32 %v446_v18, 0.0  ;;  %v450_v30 = vadd.f32 %v957_v1, %v315_v19  ;;  %v189_v43 = vld [vmem:[%s952_s20 + $0x78] sm:$0xff]  ;;  %v190_v56 = vld [vmem:[%s952_s20 + $0x80] sm:$0xff]  ;;  %v191_v57 = vld [vmem:[%s952_s20 + $0x88] sm:$0xff] }
  0x16   : > { %v575_v34 = vmax.f32 %v447_v20, 0.0  ;;  %v576_v35 = vmax.f32 %v448_v21, 0.0  ;;  %v577_v36 = vmax.f32 %v449_v22, 0.0  ;;  %v451_v37 = vadd.f32 %v957_v1, %v316_v23  ;;  %v192_v58 = vld [vmem:[%s952_s20 + $0x90] sm:$0xff]  ;;  %v193_v63 = vld [vmem:[%s952_s20 + $0x98] sm:$0xff]  ;;  %v194_v2 = vld [vmem:[%s952_s20 + $0xa0] sm:$0xff] }
  0x17   : > { %701 = vst.msk [vmem:[%s980_s25] sm:$0xff] %vm700_vm0, %v572_v27  ;;  %702 = vst.msk [vmem:[%s980_s25 + $0x8] sm:$0xff] %vm700_vm0, %v573_v28  ;;  %v578_v39 = vmax.f32 %v450_v30, 0.0  ;;  %v317_v40 = vmul.f32 %v947_v0, %v182_v24  ;;  %v318_v41 = vmul.f32 %v947_v0, %v183_v25  ;;  %v319_v42 = vmul.f32 %v947_v0, %v184_v26  ;;  %v195_v3 = vld [vmem:[%s952_s20 + $0xa8] sm:$0xff]  ;;  %v196_v8 = vld [vmem:[%s952_s20 + $0xb0] sm:$0xff] }
  0x18   : > { %703 = vst.msk [vmem:[%s980_s25 + $0x10] sm:$0xff] %vm700_vm0, %v574_v29  ;;  %704 = vst.msk [vmem:[%s980_s25 + $0x18] sm:$0xff] %vm700_vm0, %v575_v34  ;;  %v579_v44 = vmax.f32 %v451_v37, 0.0  ;;  %v320_v45 = vmul.f32 %v947_v0, %v185_v31  ;;  %v321_v46 = vmul.f32 %v947_v0, %v186_v32  ;;  %v322_v47 = vmul.f32 %v947_v0, %v187_v33  ;;  %v197_v13 = vld [vmem:[%s952_s20 + $0xb8] sm:$0xff]  ;;  %v198_v26 = vld [vmem:[%s952_s20 + $0xc0] sm:$0xff] }
  0x19   : > { %705 = vst.msk [vmem:[%s980_s25 + $0x20] sm:$0xff] %vm700_vm0, %v576_v35  ;;  %706 = vst.msk [vmem:[%s980_s25 + $0x28] sm:$0xff] %vm700_vm0, %v577_v36  ;;  %v452_v48 = vadd.f32 %v957_v1, %v317_v40  ;;  %v453_v49 = vadd.f32 %v957_v1, %v318_v41  ;;  %v454_v50 = vadd.f32 %v957_v1, %v319_v42  ;;  %v199_v27 = vld [vmem:[%s952_s20 + $0xc8] sm:$0xff]  ;;  %v200_v28 = vld [vmem:[%s952_s20 + $0xd0] sm:$0xff] }
  0x1a   : > { %707 = vst.msk [vmem:[%s980_s25 + $0x30] sm:$0xff] %vm700_vm0, %v578_v39  ;;  %v323_v51 = vmul.f32 %v947_v0, %v188_v38  ;;  %708 = vst.msk [vmem:[%s980_s25 + $0x38] sm:$0xff] %vm700_vm0, %v579_v44  ;;  %v455_v52 = vadd.f32 %v957_v1, %v320_v45  ;;  %v456_v53 = vadd.f32 %v957_v1, %v321_v46  ;;  %v201_v33 = vld [vmem:[%s952_s20 + $0xd8] sm:$0xff]  ;;  %v202_v34 = vld [vmem:[%s952_s20 + $0xe0] sm:$0xff] }
  0x1b   : > { %v457_v54 = vadd.f32 %v957_v1, %v322_v47  ;;  %v324_v55 = vmul.f32 %v947_v0, %v189_v43  ;;  %v580_v59 = vmax.f32 %v452_v48, 0.0  ;;  %v581_v60 = vmax.f32 %v453_v49, 0.0  ;;  %v203_v35 = vld [vmem:[%s952_s20 + $0xe8] sm:$0xff]  ;;  %v204_v40 = vld [vmem:[%s952_s20 + $0xf0] sm:$0xff]  ;;  %v205_v45 = vld [vmem:[%s952_s20 + $0xf8] sm:$0xff] }
  0x1c   : > { %v582_v61 = vmax.f32 %v454_v50, 0.0  ;;  %v458_v62 = vadd.f32 %v957_v1, %v323_v51  ;;  %v583_v4 = vmax.f32 %v455_v52, 0.0  ;;  %v584_v5 = vmax.f32 %v456_v53, 0.0 }
  0x1d   : > { %v585_v6 = vmax.f32 %v457_v54, 0.0  ;;  %v459_v7 = vadd.f32 %v957_v1, %v324_v55  ;;  %709 = vst.msk [vmem:[%s980_s25 + $0x40] sm:$0xff] %vm700_vm0, %v580_v59  ;;  %710 = vst.msk [vmem:[%s980_s25 + $0x48] sm:$0xff] %vm700_vm0, %v581_v60  ;;  %v325_v10 = vmul.f32 %v947_v0, %v190_v56  ;;  %v326_v11 = vmul.f32 %v947_v0, %v191_v57  ;;  %v207_v59 = vld [vmem:[%s952_s20 + $0x108] sm:$0xff]  ;;  %v208_v60 = vld [vmem:[%s952_s20 + $0x110] sm:$0xff] }
  0x1e   : > { %711 = vst.msk [vmem:[%s980_s25 + $0x50] sm:$0xff] %vm700_vm0, %v582_v61  ;;  %v586_v9 = vmax.f32 %v458_v62, 0.0  ;;  %v327_v12 = vmul.f32 %v947_v0, %v192_v58  ;;  %712 = vst.msk [vmem:[%s980_s25 + $0x58] sm:$0xff] %vm700_vm0, %v583_v4  ;;  %v328_v15 = vmul.f32 %v947_v0, %v193_v63  ;;  %v329_v16 = vmul.f32 %v947_v0, %v194_v2  ;;  %v206_v58 = vld [vmem:[%s952_s20 + $0x100] sm:$0xff] }
  0x1f   : > { %713 = vst.msk [vmem:[%s980_s25 + $0x60] sm:$0xff] %vm700_vm0, %v584_v5  ;;  %714 = vst.msk [vmem:[%s980_s25 + $0x68] sm:$0xff] %vm700_vm0, %v585_v6  ;;  %v587_v14 = vmax.f32 %v459_v7, 0.0  ;;  %v330_v17 = vmul.f32 %v947_v0, %v195_v3  ;;  %v460_v18 = vadd.f32 %v957_v1, %v325_v10  ;;  %v461_v19 = vadd.f32 %v957_v1, %v326_v11  ;;  %v209_v3 = vld [vmem:[%s952_s20 + $0x118] sm:$0xff]  ;;  %v210_v4 = vld [vmem:[%s952_s20 + $0x120] sm:$0xff] }
  0x20   : > { %715 = vst.msk [vmem:[%s980_s25 + $0x70] sm:$0xff] %vm700_vm0, %v586_v9  ;;  %v462_v20 = vadd.f32 %v957_v1, %v327_v12  ;;  %v331_v21 = vmul.f32 %v947_v0, %v196_v8  ;;  %v463_v22 = vadd.f32 %v957_v1, %v328_v15  ;;  %v464_v23 = vadd.f32 %v957_v1, %v329_v16  ;;  %v211_v5 = vld [vmem:[%s952_s20 + $0x128] sm:$0xff]  ;;  %v212_v10 = vld [vmem:[%s952_s20 + $0x130] sm:$0xff]  ;;  %v213_v15 = vld [vmem:[%s952_s20 + $0x138] sm:$0xff] }
  0x21   : > { %716 = vst.msk [vmem:[%s980_s25 + $0x78] sm:$0xff] %vm700_vm0, %v587_v14  ;;  %v465_v24 = vadd.f32 %v957_v1, %v330_v17  ;;  %v332_v25 = vmul.f32 %v947_v0, %v197_v13  ;;  %v588_v29 = vmax.f32 %v460_v18, 0.0  ;;  %v589_v30 = vmax.f32 %v461_v19, 0.0 }
  0x22   : > { %v590_v31 = vmax.f32 %v462_v20, 0.0  ;;  %v466_v32 = vadd.f32 %v957_v1, %v331_v21  ;;  %v591_v36 = vmax.f32 %v463_v22, 0.0  ;;  %v592_v37 = vmax.f32 %v464_v23, 0.0 }
  0x23   : > { %v593_v38 = vmax.f32 %v465_v24, 0.0  ;;  %v467_v39 = vadd.f32 %v957_v1, %v332_v25  ;;  %717 = vst.msk [vmem:[%s980_s25 + $0x80] sm:$0xff] %vm700_vm0, %v588_v29  ;;  %718 = vst.msk [vmem:[%s980_s25 + $0x88] sm:$0xff] %vm700_vm0, %v589_v30  ;;  %v333_v42 = vmul.f32 %v947_v0, %v198_v26  ;;  %v334_v43 = vmul.f32 %v947_v0, %v199_v27  ;;  %v215_v29 = vld [vmem:[%s952_s20 + $0x148] sm:$0xff]  ;;  %v216_v30 = vld [vmem:[%s952_s20 + $0x150] sm:$0xff] }
  0x24   : > { %719 = vst.msk [vmem:[%s980_s25 + $0x90] sm:$0xff] %vm700_vm0, %v590_v31  ;;  %v594_v41 = vmax.f32 %v466_v32, 0.0  ;;  %v335_v44 = vmul.f32 %v947_v0, %v200_v28  ;;  %720 = vst.msk [vmem:[%s980_s25 + $0x98] sm:$0xff] %vm700_vm0, %v591_v36  ;;  %v336_v47 = vmul.f32 %v947_v0, %v201_v33  ;;  %v337_v48 = vmul.f32 %v947_v0, %v202_v34  ;;  %v214_v28 = vld [vmem:[%s952_s20 + $0x140] sm:$0xff] }
  0x25   : > { %721 = vst.msk [vmem:[%s980_s25 + $0xa0] sm:$0xff] %vm700_vm0, %v592_v37  ;;  %722 = vst.msk [vmem:[%s980_s25 + $0xa8] sm:$0xff] %vm700_vm0, %v593_v38  ;;  %v595_v46 = vmax.f32 %v467_v39, 0.0  ;;  %v338_v49 = vmul.f32 %v947_v0, %v203_v35  ;;  %v468_v50 = vadd.f32 %v957_v1, %v333_v42  ;;  %v469_v51 = vadd.f32 %v957_v1, %v334_v43  ;;  %v217_v35 = vld [vmem:[%s952_s20 + $0x158] sm:$0xff]  ;;  %v218_v36 = vld [vmem:[%s952_s20 + $0x160] sm:$0xff] }
  0x26   : > { %723 = vst.msk [vmem:[%s980_s25 + $0xb0] sm:$0xff] %vm700_vm0, %v594_v41  ;;  %v470_v52 = vadd.f32 %v957_v1, %v335_v44  ;;  %v339_v53 = vmul.f32 %v947_v0, %v204_v40  ;;  %v471_v54 = vadd.f32 %v957_v1, %v336_v47  ;;  %v472_v55 = vadd.f32 %v957_v1, %v337_v48  ;;  %v219_v37 = vld [vmem:[%s952_s20 + $0x168] sm:$0xff]  ;;  %v220_v42 = vld [vmem:[%s952_s20 + $0x170] sm:$0xff]  ;;  %v221_v47 = vld [vmem:[%s952_s20 + $0x178] sm:$0xff] }
  0x27   : > { %724 = vst.msk [vmem:[%s980_s25 + $0xb8] sm:$0xff] %vm700_vm0, %v595_v46  ;;  %v473_v56 = vadd.f32 %v957_v1, %v338_v49  ;;  %v340_v57 = vmul.f32 %v947_v0, %v205_v45  ;;  %v596_v61 = vmax.f32 %v468_v50, 0.0  ;;  %v597_v62 = vmax.f32 %v469_v51, 0.0 }
  0x28   : > { %v598_v63 = vmax.f32 %v470_v52, 0.0  ;;  %v474_v2 = vadd.f32 %v957_v1, %v339_v53  ;;  %v599_v6 = vmax.f32 %v471_v54, 0.0  ;;  %v600_v7 = vmax.f32 %v472_v55, 0.0 }
  0x29   : > { %v601_v8 = vmax.f32 %v473_v56, 0.0  ;;  %v475_v9 = vadd.f32 %v957_v1, %v340_v57  ;;  %725 = vst.msk [vmem:[%s980_s25 + $0xc0] sm:$0xff] %vm700_vm0, %v596_v61  ;;  %726 = vst.msk [vmem:[%s980_s25 + $0xc8] sm:$0xff] %vm700_vm0, %v597_v62  ;;  %v341_v12 = vmul.f32 %v947_v0, %v206_v58  ;;  %v342_v13 = vmul.f32 %v947_v0, %v207_v59  ;;  %v223_v61 = vld [vmem:[%s952_s20 + $0x188] sm:$0xff]  ;;  %v224_v62 = vld [vmem:[%s952_s20 + $0x190] sm:$0xff] }
  0x2a   : > { %727 = vst.msk [vmem:[%s980_s25 + $0xd0] sm:$0xff] %vm700_vm0, %v598_v63  ;;  %v602_v11 = vmax.f32 %v474_v2, 0.0  ;;  %v343_v14 = vmul.f32 %v947_v0, %v208_v60  ;;  %728 = vst.msk [vmem:[%s980_s25 + $0xd8] sm:$0xff] %vm700_vm0, %v599_v6  ;;  %v344_v17 = vmul.f32 %v947_v0, %v209_v3  ;;  %v345_v18 = vmul.f32 %v947_v0, %v210_v4  ;;  %v222_v60 = vld [vmem:[%s952_s20 + $0x180] sm:$0xff] }
  0x2b   : > { %729 = vst.msk [vmem:[%s980_s25 + $0xe0] sm:$0xff] %vm700_vm0, %v600_v7  ;;  %730 = vst.msk [vmem:[%s980_s25 + $0xe8] sm:$0xff] %vm700_vm0, %v601_v8  ;;  %v603_v16 = vmax.f32 %v475_v9, 0.0  ;;  %v346_v19 = vmul.f32 %v947_v0, %v211_v5  ;;  %v476_v20 = vadd.f32 %v957_v1, %v341_v12  ;;  %v477_v21 = vadd.f32 %v957_v1, %v342_v13  ;;  %v225_v5 = vld [vmem:[%s952_s20 + $0x198] sm:$0xff]  ;;  %v226_v6 = vld [vmem:[%s952_s20 + $0x1a0] sm:$0xff] }
  0x2c   : > { %731 = vst.msk [vmem:[%s980_s25 + $0xf0] sm:$0xff] %vm700_vm0, %v602_v11  ;;  %v478_v22 = vadd.f32 %v957_v1, %v343_v14  ;;  %v347_v23 = vmul.f32 %v947_v0, %v212_v10  ;;  %v479_v24 = vadd.f32 %v957_v1, %v344_v17  ;;  %v480_v25 = vadd.f32 %v957_v1, %v345_v18  ;;  %v227_v7 = vld [vmem:[%s952_s20 + $0x1a8] sm:$0xff]  ;;  %v228_v12 = vld [vmem:[%s952_s20 + $0x1b0] sm:$0xff]  ;;  %v229_v17 = vld [vmem:[%s952_s20 + $0x1b8] sm:$0xff] }
  0x2d   : > { %732 = vst.msk [vmem:[%s980_s25 + $0xf8] sm:$0xff] %vm700_vm0, %v603_v16  ;;  %v481_v26 = vadd.f32 %v957_v1, %v346_v19  ;;  %v348_v27 = vmul.f32 %v947_v0, %v213_v15  ;;  %v604_v31 = vmax.f32 %v476_v20, 0.0  ;;  %v605_v32 = vmax.f32 %v477_v21, 0.0 }
  0x2e   : > { %v606_v33 = vmax.f32 %v478_v22, 0.0  ;;  %v482_v34 = vadd.f32 %v957_v1, %v347_v23  ;;  %v607_v38 = vmax.f32 %v479_v24, 0.0  ;;  %v608_v39 = vmax.f32 %v480_v25, 0.0 }
  0x2f   : > { %v609_v40 = vmax.f32 %v481_v26, 0.0  ;;  %v483_v41 = vadd.f32 %v957_v1, %v348_v27  ;;  %733 = vst.msk [vmem:[%s980_s25 + $0x100] sm:$0xff] %vm700_vm0, %v604_v31  ;;  %734 = vst.msk [vmem:[%s980_s25 + $0x108] sm:$0xff] %vm700_vm0, %v605_v32  ;;  %v349_v44 = vmul.f32 %v947_v0, %v214_v28  ;;  %v350_v45 = vmul.f32 %v947_v0, %v215_v29  ;;  %v231_v31 = vld [vmem:[%s952_s20 + $0x1c8] sm:$0xff]  ;;  %v232_v32 = vld [vmem:[%s952_s20 + $0x1d0] sm:$0xff] }
  0x30   : > { %735 = vst.msk [vmem:[%s980_s25 + $0x110] sm:$0xff] %vm700_vm0, %v606_v33  ;;  %v610_v43 = vmax.f32 %v482_v34, 0.0  ;;  %v351_v46 = vmul.f32 %v947_v0, %v216_v30  ;;  %736 = vst.msk [vmem:[%s980_s25 + $0x118] sm:$0xff] %vm700_vm0, %v607_v38  ;;  %v352_v49 = vmul.f32 %v947_v0, %v217_v35  ;;  %v353_v50 = vmul.f32 %v947_v0, %v218_v36  ;;  %v230_v30 = vld [vmem:[%s952_s20 + $0x1c0] sm:$0xff] }
  0x31   : > { %737 = vst.msk [vmem:[%s980_s25 + $0x120] sm:$0xff] %vm700_vm0, %v608_v39  ;;  %738 = vst.msk [vmem:[%s980_s25 + $0x128] sm:$0xff] %vm700_vm0, %v609_v40  ;;  %v611_v48 = vmax.f32 %v483_v41, 0.0  ;;  %v354_v51 = vmul.f32 %v947_v0, %v219_v37  ;;  %v484_v52 = vadd.f32 %v957_v1, %v349_v44  ;;  %v485_v53 = vadd.f32 %v957_v1, %v350_v45  ;;  %v233_v37 = vld [vmem:[%s952_s20 + $0x1d8] sm:$0xff]  ;;  %v234_v38 = vld [vmem:[%s952_s20 + $0x1e0] sm:$0xff] }
  0x32   : > { %739 = vst.msk [vmem:[%s980_s25 + $0x130] sm:$0xff] %vm700_vm0, %v610_v43  ;;  %v486_v54 = vadd.f32 %v957_v1, %v351_v46  ;;  %v355_v55 = vmul.f32 %v947_v0, %v220_v42  ;;  %v487_v56 = vadd.f32 %v957_v1, %v352_v49  ;;  %v488_v57 = vadd.f32 %v957_v1, %v353_v50  ;;  %v235_v39 = vld [vmem:[%s952_s20 + $0x1e8] sm:$0xff]  ;;  %v236_v44 = vld [vmem:[%s952_s20 + $0x1f0] sm:$0xff]  ;;  %v237_v49 = vld [vmem:[%s952_s20 + $0x1f8] sm:$0xff] }
  0x33   : > { %740 = vst.msk [vmem:[%s980_s25 + $0x138] sm:$0xff] %vm700_vm0, %v611_v48  ;;  %v489_v58 = vadd.f32 %v957_v1, %v354_v51  ;;  %v356_v59 = vmul.f32 %v947_v0, %v221_v47  ;;  %v612_v63 = vmax.f32 %v484_v52, 0.0  ;;  %v613_v2 = vmax.f32 %v485_v53, 0.0 }
  0x34   : > { %v614_v3 = vmax.f32 %v486_v54, 0.0  ;;  %v490_v4 = vadd.f32 %v957_v1, %v355_v55  ;;  %v615_v8 = vmax.f32 %v487_v56, 0.0  ;;  %v616_v9 = vmax.f32 %v488_v57, 0.0 }
  0x35   : > { %v617_v10 = vmax.f32 %v489_v58, 0.0  ;;  %v491_v11 = vadd.f32 %v957_v1, %v356_v59  ;;  %741 = vst.msk [vmem:[%s980_s25 + $0x140] sm:$0xff] %vm700_vm0, %v612_v63  ;;  %742 = vst.msk [vmem:[%s980_s25 + $0x148] sm:$0xff] %vm700_vm0, %v613_v2  ;;  %v357_v14 = vmul.f32 %v947_v0, %v222_v60  ;;  %v358_v15 = vmul.f32 %v947_v0, %v223_v61  ;;  %v239_v63 = vld [vmem:[%s952_s20 + $0x208] sm:$0xff]  ;;  %v240_v2 = vld [vmem:[%s952_s20 + $0x210] sm:$0xff] }
  0x36   : > { %743 = vst.msk [vmem:[%s980_s25 + $0x150] sm:$0xff] %vm700_vm0, %v614_v3  ;;  %v618_v13 = vmax.f32 %v490_v4, 0.0  ;;  %v359_v16 = vmul.f32 %v947_v0, %v224_v62  ;;  %744 = vst.msk [vmem:[%s980_s25 + $0x158] sm:$0xff] %vm700_vm0, %v615_v8  ;;  %v360_v19 = vmul.f32 %v947_v0, %v225_v5  ;;  %v361_v20 = vmul.f32 %v947_v0, %v226_v6  ;;  %v238_v62 = vld [vmem:[%s952_s20 + $0x200] sm:$0xff] }
  0x37   : > { %745 = vst.msk [vmem:[%s980_s25 + $0x160] sm:$0xff] %vm700_vm0, %v616_v9  ;;  %746 = vst.msk [vmem:[%s980_s25 + $0x168] sm:$0xff] %vm700_vm0, %v617_v10  ;;  %v619_v18 = vmax.f32 %v491_v11, 0.0  ;;  %v362_v21 = vmul.f32 %v947_v0, %v227_v7  ;;  %v492_v22 = vadd.f32 %v957_v1, %v357_v14  ;;  %v493_v23 = vadd.f32 %v957_v1, %v358_v15  ;;  %v241_v7 = vld [vmem:[%s952_s20 + $0x218] sm:$0xff]  ;;  %v242_v8 = vld [vmem:[%s952_s20 + $0x220] sm:$0xff] }
  0x38   : > { %747 = vst.msk [vmem:[%s980_s25 + $0x170] sm:$0xff] %vm700_vm0, %v618_v13  ;;  %v494_v24 = vadd.f32 %v957_v1, %v359_v16  ;;  %v363_v25 = vmul.f32 %v947_v0, %v228_v12  ;;  %v495_v26 = vadd.f32 %v957_v1, %v360_v19  ;;  %v496_v27 = vadd.f32 %v957_v1, %v361_v20  ;;  %v243_v9 = vld [vmem:[%s952_s20 + $0x228] sm:$0xff]  ;;  %v244_v14 = vld [vmem:[%s952_s20 + $0x230] sm:$0xff]  ;;  %v245_v19 = vld [vmem:[%s952_s20 + $0x238] sm:$0xff] }
  0x39   : > { %748 = vst.msk [vmem:[%s980_s25 + $0x178] sm:$0xff] %vm700_vm0, %v619_v18  ;;  %v497_v28 = vadd.f32 %v957_v1, %v362_v21  ;;  %v364_v29 = vmul.f32 %v947_v0, %v229_v17  ;;  %v620_v33 = vmax.f32 %v492_v22, 0.0  ;;  %v621_v34 = vmax.f32 %v493_v23, 0.0 }
  0x3a   : > { %v622_v35 = vmax.f32 %v494_v24, 0.0  ;;  %v498_v36 = vadd.f32 %v957_v1, %v363_v25  ;;  %v623_v40 = vmax.f32 %v495_v26, 0.0  ;;  %v624_v41 = vmax.f32 %v496_v27, 0.0 }
  0x3b   : > { %v625_v42 = vmax.f32 %v497_v28, 0.0  ;;  %v499_v43 = vadd.f32 %v957_v1, %v364_v29  ;;  %749 = vst.msk [vmem:[%s980_s25 + $0x180] sm:$0xff] %vm700_vm0, %v620_v33  ;;  %750 = vst.msk [vmem:[%s980_s25 + $0x188] sm:$0xff] %vm700_vm0, %v621_v34  ;;  %v365_v46 = vmul.f32 %v947_v0, %v230_v30  ;;  %v366_v47 = vmul.f32 %v947_v0, %v231_v31  ;;  %v247_v33 = vld [vmem:[%s952_s20 + $0x248] sm:$0xff]  ;;  %v248_v34 = vld [vmem:[%s952_s20 + $0x250] sm:$0xff] }
  0x3c   : > { %751 = vst.msk [vmem:[%s980_s25 + $0x190] sm:$0xff] %vm700_vm0, %v622_v35  ;;  %v626_v45 = vmax.f32 %v498_v36, 0.0  ;;  %v367_v48 = vmul.f32 %v947_v0, %v232_v32  ;;  %752 = vst.msk [vmem:[%s980_s25 + $0x198] sm:$0xff] %vm700_vm0, %v623_v40  ;;  %v368_v51 = vmul.f32 %v947_v0, %v233_v37  ;;  %v369_v52 = vmul.f32 %v947_v0, %v234_v38  ;;  %v246_v32 = vld [vmem:[%s952_s20 + $0x240] sm:$0xff] }
  0x3d   : > { %753 = vst.msk [vmem:[%s980_s25 + $0x1a0] sm:$0xff] %vm700_vm0, %v624_v41  ;;  %754 = vst.msk [vmem:[%s980_s25 + $0x1a8] sm:$0xff] %vm700_vm0, %v625_v42  ;;  %v627_v50 = vmax.f32 %v499_v43, 0.0  ;;  %v370_v53 = vmul.f32 %v947_v0, %v235_v39  ;;  %v500_v54 = vadd.f32 %v957_v1, %v365_v46  ;;  %v501_v55 = vadd.f32 %v957_v1, %v366_v47  ;;  %v249_v39 = vld [vmem:[%s952_s20 + $0x258] sm:$0xff]  ;;  %v250_v40 = vld [vmem:[%s952_s20 + $0x260] sm:$0xff] }
  0x3e   : > { %755 = vst.msk [vmem:[%s980_s25 + $0x1b0] sm:$0xff] %vm700_vm0, %v626_v45  ;;  %v502_v56 = vadd.f32 %v957_v1, %v367_v48  ;;  %v371_v57 = vmul.f32 %v947_v0, %v236_v44  ;;  %v503_v58 = vadd.f32 %v957_v1, %v368_v51  ;;  %v504_v59 = vadd.f32 %v957_v1, %v369_v52  ;;  %v251_v41 = vld [vmem:[%s952_s20 + $0x268] sm:$0xff]  ;;  %v252_v46 = vld [vmem:[%s952_s20 + $0x270] sm:$0xff]  ;;  %v253_v51 = vld [vmem:[%s952_s20 + $0x278] sm:$0xff] }
  0x3f   : > { %756 = vst.msk [vmem:[%s980_s25 + $0x1b8] sm:$0xff] %vm700_vm0, %v627_v50  ;;  %v505_v60 = vadd.f32 %v957_v1, %v370_v53  ;;  %v372_v61 = vmul.f32 %v947_v0, %v237_v49  ;;  %v628_v3 = vmax.f32 %v500_v54, 0.0  ;;  %v629_v4 = vmax.f32 %v501_v55, 0.0 }
  0x40   : > { %v630_v5 = vmax.f32 %v502_v56, 0.0  ;;  %v506_v6 = vadd.f32 %v957_v1, %v371_v57  ;;  %v631_v10 = vmax.f32 %v503_v58, 0.0  ;;  %v632_v11 = vmax.f32 %v504_v59, 0.0 }
  0x41   : > { %v633_v12 = vmax.f32 %v505_v60, 0.0  ;;  %v507_v13 = vadd.f32 %v957_v1, %v372_v61  ;;  %757 = vst.msk [vmem:[%s980_s25 + $0x1c0] sm:$0xff] %vm700_vm0, %v628_v3  ;;  %758 = vst.msk [vmem:[%s980_s25 + $0x1c8] sm:$0xff] %vm700_vm0, %v629_v4  ;;  %v373_v16 = vmul.f32 %v947_v0, %v238_v62  ;;  %v374_v17 = vmul.f32 %v947_v0, %v239_v63  ;;  %v255_v3 = vld [vmem:[%s952_s20 + $0x288] sm:$0xff]  ;;  %v256_v4 = vld [vmem:[%s952_s20 + $0x290] sm:$0xff] }
  0x42   : > { %759 = vst.msk [vmem:[%s980_s25 + $0x1d0] sm:$0xff] %vm700_vm0, %v630_v5  ;;  %v634_v15 = vmax.f32 %v506_v6, 0.0  ;;  %v375_v18 = vmul.f32 %v947_v0, %v240_v2  ;;  %760 = vst.msk [vmem:[%s980_s25 + $0x1d8] sm:$0xff] %vm700_vm0, %v631_v10  ;;  %v376_v21 = vmul.f32 %v947_v0, %v241_v7  ;;  %v377_v22 = vmul.f32 %v947_v0, %v242_v8  ;;  %v254_v2 = vld [vmem:[%s952_s20 + $0x280] sm:$0xff] }
  0x43   : > { %761 = vst.msk [vmem:[%s980_s25 + $0x1e0] sm:$0xff] %vm700_vm0, %v632_v11  ;;  %762 = vst.msk [vmem:[%s980_s25 + $0x1e8] sm:$0xff] %vm700_vm0, %v633_v12  ;;  %v635_v20 = vmax.f32 %v507_v13, 0.0  ;;  %v378_v23 = vmul.f32 %v947_v0, %v243_v9  ;;  %v508_v24 = vadd.f32 %v957_v1, %v373_v16  ;;  %v509_v25 = vadd.f32 %v957_v1, %v374_v17  ;;  %v257_v9 = vld [vmem:[%s952_s20 + $0x298] sm:$0xff]  ;;  %v258_v10 = vld [vmem:[%s952_s20 + $0x2a0] sm:$0xff] }
  0x44   : > { %763 = vst.msk [vmem:[%s980_s25 + $0x1f0] sm:$0xff] %vm700_vm0, %v634_v15  ;;  %v510_v26 = vadd.f32 %v957_v1, %v375_v18  ;;  %v379_v27 = vmul.f32 %v947_v0, %v244_v14  ;;  %v511_v28 = vadd.f32 %v957_v1, %v376_v21  ;;  %v512_v29 = vadd.f32 %v957_v1, %v377_v22  ;;  %v259_v11 = vld [vmem:[%s952_s20 + $0x2a8] sm:$0xff]  ;;  %v260_v16 = vld [vmem:[%s952_s20 + $0x2b0] sm:$0xff]  ;;  %v261_v21 = vld [vmem:[%s952_s20 + $0x2b8] sm:$0xff] }
  0x45   : > { %764 = vst.msk [vmem:[%s980_s25 + $0x1f8] sm:$0xff] %vm700_vm0, %v635_v20  ;;  %v513_v30 = vadd.f32 %v957_v1, %v378_v23  ;;  %v380_v31 = vmul.f32 %v947_v0, %v245_v19  ;;  %v636_v35 = vmax.f32 %v508_v24, 0.0  ;;  %v637_v36 = vmax.f32 %v509_v25, 0.0 }
  0x46   : > { %v638_v37 = vmax.f32 %v510_v26, 0.0  ;;  %v514_v38 = vadd.f32 %v957_v1, %v379_v27  ;;  %v639_v42 = vmax.f32 %v511_v28, 0.0  ;;  %v640_v43 = vmax.f32 %v512_v29, 0.0 }
  0x47   : > { %v641_v44 = vmax.f32 %v513_v30, 0.0  ;;  %v515_v45 = vadd.f32 %v957_v1, %v380_v31  ;;  %765 = vst.msk [vmem:[%s980_s25 + $0x200] sm:$0xff] %vm700_vm0, %v636_v35  ;;  %766 = vst.msk [vmem:[%s980_s25 + $0x208] sm:$0xff] %vm700_vm0, %v637_v36  ;;  %v381_v48 = vmul.f32 %v947_v0, %v246_v32  ;;  %v382_v49 = vmul.f32 %v947_v0, %v247_v33  ;;  %v263_v35 = vld [vmem:[%s952_s20 + $0x2c8] sm:$0xff]  ;;  %v264_v36 = vld [vmem:[%s952_s20 + $0x2d0] sm:$0xff] }
  0x48   : > { %767 = vst.msk [vmem:[%s980_s25 + $0x210] sm:$0xff] %vm700_vm0, %v638_v37  ;;  %v642_v47 = vmax.f32 %v514_v38, 0.0  ;;  %v383_v50 = vmul.f32 %v947_v0, %v248_v34  ;;  %768 = vst.msk [vmem:[%s980_s25 + $0x218] sm:$0xff] %vm700_vm0, %v639_v42  ;;  %v384_v53 = vmul.f32 %v947_v0, %v249_v39  ;;  %v385_v54 = vmul.f32 %v947_v0, %v250_v40  ;;  %v262_v34 = vld [vmem:[%s952_s20 + $0x2c0] sm:$0xff] }
  0x49   : > { %769 = vst.msk [vmem:[%s980_s25 + $0x220] sm:$0xff] %vm700_vm0, %v640_v43  ;;  %770 = vst.msk [vmem:[%s980_s25 + $0x228] sm:$0xff] %vm700_vm0, %v641_v44  ;;  %v643_v52 = vmax.f32 %v515_v45, 0.0  ;;  %v386_v55 = vmul.f32 %v947_v0, %v251_v41  ;;  %v516_v56 = vadd.f32 %v957_v1, %v381_v48  ;;  %v517_v57 = vadd.f32 %v957_v1, %v382_v49  ;;  %v265_v41 = vld [vmem:[%s952_s20 + $0x2d8] sm:$0xff]  ;;  %v266_v42 = vld [vmem:[%s952_s20 + $0x2e0] sm:$0xff] }
  0x4a   : > { %771 = vst.msk [vmem:[%s980_s25 + $0x230] sm:$0xff] %vm700_vm0, %v642_v47  ;;  %v518_v58 = vadd.f32 %v957_v1, %v383_v50  ;;  %v387_v59 = vmul.f32 %v947_v0, %v252_v46  ;;  %v519_v60 = vadd.f32 %v957_v1, %v384_v53  ;;  %v520_v61 = vadd.f32 %v957_v1, %v385_v54  ;;  %v267_v43 = vld [vmem:[%s952_s20 + $0x2e8] sm:$0xff]  ;;  %v268_v48 = vld [vmem:[%s952_s20 + $0x2f0] sm:$0xff]  ;;  %v269_v53 = vld [vmem:[%s952_s20 + $0x2f8] sm:$0xff] }
  0x4b   : > { %772 = vst.msk [vmem:[%s980_s25 + $0x238] sm:$0xff] %vm700_vm0, %v643_v52  ;;  %v521_v62 = vadd.f32 %v957_v1, %v386_v55  ;;  %v388_v63 = vmul.f32 %v947_v0, %v253_v51  ;;  %v644_v5 = vmax.f32 %v516_v56, 0.0  ;;  %v645_v6 = vmax.f32 %v517_v57, 0.0 }
  0x4c   : > { %v646_v7 = vmax.f32 %v518_v58, 0.0  ;;  %v522_v8 = vadd.f32 %v957_v1, %v387_v59  ;;  %v647_v12 = vmax.f32 %v519_v60, 0.0  ;;  %v648_v13 = vmax.f32 %v520_v61, 0.0 }
  0x4d   : > { %v649_v14 = vmax.f32 %v521_v62, 0.0  ;;  %v523_v15 = vadd.f32 %v957_v1, %v388_v63  ;;  %773 = vst.msk [vmem:[%s980_s25 + $0x240] sm:$0xff] %vm700_vm0, %v644_v5  ;;  %774 = vst.msk [vmem:[%s980_s25 + $0x248] sm:$0xff] %vm700_vm0, %v645_v6  ;;  %v389_v18 = vmul.f32 %v947_v0, %v254_v2  ;;  %v390_v19 = vmul.f32 %v947_v0, %v255_v3  ;;  %v271_v5 = vld [vmem:[%s952_s20 + $0x308] sm:$0xff]  ;;  %v272_v6 = vld [vmem:[%s952_s20 + $0x310] sm:$0xff] }
  0x4e   : > { %775 = vst.msk [vmem:[%s980_s25 + $0x250] sm:$0xff] %vm700_vm0, %v646_v7  ;;  %v650_v17 = vmax.f32 %v522_v8, 0.0  ;;  %v391_v20 = vmul.f32 %v947_v0, %v256_v4  ;;  %776 = vst.msk [vmem:[%s980_s25 + $0x258] sm:$0xff] %vm700_vm0, %v647_v12  ;;  %v392_v23 = vmul.f32 %v947_v0, %v257_v9  ;;  %v393_v24 = vmul.f32 %v947_v0, %v258_v10  ;;  %v270_v4 = vld [vmem:[%s952_s20 + $0x300] sm:$0xff] }
  0x4f   : > { %777 = vst.msk [vmem:[%s980_s25 + $0x260] sm:$0xff] %vm700_vm0, %v648_v13  ;;  %778 = vst.msk [vmem:[%s980_s25 + $0x268] sm:$0xff] %vm700_vm0, %v649_v14  ;;  %v651_v22 = vmax.f32 %v523_v15, 0.0  ;;  %v394_v25 = vmul.f32 %v947_v0, %v259_v11  ;;  %v524_v26 = vadd.f32 %v957_v1, %v389_v18  ;;  %v525_v27 = vadd.f32 %v957_v1, %v390_v19  ;;  %v273_v11 = vld [vmem:[%s952_s20 + $0x318] sm:$0xff]  ;;  %v274_v12 = vld [vmem:[%s952_s20 + $0x320] sm:$0xff] }
  0x50   : > { %779 = vst.msk [vmem:[%s980_s25 + $0x270] sm:$0xff] %vm700_vm0, %v650_v17  ;;  %v526_v28 = vadd.f32 %v957_v1, %v391_v20  ;;  %v395_v29 = vmul.f32 %v947_v0, %v260_v16  ;;  %v527_v30 = vadd.f32 %v957_v1, %v392_v23  ;;  %v528_v31 = vadd.f32 %v957_v1, %v393_v24  ;;  %v275_v13 = vld [vmem:[%s952_s20 + $0x328] sm:$0xff]  ;;  %v276_v18 = vld [vmem:[%s952_s20 + $0x330] sm:$0xff]  ;;  %v277_v23 = vld [vmem:[%s952_s20 + $0x338] sm:$0xff] }
  0x51   : > { %780 = vst.msk [vmem:[%s980_s25 + $0x278] sm:$0xff] %vm700_vm0, %v651_v22  ;;  %v529_v32 = vadd.f32 %v957_v1, %v394_v25  ;;  %v396_v33 = vmul.f32 %v947_v0, %v261_v21  ;;  %v652_v37 = vmax.f32 %v524_v26, 0.0  ;;  %v653_v38 = vmax.f32 %v525_v27, 0.0 }
  0x52   : > { %v654_v39 = vmax.f32 %v526_v28, 0.0  ;;  %v530_v40 = vadd.f32 %v957_v1, %v395_v29  ;;  %v655_v44 = vmax.f32 %v527_v30, 0.0  ;;  %v656_v45 = vmax.f32 %v528_v31, 0.0 }
  0x53   : > { %v657_v46 = vmax.f32 %v529_v32, 0.0  ;;  %v531_v47 = vadd.f32 %v957_v1, %v396_v33  ;;  %781 = vst.msk [vmem:[%s980_s25 + $0x280] sm:$0xff] %vm700_vm0, %v652_v37  ;;  %782 = vst.msk [vmem:[%s980_s25 + $0x288] sm:$0xff] %vm700_vm0, %v653_v38  ;;  %v397_v50 = vmul.f32 %v947_v0, %v262_v34  ;;  %v398_v51 = vmul.f32 %v947_v0, %v263_v35  ;;  %v279_v37 = vld [vmem:[%s952_s20 + $0x348] sm:$0xff]  ;;  %v280_v38 = vld [vmem:[%s952_s20 + $0x350] sm:$0xff] }
  0x54   : > { %783 = vst.msk [vmem:[%s980_s25 + $0x290] sm:$0xff] %vm700_vm0, %v654_v39  ;;  %v658_v49 = vmax.f32 %v530_v40, 0.0  ;;  %v399_v52 = vmul.f32 %v947_v0, %v264_v36  ;;  %784 = vst.msk [vmem:[%s980_s25 + $0x298] sm:$0xff] %vm700_vm0, %v655_v44  ;;  %v400_v55 = vmul.f32 %v947_v0, %v265_v41  ;;  %v401_v56 = vmul.f32 %v947_v0, %v266_v42  ;;  %v278_v36 = vld [vmem:[%s952_s20 + $0x340] sm:$0xff] }
  0x55   : > { %785 = vst.msk [vmem:[%s980_s25 + $0x2a0] sm:$0xff] %vm700_vm0, %v656_v45  ;;  %786 = vst.msk [vmem:[%s980_s25 + $0x2a8] sm:$0xff] %vm700_vm0, %v657_v46  ;;  %v659_v54 = vmax.f32 %v531_v47, 0.0  ;;  %v402_v57 = vmul.f32 %v947_v0, %v267_v43  ;;  %v532_v58 = vadd.f32 %v957_v1, %v397_v50  ;;  %v533_v59 = vadd.f32 %v957_v1, %v398_v51  ;;  %v281_v43 = vld [vmem:[%s952_s20 + $0x358] sm:$0xff]  ;;  %v282_v44 = vld [vmem:[%s952_s20 + $0x360] sm:$0xff] }
  0x56   : > { %787 = vst.msk [vmem:[%s980_s25 + $0x2b0] sm:$0xff] %vm700_vm0, %v658_v49  ;;  %v534_v60 = vadd.f32 %v957_v1, %v399_v52  ;;  %v403_v61 = vmul.f32 %v947_v0, %v268_v48  ;;  %v535_v62 = vadd.f32 %v957_v1, %v400_v55  ;;  %v536_v63 = vadd.f32 %v957_v1, %v401_v56  ;;  %v283_v45 = vld [vmem:[%s952_s20 + $0x368] sm:$0xff]  ;;  %v1476_v48 = vld [vmem:[%s1619_s2] ss:$0 sm:$0xff]  ;;  %v284_v50 = vld [vmem:[%s952_s20 + $0x370] sm:$0xff] }
  0x57   : > { %788 = vst.msk [vmem:[%s980_s25 + $0x2b8] sm:$0xff] %vm700_vm0, %v659_v54  ;;  %v537_v2 = vadd.f32 %v957_v1, %v402_v57  ;;  %v404_v3 = vmul.f32 %v947_v0, %v269_v53  ;;  %v660_v7 = vmax.f32 %v532_v58, 0.0  ;;  %v661_v8 = vmax.f32 %v533_v59, 0.0  ;;  %v1489_v51 = vld [vmem:[%s1618_s1] ss:$0 sm:$0xff]  ;;  %v285_v55 = vld [vmem:[%s952_s20 + $0x378] sm:$0xff] }
  0x58   : > { %v662_v9 = vmax.f32 %v534_v60, 0.0  ;;  %v538_v10 = vadd.f32 %v957_v1, %v403_v61  ;;  %v663_v14 = vmax.f32 %v535_v62, 0.0  ;;  %v664_v15 = vmax.f32 %v536_v63, 0.0 }
  0x59   : > { %v665_v16 = vmax.f32 %v537_v2, 0.0  ;;  %v539_v17 = vadd.f32 %v957_v1, %v404_v3  ;;  %789 = vst.msk [vmem:[%s980_s25 + $0x2c0] sm:$0xff] %vm700_vm0, %v660_v7  ;;  %790 = vst.msk [vmem:[%s980_s25 + $0x2c8] sm:$0xff] %vm700_vm0, %v661_v8  ;;  %v405_v20 = vmul.f32 %v947_v0, %v270_v4  ;;  %v406_v21 = vmul.f32 %v947_v0, %v271_v5  ;;  %v287_v7 = vld [vmem:[%s952_s20 + $0x388] sm:$0xff]  ;;  %v288_v8 = vld [vmem:[%s952_s20 + $0x390] sm:$0xff] }
  0x5a   : > { %791 = vst.msk [vmem:[%s980_s25 + $0x2d0] sm:$0xff] %vm700_vm0, %v662_v9  ;;  %v666_v19 = vmax.f32 %v538_v10, 0.0  ;;  %v407_v22 = vmul.f32 %v947_v0, %v272_v6  ;;  %792 = vst.msk [vmem:[%s980_s25 + $0x2d8] sm:$0xff] %vm700_vm0, %v663_v14  ;;  %v408_v25 = vmul.f32 %v947_v0, %v273_v11  ;;  %v409_v26 = vmul.f32 %v947_v0, %v274_v12  ;;  %v286_v6 = vld [vmem:[%s952_s20 + $0x380] sm:$0xff] }
  0x5b   : > { %793 = vst.msk [vmem:[%s980_s25 + $0x2e0] sm:$0xff] %vm700_vm0, %v664_v15  ;;  %794 = vst.msk [vmem:[%s980_s25 + $0x2e8] sm:$0xff] %vm700_vm0, %v665_v16  ;;  %v667_v24 = vmax.f32 %v539_v17, 0.0  ;;  %v410_v27 = vmul.f32 %v947_v0, %v275_v13  ;;  %v540_v28 = vadd.f32 %v957_v1, %v405_v20  ;;  %v541_v29 = vadd.f32 %v957_v1, %v406_v21  ;;  %v289_v13 = vld [vmem:[%s952_s20 + $0x398] sm:$0xff]  ;;  %v290_v14 = vld [vmem:[%s952_s20 + $0x3a0] sm:$0xff] }
  0x5c   : > { %795 = vst.msk [vmem:[%s980_s25 + $0x2f0] sm:$0xff] %vm700_vm0, %v666_v19  ;;  %v542_v30 = vadd.f32 %v957_v1, %v407_v22  ;;  %v411_v31 = vmul.f32 %v947_v0, %v276_v18  ;;  %v543_v32 = vadd.f32 %v957_v1, %v408_v25  ;;  %v544_v33 = vadd.f32 %v957_v1, %v409_v26  ;;  %v291_v15 = vld [vmem:[%s952_s20 + $0x3a8] sm:$0xff]  ;;  %v292_v20 = vld [vmem:[%s952_s20 + $0x3b0] sm:$0xff]  ;;  %v293_v25 = vld [vmem:[%s952_s20 + $0x3b8] sm:$0xff] }
  0x5d   : > { %796 = vst.msk [vmem:[%s980_s25 + $0x2f8] sm:$0xff] %vm700_vm0, %v667_v24  ;;  %v545_v34 = vadd.f32 %v957_v1, %v410_v27  ;;  %v412_v35 = vmul.f32 %v947_v0, %v277_v23  ;;  %v668_v39 = vmax.f32 %v540_v28, 0.0  ;;  %v669_v40 = vmax.f32 %v541_v29, 0.0 }
  0x5e   : > { %v670_v41 = vmax.f32 %v542_v30, 0.0  ;;  %v546_v42 = vadd.f32 %v957_v1, %v411_v31  ;;  %v671_v46 = vmax.f32 %v543_v32, 0.0  ;;  %v672_v0 = vmax.f32 %v544_v33, 0.0 }
  0x5f   : > { %v673_v47 = vmax.f32 %v545_v34, 0.0  ;;  %v547_v49 = vadd.f32 %v1476_v48, %v412_v35  ;;  %797 = vst.msk [vmem:[%s980_s25 + $0x300] sm:$0xff] %vm700_vm0, %v668_v39  ;;  %798 = vst.msk [vmem:[%s980_s25 + $0x308] sm:$0xff] %vm700_vm0, %v669_v40  ;;  %v413_v52 = vmul.f32 %v1489_v51, %v278_v36  ;;  %v414_v53 = vmul.f32 %v1489_v51, %v279_v37  ;;  %v295_v39 = vld [vmem:[%s952_s20 + $0x3c8] sm:$0xff]  ;;  %v296_v40 = vld [vmem:[%s952_s20 + $0x3d0] sm:$0xff] }
  0x60   : > { %799 = vst.msk [vmem:[%s980_s25 + $0x310] sm:$0xff] %vm700_vm0, %v670_v41  ;;  %v674_v1 = vmax.f32 %v546_v42, 0.0  ;;  %v415_v54 = vmul.f32 %v1489_v51, %v280_v38  ;;  %800 = vst.msk [vmem:[%s980_s25 + $0x318] sm:$0xff] %vm700_vm0, %v671_v46  ;;  %v416_v57 = vmul.f32 %v1489_v51, %v281_v43  ;;  %v417_v58 = vmul.f32 %v1489_v51, %v282_v44  ;;  %v294_v38 = vld [vmem:[%s952_s20 + $0x3c0] sm:$0xff] }
  0x61   : > { %801 = vst.msk [vmem:[%s980_s25 + $0x320] sm:$0xff] %vm700_vm0, %v672_v0  ;;  %802 = vst.msk [vmem:[%s980_s25 + $0x328] sm:$0xff] %vm700_vm0, %v673_v47  ;;  %v675_v56 = vmax.f32 %v547_v49, 0.0  ;;  %v418_v59 = vmul.f32 %v1489_v51, %v283_v45  ;;  %v548_v60 = vadd.f32 %v1476_v48, %v413_v52  ;;  %v549_v61 = vadd.f32 %v1476_v48, %v414_v53  ;;  %v297_v45 = vld [vmem:[%s952_s20 + $0x3d8] sm:$0xff]  ;;  %v298_v46 = vld [vmem:[%s952_s20 + $0x3e0] sm:$0xff] }
  0x62   : > { %803 = vst.msk [vmem:[%s980_s25 + $0x330] sm:$0xff] %vm700_vm0, %v674_v1  ;;  %v550_v62 = vadd.f32 %v1476_v48, %v415_v54  ;;  %v419_v63 = vmul.f32 %v1489_v51, %v284_v50  ;;  %v551_v2 = vadd.f32 %v1476_v48, %v416_v57  ;;  %v552_v3 = vadd.f32 %v1476_v48, %v417_v58  ;;  %v299_v0 = vld [vmem:[%s952_s20 + $0x3e8] sm:$0xff]  ;;  %v300_v52 = vld [vmem:[%s952_s20 + $0x3f0] sm:$0xff]  ;;  %v301_v57 = vld [vmem:[%s952_s20 + $0x3f8] sm:$0xff] }
  0x63   : > { %804 = vst.msk [vmem:[%s980_s25 + $0x338] sm:$0xff] %vm700_vm0, %v675_v56  ;;  %v553_v4 = vadd.f32 %v1476_v48, %v418_v59  ;;  %v420_v5 = vmul.f32 %v1489_v51, %v285_v55  ;;  %v676_v9 = vmax.f32 %v548_v60, 0.0  ;;  %v677_v10 = vmax.f32 %v549_v61, 0.0 }
  0x64   : > { %v678_v11 = vmax.f32 %v550_v62, 0.0  ;;  %v554_v12 = vadd.f32 %v1476_v48, %v419_v63  ;;  %v679_v16 = vmax.f32 %v551_v2, 0.0  ;;  %v680_v17 = vmax.f32 %v552_v3, 0.0 }
  0x65   : > { %v681_v18 = vmax.f32 %v553_v4, 0.0  ;;  %v555_v19 = vadd.f32 %v1476_v48, %v420_v5  ;;  %805 = vst.msk [vmem:[%s980_s25 + $0x340] sm:$0xff] %vm700_vm0, %v676_v9  ;;  %806 = vst.msk [vmem:[%s980_s25 + $0x348] sm:$0xff] %vm700_vm0, %v677_v10  ;;  %v421_v22 = vmul.f32 %v1489_v51, %v286_v6  ;;  %v422_v23 = vmul.f32 %v1489_v51, %v287_v7 }
  0x66   : > { %807 = vst.msk [vmem:[%s980_s25 + $0x350] sm:$0xff] %vm700_vm0, %v678_v11  ;;  %v682_v21 = vmax.f32 %v554_v12, 0.0  ;;  %v423_v24 = vmul.f32 %v1489_v51, %v288_v8  ;;  %808 = vst.msk [vmem:[%s980_s25 + $0x358] sm:$0xff] %vm700_vm0, %v679_v16  ;;  %v424_v27 = vmul.f32 %v1489_v51, %v289_v13  ;;  %v425_v28 = vmul.f32 %v1489_v51, %v290_v14 }
  0x67   : > { %809 = vst.msk [vmem:[%s980_s25 + $0x360] sm:$0xff] %vm700_vm0, %v680_v17  ;;  %810 = vst.msk [vmem:[%s980_s25 + $0x368] sm:$0xff] %vm700_vm0, %v681_v18  ;;  %v683_v26 = vmax.f32 %v555_v19, 0.0  ;;  %v426_v29 = vmul.f32 %v1489_v51, %v291_v15  ;;  %v556_v30 = vadd.f32 %v1476_v48, %v421_v22  ;;  %v557_v31 = vadd.f32 %v1476_v48, %v422_v23 }
  0x68   : > { %811 = vst.msk [vmem:[%s980_s25 + $0x370] sm:$0xff] %vm700_vm0, %v682_v21  ;;  %v558_v32 = vadd.f32 %v1476_v48, %v423_v24  ;;  %v427_v33 = vmul.f32 %v1489_v51, %v292_v20  ;;  %v559_v34 = vadd.f32 %v1476_v48, %v424_v27  ;;  %v560_v35 = vadd.f32 %v1476_v48, %v425_v28 }
  0x69   : > { %812 = vst.msk [vmem:[%s980_s25 + $0x378] sm:$0xff] %vm700_vm0, %v683_v26  ;;  %v561_v36 = vadd.f32 %v1476_v48, %v426_v29  ;;  %v428_v37 = vmul.f32 %v1489_v51, %v293_v25  ;;  %v684_v41 = vmax.f32 %v556_v30, 0.0  ;;  %v685_v42 = vmax.f32 %v557_v31, 0.0 }
  0x6a   : > { %v686_v43 = vmax.f32 %v558_v32, 0.0  ;;  %v562_v44 = vadd.f32 %v1476_v48, %v427_v33  ;;  %v687_v47 = vmax.f32 %v559_v34, 0.0  ;;  %v688_v49 = vmax.f32 %v560_v35, 0.0 }
  0x6b   : > { %v689_v50 = vmax.f32 %v561_v36, 0.0  ;;  %v563_v1 = vadd.f32 %v1476_v48, %v428_v37  ;;  %813 = vst.msk [vmem:[%s980_s25 + $0x380] sm:$0xff] %vm700_vm0, %v684_v41  ;;  %814 = vst.msk [vmem:[%s980_s25 + $0x388] sm:$0xff] %vm700_vm0, %v685_v42  ;;  %v429_v54 = vmul.f32 %v1489_v51, %v294_v38  ;;  %v430_v55 = vmul.f32 %v1489_v51, %v295_v39 }
  0x6c   : > { %815 = vst.msk [vmem:[%s980_s25 + $0x390] sm:$0xff] %vm700_vm0, %v686_v43  ;;  %v690_v53 = vmax.f32 %v562_v44, 0.0  ;;  %v431_v56 = vmul.f32 %v1489_v51, %v296_v40  ;;  %816 = vst.msk [vmem:[%s980_s25 + $0x398] sm:$0xff] %vm700_vm0, %v687_v47  ;;  %v432_v59 = vmul.f32 %v1489_v51, %v297_v45  ;;  %v433_v60 = vmul.f32 %v1489_v51, %v298_v46 }
  0x6d   : > { %817 = vst.msk [vmem:[%s980_s25 + $0x3a0] sm:$0xff] %vm700_vm0, %v688_v49  ;;  %818 = vst.msk [vmem:[%s980_s25 + $0x3a8] sm:$0xff] %vm700_vm0, %v689_v50  ;;  %v691_v58 = vmax.f32 %v563_v1, 0.0  ;;  %v434_v61 = vmul.f32 %v1489_v51, %v299_v0  ;;  %v564_v62 = vadd.f32 %v1476_v48, %v429_v54  ;;  %v565_v63 = vadd.f32 %v1476_v48, %v430_v55 }
  0x6e   : > { %819 = vst.msk [vmem:[%s980_s25 + $0x3b0] sm:$0xff] %vm700_vm0, %v690_v53  ;;  %v566_v2 = vadd.f32 %v1476_v48, %v431_v56  ;;  %v435_v3 = vmul.f32 %v1489_v51, %v300_v52  ;;  %v567_v4 = vadd.f32 %v1476_v48, %v432_v59  ;;  %v568_v5 = vadd.f32 %v1476_v48, %v433_v60 }
  0x6f   : > { %820 = vst.msk [vmem:[%s980_s25 + $0x3b8] sm:$0xff] %vm700_vm0, %v691_v58  ;;  %v569_v6 = vadd.f32 %v1476_v48, %v434_v61  ;;  %v436_v7 = vmul.f32 %v1489_v51, %v301_v57  ;;  %v692_v8 = vmax.f32 %v564_v62, 0.0  ;;  %v693_v9 = vmax.f32 %v565_v63, 0.0 }
  0x70   : > { %v694_v10 = vmax.f32 %v566_v2, 0.0  ;;  %v570_v11 = vadd.f32 %v1476_v48, %v435_v3  ;;  %v695_v12 = vmax.f32 %v567_v4, 0.0  ;;  %v696_v13 = vmax.f32 %v568_v5, 0.0 }
  0x71   : > { %v697_v14 = vmax.f32 %v569_v6, 0.0  ;;  %v571_v15 = vadd.f32 %v1476_v48, %v436_v7  ;;  %821 = vst.msk [vmem:[%s980_s25 + $0x3c0] sm:$0xff] %vm700_vm0, %v692_v8  ;;  %822 = vst.msk [vmem:[%s980_s25 + $0x3c8] sm:$0xff] %vm700_vm0, %v693_v9 }
  0x72   : > { %823 = vst.msk [vmem:[%s980_s25 + $0x3d0] sm:$0xff] %vm700_vm0, %v694_v10  ;;  %v698_v16 = vmax.f32 %v570_v11, 0.0  ;;  %824 = vst.msk [vmem:[%s980_s25 + $0x3d8] sm:$0xff] %vm700_vm0, %v695_v12 }
  0x73   : > { %825 = vst.msk [vmem:[%s980_s25 + $0x3e0] sm:$0xff] %vm700_vm0, %v696_v13  ;;  %826 = vst.msk [vmem:[%s980_s25 + $0x3e8] sm:$0xff] %vm700_vm0, %v697_v14  ;;  %v699_v51 = vmax.f32 %v571_v15, 0.0 }
  0x74   : > { %827 = vst.msk [vmem:[%s980_s25 + $0x3f0] sm:$0xff] %vm700_vm0, %v698_v16 }
  0x75   : > { %828 = vst.msk [vmem:[%s980_s25 + $0x3f8] sm:$0xff] %vm700_vm0, %v699_v51 }
  0x76 PF: > { %s13_s12 = sadd.s32 1, %s914_s12  }
  0x77   : > { %p10_p4 = scmp.ge.s32.totalorder %s13_s12, 4  }
  0x79   :  { %12 = sbr.rel (!%p10_p4) target bundleno = 1 (0x1), region = 62 }

// kernel: decoder_block_pallas.6
= control target key start
LH: loop header
LB: loop body
LE: loop exit
PB: predicated region body
PF: predicated region fallthrough
CT: control target
= control target key end

     0   :  { %s3258_s21 = smov 0   ;;  %s5247_s0 = inlined_call_operand.vmem [shape: f32[2048,4], index: 0, kind: input, shape index: {}]   ;;  %s5248_s1 = inlined_call_operand.vmem [shape: f32[1,4], index: 1, kind: input, shape index: {}]   ;;  %s5249_s2 = inlined_call_operand.vmem [shape: f32[1,4], index: 2, kind: input, shape index: {}]   ;;  %s5250_s3 = inlined_call_operand.vmem [shape: f32[4,8], index: 3, kind: input, shape index: {}]   ;;  %s5251_s4 = inlined_call_operand.vmem [shape: f32[1,8], index: 4, kind: input, shape index: {}]   ;;  %s5252_s5 = inlined_call_operand.vmem [shape: f32[2048,8], index: 5, kind: output, shape index: {0}]   ;;  %s5253_s6 = inlined_call_operand.vmem [shape: f32[2,8], index: 6, kind: output, shape index: {1}]  }
   0x1 LB: > { %s2734_s22 = sadd.s32 4294967295, %s3220_s21   ;;  %p2738_p0 = scmp.ge.s32.totalorder %s3220_s21, 1  ;;  %s3220_s21 = sphi %s3258_s21, %s17_s21  }
   0x2   : > { %p211_p1 = scmp.lt.s32.totalorder %s3220_s21, 3 }
   0x4   : > { %p212_p2 = pnand %p2738_p0, %p211_p1 }
   0x6   : > { %215 = sbr.rel (%p212_p2) target bundleno = 685 (0x2ad), region = 40 }
   0xd   : > { %v779_v0 = vld [vmem:[%s5250_s3] sm:$0xf]  ;;  %vm1172_vm0 = vcmask 1043456   ;;  %s2739_s25 = sshll.u32 %s2734_s22, 7  ;;  %vm787_vm1 = vcmask 31744   ;;  %vm1881_vm2 = vcmask 64512  }
   0xe   : > { %3007 = vmatprep.subr.msk.mxu0 %vm1172_vm0, %v779_v0  ;;  %3201 = vmatprep.subr.msk.mxu1 %vm1172_vm0, %v779_v0  ;;  %p242_p3 = scmp.lt.s32.totalorder %s2739_s25, 255  ;;  %v3277_v1 = vld [vmem:[%s5248_s1] ss:$0 sm:$0xff]  ;;  %p2875_p4 = scmp.ne.s32.totalorder %s2734_s22, 0 }
   0xf   : > { %3008 = vmatpush3.msk.msra.mxu0 %vm1172_vm0, %v779_v0  ;;  %3202 = vmatpush3.msk.msra.mxu1 %vm1172_vm0, %v779_v0  ;;  %v3289_v2 = vld [vmem:[%s5249_s2] ss:$0 sm:$0xff]  ;;  %vm2014_vm3 = vcmask (!%p2875_p4), 58368  }
  0x10   : > { %s5567_s25 = smov (!%p242_p3, %s2739_s25), 255 }
  0x11   : > { %s2740_s26 = sshll.u32 %s5567_s25, 3 }
  0x12   : > { %s3284_s7 = scalar_lea.vmem %s5247_s0, %s2740_s26  ;;  %s3823_s18 = scalar_lea.vmem %s5252_s5, %s2740_s26 }
  0x13   : > { %v253_v3 = vld [vmem:[%s3284_s7] sm:$0xff]  ;;  %v254_v5 = vld [vmem:[%s3284_s7 + $0x8] sm:$0xff]  ;;  %v255_v10 = vld [vmem:[%s3284_s7 + $0x10] sm:$0xff] }
  0x14   : > { %v317_v4 = vld [vmem:[%s3284_s7 + $0x200] sm:$0xff]  ;;  %v388_v6 = vmul.f32 %v3277_v1, %v253_v3  ;;  %v389_v8 = vmul.f32 %v3277_v1, %v254_v5  ;;  %v318_v9 = vld [vmem:[%s3284_s7 + $0x208] sm:$0xff]  ;;  %v319_v11 = vld [vmem:[%s3284_s7 + $0x210] sm:$0xff]  ;;  %v390_v13 = vmul.f32 %v3277_v1, %v255_v10 }
  0x15   : > { %v452_v7 = vmul.f32 %v3277_v1, %v317_v4  ;;  %v453_v12 = vmul.f32 %v3277_v1, %v318_v9  ;;  %v454_v14 = vmul.f32 %v3277_v1, %v319_v11  ;;  %v256_v15 = vld [vmem:[%s3284_s7 + $0x18] sm:$0xff]  ;;  %v257_v25 = vld [vmem:[%s3284_s7 + $0x20] sm:$0xff]  ;;  %v258_v27 = vld [vmem:[%s3284_s7 + $0x28] sm:$0xff] }
  0x16   : > { %v320_v16 = vld [vmem:[%s3284_s7 + $0x218] sm:$0xff]  ;;  %v523_v17 = vadd.f32 %v3289_v2, %v388_v6  ;;  %v524_v19 = vadd.f32 %v3289_v2, %v389_v8  ;;  %v391_v20 = vmul.f32 %v3277_v1, %v256_v15  ;;  %v525_v22 = vadd.f32 %v3289_v2, %v390_v13  ;;  %v321_v26 = vld [vmem:[%s3284_s7 + $0x220] sm:$0xff]  ;;  %v322_v32 = vld [vmem:[%s3284_s7 + $0x228] sm:$0xff] }
  0x17   : > { %v587_v18 = vadd.f32 %v3289_v2, %v452_v7  ;;  %v588_v21 = vadd.f32 %v3289_v2, %v453_v12  ;;  %v589_v23 = vadd.f32 %v3289_v2, %v454_v14  ;;  %v455_v24 = vmul.f32 %v3277_v1, %v320_v16  ;;  %v259_v33 = vld [vmem:[%s3284_s7 + $0x30] sm:$0xff]  ;;  %v260_v43 = vld [vmem:[%s3284_s7 + $0x38] sm:$0xff]  ;;  %v261_v56 = vld [vmem:[%s3284_s7 + $0x40] sm:$0xff] }
  0x18   : > { %v651_v28 = vmax.f32 %v523_v17, 0.0  ;;  %v652_v30 = vmax.f32 %v524_v19, 0.0  ;;  %v526_v31 = vadd.f32 %v3289_v2, %v391_v20  ;;  %v323_v34 = vld [vmem:[%s3284_s7 + $0x230] sm:$0xff]  ;;  %v653_v36 = vmax.f32 %v525_v22, 0.0  ;;  %v324_v48 = vld [vmem:[%s3284_s7 + $0x238] sm:$0xff]  ;;  %v325_v57 = vld [vmem:[%s3284_s7 + $0x240] sm:$0xff] }
  0x19   : > { %v715_v29 = vmax.f32 %v587_v18, 0.0  ;;  %v716_v35 = vmax.f32 %v588_v21, 0.0  ;;  %v717_v37 = vmax.f32 %v589_v23, 0.0  ;;  %v590_v38 = vadd.f32 %v3289_v2, %v455_v24  ;;  %v262_v61 = vld [vmem:[%s3284_s7 + $0x48] sm:$0xff]  ;;  %v263_v63 = vld [vmem:[%s3284_s7 + $0x50] sm:$0xff]  ;;  %v264_v14 = vld [vmem:[%s3284_s7 + $0x58] sm:$0xff] }
  0x1a   : > { %3009 = vmatprep.mubr.msk.f32.mxu0 %vm787_vm1, %v651_v28  ;;  %v654_v39 = vmax.f32 %v526_v31, 0.0  ;;  %v392_v40 = vmul.f32 %v3277_v1, %v257_v25  ;;  %v456_v41 = vmul.f32 %v3277_v1, %v321_v26  ;;  %v393_v42 = vmul.f32 %v3277_v1, %v258_v27  ;;  %v326_v62 = vld [vmem:[%s3284_s7 + $0x248] sm:$0xff]  ;;  %v327_v6 = vld [vmem:[%s3284_s7 + $0x250] sm:$0xff]  ;;  %v328_v19 = vld [vmem:[%s3284_s7 + $0x258] sm:$0xff] }
  0x1b   : > { %3105 = vmatprep.mubr.msk.f32.mxu1 %vm787_vm1, %v715_v29  ;;  %3010 = vmatmul.mubr.msk.f32.vlgmr.msra.gmra.mrb[0].mxu0 %vm787_vm1, %v652_v30  ;;  %v718_v44 = vmax.f32 %v590_v38, 0.0  ;;  %v457_v45 = vmul.f32 %v3277_v1, %v322_v32  ;;  %v394_v46 = vmul.f32 %v3277_v1, %v259_v33  ;;  %v458_v47 = vmul.f32 %v3277_v1, %v323_v34  ;;  %v265_v24 = vld [vmem:[%s3284_s7 + $0x60] sm:$0xff]  ;;  %v266_v30 = vld [vmem:[%s3284_s7 + $0x68] sm:$0xff]  ;;  %v267_v34 = vld [vmem:[%s3284_s7 + $0x70] sm:$0xff] }
  0x1c   : > { %3106 = vmatmul.mubr.msk.f32.vlgmr.msra.gmra.mrb[0].mxu1 %vm787_vm1, %v716_v35  ;;  %3012 = vmatprep.mubr.msk.f32.mxu0 %vm787_vm1, %v653_v36  ;;  %v527_v49 = vadd.f32 %v3289_v2, %v392_v40  ;;  %v591_v50 = vadd.f32 %v3289_v2, %v456_v41  ;;  %v528_v51 = vadd.f32 %v3289_v2, %v393_v42  ;;  %v329_v25 = vld [vmem:[%s3284_s7 + $0x260] sm:$0xff]  ;;  %v330_v31 = vld [vmem:[%s3284_s7 + $0x268] sm:$0xff] }
  0x1d   : > { %3108 = vmatprep.mubr.msk.f32.mxu1 %vm787_vm1, %v717_v37  ;;  %v592_v52 = vadd.f32 %v3289_v2, %v457_v45  ;;  %v529_v53 = vadd.f32 %v3289_v2, %v394_v46  ;;  %v593_v54 = vadd.f32 %v3289_v2, %v458_v47  ;;  %v395_v55 = vmul.f32 %v3277_v1, %v260_v43 }
  0x1e   : > { %v655_v58 = vmax.f32 %v527_v49, 0.0  ;;  %v719_v59 = vmax.f32 %v591_v50, 0.0  ;;  %v459_v60 = vmul.f32 %v3277_v1, %v324_v48  ;;  %v656_v0 = vmax.f32 %v528_v51, 0.0  ;;  %v332_v49 = vld [vmem:[%s3284_s7 + $0x278] sm:$0xff]  ;;  %v269_v51 = vld [vmem:[%s3284_s7 + $0x80] sm:$0xff] }
  0x1f   : > { %3013 = vmatmul.mubr.msk.f32.gmra.mrb[2].mxu0 %vm787_vm1, %v654_v39  ;;  %v720_v3 = vmax.f32 %v592_v52, 0.0  ;;  %v657_v4 = vmax.f32 %v529_v53, 0.0  ;;  %v530_v5 = vadd.f32 %v3289_v2, %v395_v55  ;;  %v721_v7 = vmax.f32 %v593_v54, 0.0  ;;  %v331_v39 = vld [vmem:[%s3284_s7 + $0x270] sm:$0xff]  ;;  %v333_v52 = vld [vmem:[%s3284_s7 + $0x280] sm:$0xff] }
  0x20   : > { %3109 = vmatmul.mubr.msk.f32.gmra.mrb[2].mxu1 %vm787_vm1, %v718_v44  ;;  %3015 = vmatprep.mubr.msk.f32.mxu0 %vm787_vm1, %v655_v58  ;;  %v594_v8 = vadd.f32 %v3289_v2, %v459_v60  ;;  %v396_v9 = vmul.f32 %v3277_v1, %v261_v56  ;;  %v460_v10 = vmul.f32 %v3277_v1, %v325_v57  ;;  %v268_v44 = vld [vmem:[%s3284_s7 + $0x78] sm:$0xff] }
  0x21   : > { %3111 = vmatprep.mubr.msk.f32.mxu1 %vm787_vm1, %v719_v59  ;;  %v397_v11 = vmul.f32 %v3277_v1, %v262_v61  ;;  %v461_v12 = vmul.f32 %v3277_v1, %v326_v62  ;;  %v398_v13 = vmul.f32 %v3277_v1, %v263_v63  ;;  %v658_v15 = vmax.f32 %v530_v5, 0.0  ;;  %v270_v61 = vld [vmem:[%s3284_s7 + $0x88] sm:$0xff]  ;;  %v271_v5 = vld [vmem:[%s3284_s7 + $0x90] sm:$0xff] }
  0x22   : > { %v531_v16 = vadd.f32 %v3289_v2, %v396_v9  ;;  %v595_v17 = vadd.f32 %v3289_v2, %v460_v10  ;;  %v462_v18 = vmul.f32 %v3277_v1, %v327_v6  ;;  %v722_v20 = vmax.f32 %v594_v8, 0.0  ;;  %v335_v6 = vld [vmem:[%s3284_s7 + $0x290] sm:$0xff] }
  0x23   : > { %3016 = vmatmul.mubr.msk.f32.gmra.mrb[4].mxu0 %vm787_vm1, %v656_v0  ;;  %v532_v21 = vadd.f32 %v3289_v2, %v397_v11  ;;  %v596_v22 = vadd.f32 %v3289_v2, %v461_v12  ;;  %v533_v23 = vadd.f32 %v3289_v2, %v398_v13  ;;  %v399_v29 = vmul.f32 %v3277_v1, %v264_v14 }
  0x24   : > { %3112 = vmatmul.mubr.msk.f32.gmra.mrb[4].mxu1 %vm787_vm1, %v720_v3  ;;  %3018 = vmatprep.mubr.msk.f32.mxu0 %vm787_vm1, %v657_v4  ;;  %v659_v26 = vmax.f32 %v531_v16, 0.0  ;;  %v723_v27 = vmax.f32 %v595_v17, 0.0  ;;  %v597_v28 = vadd.f32 %v3289_v2, %v462_v18  ;;  %v463_v33 = vmul.f32 %v3277_v1, %v328_v19  ;;  %v334_v4 = vld [vmem:[%s3284_s7 + $0x288] sm:$0xff] }
  0x25   : > { %3114 = vmatprep.mubr.msk.f32.mxu1 %vm787_vm1, %v721_v7  ;;  %v660_v32 = vmax.f32 %v532_v21, 0.0  ;;  %v724_v35 = vmax.f32 %v596_v22, 0.0  ;;  %v534_v36 = vadd.f32 %v3289_v2, %v399_v29  ;;  %v400_v37 = vmul.f32 %v3277_v1, %v265_v24  ;;  %v273_v21 = vld [vmem:[%s3284_s7 + $0xa0] sm:$0xff] }
  0x26   : > { %v464_v38 = vmul.f32 %v3277_v1, %v329_v25  ;;  %v661_v40 = vmax.f32 %v533_v23, 0.0  ;;  %v598_v41 = vadd.f32 %v3289_v2, %v463_v33  ;;  %v401_v42 = vmul.f32 %v3277_v1, %v266_v30  ;;  %v337_v22 = vld [vmem:[%s3284_s7 + $0x2a0] sm:$0xff] }
  0x27   : > { %3019 = vmatmul.mubr.msk.f32.gmra.mrb[6].mxu0 %vm787_vm1, %v658_v15  ;;  %v465_v43 = vmul.f32 %v3277_v1, %v330_v31  ;;  %v725_v45 = vmax.f32 %v597_v28, 0.0  ;;  %v535_v46 = vadd.f32 %v3289_v2, %v400_v37  ;;  %v402_v48 = vmul.f32 %v3277_v1, %v267_v34  ;;  %v272_v15 = vld [vmem:[%s3284_s7 + $0x98] sm:$0xff]  ;;  %v274_v31 = vld [vmem:[%s3284_s7 + $0xa8] sm:$0xff]  ;;  %v275_v37 = vld [vmem:[%s3284_s7 + $0xb0] sm:$0xff] }
  0x28   : > { %3115 = vmatmul.mubr.msk.f32.gmra.mrb[6].mxu1 %vm787_vm1, %v722_v20  ;;  %3021 = vmatprep.mubr.msk.f32.mxu0 %vm787_vm1, %v659_v26  ;;  %v599_v47 = vadd.f32 %v3289_v2, %v464_v38  ;;  %v466_v50 = vmul.f32 %v3277_v1, %v331_v39  ;;  %v662_v53 = vmax.f32 %v534_v36, 0.0  ;;  %v726_v54 = vmax.f32 %v598_v41, 0.0  ;;  %v336_v20 = vld [vmem:[%s3284_s7 + $0x298] sm:$0xff]  ;;  %v339_v38 = vld [vmem:[%s3284_s7 + $0x2b0] sm:$0xff] }
  0x29   : > { %3117 = vmatprep.mubr.msk.f32.mxu1 %vm787_vm1, %v723_v27  ;;  %v536_v55 = vadd.f32 %v3289_v2, %v401_v42  ;;  %v403_v56 = vmul.f32 %v3277_v1, %v268_v44  ;;  %v663_v57 = vmax.f32 %v535_v46, 0.0  ;;  %v600_v58 = vadd.f32 %v3289_v2, %v465_v43 }
  0x2a   : > { %v537_v59 = vadd.f32 %v3289_v2, %v402_v48  ;;  %v467_v60 = vmul.f32 %v3277_v1, %v332_v49  ;;  %v727_v62 = vmax.f32 %v599_v47, 0.0  ;;  %v601_v63 = vadd.f32 %v3289_v2, %v466_v50  ;;  %v276_v47 = vld [vmem:[%s3284_s7 + $0xb8] sm:$0xff] }
  0x2b   : > { %3022 = vmatmul.mubr.msk.f32.gmra.mrb[8].mxu0 %vm787_vm1, %v660_v32  ;;  %v404_v0 = vmul.f32 %v3277_v1, %v269_v51  ;;  %v468_v3 = vmul.f32 %v3277_v1, %v333_v52  ;;  %v664_v7 = vmax.f32 %v536_v55, 0.0  ;;  %v538_v8 = vadd.f32 %v3289_v2, %v403_v56  ;;  %v338_v32 = vld [vmem:[%s3284_s7 + $0x2a8] sm:$0xff]  ;;  %v340_v52 = vld [vmem:[%s3284_s7 + $0x2b8] sm:$0xff] }
  0x2c   : > { %3118 = vmatmul.mubr.msk.f32.gmra.mrb[8].mxu1 %vm787_vm1, %v724_v35  ;;  %3024 = vmatprep.mubr.msk.f32.mxu0 %vm787_vm1, %v661_v40  ;;  %v602_v9 = vadd.f32 %v3289_v2, %v467_v60  ;;  %v405_v10 = vmul.f32 %v3277_v1, %v270_v61  ;;  %v728_v11 = vmax.f32 %v600_v58, 0.0  ;;  %v469_v13 = vmul.f32 %v3277_v1, %v334_v4 }
  0x2d   : > { %3120 = vmatprep.mubr.msk.f32.mxu1 %vm787_vm1, %v725_v45  ;;  %v539_v12 = vadd.f32 %v3289_v2, %v404_v0  ;;  %v406_v14 = vmul.f32 %v3277_v1, %v271_v5  ;;  %v665_v16 = vmax.f32 %v537_v59, 0.0  ;;  %v729_v17 = vmax.f32 %v601_v63, 0.0  ;;  %v278_v63 = vld [vmem:[%s3284_s7 + $0xc8] sm:$0xff] }
  0x2e   : > { %v603_v18 = vadd.f32 %v3289_v2, %v468_v3  ;;  %v470_v19 = vmul.f32 %v3277_v1, %v335_v6  ;;  %v666_v23 = vmax.f32 %v538_v8, 0.0  ;;  %v730_v24 = vmax.f32 %v602_v9, 0.0  ;;  %v342_v6 = vld [vmem:[%s3284_s7 + $0x2c8] sm:$0xff]  ;;  %v343_v8 = vld [vmem:[%s3284_s7 + $0x2d0] sm:$0xff] }
  0x2f   : > { %3025 = vmatmul.mubr.msk.f32.gmra.mrb[10].mxu0 %vm787_vm1, %v662_v53  ;;  %v540_v25 = vadd.f32 %v3289_v2, %v405_v10  ;;  %v407_v26 = vmul.f32 %v3277_v1, %v272_v15  ;;  %v667_v27 = vmax.f32 %v539_v12, 0.0  ;;  %v604_v28 = vadd.f32 %v3289_v2, %v469_v13  ;;  %v277_v53 = vld [vmem:[%s3284_s7 + $0xc0] sm:$0xff] }
  0x30   : > { %3121 = vmatmul.mubr.msk.f32.gmra.mrb[10].mxu1 %vm787_vm1, %v726_v54  ;;  %3027 = vmatprep.mubr.msk.f32.mxu0 %vm787_vm1, %v663_v57  ;;  %v541_v29 = vadd.f32 %v3289_v2, %v406_v14  ;;  %v471_v30 = vmul.f32 %v3277_v1, %v336_v20  ;;  %v731_v33 = vmax.f32 %v603_v18, 0.0  ;;  %v605_v34 = vadd.f32 %v3289_v2, %v470_v19  ;;  %v341_v54 = vld [vmem:[%s3284_s7 + $0x2c0] sm:$0xff]  ;;  %v344_v18 = vld [vmem:[%s3284_s7 + $0x2d8] sm:$0xff] }
  0x31   : > { %3123 = vmatprep.mubr.msk.f32.mxu1 %vm787_vm1, %v727_v62  ;;  %v408_v35 = vmul.f32 %v3277_v1, %v273_v21  ;;  %v472_v36 = vmul.f32 %v3277_v1, %v337_v22  ;;  %v668_v39 = vmax.f32 %v540_v25, 0.0  ;;  %v542_v40 = vadd.f32 %v3289_v2, %v407_v26 }
  0x32   : > { %v409_v41 = vmul.f32 %v3277_v1, %v274_v31  ;;  %v473_v42 = vmul.f32 %v3277_v1, %v338_v32  ;;  %v732_v43 = vmax.f32 %v604_v28, 0.0  ;;  %v669_v44 = vmax.f32 %v541_v29, 0.0 }
  0x33   : > { %3028 = vmatmul.mubr.msk.f32.gmra.mrb[12].mxu0 %vm787_vm1, %v664_v7  ;;  %v606_v45 = vadd.f32 %v3289_v2, %v471_v30  ;;  %v410_v46 = vmul.f32 %v3277_v1, %v275_v37  ;;  %v733_v48 = vmax.f32 %v605_v34, 0.0  ;;  %v543_v49 = vadd.f32 %v3289_v2, %v408_v35  ;;  %v279_v7 = vld [vmem:[%s3284_s7 + $0xd0] sm:$0xff] }
  0x34   : > { %3124 = vmatmul.mubr.msk.f32.gmra.mrb[12].mxu1 %vm787_vm1, %v728_v11  ;;  %3030 = vmatprep.mubr.msk.f32.mxu0 %vm787_vm1, %v665_v16  ;;  %v607_v50 = vadd.f32 %v3289_v2, %v472_v36  ;;  %v474_v51 = vmul.f32 %v3277_v1, %v339_v38  ;;  %v670_v55 = vmax.f32 %v542_v40, 0.0  ;;  %v544_v56 = vadd.f32 %v3289_v2, %v409_v41  ;;  %v346_v38 = vld [vmem:[%s3284_s7 + $0x2e8] sm:$0xff]  ;;  %v347_v40 = vld [vmem:[%s3284_s7 + $0x2f0] sm:$0xff] }
  0x35   : > { %3126 = vmatprep.mubr.msk.f32.mxu1 %vm787_vm1, %v729_v17  ;;  %v608_v57 = vadd.f32 %v3289_v2, %v473_v42  ;;  %v411_v58 = vmul.f32 %v3277_v1, %v276_v47  ;;  %v734_v59 = vmax.f32 %v606_v45, 0.0  ;;  %v545_v60 = vadd.f32 %v3289_v2, %v410_v46  ;;  %v280_v17 = vld [vmem:[%s3284_s7 + $0xd8] sm:$0xff] }
  0x36   : > { %v475_v61 = vmul.f32 %v3277_v1, %v340_v52  ;;  %v412_v62 = vmul.f32 %v3277_v1, %v277_v53  ;;  %v671_v0 = vmax.f32 %v543_v49, 0.0  ;;  %v735_v3 = vmax.f32 %v607_v50, 0.0  ;;  %v284_v49 = vld [vmem:[%s3284_s7 + $0xf8] sm:$0xff] }
  0x37   : > { %3031 = vmatmul.mubr.msk.f32.gmra.mrb[14].mxu0 %vm787_vm1, %v666_v23  ;;  %v609_v4 = vadd.f32 %v3289_v2, %v474_v51  ;;  %v476_v5 = vmul.f32 %v3277_v1, %v341_v54  ;;  %v672_v9 = vmax.f32 %v544_v56, 0.0  ;;  %v736_v10 = vmax.f32 %v608_v57, 0.0  ;;  %v281_v23 = vld [vmem:[%s3284_s7 + $0xe0] sm:$0xff]  ;;  %v348_v54 = vld [vmem:[%s3284_s7 + $0x2f8] sm:$0xff] }
  0x38   : > { %3127 = vmatmul.mubr.msk.f32.gmra.mrb[14].mxu1 %vm787_vm1, %v730_v24  ;;  %3033 = vmatprep.mubr.msk.f32.mxu0 %vm787_vm1, %v667_v27  ;;  %v546_v11 = vadd.f32 %v3289_v2, %v411_v58  ;;  %v413_v12 = vmul.f32 %v3277_v1, %v278_v63  ;;  %v673_v13 = vmax.f32 %v545_v60, 0.0  ;;  %v610_v14 = vadd.f32 %v3289_v2, %v475_v61  ;;  %v345_v24 = vld [vmem:[%s3284_s7 + $0x2e0] sm:$0xff] }
  0x39   : > { %3129 = vmatprep.mubr.msk.f32.mxu1 %vm787_vm1, %v731_v33  ;;  %v547_v15 = vadd.f32 %v3289_v2, %v412_v62  ;;  %v477_v16 = vmul.f32 %v3277_v1, %v342_v6  ;;  %v737_v19 = vmax.f32 %v609_v4, 0.0  ;;  %v611_v20 = vadd.f32 %v3289_v2, %v476_v5  ;;  %v282_v33 = vld [vmem:[%s3284_s7 + $0xe8] sm:$0xff]  ;;  %v349_v56 = vld [vmem:[%s3284_s7 + $0x300] sm:$0xff] }
  0x3a   : > { %v414_v21 = vmul.f32 %v3277_v1, %v279_v7  ;;  %v478_v22 = vmul.f32 %v3277_v1, %v343_v8  ;;  %v674_v25 = vmax.f32 %v546_v11, 0.0  ;;  %v548_v26 = vadd.f32 %v3289_v2, %v413_v12  ;;  %v350_v4 = vld [vmem:[%s3284_s7 + $0x308] sm:$0xff] }
  0x3b   : > { %3034 = vmatmul.mubr.msk.f32.gmra.mrb[16].mxu0 %vm787_vm1, %v668_v39  ;;  %v415_v27 = vmul.f32 %v3277_v1, %v280_v17  ;;  %v479_v28 = vmul.f32 %v3277_v1, %v344_v18  ;;  %v738_v29 = vmax.f32 %v610_v14, 0.0  ;;  %v675_v30 = vmax.f32 %v547_v15, 0.0  ;;  %v283_v39 = vld [vmem:[%s3284_s7 + $0xf0] sm:$0xff] }
  0x3c   : > { %3130 = vmatmul.mubr.msk.f32.gmra.mrb[16].mxu1 %vm787_vm1, %v732_v43  ;;  %3036 = vmatprep.mubr.msk.f32.mxu0 %vm787_vm1, %v669_v44  ;;  %v612_v31 = vadd.f32 %v3289_v2, %v477_v16  ;;  %v416_v32 = vmul.f32 %v3277_v1, %v281_v23  ;;  %v739_v34 = vmax.f32 %v611_v20, 0.0  ;;  %v549_v35 = vadd.f32 %v3289_v2, %v414_v21 }
  0x3d   : > { %3132 = vmatprep.mubr.msk.f32.mxu1 %vm787_vm1, %v733_v48  ;;  %v613_v36 = vadd.f32 %v3289_v2, %v478_v22  ;;  %v480_v37 = vmul.f32 %v3277_v1, %v345_v24  ;;  %v676_v41 = vmax.f32 %v548_v26, 0.0  ;;  %v550_v42 = vadd.f32 %v3289_v2, %v415_v27  ;;  %v352_v24 = vld [vmem:[%s3284_s7 + $0x318] sm:$0xff]  ;;  %v353_v26 = vld [vmem:[%s3284_s7 + $0x320] sm:$0xff] }
  0x3e   : > { %v614_v43 = vadd.f32 %v3289_v2, %v479_v28  ;;  %v417_v44 = vmul.f32 %v3277_v1, %v282_v33  ;;  %v740_v45 = vmax.f32 %v612_v31, 0.0  ;;  %v551_v46 = vadd.f32 %v3289_v2, %v416_v32 }
  0x3f   : > { %3037 = vmatmul.mubr.msk.f32.gmra.mrb[18].mxu0 %vm787_vm1, %v670_v55  ;;  %v481_v47 = vmul.f32 %v3277_v1, %v346_v38  ;;  %v418_v48 = vmul.f32 %v3277_v1, %v283_v39  ;;  %v677_v50 = vmax.f32 %v549_v35, 0.0  ;;  %v741_v51 = vmax.f32 %v613_v36, 0.0  ;;  %v285_v55 = vld [vmem:[%s3284_s7 + $0x100] sm:$0xff]  ;;  %v290_v35 = vld [vmem:[%s3284_s7 + $0x128] sm:$0xff] }
  0x40   : > { %3133 = vmatmul.mubr.msk.f32.gmra.mrb[18].mxu1 %vm787_vm1, %v734_v59  ;;  %3039 = vmatprep.mubr.msk.f32.mxu0 %vm787_vm1, %v671_v0  ;;  %v615_v52 = vadd.f32 %v3289_v2, %v480_v37  ;;  %v482_v53 = vmul.f32 %v3277_v1, %v347_v40  ;;  %v678_v57 = vmax.f32 %v550_v42, 0.0  ;;  %v742_v58 = vmax.f32 %v614_v43, 0.0  ;;  %v354_v40 = vld [vmem:[%s3284_s7 + $0x328] sm:$0xff]  ;;  %v355_v42 = vld [vmem:[%s3284_s7 + $0x330] sm:$0xff] }
  0x41   : > { %3135 = vmatprep.mubr.msk.f32.mxu1 %vm787_vm1, %v735_v3  ;;  %v552_v59 = vadd.f32 %v3289_v2, %v417_v44  ;;  %v419_v60 = vmul.f32 %v3277_v1, %v284_v49  ;;  %v679_v61 = vmax.f32 %v551_v46, 0.0  ;;  %v616_v62 = vadd.f32 %v3289_v2, %v481_v47  ;;  %v286_v3 = vld [vmem:[%s3284_s7 + $0x108] sm:$0xff] }
  0x42   : > { %v553_v63 = vadd.f32 %v3289_v2, %v418_v48  ;;  %v483_v0 = vmul.f32 %v3277_v1, %v348_v54  ;;  %v743_v5 = vmax.f32 %v615_v52, 0.0  ;;  %v617_v6 = vadd.f32 %v3289_v2, %v482_v53  ;;  %v356_v52 = vld [vmem:[%s3284_s7 + $0x338] sm:$0xff] }
  0x43   : > { %3040 = vmatmul.mubr.msk.f32.gmra.mrb[20].mxu0 %vm787_vm1, %v672_v9  ;;  %v420_v7 = vmul.f32 %v3277_v1, %v285_v55  ;;  %v484_v8 = vmul.f32 %v3277_v1, %v349_v56  ;;  %v287_v9 = vld [vmem:[%s3284_s7 + $0x110] sm:$0xff]  ;;  %v680_v11 = vmax.f32 %v552_v59, 0.0  ;;  %v554_v12 = vadd.f32 %v3289_v2, %v419_v60 }
  0x44   : > { %3136 = vmatmul.mubr.msk.f32.gmra.mrb[20].mxu1 %vm787_vm1, %v736_v10  ;;  %3042 = vmatprep.mubr.msk.f32.mxu0 %vm787_vm1, %v673_v13  ;;  %v351_v10 = vld [vmem:[%s3284_s7 + $0x310] sm:$0xff]  ;;  %v421_v13 = vmul.f32 %v3277_v1, %v286_v3  ;;  %v485_v14 = vmul.f32 %v3277_v1, %v350_v4  ;;  %v744_v15 = vmax.f32 %v616_v62, 0.0  ;;  %v681_v16 = vmax.f32 %v553_v63, 0.0 }
  0x45   : > { %3138 = vmatprep.mubr.msk.f32.mxu1 %vm787_vm1, %v737_v19  ;;  %v618_v17 = vadd.f32 %v3289_v2, %v483_v0  ;;  %v422_v18 = vmul.f32 %v3277_v1, %v287_v9  ;;  %v288_v19 = vld [vmem:[%s3284_s7 + $0x118] sm:$0xff]  ;;  %v745_v20 = vmax.f32 %v617_v6, 0.0  ;;  %v555_v21 = vadd.f32 %v3289_v2, %v420_v7 }
  0x46   : > { %v619_v22 = vadd.f32 %v3289_v2, %v484_v8  ;;  %v486_v23 = vmul.f32 %v3277_v1, %v351_v10  ;;  %v682_v27 = vmax.f32 %v554_v12, 0.0  ;;  %v556_v28 = vadd.f32 %v3289_v2, %v421_v13  ;;  %v358_v10 = vld [vmem:[%s3284_s7 + $0x348] sm:$0xff]  ;;  %v359_v12 = vld [vmem:[%s3284_s7 + $0x350] sm:$0xff] }
  0x47   : > { %3043 = vmatmul.mubr.msk.f32.gmra.mrb[22].mxu0 %vm787_vm1, %v674_v25  ;;  %v289_v25 = vld [vmem:[%s3284_s7 + $0x120] sm:$0xff]  ;;  %v746_v31 = vmax.f32 %v618_v17, 0.0  ;;  %v557_v32 = vadd.f32 %v3289_v2, %v422_v18  ;;  %v487_v33 = vmul.f32 %v3277_v1, %v352_v24  ;;  %v683_v36 = vmax.f32 %v555_v21, 0.0  ;;  %v296_v21 = vld [vmem:[%s3284_s7 + $0x158] sm:$0xff] }
  0x48   : > { %3139 = vmatmul.mubr.msk.f32.gmra.mrb[22].mxu1 %vm787_vm1, %v738_v29  ;;  %3045 = vmatprep.mubr.msk.f32.mxu0 %vm787_vm1, %v675_v30  ;;  %v620_v29 = vadd.f32 %v3289_v2, %v485_v14  ;;  %v423_v30 = vmul.f32 %v3277_v1, %v288_v19  ;;  %v747_v37 = vmax.f32 %v619_v22, 0.0  ;;  %v621_v38 = vadd.f32 %v3289_v2, %v486_v23 }
  0x49   : > { %3141 = vmatprep.mubr.msk.f32.mxu1 %vm787_vm1, %v739_v34  ;;  %v424_v34 = vmul.f32 %v3277_v1, %v289_v25  ;;  %v488_v39 = vmul.f32 %v3277_v1, %v353_v26  ;;  %v684_v43 = vmax.f32 %v556_v28, 0.0  ;;  %v425_v46 = vmul.f32 %v3277_v1, %v290_v35  ;;  %v360_v26 = vld [vmem:[%s3284_s7 + $0x358] sm:$0xff]  ;;  %v361_v28 = vld [vmem:[%s3284_s7 + $0x360] sm:$0xff] }
  0x4a   : > { %v748_v44 = vmax.f32 %v620_v29, 0.0  ;;  %v685_v47 = vmax.f32 %v557_v32, 0.0  ;;  %v622_v48 = vadd.f32 %v3289_v2, %v487_v33  ;;  %v749_v53 = vmax.f32 %v621_v38, 0.0  ;;  %v362_v38 = vld [vmem:[%s3284_s7 + $0x368] sm:$0xff] }
  0x4b   : > { %3046 = vmatmul.mubr.msk.f32.gmra.mrb[24].mxu0 %vm787_vm1, %v676_v41  ;;  %v291_v41 = vld [vmem:[%s3284_s7 + $0x130] sm:$0xff]  ;;  %v559_v49 = vadd.f32 %v3289_v2, %v424_v34  ;;  %v623_v54 = vadd.f32 %v3289_v2, %v488_v39  ;;  %v490_v56 = vmul.f32 %v3277_v1, %v355_v42  ;;  %v560_v60 = vadd.f32 %v3289_v2, %v425_v46 }
  0x4c   : > { %3142 = vmatmul.mubr.msk.f32.gmra.mrb[24].mxu1 %vm787_vm1, %v740_v45  ;;  %3048 = vmatprep.mubr.msk.f32.mxu0 %vm787_vm1, %v677_v50  ;;  %v558_v45 = vadd.f32 %v3289_v2, %v423_v30  ;;  %v489_v50 = vmul.f32 %v3277_v1, %v354_v40  ;;  %v426_v55 = vmul.f32 %v3277_v1, %v291_v41  ;;  %v750_v63 = vmax.f32 %v622_v48, 0.0 }
  0x4d   : > { %3144 = vmatprep.mubr.msk.f32.mxu1 %vm787_vm1, %v741_v51  ;;  %v292_v51 = vld [vmem:[%s3284_s7 + $0x138] sm:$0xff]  ;;  %v491_v62 = vmul.f32 %v3277_v1, %v356_v52  ;;  %v687_v0 = vmax.f32 %v559_v49, 0.0  ;;  %v751_v6 = vmax.f32 %v623_v54, 0.0  ;;  %v625_v8 = vadd.f32 %v3289_v2, %v490_v56 }
  0x4e   : > { %v686_v59 = vmax.f32 %v558_v45, 0.0  ;;  %v624_v3 = vadd.f32 %v3289_v2, %v489_v50  ;;  %v561_v7 = vadd.f32 %v3289_v2, %v426_v55  ;;  %v688_v13 = vmax.f32 %v560_v60, 0.0  ;;  %v365_v60 = vld [vmem:[%s3284_s7 + $0x380] sm:$0xff] }
  0x4f   : > { %3049 = vmatmul.mubr.msk.f32.gmra.mrb[26].mxu0 %vm787_vm1, %v678_v57  ;;  %v293_v57 = vld [vmem:[%s3284_s7 + $0x140] sm:$0xff]  ;;  %v493_v19 = vmul.f32 %v3277_v1, %v358_v10  ;;  %v753_v23 = vmax.f32 %v625_v8, 0.0  ;;  %v494_v25 = vmul.f32 %v3277_v1, %v359_v12  ;;  %v431_v32 = vmul.f32 %v3277_v1, %v296_v21  ;;  %v366_v12 = vld [vmem:[%s3284_s7 + $0x388] sm:$0xff] }
  0x50   : > { %3145 = vmatmul.mubr.msk.f32.gmra.mrb[26].mxu1 %vm787_vm1, %v742_v58  ;;  %3051 = vmatprep.mubr.msk.f32.mxu0 %vm787_vm1, %v679_v61  ;;  %v357_v58 = vld [vmem:[%s3284_s7 + $0x340] sm:$0xff]  ;;  %v427_v61 = vmul.f32 %v3277_v1, %v292_v51  ;;  %v428_v4 = vmul.f32 %v3277_v1, %v293_v57  ;;  %v752_v17 = vmax.f32 %v624_v3, 0.0  ;;  %v689_v22 = vmax.f32 %v561_v7, 0.0  ;;  %v302_v7 = vld [vmem:[%s3284_s7 + $0x188] sm:$0xff] }
  0x51   : > { %3147 = vmatprep.mubr.msk.f32.mxu1 %vm787_vm1, %v743_v5  ;;  %v294_v5 = vld [vmem:[%s3284_s7 + $0x148] sm:$0xff]  ;;  %v492_v9 = vmul.f32 %v3277_v1, %v357_v58  ;;  %v628_v34 = vadd.f32 %v3289_v2, %v493_v19  ;;  %v629_v40 = vadd.f32 %v3289_v2, %v494_v25  ;;  %v496_v42 = vmul.f32 %v3277_v1, %v361_v28  ;;  %v364_v58 = vld [vmem:[%s3284_s7 + $0x378] sm:$0xff] }
  0x52   : > { %v562_v14 = vadd.f32 %v3289_v2, %v427_v61  ;;  %v563_v18 = vadd.f32 %v3289_v2, %v428_v4  ;;  %v566_v46 = vadd.f32 %v3289_v2, %v431_v32  ;;  %v497_v48 = vmul.f32 %v3277_v1, %v362_v38 }
  0x53   : > { %3052 = vmatmul.mubr.msk.f32.gmra.mrb[28].mxu0 %vm787_vm1, %v680_v11  ;;  %v295_v11 = vld [vmem:[%s3284_s7 + $0x150] sm:$0xff]  ;;  %v627_v24 = vadd.f32 %v3289_v2, %v492_v9  ;;  %v756_v49 = vmax.f32 %v628_v34, 0.0  ;;  %v757_v54 = vmax.f32 %v629_v40, 0.0  ;;  %v631_v56 = vadd.f32 %v3289_v2, %v496_v42 }
  0x54   : > { %3148 = vmatmul.mubr.msk.f32.gmra.mrb[28].mxu1 %vm787_vm1, %v744_v15  ;;  %3054 = vmatprep.mubr.msk.f32.mxu0 %vm787_vm1, %v681_v16  ;;  %v626_v15 = vadd.f32 %v3289_v2, %v491_v62  ;;  %v429_v16 = vmul.f32 %v3277_v1, %v294_v5  ;;  %v690_v29 = vmax.f32 %v562_v14, 0.0  ;;  %v691_v33 = vmax.f32 %v563_v18, 0.0  ;;  %v367_v14 = vld [vmem:[%s3284_s7 + $0x390] sm:$0xff] }
  0x55   : > { %3150 = vmatprep.mubr.msk.f32.mxu1 %vm787_vm1, %v745_v20  ;;  %v430_v20 = vmul.f32 %v3277_v1, %v295_v11  ;;  %v755_v39 = vmax.f32 %v627_v24, 0.0  ;;  %v694_v61 = vmax.f32 %v566_v46, 0.0  ;;  %v499_v5 = vmul.f32 %v3277_v1, %v364_v58  ;;  %v368_v24 = vld [vmem:[%s3284_s7 + $0x398] sm:$0xff]  ;;  %v371_v46 = vld [vmem:[%s3284_s7 + $0x3b0] sm:$0xff] }
  0x56   : > { %v754_v30 = vmax.f32 %v626_v15, 0.0  ;;  %v759_v9 = vmax.f32 %v631_v56, 0.0  ;;  %v500_v11 = vmul.f32 %v3277_v1, %v365_v60  ;;  %v437_v18 = vmul.f32 %v3277_v1, %v302_v7  ;;  %v372_v60 = vld [vmem:[%s3284_s7 + $0x3b8] sm:$0xff] }
  0x57   : > { %3055 = vmatmul.mubr.msk.f32.gmra.mrb[30].mxu0 %vm787_vm1, %v682_v27  ;;  %v297_v27 = vld [vmem:[%s3284_s7 + $0x160] sm:$0xff]  ;;  %v565_v35 = vadd.f32 %v3289_v2, %v430_v20  ;;  %v634_v20 = vadd.f32 %v3289_v2, %v499_v5  ;;  %v502_v28 = vmul.f32 %v3277_v1, %v367_v14  ;;  %v503_v34 = vmul.f32 %v3277_v1, %v368_v24 }
  0x58   : > { %3151 = vmatmul.mubr.msk.f32.gmra.mrb[30].mxu1 %vm787_vm1, %v746_v31  ;;  %3057 = vmatprep.mubr.msk.f32.mxu0 %vm787_vm1, %v683_v36  ;;  %v564_v31 = vadd.f32 %v3289_v2, %v429_v16  ;;  %v495_v36 = vmul.f32 %v3277_v1, %v360_v26  ;;  %v432_v41 = vmul.f32 %v3277_v1, %v297_v27 }
  0x59   : > { %3153 = vmatprep.mubr.msk.f32.mxu1 %vm787_vm1, %v747_v37  ;;  %v298_v37 = vld [vmem:[%s3284_s7 + $0x168] sm:$0xff]  ;;  %v693_v50 = vmax.f32 %v565_v35, 0.0  ;;  %v635_v26 = vadd.f32 %v3289_v2, %v500_v11  ;;  %v572_v32 = vadd.f32 %v3289_v2, %v437_v18  ;;  %v762_v35 = vmax.f32 %v634_v20, 0.0 }
  0x5a   : > { %v692_v45 = vmax.f32 %v564_v31, 0.0  ;;  %v630_v51 = vadd.f32 %v3289_v2, %v495_v36  ;;  %v567_v55 = vadd.f32 %v3289_v2, %v432_v41  ;;  %v637_v42 = vadd.f32 %v3289_v2, %v502_v28 }
  0x5b   : > { %3058 = vmatmul.mubr.msk.f32.gmra.mrb[32].mxu0 %vm787_vm1, %v684_v43  ;;  %v299_v43 = vld [vmem:[%s3284_s7 + $0x170] sm:$0xff]  ;;  %v763_v40 = vmax.f32 %v635_v26, 0.0 }
  0x5c   : > { %3154 = vmatmul.mubr.msk.f32.gmra.mrb[32].mxu1 %vm787_vm1, %v748_v44  ;;  %3060 = vmatprep.mubr.msk.f32.mxu0 %vm787_vm1, %v685_v47  ;;  %v363_v44 = vld [vmem:[%s3284_s7 + $0x370] sm:$0xff]  ;;  %v433_v47 = vmul.f32 %v3277_v1, %v298_v37  ;;  %v434_v52 = vmul.f32 %v3277_v1, %v299_v43  ;;  %v758_v3 = vmax.f32 %v630_v51, 0.0  ;;  %v695_v8 = vmax.f32 %v567_v55, 0.0  ;;  %v308_v55 = vld [vmem:[%s3284_s7 + $0x1b8] sm:$0xff] }
  0x5d   : > { %3156 = vmatprep.mubr.msk.f32.mxu1 %vm787_vm1, %v749_v53  ;;  %v300_v53 = vld [vmem:[%s3284_s7 + $0x178] sm:$0xff]  ;;  %v498_v57 = vmul.f32 %v3277_v1, %v363_v44  ;;  %v370_v44 = vld [vmem:[%s3284_s7 + $0x3a8] sm:$0xff] }
  0x5e   : > { %v568_v62 = vadd.f32 %v3289_v2, %v433_v47  ;;  %v569_v4 = vadd.f32 %v3289_v2, %v434_v52  ;;  %v700_v47 = vmax.f32 %v572_v32, 0.0  ;;  %v377_v32 = vld [vmem:[%s3284_s7 + $0x3e0] sm:$0xff] }
  0x5f   : > { %3061 = vmatmul.mubr.msk.f32.gmra.mrb[34].mxu0 %vm787_vm1, %v686_v59  ;;  %v301_v59 = vld [vmem:[%s3284_s7 + $0x180] sm:$0xff]  ;;  %v633_v10 = vadd.f32 %v3289_v2, %v498_v57  ;;  %v765_v57 = vmax.f32 %v637_v42, 0.0 }
  0x60   : > { %3157 = vmatmul.mubr.msk.f32.gmra.mrb[34].mxu1 %vm787_vm1, %v750_v63  ;;  %3063 = vmatprep.mubr.msk.f32.mxu0 %vm787_vm1, %v687_v0  ;;  %v632_v63 = vadd.f32 %v3289_v2, %v497_v48  ;;  %v435_v0 = vmul.f32 %v3277_v1, %v300_v53  ;;  %v696_v15 = vmax.f32 %v568_v62, 0.0  ;;  %v697_v19 = vmax.f32 %v569_v4, 0.0  ;;  %v3706_v48 = vld [vmem:[%s5249_s2] ss:$0 sm:$0xff] }
  0x61   : > { %3159 = vmatprep.mubr.msk.f32.mxu1 %vm787_vm1, %v751_v6  ;;  %v436_v6 = vmul.f32 %v3277_v1, %v301_v59  ;;  %v761_v25 = vmax.f32 %v633_v10, 0.0  ;;  %v373_v62 = vld [vmem:[%s3284_s7 + $0x3c0] sm:$0xff]  ;;  %v374_v10 = vld [vmem:[%s3284_s7 + $0x3c8] sm:$0xff] }
  0x62   : > { %v760_v16 = vmax.f32 %v632_v63, 0.0 }
  0x63   : > { %3064 = vmatmul.mubr.msk.f32.gmra.mrb[36].mxu0 %vm787_vm1, %v688_v13  ;;  %v303_v13 = vld [vmem:[%s3284_s7 + $0x190] sm:$0xff]  ;;  %v571_v21 = vadd.f32 %v3289_v2, %v436_v6 }
  0x64   : > { %3160 = vmatmul.mubr.msk.f32.gmra.mrb[36].mxu1 %vm787_vm1, %v752_v17  ;;  %3066 = vmatprep.mubr.msk.f32.mxu0 %vm787_vm1, %v689_v22  ;;  %v570_v17 = vadd.f32 %v3289_v2, %v435_v0  ;;  %v501_v22 = vmul.f32 %v3277_v1, %v366_v12  ;;  %v438_v27 = vmul.f32 %v3277_v1, %v303_v13 }
  0x65   : > { %3162 = vmatprep.mubr.msk.f32.mxu1 %vm787_vm1, %v753_v23  ;;  %v304_v23 = vld [vmem:[%s3284_s7 + $0x198] sm:$0xff]  ;;  %v699_v36 = vmax.f32 %v571_v21, 0.0 }
  0x66   : > { %v698_v31 = vmax.f32 %v570_v17, 0.0  ;;  %v636_v37 = vadd.f32 %v3289_v2, %v501_v22  ;;  %v573_v41 = vadd.f32 %v3289_v2, %v438_v27  ;;  %v3713_v2 = vld [vmem:[%s5248_s1] ss:$0 sm:$0xff] }
  0x67   : > { %3067 = vmatmul.mubr.msk.f32.gmra.mrb[38].mxu0 %vm787_vm1, %v690_v29  ;;  %v305_v29 = vld [vmem:[%s3284_s7 + $0x1a0] sm:$0xff]  ;;  %v505_v53 = vmul.f32 %v3713_v2, %v370_v44  ;;  %v506_v59 = vmul.f32 %v3713_v2, %v371_v46  ;;  %v443_v4 = vmul.f32 %v3713_v2, %v308_v55  ;;  %v508_v14 = vmul.f32 %v3713_v2, %v373_v62  ;;  %v378_v46 = vld [vmem:[%s3284_s7 + $0x3e8] sm:$0xff]  ;;  %v380_v62 = vld [vmem:[%s3284_s7 + $0x3f8] sm:$0xff] }
  0x68   : > { %3163 = vmatmul.mubr.msk.f32.gmra.mrb[38].mxu1 %vm787_vm1, %v754_v30  ;;  %3069 = vmatprep.mubr.msk.f32.mxu0 %vm787_vm1, %v691_v33  ;;  %v369_v30 = vld [vmem:[%s3284_s7 + $0x3a0] sm:$0xff]  ;;  %v439_v33 = vmul.f32 %v3277_v1, %v304_v23  ;;  %v440_v38 = vmul.f32 %v3277_v1, %v305_v29  ;;  %v764_v51 = vmax.f32 %v636_v37, 0.0  ;;  %v701_v56 = vmax.f32 %v573_v41, 0.0  ;;  %v314_v41 = vld [vmem:[%s3284_s7 + $0x1e8] sm:$0xff] }
  0x69   : > { %3165 = vmatprep.mubr.msk.f32.mxu1 %vm787_vm1, %v755_v39  ;;  %v306_v39 = vld [vmem:[%s3284_s7 + $0x1a8] sm:$0xff]  ;;  %v504_v43 = vmul.f32 %v3277_v1, %v369_v30  ;;  %v640_v6 = vadd.f32 %v3706_v48, %v505_v53  ;;  %v641_v12 = vadd.f32 %v3706_v48, %v506_v59  ;;  %v578_v18 = vadd.f32 %v3706_v48, %v443_v4  ;;  %v376_v30 = vld [vmem:[%s3284_s7 + $0x3d8] sm:$0xff] }
  0x6a   : > { %v441_v1 = vmul.f32 %v3713_v2, %v306_v39  ;;  %v575_v52 = vadd.f32 %v3706_v48, %v440_v38  ;;  %v509_v20 = vmul.f32 %v3713_v2, %v374_v10  ;;  %v643_v28 = vadd.f32 %v3706_v48, %v508_v14 }
  0x6b   : > { %3070 = vmatmul.mubr.msk.f32.gmra.mrb[40].mxu0 %vm787_vm1, %v692_v45  ;;  %v307_v45 = vld [vmem:[%s3284_s7 + $0x1b0] sm:$0xff]  ;;  %v639_v58 = vadd.f32 %v3706_v48, %v504_v43  ;;  %v768_v21 = vmax.f32 %v640_v6, 0.0  ;;  %v769_v26 = vmax.f32 %v641_v12, 0.0  ;;  %v511_v39 = vmul.f32 %v3713_v2, %v376_v30 }
  0x6c   : > { %3166 = vmatmul.mubr.msk.f32.gmra.mrb[40].mxu1 %vm787_vm1, %v756_v49  ;;  %3072 = vmatprep.mubr.msk.f32.mxu0 %vm787_vm1, %v693_v50  ;;  %v574_v49 = vadd.f32 %v3706_v48, %v439_v33  ;;  %v638_v50 = vadd.f32 %v3706_v48, %v503_v34  ;;  %v703_v5 = vmax.f32 %v575_v52, 0.0  ;;  %v706_v33 = vmax.f32 %v578_v18, 0.0 }
  0x6d   : > { %3168 = vmatprep.mubr.msk.f32.mxu1 %vm787_vm1, %v757_v54  ;;  %v442_v54 = vmul.f32 %v3713_v2, %v307_v45  ;;  %v767_v11 = vmax.f32 %v639_v58, 0.0  ;;  %v771_v43 = vmax.f32 %v643_v28, 0.0  ;;  %v512_v45 = vmul.f32 %v3713_v2, %v377_v32 }
  0x6e   : > { %v702_v63 = vmax.f32 %v574_v49, 0.0  ;;  %v766_v0 = vmax.f32 %v638_v50, 0.0  ;;  %v379_v49 = vld [vmem:[%s3284_s7 + $0x3f0] sm:$0xff]  ;;  %v449_v52 = vmul.f32 %v3713_v2, %v314_v41  ;;  %v515_v6 = vmul.f32 %v3713_v2, %v380_v62 }
  0x6f   : > { %3073 = vmatmul.mubr.msk.f32.gmra.mrb[42].mxu0 %vm787_vm1, %v694_v61  ;;  %v309_v61 = vld [vmem:[%s3284_s7 + $0x1c0] sm:$0xff]  ;;  %v577_v7 = vadd.f32 %v3706_v48, %v442_v54  ;;  %v646_v54 = vadd.f32 %v3706_v48, %v511_v39  ;;  %v647_v58 = vadd.f32 %v3706_v48, %v512_v45 }
  0x70   : > { %3169 = vmatmul.mubr.msk.f32.gmra.mrb[42].mxu1 %vm787_vm1, %v758_v3  ;;  %3075 = vmatprep.mubr.msk.f32.mxu0 %vm787_vm1, %v695_v8  ;;  %v576_v3 = vadd.f32 %v3706_v48, %v441_v1  ;;  %v507_v8 = vmul.f32 %v3713_v2, %v372_v60  ;;  %v444_v13 = vmul.f32 %v3713_v2, %v309_v61  ;;  %v316_v61 = vld [vmem:[%s3284_s7 + $0x1f8] sm:$0xff] }
  0x71   : > { %3171 = vmatprep.mubr.msk.f32.mxu1 %vm787_vm1, %v759_v9  ;;  %v310_v9 = vld [vmem:[%s3284_s7 + $0x1c8] sm:$0xff]  ;;  %v705_v22 = vmax.f32 %v577_v7, 0.0  ;;  %v514_v60 = vmul.f32 %v3713_v2, %v379_v49 }
  0x72   : > { %v704_v17 = vmax.f32 %v576_v3, 0.0  ;;  %v642_v23 = vadd.f32 %v3706_v48, %v507_v8  ;;  %v579_v27 = vadd.f32 %v3706_v48, %v444_v13  ;;  %v774_v3 = vmax.f32 %v646_v54, 0.0 }
  0x73   : > { %3076 = vmatmul.mubr.msk.f32.gmra.mrb[44].mxu0 %vm787_vm1, %v696_v15  ;;  %v311_v15 = vld [vmem:[%s3284_s7 + $0x1d0] sm:$0xff]  ;;  %v775_v8 = vmax.f32 %v647_v58, 0.0  ;;  %v649_v10 = vadd.f32 %v3706_v48, %v514_v60 }
  0x74   : > { %3172 = vmatmul.mubr.msk.f32.gmra.mrb[44].mxu1 %vm787_vm1, %v760_v16  ;;  %3078 = vmatprep.mubr.msk.f32.mxu0 %vm787_vm1, %v697_v19  ;;  %v375_v16 = vld [vmem:[%s3284_s7 + $0x3d0] sm:$0xff]  ;;  %v445_v19 = vmul.f32 %v3713_v2, %v310_v9  ;;  %v446_v24 = vmul.f32 %v3713_v2, %v311_v15  ;;  %v770_v37 = vmax.f32 %v642_v23, 0.0  ;;  %v707_v42 = vmax.f32 %v579_v27, 0.0 }
  0x75   : > { %3174 = vmatprep.mubr.msk.f32.mxu1 %vm787_vm1, %v761_v25  ;;  %v312_v25 = vld [vmem:[%s3284_s7 + $0x1d8] sm:$0xff]  ;;  %v510_v29 = vmul.f32 %v3713_v2, %v375_v16  ;;  %v777_v15 = vmax.f32 %v649_v10, 0.0 }
  0x76   : > { %v580_v34 = vadd.f32 %v3706_v48, %v445_v19  ;;  %v581_v38 = vadd.f32 %v3706_v48, %v446_v24 }
  0x77   : > { %3079 = vmatmul.mubr.msk.f32.gmra.mrb[46].mxu0 %vm787_vm1, %v698_v31  ;;  %v313_v31 = vld [vmem:[%s3284_s7 + $0x1e0] sm:$0xff]  ;;  %v645_v44 = vadd.f32 %v3706_v48, %v510_v29 }
  0x78   : > { %3175 = vmatmul.mubr.msk.f32.gmra.mrb[46].mxu1 %vm787_vm1, %v762_v35  ;;  %3081 = vmatprep.mubr.msk.f32.mxu0 %vm787_vm1, %v699_v36  ;;  %v644_v35 = vadd.f32 %v3706_v48, %v509_v20  ;;  %v447_v36 = vmul.f32 %v3713_v2, %v312_v25  ;;  %v708_v50 = vmax.f32 %v580_v34, 0.0  ;;  %v709_v53 = vmax.f32 %v581_v38, 0.0 }
  0x79   : > { %3177 = vmatprep.mubr.msk.f32.mxu1 %vm787_vm1, %v763_v40  ;;  %v448_v40 = vmul.f32 %v3713_v2, %v313_v31 }
  0x7a   : > { %v772_v1 = vmax.f32 %v644_v35, 0.0 }
  0x7b   : > { %3082 = vmatmul.mubr.msk.f32.gmra.mrb[48].mxu0 %vm787_vm1, %v700_v47  ;;  %v315_v47 = vld [vmem:[%s3284_s7 + $0x1f0] sm:$0xff]  ;;  %v583_v55 = vadd.f32 %v3706_v48, %v448_v40 }
  0x7c   : > { %3178 = vmatmul.mubr.msk.f32.gmra.mrb[48].mxu1 %vm787_vm1, %v764_v51  ;;  %3084 = vmatprep.mubr.msk.f32.mxu0 %vm787_vm1, %v701_v56  ;;  %v582_v51 = vadd.f32 %v3706_v48, %v447_v36  ;;  %v513_v56 = vmul.f32 %v3713_v2, %v378_v46  ;;  %v450_v59 = vmul.f32 %v3713_v2, %v315_v47 }
  0x7d   : > { %3180 = vmatprep.mubr.msk.f32.mxu1 %vm787_vm1, %v765_v57  ;;  %v773_v57 = vmax.f32 %v645_v44, 0.0  ;;  %v711_v7 = vmax.f32 %v583_v55, 0.0 }
  0x7e   : > { %v648_v4 = vadd.f32 %v3706_v48, %v513_v56  ;;  %v585_v9 = vadd.f32 %v3706_v48, %v450_v59 }
  0x7f   : > { %3085 = vmatmul.mubr.msk.f32.gmra.mrb[50].mxu0 %vm787_vm1, %v702_v63  ;;  %v710_v63 = vmax.f32 %v582_v51, 0.0 }
  0x80   : > { %3181 = vmatmul.mubr.msk.f32.gmra.mrb[50].mxu1 %vm787_vm1, %v766_v0  ;;  %3087 = vmatprep.mubr.msk.f32.mxu0 %vm787_vm1, %v703_v5  ;;  %v584_v0 = vadd.f32 %v3706_v48, %v449_v52  ;;  %v451_v5 = vmul.f32 %v3713_v2, %v316_v61  ;;  %v776_v12 = vmax.f32 %v648_v4, 0.0  ;;  %v650_v2 = vadd.f32 %v3706_v48, %v515_v6 }
  0x81   : > { %3183 = vmatprep.mubr.msk.f32.mxu1 %vm787_vm1, %v767_v11  ;;  %v713_v14 = vmax.f32 %v585_v9, 0.0 }
  0x82   : > { %v712_v11 = vmax.f32 %v584_v0, 0.0  ;;  %v586_v13 = vadd.f32 %v3706_v48, %v451_v5  ;;  %v3816_v48 = vld [vmem:[%s5251_s4] ss:$0 sm:$0xff] }
  0x83   : > { %3088 = vmatmul.mubr.msk.f32.gmra.mrb[52].mxu0 %vm787_vm1, %v704_v17  ;;  %v778_v17 = vmax.f32 %v650_v2, 0.0 }
  0x84   : > { %3184 = vmatmul.mubr.msk.f32.gmra.mrb[52].mxu1 %vm787_vm1, %v768_v21  ;;  %3090 = vmatprep.mubr.msk.f32.mxu0 %vm787_vm1, %v705_v22  ;;  %v714_v16 = vmax.f32 %v586_v13, 0.0 }
  0x85   : > { %3186 = vmatprep.mubr.msk.f32.mxu1 %vm787_vm1, %v769_v26 }
  0x87   : > { %3091 = vmatmul.mubr.msk.f32.gmra.mrb[54].mxu0 %vm787_vm1, %v706_v33 }
  0x88   : > { %3187 = vmatmul.mubr.msk.f32.gmra.mrb[54].mxu1 %vm787_vm1, %v770_v37  ;;  %3093 = vmatprep.mubr.msk.f32.mxu0 %vm787_vm1, %v707_v42 }
  0x89   : > { %3189 = vmatprep.mubr.msk.f32.mxu1 %vm787_vm1, %v771_v43 }
  0x8b   : > { %3094 = vmatmul.mubr.msk.f32.gmra.mrb[56].mxu0 %vm787_vm1, %v708_v50 }
  0x8c   : > { %3190 = vmatmul.mubr.msk.f32.gmra.mrb[56].mxu1 %vm787_vm1, %v772_v1  ;;  %3096 = vmatprep.mubr.msk.f32.mxu0 %vm787_vm1, %v709_v53 }
  0x8d   : > { %3192 = vmatprep.mubr.msk.f32.mxu1 %vm787_vm1, %v773_v57 }
  0x8f   : > { %3097 = vmatmul.mubr.msk.f32.gmra.mrb[58].mxu0 %vm787_vm1, %v710_v63 }
  0x90   : > { %3193 = vmatmul.mubr.msk.f32.gmra.mrb[58].mxu1 %vm787_vm1, %v774_v3  ;;  %3099 = vmatprep.mubr.msk.f32.mxu0 %vm787_vm1, %v711_v7 }
  0x91   : > { %3195 = vmatprep.mubr.msk.f32.mxu1 %vm787_vm1, %v775_v8 }
  0x93   : > { %3100 = vmatmul.mubr.msk.f32.gmra.mrb[60].mxu0 %vm787_vm1, %v712_v11 }
  0x94   : > { %3196 = vmatmul.mubr.msk.f32.gmra.mrb[60].mxu1 %vm787_vm1, %v776_v12  ;;  %3102 = vmatprep.mubr.msk.f32.mxu0 %vm787_vm1, %v713_v14 }
  0x95   : > { %3198 = vmatprep.mubr.msk.f32.mxu1 %vm787_vm1, %v777_v15 }
  0x97   : > { %3103 = vmatmul.mubr.msk.f32.gmra.mrb[62].mxu0 %vm787_vm1, %v714_v16 }
  0x98   : > { %3199 = vmatmul.mubr.msk.f32.gmra.mrb[62].mxu1 %vm787_vm1, %v778_v17 }
  0xee   : > { %v3011_v18 = vpop.f32.mrb[0].mxu0 }
  0xef   : > { %v3107_v19 = vpop.f32.mrb[0].mxu1  ;;  %v3826_v20 = vadd.f32 %v3011_v18, %v3816_v48  ;;  %v1242_v22 = vpop.f32.mrb[1].mxu0 }
  0xf0   : > { %v3829_v21 = vadd.f32 %v3107_v19, %v3816_v48  ;;  %v1562_v23 = vpop.f32.mrb[1].mxu1  ;;  %v3832_v24 = vadd.f32 %v3816_v48, %v1242_v22 }
  0xf1   : > { %v3835_v25 = vadd.f32 %v3816_v48, %v1562_v23  ;;  %1883 = vst.msk [vmem:[%s3823_s18 + $0x8] sm:$0xff] %vm1881_vm2, %v3826_v20 }
  0xf2   : > { %5410 = vst [vmem:[#allocation2_spill] sm:$0xff] %v3829_v21  ;;  %1947 = vst.msk [vmem:[%s3823_s18 + $0x208] sm:$0xff] %vm1881_vm2, %v3829_v21  ;;  %v3014_v26 = vpop.f32.mrb[2].mxu0 }
  0xf3   : > { %5411 = vst [vmem:[#allocation3_spill] sm:$0xff] %v3835_v25  ;;  %1882 = vst.msk [vmem:[%s3823_s18] sm:$0xff] %vm1881_vm2, %v3832_v24  ;;  %v3110_v27 = vpop.f32.mrb[2].mxu1  ;;  %v3850_v28 = vadd.f32 %v3014_v26, %v3816_v48  ;;  %v1252_v30 = vpop.f32.mrb[3].mxu0 }
  0xf4   : > { %1946 = vst.msk [vmem:[%s3823_s18 + $0x200] sm:$0xff] %vm1881_vm2, %v3835_v25  ;;  %v3853_v29 = vadd.f32 %v3110_v27, %v3816_v48  ;;  %v1572_v31 = vpop.f32.mrb[3].mxu1  ;;  %v3856_v32 = vadd.f32 %v3816_v48, %v1252_v30 }
  0xf5   : > { %v3859_v33 = vadd.f32 %v3816_v48, %v1572_v31  ;;  %1885 = vst.msk [vmem:[%s3823_s18 + $0x18] sm:$0xff] %vm1881_vm2, %v3850_v28 }
  0xf6   : > { %5412 = vst [vmem:[#allocation4_spill] sm:$0xff] %v3853_v29  ;;  %1949 = vst.msk [vmem:[%s3823_s18 + $0x218] sm:$0xff] %vm1881_vm2, %v3853_v29  ;;  %v3017_v34 = vpop.f32.mrb[4].mxu0 }
  0xf7   : > { %5413 = vst [vmem:[#allocation5_spill] sm:$0xff] %v3859_v33  ;;  %1884 = vst.msk [vmem:[%s3823_s18 + $0x10] sm:$0xff] %vm1881_vm2, %v3856_v32  ;;  %v3113_v35 = vpop.f32.mrb[4].mxu1  ;;  %v3874_v36 = vadd.f32 %v3017_v34, %v3816_v48  ;;  %v1262_v38 = vpop.f32.mrb[5].mxu0 }
  0xf8   : > { %1948 = vst.msk [vmem:[%s3823_s18 + $0x210] sm:$0xff] %vm1881_vm2, %v3859_v33  ;;  %v3877_v37 = vadd.f32 %v3113_v35, %v3816_v48  ;;  %v1582_v39 = vpop.f32.mrb[5].mxu1  ;;  %v3880_v40 = vadd.f32 %v3816_v48, %v1262_v38 }
  0xf9   : > { %v3883_v41 = vadd.f32 %v3816_v48, %v1582_v39  ;;  %1887 = vst.msk [vmem:[%s3823_s18 + $0x28] sm:$0xff] %vm1881_vm2, %v3874_v36 }
  0xfa   : > { %5414 = vst [vmem:[#allocation6_spill] sm:$0xff] %v3877_v37  ;;  %1951 = vst.msk [vmem:[%s3823_s18 + $0x228] sm:$0xff] %vm1881_vm2, %v3877_v37  ;;  %v3020_v42 = vpop.f32.mrb[6].mxu0 }
  0xfb   : > { %5415 = vst [vmem:[#allocation7_spill] sm:$0xff] %v3883_v41  ;;  %1886 = vst.msk [vmem:[%s3823_s18 + $0x20] sm:$0xff] %vm1881_vm2, %v3880_v40  ;;  %v3116_v43 = vpop.f32.mrb[6].mxu1  ;;  %v3898_v44 = vadd.f32 %v3020_v42, %v3816_v48  ;;  %v1272_v46 = vpop.f32.mrb[7].mxu0 }
  0xfc   : > { %1950 = vst.msk [vmem:[%s3823_s18 + $0x220] sm:$0xff] %vm1881_vm2, %v3883_v41  ;;  %v3901_v45 = vadd.f32 %v3116_v43, %v3816_v48  ;;  %v1592_v47 = vpop.f32.mrb[7].mxu1  ;;  %v3904_v49 = vadd.f32 %v3816_v48, %v1272_v46 }
  0xfd   : > { %v3907_v50 = vadd.f32 %v3816_v48, %v1592_v47  ;;  %1889 = vst.msk [vmem:[%s3823_s18 + $0x38] sm:$0xff] %vm1881_vm2, %v3898_v44 }
  0xfe   : > { %5416 = vst [vmem:[#allocation8_spill] sm:$0xff] %v3901_v45  ;;  %1953 = vst.msk [vmem:[%s3823_s18 + $0x238] sm:$0xff] %vm1881_vm2, %v3901_v45  ;;  %v3023_v1 = vpop.f32.mrb[8].mxu0 }
  0xff   : > { %5417 = vst [vmem:[#allocation9_spill] sm:$0xff] %v3907_v50  ;;  %1888 = vst.msk [vmem:[%s3823_s18 + $0x30] sm:$0xff] %vm1881_vm2, %v3904_v49  ;;  %v3119_v51 = vpop.f32.mrb[8].mxu1  ;;  %v3922_v52 = vadd.f32 %v3023_v1, %v3816_v48  ;;  %v1282_v54 = vpop.f32.mrb[9].mxu0 }
 0x100   : > { %1952 = vst.msk [vmem:[%s3823_s18 + $0x230] sm:$0xff] %vm1881_vm2, %v3907_v50  ;;  %v3925_v53 = vadd.f32 %v3119_v51, %v3816_v48  ;;  %v1602_v55 = vpop.f32.mrb[9].mxu1  ;;  %v3928_v56 = vadd.f32 %v3816_v48, %v1282_v54 }
 0x101   : > { %v3931_v57 = vadd.f32 %v3816_v48, %v1602_v55  ;;  %1891 = vst.msk [vmem:[%s3823_s18 + $0x48] sm:$0xff] %vm1881_vm2, %v3922_v52 }
 0x102   : > { %5418 = vst [vmem:[#allocation10_spill] sm:$0xff] %v3925_v53  ;;  %1955 = vst.msk [vmem:[%s3823_s18 + $0x248] sm:$0xff] %vm1881_vm2, %v3925_v53  ;;  %v3026_v58 = vpop.f32.mrb[10].mxu0 }
 0x103   : > { %5419 = vst [vmem:[#allocation11_spill] sm:$0xff] %v3931_v57  ;;  %1890 = vst.msk [vmem:[%s3823_s18 + $0x40] sm:$0xff] %vm1881_vm2, %v3928_v56  ;;  %v3122_v59 = vpop.f32.mrb[10].mxu1  ;;  %v3946_v60 = vadd.f32 %v3026_v58, %v3816_v48  ;;  %v1292_v62 = vpop.f32.mrb[11].mxu0 }
 0x104   : > { %1954 = vst.msk [vmem:[%s3823_s18 + $0x240] sm:$0xff] %vm1881_vm2, %v3931_v57  ;;  %v3949_v61 = vadd.f32 %v3122_v59, %v3816_v48  ;;  %v1612_v63 = vpop.f32.mrb[11].mxu1  ;;  %v3952_v0 = vadd.f32 %v3816_v48, %v1292_v62 }
 0x105   : > { %v3955_v3 = vadd.f32 %v3816_v48, %v1612_v63  ;;  %1893 = vst.msk [vmem:[%s3823_s18 + $0x58] sm:$0xff] %vm1881_vm2, %v3946_v60 }
 0x106   : > { %5420 = vst [vmem:[#allocation12_spill] sm:$0xff] %v3949_v61  ;;  %1957 = vst.msk [vmem:[%s3823_s18 + $0x258] sm:$0xff] %vm1881_vm2, %v3949_v61  ;;  %v3029_v4 = vpop.f32.mrb[12].mxu0 }
 0x107   : > { %5421 = vst [vmem:[#allocation13_spill] sm:$0xff] %v3955_v3  ;;  %1892 = vst.msk [vmem:[%s3823_s18 + $0x50] sm:$0xff] %vm1881_vm2, %v3952_v0  ;;  %v3125_v5 = vpop.f32.mrb[12].mxu1  ;;  %v3970_v6 = vadd.f32 %v3029_v4, %v3816_v48  ;;  %v1302_v8 = vpop.f32.mrb[13].mxu0 }
 0x108   : > { %1956 = vst.msk [vmem:[%s3823_s18 + $0x250] sm:$0xff] %vm1881_vm2, %v3955_v3  ;;  %v3973_v7 = vadd.f32 %v3125_v5, %v3816_v48  ;;  %v1622_v9 = vpop.f32.mrb[13].mxu1  ;;  %v3976_v10 = vadd.f32 %v3816_v48, %v1302_v8 }
 0x109   : > { %v3979_v11 = vadd.f32 %v3816_v48, %v1622_v9  ;;  %1895 = vst.msk [vmem:[%s3823_s18 + $0x68] sm:$0xff] %vm1881_vm2, %v3970_v6 }
 0x10a   : > { %5422 = vst [vmem:[#allocation14_spill] sm:$0xff] %v3973_v7  ;;  %1959 = vst.msk [vmem:[%s3823_s18 + $0x268] sm:$0xff] %vm1881_vm2, %v3973_v7  ;;  %v3032_v12 = vpop.f32.mrb[14].mxu0 }
 0x10b   : > { %5423 = vst [vmem:[#allocation15_spill] sm:$0xff] %v3979_v11  ;;  %1894 = vst.msk [vmem:[%s3823_s18 + $0x60] sm:$0xff] %vm1881_vm2, %v3976_v10  ;;  %v3128_v13 = vpop.f32.mrb[14].mxu1  ;;  %v3994_v2 = vadd.f32 %v3032_v12, %v3816_v48  ;;  %v1312_v15 = vpop.f32.mrb[15].mxu0 }
 0x10c   : > { %1958 = vst.msk [vmem:[%s3823_s18 + $0x260] sm:$0xff] %vm1881_vm2, %v3979_v11  ;;  %v3997_v14 = vadd.f32 %v3128_v13, %v3816_v48  ;;  %v1632_v16 = vpop.f32.mrb[15].mxu1  ;;  %v4000_v17 = vadd.f32 %v3816_v48, %v1312_v15 }
 0x10d   : > { %v4003_v18 = vadd.f32 %v3816_v48, %v1632_v16  ;;  %1897 = vst.msk [vmem:[%s3823_s18 + $0x78] sm:$0xff] %vm1881_vm2, %v3994_v2 }
 0x10e   : > { %5424 = vst [vmem:[#allocation16_spill] sm:$0xff] %v3997_v14  ;;  %1961 = vst.msk [vmem:[%s3823_s18 + $0x278] sm:$0xff] %vm1881_vm2, %v3997_v14  ;;  %v3035_v19 = vpop.f32.mrb[16].mxu0 }
 0x10f   : > { %5425 = vst [vmem:[#allocation17_spill] sm:$0xff] %v4003_v18  ;;  %1896 = vst.msk [vmem:[%s3823_s18 + $0x70] sm:$0xff] %vm1881_vm2, %v4000_v17  ;;  %v3131_v22 = vpop.f32.mrb[16].mxu1  ;;  %v4018_v23 = vadd.f32 %v3035_v19, %v3816_v48  ;;  %v1322_v27 = vpop.f32.mrb[17].mxu0 }
 0x110   : > { %1960 = vst.msk [vmem:[%s3823_s18 + $0x270] sm:$0xff] %vm1881_vm2, %v4003_v18  ;;  %v4021_v26 = vadd.f32 %v3131_v22, %v3816_v48  ;;  %v1642_v30 = vpop.f32.mrb[17].mxu1  ;;  %v4024_v31 = vadd.f32 %v3816_v48, %v1322_v27 }
 0x111   : > { %v4027_v34 = vadd.f32 %v3816_v48, %v1642_v30  ;;  %1899 = vst.msk [vmem:[%s3823_s18 + $0x88] sm:$0xff] %vm1881_vm2, %v4018_v23 }
 0x112   : > { %5426 = vst [vmem:[#allocation18_spill] sm:$0xff] %v4021_v26  ;;  %1963 = vst.msk [vmem:[%s3823_s18 + $0x288] sm:$0xff] %vm1881_vm2, %v4021_v26  ;;  %v3038_v35 = vpop.f32.mrb[18].mxu0 }
 0x113   : > { %5427 = vst [vmem:[#allocation19_spill] sm:$0xff] %v4027_v34  ;;  %1898 = vst.msk [vmem:[%s3823_s18 + $0x80] sm:$0xff] %vm1881_vm2, %v4024_v31  ;;  %v3134_v38 = vpop.f32.mrb[18].mxu1  ;;  %v4042_v39 = vadd.f32 %v3038_v35, %v3816_v48  ;;  %v1332_v43 = vpop.f32.mrb[19].mxu0 }
 0x114   : > { %1962 = vst.msk [vmem:[%s3823_s18 + $0x280] sm:$0xff] %vm1881_vm2, %v4027_v34  ;;  %v4045_v42 = vadd.f32 %v3134_v38, %v3816_v48  ;;  %v1652_v46 = vpop.f32.mrb[19].mxu1  ;;  %v4048_v47 = vadd.f32 %v3816_v48, %v1332_v43 }
 0x115   : > { %v4051_v1 = vadd.f32 %v3816_v48, %v1652_v46  ;;  %1901 = vst.msk [vmem:[%s3823_s18 + $0x98] sm:$0xff] %vm1881_vm2, %v4042_v39 }
 0x116   : > { %5428 = vst [vmem:[#allocation20_spill] sm:$0xff] %v4045_v42  ;;  %1965 = vst.msk [vmem:[%s3823_s18 + $0x298] sm:$0xff] %vm1881_vm2, %v4045_v42  ;;  %v3041_v51 = vpop.f32.mrb[20].mxu0 }
 0x117   : > { %5429 = vst [vmem:[#allocation21_spill] sm:$0xff] %v4051_v1  ;;  %1900 = vst.msk [vmem:[%s3823_s18 + $0x90] sm:$0xff] %vm1881_vm2, %v4048_v47  ;;  %v3137_v54 = vpop.f32.mrb[20].mxu1  ;;  %v4066_v55 = vadd.f32 %v3041_v51, %v3816_v48  ;;  %v1342_v59 = vpop.f32.mrb[21].mxu0 }
 0x118   : > { %1964 = vst.msk [vmem:[%s3823_s18 + $0x290] sm:$0xff] %vm1881_vm2, %v4051_v1  ;;  %v4069_v58 = vadd.f32 %v3137_v54, %v3816_v48  ;;  %v1662_v62 = vpop.f32.mrb[21].mxu1  ;;  %v4072_v63 = vadd.f32 %v3816_v48, %v1342_v59 }
 0x119   : > { %v4075_v4 = vadd.f32 %v3816_v48, %v1662_v62  ;;  %1903 = vst.msk [vmem:[%s3823_s18 + $0xa8] sm:$0xff] %vm1881_vm2, %v4066_v55 }
 0x11a   : > { %5430 = vst [vmem:[#allocation22_spill] sm:$0xff] %v4069_v58  ;;  %1967 = vst.msk [vmem:[%s3823_s18 + $0x2a8] sm:$0xff] %vm1881_vm2, %v4069_v58  ;;  %v3044_v5 = vpop.f32.mrb[22].mxu0 }
 0x11b   : > { %5431 = vst [vmem:[#allocation23_spill] sm:$0xff] %v4075_v4  ;;  %1902 = vst.msk [vmem:[%s3823_s18 + $0xa0] sm:$0xff] %vm1881_vm2, %v4072_v63  ;;  %v3140_v8 = vpop.f32.mrb[22].mxu1  ;;  %v4090_v9 = vadd.f32 %v3044_v5, %v3816_v48  ;;  %v1352_v13 = vpop.f32.mrb[23].mxu0 }
 0x11c   : > { %1966 = vst.msk [vmem:[%s3823_s18 + $0x2a0] sm:$0xff] %vm1881_vm2, %v4075_v4  ;;  %v4093_v12 = vadd.f32 %v3140_v8, %v3816_v48  ;;  %v1672_v15 = vpop.f32.mrb[23].mxu1  ;;  %v4096_v16 = vadd.f32 %v3816_v48, %v1352_v13 }
 0x11d   : > { %v4099_v19 = vadd.f32 %v3816_v48, %v1672_v15  ;;  %1905 = vst.msk [vmem:[%s3823_s18 + $0xb8] sm:$0xff] %vm1881_vm2, %v4090_v9 }
 0x11e   : > { %5432 = vst [vmem:[#allocation24_spill] sm:$0xff] %v4093_v12  ;;  %1969 = vst.msk [vmem:[%s3823_s18 + $0x2b8] sm:$0xff] %vm1881_vm2, %v4093_v12  ;;  %v3047_v22 = vpop.f32.mrb[24].mxu0 }
 0x11f   : > { %5433 = vst [vmem:[#allocation25_spill] sm:$0xff] %v4099_v19  ;;  %1904 = vst.msk [vmem:[%s3823_s18 + $0xb0] sm:$0xff] %vm1881_vm2, %v4096_v16  ;;  %v3143_v27 = vpop.f32.mrb[24].mxu1  ;;  %v4114_v30 = vadd.f32 %v3047_v22, %v3816_v48  ;;  %v1362_v38 = vpop.f32.mrb[25].mxu0 }
 0x120   : > { %1968 = vst.msk [vmem:[%s3823_s18 + $0x2b0] sm:$0xff] %vm1881_vm2, %v4099_v19  ;;  %v4117_v35 = vadd.f32 %v3143_v27, %v3816_v48  ;;  %v1682_v43 = vpop.f32.mrb[25].mxu1  ;;  %v4120_v46 = vadd.f32 %v3816_v48, %v1362_v38 }
 0x121   : > { %v4123_v51 = vadd.f32 %v3816_v48, %v1682_v43  ;;  %1907 = vst.msk [vmem:[%s3823_s18 + $0xc8] sm:$0xff] %vm1881_vm2, %v4114_v30 }
 0x122   : > { %5434 = vst [vmem:[#allocation26_spill] sm:$0xff] %v4117_v35  ;;  %1971 = vst.msk [vmem:[%s3823_s18 + $0x2c8] sm:$0xff] %vm1881_vm2, %v4117_v35  ;;  %v3050_v54 = vpop.f32.mrb[26].mxu0 }
 0x123   : > { %5435 = vst [vmem:[#allocation27_spill] sm:$0xff] %v4123_v51  ;;  %1906 = vst.msk [vmem:[%s3823_s18 + $0xc0] sm:$0xff] %vm1881_vm2, %v4120_v46  ;;  %v3146_v59 = vpop.f32.mrb[26].mxu1  ;;  %v4138_v62 = vadd.f32 %v3050_v54, %v3816_v48  ;;  %v1372_v8 = vpop.f32.mrb[27].mxu0 }
 0x124   : > { %1970 = vst.msk [vmem:[%s3823_s18 + $0x2c0] sm:$0xff] %vm1881_vm2, %v4123_v51  ;;  %v4141_v5 = vadd.f32 %v3146_v59, %v3816_v48  ;;  %v1692_v13 = vpop.f32.mrb[27].mxu1  ;;  %v4144_v15 = vadd.f32 %v3816_v48, %v1372_v8 }
 0x125   : > { %v4147_v22 = vadd.f32 %v3816_v48, %v1692_v13  ;;  %1909 = vst.msk [vmem:[%s3823_s18 + $0xd8] sm:$0xff] %vm1881_vm2, %v4138_v62 }
 0x126   : > { %5436 = vst [vmem:[#allocation28_spill] sm:$0xff] %v4141_v5  ;;  %1973 = vst.msk [vmem:[%s3823_s18 + $0x2d8] sm:$0xff] %vm1881_vm2, %v4141_v5  ;;  %v3053_v27 = vpop.f32.mrb[28].mxu0 }
 0x127   : > { %5437 = vst [vmem:[#allocation29_spill] sm:$0xff] %v4147_v22  ;;  %1908 = vst.msk [vmem:[%s3823_s18 + $0xd0] sm:$0xff] %vm1881_vm2, %v4144_v15  ;;  %v3149_v38 = vpop.f32.mrb[28].mxu1  ;;  %v4162_v43 = vadd.f32 %v3053_v27, %v3816_v48  ;;  %v1382_v59 = vpop.f32.mrb[29].mxu0 }
 0x128   : > { %1972 = vst.msk [vmem:[%s3823_s18 + $0x2d0] sm:$0xff] %vm1881_vm2, %v4147_v22  ;;  %v4165_v54 = vadd.f32 %v3149_v38, %v3816_v48  ;;  %v1702_v8 = vpop.f32.mrb[29].mxu1  ;;  %v4168_v13 = vadd.f32 %v3816_v48, %v1382_v59 }
 0x129   : > { %v4171_v5 = vadd.f32 %v3816_v48, %v1702_v8  ;;  %1911 = vst.msk [vmem:[%s3823_s18 + $0xe8] sm:$0xff] %vm1881_vm2, %v4162_v43 }
 0x12a   : > { %5438 = vst [vmem:[#allocation30_spill] sm:$0xff] %v4165_v54  ;;  %1975 = vst.msk [vmem:[%s3823_s18 + $0x2e8] sm:$0xff] %vm1881_vm2, %v4165_v54  ;;  %v3056_v27 = vpop.f32.mrb[30].mxu0 }
 0x12b   : > { %5439 = vst [vmem:[#allocation31_spill] sm:$0xff] %v4171_v5  ;;  %1910 = vst.msk [vmem:[%s3823_s18 + $0xe0] sm:$0xff] %vm1881_vm2, %v4168_v13  ;;  %v3152_v38 = vpop.f32.mrb[30].mxu1  ;;  %v4186_v59 = vadd.f32 %v3056_v27, %v3816_v48  ;;  %v1392_v22 = vpop.f32.mrb[31].mxu0 }
 0x12c   : > { %1974 = vst.msk [vmem:[%s3823_s18 + $0x2e0] sm:$0xff] %vm1881_vm2, %v4171_v5  ;;  %v4189_v8 = vadd.f32 %v3152_v38, %v3816_v48  ;;  %v1712_v35 = vpop.f32.mrb[31].mxu1  ;;  %v4192_v54 = vadd.f32 %v3816_v48, %v1392_v22 }
 0x12d   : > { %v4195_v51 = vadd.f32 %v3816_v48, %v1712_v35  ;;  %1913 = vst.msk [vmem:[%s3823_s18 + $0xf8] sm:$0xff] %vm1881_vm2, %v4186_v59 }
 0x12e   : > { %5440 = vst [vmem:[#allocation32_spill] sm:$0xff] %v4189_v8  ;;  %1977 = vst.msk [vmem:[%s3823_s18 + $0x2f8] sm:$0xff] %vm1881_vm2, %v4189_v8  ;;  %v3059_v27 = vpop.f32.mrb[32].mxu0 }
 0x12f   : > { %5441 = vst [vmem:[#allocation33_spill] sm:$0xff] %v4195_v51  ;;  %1912 = vst.msk [vmem:[%s3823_s18 + $0xf0] sm:$0xff] %vm1881_vm2, %v4192_v54  ;;  %v3155_v22 = vpop.f32.mrb[32].mxu1  ;;  %v4210_v38 = vadd.f32 %v3059_v27, %v3816_v48  ;;  %v1402_v5 = vpop.f32.mrb[33].mxu0 }
 0x130   : > { %1976 = vst.msk [vmem:[%s3823_s18 + $0x2f0] sm:$0xff] %vm1881_vm2, %v4195_v51  ;;  %v4213_v35 = vadd.f32 %v3155_v22, %v3816_v48  ;;  %v1722_v12 = vpop.f32.mrb[33].mxu1  ;;  %v4216_v8 = vadd.f32 %v3816_v48, %v1402_v5 }
 0x131   : > { %v4219_v19 = vadd.f32 %v3816_v48, %v1722_v12  ;;  %1915 = vst.msk [vmem:[%s3823_s18 + $0x108] sm:$0xff] %vm1881_vm2, %v4210_v38 }
 0x132   : > { %5442 = vst [vmem:[#allocation34_spill] sm:$0xff] %v4213_v35  ;;  %1979 = vst.msk [vmem:[%s3823_s18 + $0x308] sm:$0xff] %vm1881_vm2, %v4213_v35  ;;  %v3062_v27 = vpop.f32.mrb[34].mxu0 }
 0x133   : > { %5443 = vst [vmem:[#allocation35_spill] sm:$0xff] %v4219_v19  ;;  %1914 = vst.msk [vmem:[%s3823_s18 + $0x100] sm:$0xff] %vm1881_vm2, %v4216_v8  ;;  %v3158_v5 = vpop.f32.mrb[34].mxu1  ;;  %v4234_v22 = vadd.f32 %v3062_v27, %v3816_v48  ;;  %v1412_v51 = vpop.f32.mrb[35].mxu0 }
 0x134   : > { %1978 = vst.msk [vmem:[%s3823_s18 + $0x300] sm:$0xff] %vm1881_vm2, %v4219_v19  ;;  %v4237_v12 = vadd.f32 %v3158_v5, %v3816_v48  ;;  %v1732_v58 = vpop.f32.mrb[35].mxu1  ;;  %v4240_v35 = vadd.f32 %v3816_v48, %v1412_v51 }
 0x135   : > { %v4243_v4 = vadd.f32 %v3816_v48, %v1732_v58  ;;  %1917 = vst.msk [vmem:[%s3823_s18 + $0x118] sm:$0xff] %vm1881_vm2, %v4234_v22 }
 0x136   : > { %5444 = vst [vmem:[#allocation36_spill] sm:$0xff] %v4237_v12  ;;  %1981 = vst.msk [vmem:[%s3823_s18 + $0x318] sm:$0xff] %vm1881_vm2, %v4237_v12  ;;  %v3065_v27 = vpop.f32.mrb[36].mxu0 }
 0x137   : > { %5445 = vst [vmem:[#allocation37_spill] sm:$0xff] %v4243_v4  ;;  %1916 = vst.msk [vmem:[%s3823_s18 + $0x110] sm:$0xff] %vm1881_vm2, %v4240_v35  ;;  %v3161_v51 = vpop.f32.mrb[36].mxu1  ;;  %v4258_v5 = vadd.f32 %v3065_v27, %v3816_v48  ;;  %v1422_v19 = vpop.f32.mrb[37].mxu0 }
 0x138   : > { %1980 = vst.msk [vmem:[%s3823_s18 + $0x310] sm:$0xff] %vm1881_vm2, %v4243_v4  ;;  %v4261_v58 = vadd.f32 %v3161_v51, %v3816_v48  ;;  %v1742_v42 = vpop.f32.mrb[37].mxu1  ;;  %v4264_v12 = vadd.f32 %v3816_v48, %v1422_v19 }
 0x139   : > { %v4267_v1 = vadd.f32 %v3816_v48, %v1742_v42  ;;  %1919 = vst.msk [vmem:[%s3823_s18 + $0x128] sm:$0xff] %vm1881_vm2, %v4258_v5 }
 0x13a   : > { %5446 = vst [vmem:[#allocation38_spill] sm:$0xff] %v4261_v58  ;;  %1983 = vst.msk [vmem:[%s3823_s18 + $0x328] sm:$0xff] %vm1881_vm2, %v4261_v58  ;;  %v3068_v27 = vpop.f32.mrb[38].mxu0 }
 0x13b   : > { %5447 = vst [vmem:[#allocation39_spill] sm:$0xff] %v4267_v1  ;;  %1918 = vst.msk [vmem:[%s3823_s18 + $0x120] sm:$0xff] %vm1881_vm2, %v4264_v12  ;;  %v3164_v19 = vpop.f32.mrb[38].mxu1  ;;  %v4282_v51 = vadd.f32 %v3068_v27, %v3816_v48  ;;  %v1432_v4 = vpop.f32.mrb[39].mxu0 }
 0x13c   : > { %1982 = vst.msk [vmem:[%s3823_s18 + $0x320] sm:$0xff] %vm1881_vm2, %v4267_v1  ;;  %v4285_v42 = vadd.f32 %v3164_v19, %v3816_v48  ;;  %v1752_v26 = vpop.f32.mrb[39].mxu1  ;;  %v4288_v58 = vadd.f32 %v3816_v48, %v1432_v4 }
 0x13d   : > { %v4291_v34 = vadd.f32 %v3816_v48, %v1752_v26  ;;  %1921 = vst.msk [vmem:[%s3823_s18 + $0x138] sm:$0xff] %vm1881_vm2, %v4282_v51 }
 0x13e   : > { %5448 = vst [vmem:[#allocation40_spill] sm:$0xff] %v4285_v42  ;;  %1985 = vst.msk [vmem:[%s3823_s18 + $0x338] sm:$0xff] %vm1881_vm2, %v4285_v42  ;;  %v3071_v27 = vpop.f32.mrb[40].mxu0 }
 0x13f   : > { %5449 = vst [vmem:[#allocation41_spill] sm:$0xff] %v4291_v34  ;;  %1920 = vst.msk [vmem:[%s3823_s18 + $0x130] sm:$0xff] %vm1881_vm2, %v4288_v58  ;;  %v3167_v4 = vpop.f32.mrb[40].mxu1  ;;  %v4306_v19 = vadd.f32 %v3071_v27, %v3816_v48  ;;  %v1442_v1 = vpop.f32.mrb[41].mxu0 }
 0x140   : > { %1984 = vst.msk [vmem:[%s3823_s18 + $0x330] sm:$0xff] %vm1881_vm2, %v4291_v34  ;;  %v4309_v26 = vadd.f32 %v3167_v4, %v3816_v48  ;;  %v1762_v14 = vpop.f32.mrb[41].mxu1  ;;  %v4312_v42 = vadd.f32 %v3816_v48, %v1442_v1 }
 0x141   : > { %v4315_v18 = vadd.f32 %v3816_v48, %v1762_v14  ;;  %1923 = vst.msk [vmem:[%s3823_s18 + $0x148] sm:$0xff] %vm1881_vm2, %v4306_v19 }
 0x142   : > { %5450 = vst [vmem:[#allocation42_spill] sm:$0xff] %v4309_v26  ;;  %1987 = vst.msk [vmem:[%s3823_s18 + $0x348] sm:$0xff] %vm1881_vm2, %v4309_v26  ;;  %v3074_v27 = vpop.f32.mrb[42].mxu0 }
 0x143   : > { %5451 = vst [vmem:[#allocation43_spill] sm:$0xff] %v4315_v18  ;;  %1922 = vst.msk [vmem:[%s3823_s18 + $0x140] sm:$0xff] %vm1881_vm2, %v4312_v42  ;;  %v3170_v1 = vpop.f32.mrb[42].mxu1  ;;  %v4330_v4 = vadd.f32 %v3074_v27, %v3816_v48  ;;  %v1452_v34 = vpop.f32.mrb[43].mxu0 }
 0x144   : > { %1986 = vst.msk [vmem:[%s3823_s18 + $0x340] sm:$0xff] %vm1881_vm2, %v4315_v18  ;;  %v4333_v14 = vadd.f32 %v3170_v1, %v3816_v48  ;;  %v1772_v7 = vpop.f32.mrb[43].mxu1  ;;  %v4336_v26 = vadd.f32 %v3816_v48, %v1452_v34 }
 0x145   : > { %v4339_v11 = vadd.f32 %v3816_v48, %v1772_v7  ;;  %1925 = vst.msk [vmem:[%s3823_s18 + $0x158] sm:$0xff] %vm1881_vm2, %v4330_v4 }
 0x146   : > { %5452 = vst [vmem:[#allocation44_spill] sm:$0xff] %v4333_v14  ;;  %1989 = vst.msk [vmem:[%s3823_s18 + $0x358] sm:$0xff] %vm1881_vm2, %v4333_v14  ;;  %v3077_v27 = vpop.f32.mrb[44].mxu0 }
 0x147   : > { %5453 = vst [vmem:[#allocation45_spill] sm:$0xff] %v4339_v11  ;;  %1924 = vst.msk [vmem:[%s3823_s18 + $0x150] sm:$0xff] %vm1881_vm2, %v4336_v26  ;;  %v3173_v34 = vpop.f32.mrb[44].mxu1  ;;  %v4354_v1 = vadd.f32 %v3077_v27, %v3816_v48  ;;  %v1462_v18 = vpop.f32.mrb[45].mxu0 }
 0x148   : > { %1988 = vst.msk [vmem:[%s3823_s18 + $0x350] sm:$0xff] %vm1881_vm2, %v4339_v11  ;;  %v4357_v7 = vadd.f32 %v3173_v34, %v3816_v48  ;;  %v1782_v61 = vpop.f32.mrb[45].mxu1  ;;  %v4360_v14 = vadd.f32 %v3816_v48, %v1462_v18 }
 0x149   : > { %v4363_v3 = vadd.f32 %v3816_v48, %v1782_v61  ;;  %1927 = vst.msk [vmem:[%s3823_s18 + $0x168] sm:$0xff] %vm1881_vm2, %v4354_v1 }
 0x14a   : > { %5454 = vst [vmem:[#allocation46_spill] sm:$0xff] %v4357_v7  ;;  %1991 = vst.msk [vmem:[%s3823_s18 + $0x368] sm:$0xff] %vm1881_vm2, %v4357_v7  ;;  %v3080_v27 = vpop.f32.mrb[46].mxu0 }
 0x14b   : > { %5455 = vst [vmem:[#allocation47_spill] sm:$0xff] %v4363_v3  ;;  %1926 = vst.msk [vmem:[%s3823_s18 + $0x160] sm:$0xff] %vm1881_vm2, %v4360_v14  ;;  %v3176_v18 = vpop.f32.mrb[46].mxu1  ;;  %v4378_v34 = vadd.f32 %v3080_v27, %v3816_v48  ;;  %v1472_v11 = vpop.f32.mrb[47].mxu0 }
 0x14c   : > { %1990 = vst.msk [vmem:[%s3823_s18 + $0x360] sm:$0xff] %vm1881_vm2, %v4363_v3  ;;  %v4381_v61 = vadd.f32 %v3176_v18, %v3816_v48  ;;  %v1792_v53 = vpop.f32.mrb[47].mxu1  ;;  %v4384_v7 = vadd.f32 %v3816_v48, %v1472_v11 }
 0x14d   : > { %v4387_v57 = vadd.f32 %v3816_v48, %v1792_v53  ;;  %1929 = vst.msk [vmem:[%s3823_s18 + $0x178] sm:$0xff] %vm1881_vm2, %v4378_v34 }
 0x14e   : > { %5456 = vst [vmem:[#allocation48_spill] sm:$0xff] %v4381_v61  ;;  %1993 = vst.msk [vmem:[%s3823_s18 + $0x378] sm:$0xff] %vm1881_vm2, %v4381_v61  ;;  %v3083_v27 = vpop.f32.mrb[48].mxu0 }
 0x14f   : > { %5457 = vst [vmem:[#allocation49_spill] sm:$0xff] %v4387_v57  ;;  %1928 = vst.msk [vmem:[%s3823_s18 + $0x170] sm:$0xff] %vm1881_vm2, %v4384_v7  ;;  %v3179_v11 = vpop.f32.mrb[48].mxu1  ;;  %v4402_v18 = vadd.f32 %v3083_v27, %v3816_v48  ;;  %v1482_v3 = vpop.f32.mrb[49].mxu0 }
 0x150   : > { %1992 = vst.msk [vmem:[%s3823_s18 + $0x370] sm:$0xff] %vm1881_vm2, %v4387_v57  ;;  %v4405_v53 = vadd.f32 %v3179_v11, %v3816_v48  ;;  %v1802_v45 = vpop.f32.mrb[49].mxu1  ;;  %v4408_v61 = vadd.f32 %v3816_v48, %v1482_v3 }
 0x151   : > { %v4411_v50 = vadd.f32 %v3816_v48, %v1802_v45  ;;  %1931 = vst.msk [vmem:[%s3823_s18 + $0x188] sm:$0xff] %vm1881_vm2, %v4402_v18 }
 0x152   : > { %5458 = vst [vmem:[#allocation50_spill] sm:$0xff] %v4405_v53  ;;  %1995 = vst.msk [vmem:[%s3823_s18 + $0x388] sm:$0xff] %vm1881_vm2, %v4405_v53  ;;  %v3086_v27 = vpop.f32.mrb[50].mxu0 }
 0x153   : > { %5459 = vst [vmem:[#allocation51_spill] sm:$0xff] %v4411_v50  ;;  %1930 = vst.msk [vmem:[%s3823_s18 + $0x180] sm:$0xff] %vm1881_vm2, %v4408_v61  ;;  %v3182_v3 = vpop.f32.mrb[50].mxu1  ;;  %v4426_v11 = vadd.f32 %v3086_v27, %v3816_v48  ;;  %v1492_v57 = vpop.f32.mrb[51].mxu0 }
 0x154   : > { %1994 = vst.msk [vmem:[%s3823_s18 + $0x380] sm:$0xff] %vm1881_vm2, %v4411_v50  ;;  %v4429_v45 = vadd.f32 %v3182_v3, %v3816_v48  ;;  %v1812_v37 = vpop.f32.mrb[51].mxu1  ;;  %v4432_v53 = vadd.f32 %v3816_v48, %v1492_v57 }
 0x155   : > { %5460 = vst [vmem:[#allocation52_spill] sm:$0xff] %v4426_v11  ;;  %v4435_v41 = vadd.f32 %v3816_v48, %v1812_v37  ;;  %1933 = vst.msk [vmem:[%s3823_s18 + $0x198] sm:$0xff] %vm1881_vm2, %v4426_v11 }
 0x156   : > { %5461 = vst [vmem:[#allocation53_spill] sm:$0xff] %v4429_v45  ;;  %5462 = vst [vmem:[#allocation54_spill] sm:$0xff] %v4432_v53  ;;  %v3089_v27 = vpop.f32.mrb[52].mxu0 }
 0x157   : > { %5463 = vst [vmem:[#allocation55_spill] sm:$0xff] %v4435_v41  ;;  %1997 = vst.msk [vmem:[%s3823_s18 + $0x398] sm:$0xff] %vm1881_vm2, %v4429_v45  ;;  %v3185_v57 = vpop.f32.mrb[52].mxu1  ;;  %v4450_v3 = vadd.f32 %v3089_v27, %v3816_v48  ;;  %v1502_v50 = vpop.f32.mrb[53].mxu0 }
 0x158   : > { %1932 = vst.msk [vmem:[%s3823_s18 + $0x190] sm:$0xff] %vm1881_vm2, %v4432_v53  ;;  %1996 = vst.msk [vmem:[%s3823_s18 + $0x390] sm:$0xff] %vm1881_vm2, %v4435_v41  ;;  %v4453_v37 = vadd.f32 %v3185_v57, %v3816_v48  ;;  %v1822_v29 = vpop.f32.mrb[53].mxu1  ;;  %v4456_v45 = vadd.f32 %v3816_v48, %v1502_v50 }
 0x159   : > { %5464 = vst [vmem:[#allocation56_spill] sm:$0xff] %v4450_v3  ;;  %v4459_v33 = vadd.f32 %v3816_v48, %v1822_v29  ;;  %1935 = vst.msk [vmem:[%s3823_s18 + $0x1a8] sm:$0xff] %vm1881_vm2, %v4450_v3 }
 0x15a   : > { %5465 = vst [vmem:[#allocation57_spill] sm:$0xff] %v4453_v37  ;;  %5466 = vst [vmem:[#allocation58_spill] sm:$0xff] %v4456_v45  ;;  %v3092_v27 = vpop.f32.mrb[54].mxu0 }
 0x15b   : > { %5467 = vst [vmem:[#allocation59_spill] sm:$0xff] %v4459_v33  ;;  %1999 = vst.msk [vmem:[%s3823_s18 + $0x3a8] sm:$0xff] %vm1881_vm2, %v4453_v37  ;;  %v3188_v50 = vpop.f32.mrb[54].mxu1  ;;  %v4474_v57 = vadd.f32 %v3092_v27, %v3816_v48  ;;  %v1512_v41 = vpop.f32.mrb[55].mxu0 }
 0x15c   : > { %1934 = vst.msk [vmem:[%s3823_s18 + $0x1a0] sm:$0xff] %vm1881_vm2, %v4456_v45  ;;  %1998 = vst.msk [vmem:[%s3823_s18 + $0x3a0] sm:$0xff] %vm1881_vm2, %v4459_v33  ;;  %v4477_v29 = vadd.f32 %v3188_v50, %v3816_v48  ;;  %v1832_v21 = vpop.f32.mrb[55].mxu1  ;;  %v4480_v37 = vadd.f32 %v3816_v48, %v1512_v41 }
 0x15d   : > { %5468 = vst [vmem:[#allocation60_spill] sm:$0xff] %v4474_v57  ;;  %v4483_v25 = vadd.f32 %v3816_v48, %v1832_v21  ;;  %1937 = vst.msk [vmem:[%s3823_s18 + $0x1b8] sm:$0xff] %vm1881_vm2, %v4474_v57 }
 0x15e   : > { %5469 = vst [vmem:[#allocation61_spill] sm:$0xff] %v4477_v29  ;;  %5470 = vst [vmem:[#allocation62_spill] sm:$0xff] %v4480_v37  ;;  %v3095_v27 = vpop.f32.mrb[56].mxu0 }
 0x15f   : > { %5471 = vst [vmem:[#allocation63_spill] sm:$0xff] %v4483_v25  ;;  %2001 = vst.msk [vmem:[%s3823_s18 + $0x3b8] sm:$0xff] %vm1881_vm2, %v4477_v29  ;;  %v3191_v41 = vpop.f32.mrb[56].mxu1  ;;  %v4498_v50 = vadd.f32 %v3095_v27, %v3816_v48  ;;  %v1522_v33 = vpop.f32.mrb[57].mxu0 }
 0x160   : > { %1936 = vst.msk [vmem:[%s3823_s18 + $0x1b0] sm:$0xff] %vm1881_vm2, %v4480_v37  ;;  %2000 = vst.msk [vmem:[%s3823_s18 + $0x3b0] sm:$0xff] %vm1881_vm2, %v4483_v25  ;;  %v4501_v21 = vadd.f32 %v3191_v41, %v3816_v48  ;;  %v1842_v57 = vpop.f32.mrb[57].mxu1  ;;  %v4504_v29 = vadd.f32 %v3816_v48, %v1522_v33 }
 0x161   : > { %5472 = vst [vmem:[#allocation64_spill] sm:$0xff] %v4498_v50  ;;  %v4507_v37 = vadd.f32 %v3816_v48, %v1842_v57  ;;  %1939 = vst.msk [vmem:[%s3823_s18 + $0x1c8] sm:$0xff] %vm1881_vm2, %v4498_v50 }
 0x162   : > { %5473 = vst [vmem:[#allocation65_spill] sm:$0xff] %v4501_v21  ;;  %5474 = vst [vmem:[#allocation66_spill] sm:$0xff] %v4504_v29  ;;  %v3098_v27 = vpop.f32.mrb[58].mxu0 }
 0x163   : > { %5475 = vst [vmem:[#allocation67_spill] sm:$0xff] %v4507_v37  ;;  %2003 = vst.msk [vmem:[%s3823_s18 + $0x3c8] sm:$0xff] %vm1881_vm2, %v4501_v21  ;;  %v3194_v33 = vpop.f32.mrb[58].mxu1  ;;  %v4522_v41 = vadd.f32 %v3098_v27, %v3816_v48  ;;  %v1532_v25 = vpop.f32.mrb[59].mxu0 }
 0x164   : > { %1938 = vst.msk [vmem:[%s3823_s18 + $0x1c0] sm:$0xff] %vm1881_vm2, %v4504_v29  ;;  %2002 = vst.msk [vmem:[%s3823_s18 + $0x3c0] sm:$0xff] %vm1881_vm2, %v4507_v37  ;;  %v4525_v57 = vadd.f32 %v3194_v33, %v3816_v48  ;;  %v1852_v50 = vpop.f32.mrb[59].mxu1  ;;  %v4528_v21 = vadd.f32 %v3816_v48, %v1532_v25 }
 0x165   : > { %5476 = vst [vmem:[#allocation68_spill] sm:$0xff] %v4522_v41  ;;  %v4531_v29 = vadd.f32 %v3816_v48, %v1852_v50  ;;  %1941 = vst.msk [vmem:[%s3823_s18 + $0x1d8] sm:$0xff] %vm1881_vm2, %v4522_v41 }
 0x166   : > { %5477 = vst [vmem:[#allocation69_spill] sm:$0xff] %v4525_v57  ;;  %5478 = vst [vmem:[#allocation70_spill] sm:$0xff] %v4528_v21  ;;  %v3101_v27 = vpop.f32.mrb[60].mxu0 }
 0x167   : > { %5479 = vst [vmem:[#allocation71_spill] sm:$0xff] %v4531_v29  ;;  %2005 = vst.msk [vmem:[%s3823_s18 + $0x3d8] sm:$0xff] %vm1881_vm2, %v4525_v57  ;;  %v3197_v25 = vpop.f32.mrb[60].mxu1  ;;  %v4546_v33 = vadd.f32 %v3101_v27, %v3816_v48  ;;  %v1542_v37 = vpop.f32.mrb[61].mxu0 }
 0x168   : > { %1940 = vst.msk [vmem:[%s3823_s18 + $0x1d0] sm:$0xff] %vm1881_vm2, %v4528_v21  ;;  %2004 = vst.msk [vmem:[%s3823_s18 + $0x3d0] sm:$0xff] %vm1881_vm2, %v4531_v29  ;;  %v4549_v50 = vadd.f32 %v3197_v25, %v3816_v48  ;;  %v1862_v41 = vpop.f32.mrb[61].mxu1  ;;  %v4552_v57 = vadd.f32 %v3816_v48, %v1542_v37 }
 0x169   : > { %5480 = vst [vmem:[#allocation72_spill] sm:$0xff] %v4546_v33  ;;  %v4555_v21 = vadd.f32 %v3816_v48, %v1862_v41  ;;  %1943 = vst.msk [vmem:[%s3823_s18 + $0x1e8] sm:$0xff] %vm1881_vm2, %v4546_v33 }
 0x16a   : > { %5481 = vst [vmem:[#allocation73_spill] sm:$0xff] %v4549_v50  ;;  %5482 = vst [vmem:[#allocation74_spill] sm:$0xff] %v4552_v57  ;;  %v3104_v27 = vpop.f32.mrb[62].mxu0  ;;  %2013 = sbr.rel (%p2875_p4) target bundleno = 370 (0x172), region = 44 }
 0x16b   : > { %5483 = vst [vmem:[#allocation75_spill] sm:$0xff] %v4555_v21  ;;  %2007 = vst.msk [vmem:[%s3823_s18 + $0x3e8] sm:$0xff] %vm1881_vm2, %v4549_v50  ;;  %v3200_v37 = vpop.f32.mrb[62].mxu1  ;;  %v4570_v25 = vadd.f32 %v3104_v27, %v3816_v48  ;;  %v1552_v29 = vpop.f32.mrb[63].mxu0 }
 0x16c   : > { %1942 = vst.msk [vmem:[%s3823_s18 + $0x1e0] sm:$0xff] %vm1881_vm2, %v4552_v57  ;;  %2006 = vst.msk [vmem:[%s3823_s18 + $0x3e0] sm:$0xff] %vm1881_vm2, %v4555_v21  ;;  %v4573_v41 = vadd.f32 %v3200_v37, %v3816_v48  ;;  %v1872_v3 = vpop.f32.mrb[63].mxu1  ;;  %v4576_v33 = vadd.f32 %v3816_v48, %v1552_v29  ;;  %v3222_v29 = vmov (!%p2875_p4), 0.0  }
 0x16d   : > { %5484 = vst [vmem:[#allocation76_spill] sm:$0xff] %v4570_v25  ;;  %v4579_v50 = vadd.f32 %v3816_v48, %v1872_v3  ;;  %1945 = vst.msk [vmem:[%s3823_s18 + $0x1f8] sm:$0xff] %vm1881_vm2, %v4570_v25 }
 0x16e   : > { %5485 = vst [vmem:[#allocation77_spill] sm:$0xff] %v4573_v41  ;;  %5486 = vst [vmem:[#allocation78_spill] sm:$0xff] %v4576_v33 }
 0x16f   : > { %5487 = vst [vmem:[#allocation79_spill] sm:$0xff] %v4579_v50  ;;  %2009 = vst.msk [vmem:[%s3823_s18 + $0x3f8] sm:$0xff] %vm1881_vm2, %v4573_v41 }
 0x170   : > { %1944 = vst.msk [vmem:[%s3823_s18 + $0x1f0] sm:$0xff] %vm1881_vm2, %v4576_v33  ;;  %2008 = vst.msk [vmem:[%s3823_s18 + $0x3f0] sm:$0xff] %vm1881_vm2, %v4579_v50 }
 0x171   : > { %2015 = vst.msk [vmem:[%s5253_s6] sm:$0x3] %vm2014_vm3, %v3222_v29 }
 0x172 PF: > { %v2016_v48 = vsel %vm1881_vm2, %v3832_v24, 0.0  ;;  %v2017_v3 = vsel %vm1881_vm2, %v3826_v20, 0.0  ;;  %v2019_v27 = vsel %vm1881_vm2, %v3856_v32, 0.0  ;;  %v2021_v41 = vsel %vm1881_vm2, %v3850_v28, 0.0 }
 0x173   : > { %v2018_v37 = vadd.f32 %v2017_v3, %v2016_v48  ;;  %v2023_v21 = vsel %vm1881_vm2, %v3880_v40, 0.0  ;;  %v2025_v29 = vsel %vm1881_vm2, %v3874_v36, 0.0  ;;  %v2027_v57 = vsel %vm1881_vm2, %v3904_v49, 0.0 }
 0x174   : > { %v2029_v11 = vsel %vm1881_vm2, %v3898_v44, 0.0  ;;  %v2031_v3 = vsel %vm1881_vm2, %v3928_v56, 0.0  ;;  %vm2667_vm4 = vcmask 1040384   ;;  %vm2670_vm5 = vcmask 58368  }
 0x175   : > { %v2020_v50 = vadd.f32 %v2019_v27, %v2018_v37  ;;  %v2033_v37 = vsel %vm1881_vm2, %v3922_v52, 0.0 }
 0x177   : > { %v2022_v25 = vadd.f32 %v2021_v41, %v2020_v50  ;;  %v2035_v41 = vsel %vm1881_vm2, %v3952_v0, 0.0 }
 0x179   : > { %v2024_v33 = vadd.f32 %v2023_v21, %v2022_v25  ;;  %v2037_v25 = vsel %vm1881_vm2, %v3946_v60, 0.0 }
 0x17b   : > { %v2026_v45 = vadd.f32 %v2025_v29, %v2024_v33  ;;  %v2039_v29 = vsel %vm1881_vm2, %v3976_v10, 0.0 }
 0x17d   : > { %v2028_v48 = vadd.f32 %v2027_v57, %v2026_v45  ;;  %v2041_v57 = vsel %vm1881_vm2, %v3970_v6, 0.0 }
 0x17f   : > { %v2030_v27 = vadd.f32 %v2029_v11, %v2028_v48  ;;  %v2043_v48 = vsel %vm1881_vm2, %v4000_v17, 0.0 }
 0x181   : > { %v2032_v50 = vadd.f32 %v2031_v3, %v2030_v27  ;;  %v2045_v27 = vsel %vm1881_vm2, %v3994_v2, 0.0 }
 0x183   : > { %v2034_v21 = vadd.f32 %v2033_v37, %v2032_v50  ;;  %v2047_v50 = vsel %vm1881_vm2, %v4024_v31, 0.0 }
 0x185   : > { %v2036_v33 = vadd.f32 %v2035_v41, %v2034_v21  ;;  %v2049_v21 = vsel %vm1881_vm2, %v4018_v23, 0.0 }
 0x187   : > { %v2038_v45 = vadd.f32 %v2037_v25, %v2036_v33  ;;  %v2051_v33 = vsel %vm1881_vm2, %v4048_v47, 0.0 }
 0x189   : > { %v2040_v11 = vadd.f32 %v2039_v29, %v2038_v45  ;;  %v2053_v45 = vsel %vm1881_vm2, %v4042_v39, 0.0 }
 0x18b   : > { %v2042_v3 = vadd.f32 %v2041_v57, %v2040_v11  ;;  %v2055_v11 = vsel %vm1881_vm2, %v4072_v63, 0.0 }
 0x18d   : > { %v2044_v37 = vadd.f32 %v2043_v48, %v2042_v3  ;;  %v2057_v3 = vsel %vm1881_vm2, %v4066_v55, 0.0 }
 0x18f   : > { %v2046_v41 = vadd.f32 %v2045_v27, %v2044_v37  ;;  %v2059_v37 = vsel %vm1881_vm2, %v4096_v16, 0.0 }
 0x191   : > { %v2048_v25 = vadd.f32 %v2047_v50, %v2046_v41  ;;  %v2061_v41 = vsel %vm1881_vm2, %v4090_v9, 0.0 }
 0x193   : > { %v2050_v29 = vadd.f32 %v2049_v21, %v2048_v25  ;;  %v2063_v25 = vsel %vm1881_vm2, %v4120_v46, 0.0 }
 0x195   : > { %v2052_v57 = vadd.f32 %v2051_v33, %v2050_v29  ;;  %v2277_v33 = vmul.f32 %v3832_v24, %v3832_v24  ;;  %v2278_v29 = vmul.f32 %v3826_v20, %v3826_v20  ;;  %v2281_v24 = vmul.f32 %v3880_v40, %v3880_v40 }
 0x196   : > { %v2071_v40 = vsel %vm1881_vm2, %v4168_v13, 0.0 }
 0x197   : > { %v2054_v48 = vadd.f32 %v2053_v45, %v2052_v57  ;;  %v2279_v45 = vmul.f32 %v3856_v32, %v3856_v32  ;;  %v2406_v20 = vsel %vm1881_vm2, %v2278_v29, 0.0  ;;  %v2412_v29 = vsel %vm1881_vm2, %v2281_v24, 0.0 }
 0x199   : > { %v2056_v27 = vadd.f32 %v2055_v11, %v2054_v48  ;;  %v2065_v11 = vsel %vm1881_vm2, %v4114_v30, 0.0  ;;  %v2280_v48 = vmul.f32 %v3850_v28, %v3850_v28  ;;  %v2408_v32 = vsel %vm1881_vm2, %v2279_v45, 0.0 }
 0x19a   : > { %v2282_v28 = vmul.f32 %v3874_v36, %v3874_v36  ;;  %v2284_v36 = vmul.f32 %v3898_v44, %v3898_v44  ;;  %v2286_v44 = vmul.f32 %v3922_v52, %v3922_v52  ;;  %v2288_v52 = vmul.f32 %v3946_v60, %v3946_v60 }
 0x19b   : > { %v2058_v50 = vadd.f32 %v2057_v3, %v2056_v27  ;;  %v2067_v27 = vsel %vm1881_vm2, %v4144_v15, 0.0  ;;  %v2290_v60 = vmul.f32 %v3970_v6, %v3970_v6  ;;  %v2292_v6 = vmul.f32 %v3994_v2, %v3994_v2 }
 0x19c   : > { %v2294_v2 = vmul.f32 %v4018_v23, %v4018_v23  ;;  %v2296_v23 = vmul.f32 %v4042_v39, %v4042_v39  ;;  %v2298_v39 = vmul.f32 %v4066_v55, %v4066_v55  ;;  %v2300_v55 = vmul.f32 %v4090_v9, %v4090_v9 }
 0x19d   : > { %v2060_v21 = vadd.f32 %v2059_v37, %v2058_v50  ;;  %v2405_v37 = vsel %vm1881_vm2, %v2277_v33, 0.0  ;;  %v2283_v33 = vmul.f32 %v3904_v49, %v3904_v49  ;;  %v2285_v49 = vmul.f32 %v3928_v56, %v3928_v56 }
 0x19e   : > { %v2287_v56 = vmul.f32 %v3952_v0, %v3952_v0  ;;  %v2289_v0 = vmul.f32 %v3976_v10, %v3976_v10  ;;  %v2291_v10 = vmul.f32 %v4000_v17, %v4000_v17  ;;  %v2293_v17 = vmul.f32 %v4024_v31, %v4024_v31 }
 0x19f   : > { %v2062_v57 = vadd.f32 %v2061_v41, %v2060_v21  ;;  %v2407_v41 = vadd.f32 %v2406_v20, %v2405_v37  ;;  %v2069_v21 = vsel %vm1881_vm2, %v4138_v62, 0.0  ;;  %v2075_v20 = vsel %vm1881_vm2, %v4192_v54, 0.0 }
 0x1a0   : > { %v2416_v24 = vsel %vm1881_vm2, %v2283_v33, 0.0  ;;  %v2295_v31 = vmul.f32 %v4048_v47, %v4048_v47  ;;  %v2297_v47 = vmul.f32 %v4072_v63, %v4072_v63  ;;  %v2299_v63 = vmul.f32 %v4096_v16, %v4096_v16 }
 0x1a1   : > { %v2064_v3 = vadd.f32 %v2063_v25, %v2062_v57  ;;  %v2410_v25 = vsel %vm1881_vm2, %v2280_v48, 0.0  ;;  %v2409_v53 = vadd.f32 %v2408_v32, %v2407_v41  ;;  %v2414_v48 = vsel %vm1881_vm2, %v2282_v28, 0.0 }
 0x1a2   : > { %v2418_v41 = vsel %vm1881_vm2, %v2284_v36, 0.0  ;;  %v2083_v36 = vsel %vm1881_vm2, %v4240_v35, 0.0  ;;  %v2301_v16 = vmul.f32 %v4120_v46, %v4120_v46  ;;  %v2302_v9 = vmul.f32 %v4114_v30, %v4114_v30 }
 0x1a3   : > { %v2066_v50 = vadd.f32 %v2065_v11, %v2064_v3  ;;  %v2411_v11 = vadd.f32 %v2410_v25, %v2409_v53  ;;  %v2073_v3 = vsel %vm1881_vm2, %v4162_v43, 0.0  ;;  %v2079_v25 = vsel %vm1881_vm2, %v4216_v8, 0.0 }
 0x1a4   : > { %v2303_v46 = vmul.f32 %v4144_v15, %v4144_v15  ;;  %v2304_v30 = vmul.f32 %v4138_v62, %v4138_v62  ;;  %v2305_v15 = vmul.f32 %v4168_v13, %v4168_v13  ;;  %v2306_v62 = vmul.f32 %v4162_v43, %v4162_v43 }
 0x1a5   : > { %v2068_v57 = vadd.f32 %v2067_v27, %v2066_v50  ;;  %v2413_v37 = vadd.f32 %v2412_v29, %v2411_v11  ;;  %v2077_v50 = vsel %vm1881_vm2, %v4186_v59, 0.0  ;;  %v2081_v29 = vsel %vm1881_vm2, %v4210_v38, 0.0 }
 0x1a6   : > { %v2307_v13 = vmul.f32 %v4192_v54, %v4192_v54  ;;  %v2308_v43 = vmul.f32 %v4186_v59, %v4186_v59  ;;  %v2309_v54 = vmul.f32 %v4216_v8, %v4216_v8  ;;  %v2310_v59 = vmul.f32 %v4210_v38, %v4210_v38 }
 0x1a7   : > { %v2070_v45 = vadd.f32 %v2069_v21, %v2068_v57  ;;  %v2415_v53 = vadd.f32 %v2414_v48, %v2413_v37  ;;  %v2420_v57 = vsel %vm1881_vm2, %v2285_v49, 0.0  ;;  %v2424_v48 = vsel %vm1881_vm2, %v2287_v56, 0.0 }
 0x1a8   : > { %v2426_v49 = vsel %vm1881_vm2, %v2288_v52, 0.0  ;;  %v2093_v52 = vsel %vm1881_vm2, %v4282_v51, 0.0  ;;  %v2311_v8 = vmul.f32 %v4240_v35, %v4240_v35  ;;  %v2312_v38 = vmul.f32 %v4234_v22, %v4234_v22 }
 0x1a9   : > { %v2072_v27 = vadd.f32 %v2071_v40, %v2070_v45  ;;  %v2417_v28 = vadd.f32 %v2416_v24, %v2415_v53  ;;  %v2422_v45 = vsel %vm1881_vm2, %v2286_v44, 0.0  ;;  %v2087_v53 = vsel %vm1881_vm2, %v4264_v12, 0.0 }
 0x1aa   : > { %v2313_v35 = vmul.f32 %v4264_v12, %v4264_v12  ;;  %v2315_v12 = vmul.f32 %v4288_v58, %v4288_v58 }
 0x1ab   : > { %v2074_v32 = vadd.f32 %v2073_v3, %v2072_v27  ;;  %v2419_v33 = vadd.f32 %v2418_v41, %v2417_v28  ;;  %v2430_v28 = vsel %vm1881_vm2, %v2290_v60, 0.0 }
 0x1ad   : > { %v2076_v21 = vadd.f32 %v2075_v20, %v2074_v32  ;;  %v2421_v3 = vadd.f32 %v2420_v57, %v2419_v33  ;;  %v2085_v20 = vsel %vm1881_vm2, %v4234_v22, 0.0  ;;  %v2091_v57 = vsel %vm1881_vm2, %v4288_v58, 0.0 }
 0x1ae   : > { %v2314_v22 = vmul.f32 %v4258_v5, %v4258_v5  ;;  %v2317_v58 = vmul.f32 %v4312_v42, %v4312_v42 }
 0x1af   : > { %v2078_v40 = vadd.f32 %v2077_v50, %v2076_v21  ;;  %v2423_v37 = vadd.f32 %v2422_v45, %v2421_v3  ;;  %v2428_v50 = vsel %vm1881_vm2, %v2289_v0, 0.0  ;;  %v2089_v21 = vsel %vm1881_vm2, %v4258_v5, 0.0 }
 0x1b0   : > { %v2434_v45 = vsel %vm1881_vm2, %v2292_v6, 0.0  ;;  %v2436_v0 = vsel %vm1881_vm2, %v2293_v17, 0.0  ;;  %v2103_v6 = vsel %vm1881_vm2, %v4360_v14, 0.0  ;;  %v2446_v17 = vsel %vm1881_vm2, %v2298_v39, 0.0 }
 0x1b1   : > { %v2080_v11 = vadd.f32 %v2079_v25, %v2078_v40  ;;  %v2425_v32 = vadd.f32 %v2424_v48, %v2423_v37  ;;  %v2432_v40 = vsel %vm1881_vm2, %v2291_v10, 0.0  ;;  %v2097_v37 = vsel %vm1881_vm2, %v4306_v19, 0.0 }
 0x1b2   : > { %v2316_v5 = vmul.f32 %v4282_v51, %v4282_v51  ;;  %v2318_v51 = vmul.f32 %v4306_v19, %v4306_v19  ;;  %v2320_v19 = vmul.f32 %v4330_v4, %v4330_v4 }
 0x1b3   : > { %v2082_v27 = vadd.f32 %v2081_v29, %v2080_v11  ;;  %v2427_v41 = vadd.f32 %v2426_v49, %v2425_v32  ;;  %v2440_v32 = vsel %vm1881_vm2, %v2295_v31, 0.0 }
 0x1b5   : > { %v2084_v24 = vadd.f32 %v2083_v36, %v2082_v27  ;;  %v2429_v56 = vadd.f32 %v2428_v50, %v2427_v41  ;;  %v2095_v36 = vsel %vm1881_vm2, %v4312_v42, 0.0  ;;  %v2101_v50 = vsel %vm1881_vm2, %v4330_v4, 0.0 }
 0x1b6   : > { %v2319_v42 = vmul.f32 %v4336_v26, %v4336_v26 }
 0x1b7   : > { %v2086_v44 = vadd.f32 %v2085_v20, %v2084_v24  ;;  %v2431_v29 = vadd.f32 %v2430_v28, %v2429_v56  ;;  %v2438_v20 = vsel %vm1881_vm2, %v2294_v2, 0.0  ;;  %v2099_v24 = vsel %vm1881_vm2, %v4336_v26, 0.0 }
 0x1b8   : > { %v2444_v28 = vsel %vm1881_vm2, %v2297_v47, 0.0  ;;  %v2321_v26 = vmul.f32 %v4360_v14, %v4360_v14 }
 0x1b9   : > { %v2088_v25 = vadd.f32 %v2087_v53, %v2086_v44  ;;  %v2433_v3 = vadd.f32 %v2432_v40, %v2431_v29  ;;  %v2442_v44 = vsel %vm1881_vm2, %v2296_v23, 0.0  ;;  %v2107_v29 = vsel %vm1881_vm2, %v4384_v7, 0.0 }
 0x1ba   : > { %v2113_v23 = vsel %vm1881_vm2, %v4402_v18, 0.0 }
 0x1bb   : > { %v2090_v33 = vadd.f32 %v2089_v21, %v2088_v25  ;;  %v2435_v27 = vadd.f32 %v2434_v45, %v2433_v3  ;;  %v2450_v3 = vsel %vm1881_vm2, %v2300_v55, 0.0 }
 0x1bd   : > { %v2092_v11 = vadd.f32 %v2091_v57, %v2090_v33  ;;  %v2437_v49 = vadd.f32 %v2436_v0, %v2435_v27  ;;  %v2105_v57 = vsel %vm1881_vm2, %v4354_v1, 0.0  ;;  %v2111_v0 = vsel %vm1881_vm2, %v4408_v61, 0.0 }
 0x1bf   : > { %v2094_v48 = vadd.f32 %v2093_v52, %v2092_v11  ;;  %v2439_v10 = vadd.f32 %v2438_v20, %v2437_v49  ;;  %v2448_v52 = vsel %vm1881_vm2, %v2299_v63, 0.0  ;;  %v2109_v11 = vsel %vm1881_vm2, %v4378_v34, 0.0 }
 0x1c0   : > { %v2454_v20 = vsel %vm1881_vm2, %v2302_v9, 0.0 }
 0x1c1   : > { %v2096_v60 = vadd.f32 %v2095_v36, %v2094_v48  ;;  %v2441_v21 = vadd.f32 %v2440_v32, %v2439_v10  ;;  %v2452_v48 = vsel %vm1881_vm2, %v2301_v16, 0.0  ;;  %v2456_v32 = vsel %vm1881_vm2, %v2303_v46, 0.0 }
 0x1c3   : > { %v2098_v53 = vadd.f32 %v2097_v37, %v2096_v60  ;;  %v2443_v56 = vadd.f32 %v2442_v44, %v2441_v21  ;;  %v2458_v44 = vsel %vm1881_vm2, %v2304_v30, 0.0 }
 0x1c5   : > { %v2100_v41 = vadd.f32 %v2099_v24, %v2098_v53  ;;  %v2445_v33 = vadd.f32 %v2444_v28, %v2443_v56  ;;  %v5488_v24 = vld [vmem:[#allocation54_spill] sm:$0xff]  ;;  %v2460_v28 = vsel %vm1881_vm2, %v2305_v15, 0.0 }
 0x1c6   : > { %v2115_v47 = vsel %vm1881_vm2, %v5488_v24, 0.0 }
 0x1c7   : > { %v2102_v25 = vadd.f32 %v2101_v50, %v2100_v41  ;;  %v2447_v45 = vadd.f32 %v2446_v17, %v2445_v33  ;;  %v5489_v50 = vld [vmem:[#allocation52_spill] sm:$0xff]  ;;  %v2462_v17 = vsel %vm1881_vm2, %v2306_v62, 0.0 }
 0x1c8   : > { %v2117_v39 = vsel %vm1881_vm2, %v5489_v50, 0.0 }
 0x1c9   : > { %v2104_v40 = vadd.f32 %v2103_v6, %v2102_v25  ;;  %v2449_v31 = vadd.f32 %v2448_v52, %v2447_v45  ;;  %v5490_v6 = vld [vmem:[#allocation58_spill] sm:$0xff]  ;;  %v2464_v52 = vsel %vm1881_vm2, %v2307_v13, 0.0 }
 0x1ca   : > { %v2119_v63 = vsel %vm1881_vm2, %v5490_v6, 0.0 }
 0x1cb   : > { %v2106_v2 = vadd.f32 %v2105_v57, %v2104_v40  ;;  %v2451_v37 = vadd.f32 %v2450_v3, %v2449_v31  ;;  %v5491_v57 = vld [vmem:[#allocation56_spill] sm:$0xff]  ;;  %v2466_v3 = vsel %vm1881_vm2, %v2308_v43, 0.0 }
 0x1cc   : > { %v2121_v55 = vsel %vm1881_vm2, %v5491_v57, 0.0 }
 0x1cd   : > { %v2108_v36 = vadd.f32 %v2107_v29, %v2106_v2  ;;  %v2453_v49 = vadd.f32 %v2452_v48, %v2451_v37  ;;  %v5492_v29 = vld [vmem:[#allocation62_spill] sm:$0xff]  ;;  %v2468_v48 = vsel %vm1881_vm2, %v2309_v54, 0.0 }
 0x1ce   : > { %v2123_v16 = vsel %vm1881_vm2, %v5492_v29, 0.0 }
 0x1cf   : > { %v2110_v27 = vadd.f32 %v2109_v11, %v2108_v36  ;;  %v2455_v10 = vadd.f32 %v2454_v20, %v2453_v49  ;;  %v5493_v11 = vld [vmem:[#allocation60_spill] sm:$0xff]  ;;  %v2470_v20 = vsel %vm1881_vm2, %v2310_v59, 0.0 }
 0x1d0   : > { %v2125_v9 = vsel %vm1881_vm2, %v5493_v11, 0.0 }
 0x1d1   : > { %v2112_v60 = vadd.f32 %v2111_v0, %v2110_v27  ;;  %v2457_v21 = vadd.f32 %v2456_v32, %v2455_v10  ;;  %v5494_v0 = vld [vmem:[#allocation66_spill] sm:$0xff]  ;;  %v2472_v32 = vsel %vm1881_vm2, %v2311_v8, 0.0 }
 0x1d2   : > { %v2127_v46 = vsel %vm1881_vm2, %v5494_v0, 0.0 }
 0x1d3   : > { %v2114_v53 = vadd.f32 %v2113_v23, %v2112_v60  ;;  %v2459_v56 = vadd.f32 %v2458_v44, %v2457_v21  ;;  %v5495_v23 = vld [vmem:[#allocation64_spill] sm:$0xff]  ;;  %v2474_v44 = vsel %vm1881_vm2, %v2312_v38, 0.0 }
 0x1d4   : > { %v2129_v30 = vsel %vm1881_vm2, %v5495_v23, 0.0 }
 0x1d5   : > { %v2116_v41 = vadd.f32 %v2115_v47, %v2114_v53  ;;  %v2461_v33 = vadd.f32 %v2460_v28, %v2459_v56  ;;  %v5496_v47 = vld [vmem:[#allocation70_spill] sm:$0xff]  ;;  %v2476_v28 = vsel %vm1881_vm2, %v2313_v35, 0.0 }
 0x1d6   : > { %v2131_v15 = vsel %vm1881_vm2, %v5496_v47, 0.0 }
 0x1d7   : > { %v2118_v25 = vadd.f32 %v2117_v39, %v2116_v41  ;;  %v2463_v45 = vadd.f32 %v2462_v17, %v2461_v33  ;;  %v5497_v39 = vld [vmem:[#allocation68_spill] sm:$0xff]  ;;  %v2478_v17 = vsel %vm1881_vm2, %v2314_v22, 0.0 }
 0x1d8   : > { %v2133_v62 = vsel %vm1881_vm2, %v5497_v39, 0.0 }
 0x1d9   : > { %v2120_v40 = vadd.f32 %v2119_v63, %v2118_v25  ;;  %v2465_v31 = vadd.f32 %v2464_v52, %v2463_v45  ;;  %v5498_v63 = vld [vmem:[#allocation74_spill] sm:$0xff]  ;;  %v2480_v52 = vsel %vm1881_vm2, %v2315_v12, 0.0 }
 0x1da   : > { %v2135_v13 = vsel %vm1881_vm2, %v5498_v63, 0.0 }
 0x1db   : > { %v2122_v2 = vadd.f32 %v2121_v55, %v2120_v40  ;;  %v2467_v37 = vadd.f32 %v2466_v3, %v2465_v31  ;;  %v5499_v55 = vld [vmem:[#allocation72_spill] sm:$0xff]  ;;  %v2482_v3 = vsel %vm1881_vm2, %v2316_v5, 0.0 }
 0x1dc   : > { %v2137_v43 = vsel %vm1881_vm2, %v5499_v55, 0.0 }
 0x1dd   : > { %v2124_v36 = vadd.f32 %v2123_v16, %v2122_v2  ;;  %v2469_v49 = vadd.f32 %v2468_v48, %v2467_v37  ;;  %v5500_v16 = vld [vmem:[#allocation78_spill] sm:$0xff]  ;;  %v2484_v48 = vsel %vm1881_vm2, %v2317_v58, 0.0 }
 0x1de   : > { %v2139_v54 = vsel %vm1881_vm2, %v5500_v16, 0.0 }
 0x1df   : > { %v2126_v27 = vadd.f32 %v2125_v9, %v2124_v36  ;;  %v2471_v10 = vadd.f32 %v2470_v20, %v2469_v49  ;;  %v5501_v9 = vld [vmem:[#allocation76_spill] sm:$0xff]  ;;  %v2486_v20 = vsel %vm1881_vm2, %v2318_v51, 0.0 }
 0x1e0   : > { %v2141_v59 = vsel %vm1881_vm2, %v5501_v9, 0.0 }
 0x1e1   : > { %v2128_v60 = vadd.f32 %v2127_v46, %v2126_v27  ;;  %v2473_v21 = vadd.f32 %v2472_v32, %v2471_v10  ;;  %v5502_v46 = vld [vmem:[#allocation3_spill] sm:$0xff]  ;;  %v2488_v32 = vsel %vm1881_vm2, %v2319_v42, 0.0 }
 0x1e2   : > { %v2143_v8 = vsel %vm1881_vm2, %v5502_v46, 0.0 }
 0x1e3   : > { %v2130_v53 = vadd.f32 %v2129_v30, %v2128_v60  ;;  %v2475_v56 = vadd.f32 %v2474_v44, %v2473_v21  ;;  %v5503_v30 = vld [vmem:[#allocation2_spill] sm:$0xff]  ;;  %v2490_v44 = vsel %vm1881_vm2, %v2320_v19, 0.0 }
 0x1e4   : > { %v2145_v38 = vsel %vm1881_vm2, %v5503_v30, 0.0 }
 0x1e5   : > { %v2132_v41 = vadd.f32 %v2131_v15, %v2130_v53  ;;  %v2477_v33 = vadd.f32 %v2476_v28, %v2475_v56  ;;  %v5504_v15 = vld [vmem:[#allocation5_spill] sm:$0xff]  ;;  %v2492_v28 = vsel %vm1881_vm2, %v2321_v26, 0.0 }
 0x1e6   : > { %v2147_v35 = vsel %vm1881_vm2, %v5504_v15, 0.0 }
 0x1e7   : > { %v2134_v25 = vadd.f32 %v2133_v62, %v2132_v41  ;;  %v2479_v45 = vadd.f32 %v2478_v17, %v2477_v33  ;;  %v5505_v62 = vld [vmem:[#allocation4_spill] sm:$0xff]  ;;  %v2322_v41 = vmul.f32 %v4354_v1, %v4354_v1 }
 0x1e8   : > { %v2149_v22 = vsel %vm1881_vm2, %v5505_v62, 0.0 }
 0x1e9   : > { %v2136_v40 = vadd.f32 %v2135_v13, %v2134_v25  ;;  %v2481_v31 = vadd.f32 %v2480_v52, %v2479_v45  ;;  %v5506_v13 = vld [vmem:[#allocation7_spill] sm:$0xff]  ;;  %v2323_v25 = vmul.f32 %v4384_v7, %v4384_v7  ;;  %v2494_v1 = vsel %vm1881_vm2, %v2322_v41, 0.0  ;;  %v5509_v45 = vld [vmem:[#allocation8_spill] sm:$0xff] }
 0x1ea   : > { %v2151_v12 = vsel %vm1881_vm2, %v5506_v13, 0.0 }
 0x1eb   : > { %v2138_v2 = vadd.f32 %v2137_v43, %v2136_v40  ;;  %v2483_v37 = vadd.f32 %v2482_v3, %v2481_v31  ;;  %v5507_v43 = vld [vmem:[#allocation6_spill] sm:$0xff]  ;;  %v2324_v40 = vmul.f32 %v4378_v34, %v4378_v34  ;;  %v2496_v7 = vsel %vm1881_vm2, %v2323_v25, 0.0  ;;  %v5510_v31 = vld [vmem:[#allocation11_spill] sm:$0xff] }
 0x1ec   : > { %v2153_v5 = vsel %vm1881_vm2, %v5507_v43, 0.0  ;;  %v2326_v34 = vmul.f32 %v4402_v18, %v4402_v18  ;;  %v2328_v18 = vmul.f32 %v5489_v50, %v5489_v50  ;;  %v2330_v50 = vmul.f32 %v5491_v57, %v5491_v57 }
 0x1ed   : > { %v2140_v36 = vadd.f32 %v2139_v54, %v2138_v2  ;;  %v2485_v49 = vadd.f32 %v2484_v48, %v2483_v37  ;;  %v5508_v54 = vld [vmem:[#allocation9_spill] sm:$0xff]  ;;  %v2325_v2 = vmul.f32 %v4408_v61, %v4408_v61  ;;  %v2327_v61 = vmul.f32 %v5488_v24, %v5488_v24  ;;  %v5511_v37 = vld [vmem:[#allocation10_spill] sm:$0xff] }
 0x1ee   : > { %v2155_v58 = vsel %vm1881_vm2, %v5508_v54, 0.0  ;;  %v2329_v24 = vmul.f32 %v5490_v6, %v5490_v6  ;;  %v2506_v41 = vsel %vm1881_vm2, %v2328_v18, 0.0  ;;  %v2331_v6 = vmul.f32 %v5492_v29, %v5492_v29 }
 0x1ef   : > { %v2142_v27 = vadd.f32 %v2141_v59, %v2140_v36  ;;  %v2487_v10 = vadd.f32 %v2486_v20, %v2485_v49  ;;  %v2157_v59 = vsel %vm1881_vm2, %v5509_v45, 0.0  ;;  %v2498_v36 = vsel %vm1881_vm2, %v2324_v40, 0.0  ;;  %v5512_v49 = vld [vmem:[#allocation13_spill] sm:$0xff] }
 0x1f0   : > { %v2508_v25 = vsel %vm1881_vm2, %v2329_v24, 0.0  ;;  %v2332_v57 = vmul.f32 %v5493_v11, %v5493_v11  ;;  %v2333_v29 = vmul.f32 %v5494_v0, %v5494_v0  ;;  %v2334_v11 = vmul.f32 %v5495_v23, %v5495_v23 }
 0x1f1   : > { %v2144_v60 = vadd.f32 %v2143_v8, %v2142_v27  ;;  %v2489_v21 = vadd.f32 %v2488_v32, %v2487_v10  ;;  %v2159_v8 = vsel %vm1881_vm2, %v5510_v31, 0.0  ;;  %v2500_v27 = vsel %vm1881_vm2, %v2325_v2, 0.0  ;;  %v5513_v10 = vld [vmem:[#allocation12_spill] sm:$0xff] }
 0x1f2   : > { %v2335_v0 = vmul.f32 %v5496_v47, %v5496_v47  ;;  %v2336_v23 = vmul.f32 %v5497_v39, %v5497_v39  ;;  %v2337_v47 = vmul.f32 %v5498_v63, %v5498_v63  ;;  %v2338_v39 = vmul.f32 %v5499_v55, %v5499_v55 }
 0x1f3   : > { %v2146_v53 = vadd.f32 %v2145_v38, %v2144_v60  ;;  %v2491_v56 = vadd.f32 %v2490_v44, %v2489_v21  ;;  %v2161_v38 = vsel %vm1881_vm2, %v5511_v37, 0.0  ;;  %v2502_v60 = vsel %vm1881_vm2, %v2326_v34, 0.0  ;;  %v5514_v21 = vld [vmem:[#allocation15_spill] sm:$0xff] }
 0x1f4   : > { %v2339_v63 = vmul.f32 %v5500_v16, %v5500_v16  ;;  %v2340_v55 = vmul.f32 %v5501_v9, %v5501_v9  ;;  %v2341_v16 = vmul.f32 %v5502_v46, %v5502_v46  ;;  %v2342_v9 = vmul.f32 %v5503_v30, %v5503_v30 }
 0x1f5   : > { %v2148_v4 = vadd.f32 %v2147_v35, %v2146_v53  ;;  %v2493_v33 = vadd.f32 %v2492_v28, %v2491_v56  ;;  %v2163_v35 = vsel %vm1881_vm2, %v5512_v49, 0.0  ;;  %v2504_v53 = vsel %vm1881_vm2, %v2327_v61, 0.0  ;;  %v5515_v56 = vld [vmem:[#allocation14_spill] sm:$0xff] }
 0x1f6   : > { %v2343_v46 = vmul.f32 %v5504_v15, %v5504_v15  ;;  %v2344_v30 = vmul.f32 %v5505_v62, %v5505_v62  ;;  %v2345_v15 = vmul.f32 %v5506_v13, %v5506_v13  ;;  %v2346_v62 = vmul.f32 %v5507_v43, %v5507_v43 }
 0x1f7   : > { %v2150_v14 = vadd.f32 %v2149_v22, %v2148_v4  ;;  %v2495_v51 = vadd.f32 %v2494_v1, %v2493_v33  ;;  %v2165_v22 = vsel %vm1881_vm2, %v5513_v10, 0.0  ;;  %v2510_v33 = vsel %vm1881_vm2, %v2330_v50, 0.0  ;;  %v5516_v1 = vld [vmem:[#allocation17_spill] sm:$0xff] }
 0x1f8   : > { %v2347_v13 = vmul.f32 %v5508_v54, %v5508_v54  ;;  %v2348_v43 = vmul.f32 %v5509_v45, %v5509_v45  ;;  %v2349_v54 = vmul.f32 %v5510_v31, %v5510_v31  ;;  %v2350_v45 = vmul.f32 %v5511_v37, %v5511_v37 }
 0x1f9   : > { %v2152_v17 = vadd.f32 %v2151_v12, %v2150_v14  ;;  %v2497_v42 = vadd.f32 %v2496_v7, %v2495_v51  ;;  %v2167_v12 = vsel %vm1881_vm2, %v5514_v21, 0.0  ;;  %v2512_v7 = vsel %vm1881_vm2, %v2331_v6, 0.0 }
 0x1fa   : > { %v2351_v31 = vmul.f32 %v5512_v49, %v5512_v49  ;;  %v2352_v37 = vmul.f32 %v5513_v10, %v5513_v10  ;;  %v2353_v49 = vmul.f32 %v5514_v21, %v5514_v21  ;;  %v2354_v10 = vmul.f32 %v5515_v56, %v5515_v56 }
 0x1fb   : > { %v2154_v52 = vadd.f32 %v2153_v5, %v2152_v17  ;;  %v2499_v19 = vadd.f32 %v2498_v36, %v2497_v42  ;;  %v2169_v5 = vsel %vm1881_vm2, %v5515_v56, 0.0  ;;  %v2514_v36 = vsel %vm1881_vm2, %v2332_v57, 0.0 }
 0x1fc   : > { %v2355_v21 = vmul.f32 %v5516_v1, %v5516_v1 }
 0x1fd   : > { %v2156_v3 = vadd.f32 %v2155_v58, %v2154_v52  ;;  %v2501_v26 = vadd.f32 %v2500_v27, %v2499_v19  ;;  %v2171_v58 = vsel %vm1881_vm2, %v5516_v1, 0.0  ;;  %v2516_v27 = vsel %vm1881_vm2, %v2333_v29, 0.0 }
 0x1ff   : > { %v2158_v48 = vadd.f32 %v2157_v59, %v2156_v3  ;;  %v2503_v44 = vadd.f32 %v2502_v60, %v2501_v26  ;;  %v5517_v59 = vld [vmem:[#allocation16_spill] sm:$0xff]  ;;  %v2518_v60 = vsel %vm1881_vm2, %v2334_v11, 0.0 }
 0x200   : > { %v2173_v51 = vsel %vm1881_vm2, %v5517_v59, 0.0  ;;  %v2356_v56 = vmul.f32 %v5517_v59, %v5517_v59 }
 0x201   : > { %v2160_v20 = vadd.f32 %v2159_v8, %v2158_v48  ;;  %v2505_v28 = vadd.f32 %v2504_v53, %v2503_v44  ;;  %v5518_v8 = vld [vmem:[#allocation19_spill] sm:$0xff]  ;;  %v2520_v53 = vsel %vm1881_vm2, %v2335_v0, 0.0 }
 0x202   : > { %v2175_v42 = vsel %vm1881_vm2, %v5518_v8, 0.0  ;;  %v2357_v1 = vmul.f32 %v5518_v8, %v5518_v8 }
 0x203   : > { %v2162_v32 = vadd.f32 %v2161_v38, %v2160_v20  ;;  %v2507_v17 = vadd.f32 %v2506_v41, %v2505_v28  ;;  %v5519_v38 = vld [vmem:[#allocation18_spill] sm:$0xff]  ;;  %v2522_v41 = vsel %vm1881_vm2, %v2336_v23, 0.0 }
 0x204   : > { %v2177_v19 = vsel %vm1881_vm2, %v5519_v38, 0.0  ;;  %v2358_v59 = vmul.f32 %v5519_v38, %v5519_v38 }
 0x205   : > { %v2164_v4 = vadd.f32 %v2163_v35, %v2162_v32  ;;  %v2509_v52 = vadd.f32 %v2508_v25, %v2507_v17  ;;  %v5520_v35 = vld [vmem:[#allocation21_spill] sm:$0xff]  ;;  %v2524_v25 = vsel %vm1881_vm2, %v2337_v47, 0.0 }
 0x206   : > { %v2179_v26 = vsel %vm1881_vm2, %v5520_v35, 0.0  ;;  %v2359_v8 = vmul.f32 %v5520_v35, %v5520_v35 }
 0x207   : > { %v2166_v14 = vadd.f32 %v2165_v22, %v2164_v4  ;;  %v2511_v3 = vadd.f32 %v2510_v33, %v2509_v52  ;;  %v5521_v22 = vld [vmem:[#allocation20_spill] sm:$0xff]  ;;  %v2526_v33 = vsel %vm1881_vm2, %v2338_v39, 0.0 }
 0x208   : > { %v2181_v44 = vsel %vm1881_vm2, %v5521_v22, 0.0  ;;  %v2360_v38 = vmul.f32 %v5521_v22, %v5521_v22 }
 0x209   : > { %v2168_v40 = vadd.f32 %v2167_v12, %v2166_v14  ;;  %v2513_v48 = vadd.f32 %v2512_v7, %v2511_v3  ;;  %v5522_v12 = vld [vmem:[#allocation23_spill] sm:$0xff]  ;;  %v2528_v7 = vsel %vm1881_vm2, %v2339_v63, 0.0 }
 0x20a   : > { %v2183_v28 = vsel %vm1881_vm2, %v5522_v12, 0.0  ;;  %v2361_v35 = vmul.f32 %v5522_v12, %v5522_v12 }
 0x20b   : > { %v2170_v2 = vadd.f32 %v2169_v5, %v2168_v40  ;;  %v2515_v20 = vadd.f32 %v2514_v36, %v2513_v48  ;;  %v5523_v5 = vld [vmem:[#allocation22_spill] sm:$0xff]  ;;  %v2530_v36 = vsel %vm1881_vm2, %v2340_v55, 0.0 }
 0x20c   : > { %v2185_v17 = vsel %vm1881_vm2, %v5523_v5, 0.0  ;;  %v2362_v22 = vmul.f32 %v5523_v5, %v5523_v5 }
 0x20d   : > { %v2172_v34 = vadd.f32 %v2171_v58, %v2170_v2  ;;  %v2517_v32 = vadd.f32 %v2516_v27, %v2515_v20  ;;  %v5524_v58 = vld [vmem:[#allocation25_spill] sm:$0xff]  ;;  %v2532_v27 = vsel %vm1881_vm2, %v2341_v16, 0.0 }
 0x20e   : > { %v2187_v52 = vsel %vm1881_vm2, %v5524_v58, 0.0  ;;  %v2363_v12 = vmul.f32 %v5524_v58, %v5524_v58 }
 0x20f   : > { %v2174_v61 = vadd.f32 %v2173_v51, %v2172_v34  ;;  %v2519_v4 = vadd.f32 %v2518_v60, %v2517_v32  ;;  %v5525_v51 = vld [vmem:[#allocation24_spill] sm:$0xff]  ;;  %v2534_v60 = vsel %vm1881_vm2, %v2342_v9, 0.0 }
 0x210   : > { %v2189_v3 = vsel %vm1881_vm2, %v5525_v51, 0.0  ;;  %v2364_v5 = vmul.f32 %v5525_v51, %v5525_v51 }
 0x211   : > { %v2176_v18 = vadd.f32 %v2175_v42, %v2174_v61  ;;  %v2521_v14 = vadd.f32 %v2520_v53, %v2519_v4  ;;  %v5526_v42 = vld [vmem:[#allocation27_spill] sm:$0xff]  ;;  %v2536_v53 = vsel %vm1881_vm2, %v2343_v46, 0.0 }
 0x212   : > { %v2191_v48 = vsel %vm1881_vm2, %v5526_v42, 0.0  ;;  %v2365_v58 = vmul.f32 %v5526_v42, %v5526_v42 }
 0x213   : > { %v2178_v24 = vadd.f32 %v2177_v19, %v2176_v18  ;;  %v2523_v40 = vadd.f32 %v2522_v41, %v2521_v14  ;;  %v5527_v19 = vld [vmem:[#allocation26_spill] sm:$0xff]  ;;  %v2538_v41 = vsel %vm1881_vm2, %v2344_v30, 0.0 }
 0x214   : > { %v2193_v20 = vsel %vm1881_vm2, %v5527_v19, 0.0 }
 0x215   : > { %v2180_v50 = vadd.f32 %v2179_v26, %v2178_v24  ;;  %v2525_v2 = vadd.f32 %v2524_v25, %v2523_v40  ;;  %v5528_v26 = vld [vmem:[#allocation29_spill] sm:$0xff]  ;;  %v2540_v25 = vsel %vm1881_vm2, %v2345_v15, 0.0 }
 0x216   : > { %v2195_v32 = vsel %vm1881_vm2, %v5528_v26, 0.0 }
 0x217   : > { %v2182_v6 = vadd.f32 %v2181_v44, %v2180_v50  ;;  %v2527_v34 = vadd.f32 %v2526_v33, %v2525_v2  ;;  %v5529_v44 = vld [vmem:[#allocation28_spill] sm:$0xff]  ;;  %v2542_v33 = vsel %vm1881_vm2, %v2346_v62, 0.0 }
 0x218   : > { %v2197_v4 = vsel %vm1881_vm2, %v5529_v44, 0.0  ;;  %v2368_v42 = vmul.f32 %v5529_v44, %v5529_v44 }
 0x219   : > { %v2184_v57 = vadd.f32 %v2183_v28, %v2182_v6  ;;  %v2529_v61 = vadd.f32 %v2528_v7, %v2527_v34  ;;  %v5530_v28 = vld [vmem:[#allocation31_spill] sm:$0xff]  ;;  %v2544_v7 = vsel %vm1881_vm2, %v2347_v13, 0.0 }
 0x21a   : > { %v2199_v14 = vsel %vm1881_vm2, %v5530_v28, 0.0 }
 0x21b   : > { %v2186_v29 = vadd.f32 %v2185_v17, %v2184_v57  ;;  %v2531_v18 = vadd.f32 %v2530_v36, %v2529_v61  ;;  %v5531_v17 = vld [vmem:[#allocation30_spill] sm:$0xff]  ;;  %v2546_v36 = vsel %vm1881_vm2, %v2348_v43, 0.0 }
 0x21c   : > { %v2201_v40 = vsel %vm1881_vm2, %v5531_v17, 0.0 }
 0x21d   : > { %v2188_v11 = vadd.f32 %v2187_v52, %v2186_v29  ;;  %v2533_v24 = vadd.f32 %v2532_v27, %v2531_v18  ;;  %v5532_v52 = vld [vmem:[#allocation33_spill] sm:$0xff]  ;;  %v2548_v27 = vsel %vm1881_vm2, %v2349_v54, 0.0 }
 0x21e   : > { %v2203_v2 = vsel %vm1881_vm2, %v5532_v52, 0.0 }
 0x21f   : > { %v2190_v0 = vadd.f32 %v2189_v3, %v2188_v11  ;;  %v2535_v50 = vadd.f32 %v2534_v60, %v2533_v24  ;;  %v5533_v3 = vld [vmem:[#allocation32_spill] sm:$0xff]  ;;  %v2550_v60 = vsel %vm1881_vm2, %v2350_v45, 0.0 }
 0x220   : > { %v2205_v34 = vsel %vm1881_vm2, %v5533_v3, 0.0 }
 0x221   : > { %v2192_v23 = vadd.f32 %v2191_v48, %v2190_v0  ;;  %v2537_v6 = vadd.f32 %v2536_v53, %v2535_v50  ;;  %v5534_v48 = vld [vmem:[#allocation35_spill] sm:$0xff]  ;;  %v2552_v53 = vsel %vm1881_vm2, %v2351_v31, 0.0 }
 0x222   : > { %v2207_v61 = vsel %vm1881_vm2, %v5534_v48, 0.0 }
 0x223   : > { %v2194_v47 = vadd.f32 %v2193_v20, %v2192_v23  ;;  %v2539_v57 = vadd.f32 %v2538_v41, %v2537_v6  ;;  %v5535_v20 = vld [vmem:[#allocation34_spill] sm:$0xff]  ;;  %v2554_v41 = vsel %vm1881_vm2, %v2352_v37, 0.0 }
 0x224   : > { %v2209_v18 = vsel %vm1881_vm2, %v5535_v20, 0.0 }
 0x225   : > { %v2196_v39 = vadd.f32 %v2195_v32, %v2194_v47  ;;  %v2541_v29 = vadd.f32 %v2540_v25, %v2539_v57  ;;  %v5536_v32 = vld [vmem:[#allocation37_spill] sm:$0xff]  ;;  %v2556_v25 = vsel %vm1881_vm2, %v2353_v49, 0.0 }
 0x226   : > { %v2211_v24 = vsel %vm1881_vm2, %v5536_v32, 0.0 }
 0x227   : > { %v2198_v63 = vadd.f32 %v2197_v4, %v2196_v39  ;;  %v2543_v11 = vadd.f32 %v2542_v33, %v2541_v29  ;;  %v5537_v4 = vld [vmem:[#allocation36_spill] sm:$0xff]  ;;  %v2558_v33 = vsel %vm1881_vm2, %v2354_v10, 0.0 }
 0x228   : > { %v2213_v50 = vsel %vm1881_vm2, %v5537_v4, 0.0 }
 0x229   : > { %v2200_v55 = vadd.f32 %v2199_v14, %v2198_v63  ;;  %v2545_v0 = vadd.f32 %v2544_v7, %v2543_v11  ;;  %v5538_v14 = vld [vmem:[#allocation39_spill] sm:$0xff]  ;;  %v2560_v7 = vsel %vm1881_vm2, %v2355_v21, 0.0 }
 0x22a   : > { %v2215_v6 = vsel %vm1881_vm2, %v5538_v14, 0.0 }
 0x22b   : > { %v2202_v16 = vadd.f32 %v2201_v40, %v2200_v55  ;;  %v2547_v23 = vadd.f32 %v2546_v36, %v2545_v0  ;;  %v5539_v40 = vld [vmem:[#allocation38_spill] sm:$0xff]  ;;  %v2562_v36 = vsel %vm1881_vm2, %v2356_v56, 0.0 }
 0x22c   : > { %v2217_v57 = vsel %vm1881_vm2, %v5539_v40, 0.0 }
 0x22d   : > { %v2204_v9 = vadd.f32 %v2203_v2, %v2202_v16  ;;  %v2549_v47 = vadd.f32 %v2548_v27, %v2547_v23  ;;  %v5540_v2 = vld [vmem:[#allocation41_spill] sm:$0xff]  ;;  %v2564_v27 = vsel %vm1881_vm2, %v2357_v1, 0.0 }
 0x22e   : > { %v2219_v29 = vsel %vm1881_vm2, %v5540_v2, 0.0 }
 0x22f   : > { %v2206_v46 = vadd.f32 %v2205_v34, %v2204_v9  ;;  %v2551_v39 = vadd.f32 %v2550_v60, %v2549_v47  ;;  %v5541_v34 = vld [vmem:[#allocation40_spill] sm:$0xff]  ;;  %v2566_v60 = vsel %vm1881_vm2, %v2358_v59, 0.0 }
 0x230   : > { %v2221_v11 = vsel %vm1881_vm2, %v5541_v34, 0.0 }
 0x231   : > { %v2208_v30 = vadd.f32 %v2207_v61, %v2206_v46  ;;  %v2553_v63 = vadd.f32 %v2552_v53, %v2551_v39  ;;  %v5542_v61 = vld [vmem:[#allocation43_spill] sm:$0xff]  ;;  %v2568_v53 = vsel %vm1881_vm2, %v2359_v8, 0.0 }
 0x232   : > { %v2223_v0 = vsel %vm1881_vm2, %v5542_v61, 0.0 }
 0x233   : > { %v2210_v15 = vadd.f32 %v2209_v18, %v2208_v30  ;;  %v2555_v55 = vadd.f32 %v2554_v41, %v2553_v63  ;;  %v5543_v18 = vld [vmem:[#allocation42_spill] sm:$0xff]  ;;  %v2570_v41 = vsel %vm1881_vm2, %v2360_v38, 0.0  ;;  %v2369_v38 = vmul.f32 %v5530_v28, %v5530_v28 }
 0x234   : > { %v2225_v23 = vsel %vm1881_vm2, %v5543_v18, 0.0  ;;  %v2372_v28 = vmul.f32 %v5533_v3, %v5533_v3 }
 0x235   : > { %v2212_v62 = vadd.f32 %v2211_v24, %v2210_v15  ;;  %v2557_v16 = vadd.f32 %v2556_v25, %v2555_v55  ;;  %v5544_v24 = vld [vmem:[#allocation45_spill] sm:$0xff]  ;;  %v2572_v25 = vsel %vm1881_vm2, %v2361_v35, 0.0  ;;  %v5551_v35 = vld [vmem:[#allocation50_spill] sm:$0xff] }
 0x236   : > { %v2227_v47 = vsel %vm1881_vm2, %v5544_v24, 0.0 }
 0x237   : > { %v2214_v13 = vadd.f32 %v2213_v50, %v2212_v62  ;;  %v2559_v9 = vadd.f32 %v2558_v33, %v2557_v16  ;;  %v5545_v50 = vld [vmem:[#allocation44_spill] sm:$0xff]  ;;  %v2574_v33 = vsel %vm1881_vm2, %v2362_v22, 0.0 }
 0x238   : > { %v2229_v39 = vsel %vm1881_vm2, %v5545_v50, 0.0 }
 0x239   : > { %v2216_v43 = vadd.f32 %v2215_v6, %v2214_v13  ;;  %v2561_v46 = vadd.f32 %v2560_v7, %v2559_v9  ;;  %v5546_v6 = vld [vmem:[#allocation47_spill] sm:$0xff]  ;;  %v2576_v7 = vsel %vm1881_vm2, %v2363_v12, 0.0  ;;  %v2366_v9 = vmul.f32 %v5527_v19, %v5527_v19 }
 0x23a   : > { %v2231_v63 = vsel %vm1881_vm2, %v5546_v6, 0.0 }
 0x23b   : > { %v2218_v54 = vadd.f32 %v2217_v57, %v2216_v43  ;;  %v2563_v30 = vadd.f32 %v2562_v36, %v2561_v46  ;;  %v5547_v57 = vld [vmem:[#allocation46_spill] sm:$0xff]  ;;  %v5549_v36 = vld [vmem:[#allocation48_spill] sm:$0xff]  ;;  %v2367_v46 = vmul.f32 %v5528_v26, %v5528_v26  ;;  %v2370_v26 = vmul.f32 %v5531_v17, %v5531_v17 }
 0x23c   : > { %v2233_v55 = vsel %vm1881_vm2, %v5547_v57, 0.0 }
 0x23d   : > { %v2220_v45 = vadd.f32 %v2219_v29, %v2218_v54  ;;  %v2565_v15 = vadd.f32 %v2564_v27, %v2563_v30  ;;  %v5548_v54 = vld [vmem:[#allocation49_spill] sm:$0xff]  ;;  %v2582_v27 = vsel %vm1881_vm2, %v2366_v9, 0.0  ;;  %v5550_v30 = vld [vmem:[#allocation51_spill] sm:$0xff]  ;;  %v2590_v22 = vsel %vm1881_vm2, %v2370_v26, 0.0 }
 0x23e   : > { %v2235_v1 = vsel %vm1881_vm2, %v5548_v54, 0.0  ;;  %v2377_v9 = vmul.f32 %v5538_v14, %v5538_v14  ;;  %v2380_v14 = vmul.f32 %v5541_v34, %v5541_v34 }
 0x23f   : > { %v2222_v31 = vadd.f32 %v2221_v11, %v2220_v45  ;;  %v2567_v62 = vadd.f32 %v2566_v60, %v2565_v15  ;;  %v2578_v45 = vsel %vm1881_vm2, %v2364_v5, 0.0  ;;  %v2584_v60 = vsel %vm1881_vm2, %v2367_v46, 0.0  ;;  %v5555_v46 = vld [vmem:[#allocation57_spill] sm:$0xff] }
 0x240   : > { %v2586_v15 = vsel %vm1881_vm2, %v2368_v42, 0.0  ;;  %v2604_v42 = vsel %vm1881_vm2, %v2377_v9, 0.0 }
 0x241   : > { %v2224_v37 = vadd.f32 %v2223_v0, %v2222_v31  ;;  %v2569_v13 = vadd.f32 %v2568_v53, %v2567_v62  ;;  %v2237_v0 = vsel %vm1881_vm2, %v5549_v36, 0.0  ;;  %v2580_v31 = vsel %vm1881_vm2, %v2365_v58, 0.0 }
 0x242   : > { %v2241_v53 = vsel %vm1881_vm2, %v5551_v35, 0.0  ;;  %v2588_v62 = vsel %vm1881_vm2, %v2369_v38, 0.0 }
 0x243   : > { %v2226_v49 = vadd.f32 %v2225_v23, %v2224_v37  ;;  %v2571_v43 = vadd.f32 %v2570_v41, %v2569_v13  ;;  %v2239_v37 = vsel %vm1881_vm2, %v5550_v30, 0.0 }
 0x245   : > { %v2228_v10 = vadd.f32 %v2227_v47, %v2226_v49  ;;  %v2573_v29 = vadd.f32 %v2572_v25, %v2571_v43 }
 0x247   : > { %v2230_v21 = vadd.f32 %v2229_v39, %v2228_v10  ;;  %v2575_v11 = vadd.f32 %v2574_v33, %v2573_v29  ;;  %v2371_v39 = vmul.f32 %v5532_v52, %v5532_v52  ;;  %v2374_v52 = vmul.f32 %v5535_v20, %v5535_v20 }
 0x248   : > { %v2375_v33 = vmul.f32 %v5536_v32, %v5536_v32  ;;  %v2378_v32 = vmul.f32 %v5539_v40, %v5539_v40 }
 0x249   : > { %v2232_v56 = vadd.f32 %v2231_v63, %v2230_v21  ;;  %v2577_v51 = vadd.f32 %v2576_v7, %v2575_v11  ;;  %v5552_v63 = vld [vmem:[#allocation55_spill] sm:$0xff]  ;;  %v2373_v21 = vmul.f32 %v5534_v48, %v5534_v48  ;;  %v2592_v12 = vsel %vm1881_vm2, %v2371_v39, 0.0 }
 0x24a   : > { %v2243_v13 = vsel %vm1881_vm2, %v5552_v63, 0.0  ;;  %v2376_v48 = vmul.f32 %v5537_v4, %v5537_v4  ;;  %v5554_v7 = vld [vmem:[#allocation59_spill] sm:$0xff]  ;;  %v2383_v39 = vmul.f32 %v5544_v24, %v5544_v24  ;;  %v2386_v24 = vmul.f32 %v5547_v57, %v5547_v57 }
 0x24b   : > { %v2234_v16 = vadd.f32 %v2233_v55, %v2232_v56  ;;  %v2579_v8 = vadd.f32 %v2578_v45, %v2577_v51  ;;  %v2594_v55 = vsel %vm1881_vm2, %v2372_v28, 0.0  ;;  %v5553_v56 = vld [vmem:[#allocation53_spill] sm:$0xff]  ;;  %v2596_v29 = vsel %vm1881_vm2, %v2373_v21, 0.0 }
 0x24c   : > { %v2245_v5 = vsel %vm1881_vm2, %v5553_v56, 0.0  ;;  %v2247_v11 = vsel %vm1881_vm2, %v5554_v7, 0.0  ;;  %v2600_v45 = vsel %vm1881_vm2, %v2375_v33, 0.0  ;;  %v2602_v51 = vsel %vm1881_vm2, %v2376_v48, 0.0  ;;  %v5560_v48 = vld [vmem:[#allocation71_spill] sm:$0xff] }
 0x24d   : > { %v2236_v59 = vadd.f32 %v2235_v1, %v2234_v16  ;;  %v2581_v19 = vadd.f32 %v2580_v31, %v2579_v8  ;;  %v2598_v1 = vsel %vm1881_vm2, %v2374_v52, 0.0  ;;  %v2249_v31 = vsel %vm1881_vm2, %v5555_v46, 0.0 }
 0x24e   : > { %v2379_v8 = vmul.f32 %v5540_v2, %v5540_v2  ;;  %v2382_v2 = vmul.f32 %v5543_v18, %v5543_v18  ;;  %v2616_v21 = vsel %vm1881_vm2, %v2383_v39, 0.0 }
 0x24f   : > { %v2238_v23 = vadd.f32 %v2237_v0, %v2236_v59  ;;  %v2583_v47 = vadd.f32 %v2582_v27, %v2581_v19 }
 0x250   : > { %v2614_v28 = vsel %vm1881_vm2, %v2382_v2, 0.0 }
 0x251   : > { %v2240_v49 = vadd.f32 %v2239_v37, %v2238_v23  ;;  %v2585_v44 = vadd.f32 %v2584_v60, %v2583_v47  ;;  %v2606_v23 = vsel %vm1881_vm2, %v2378_v32, 0.0  ;;  %v5556_v37 = vld [vmem:[#allocation63_spill] sm:$0xff]  ;;  %v2381_v60 = vmul.f32 %v5542_v61, %v5542_v61 }
 0x252   : > { %v2251_v38 = vsel %vm1881_vm2, %v5556_v37, 0.0  ;;  %v2608_v47 = vsel %vm1881_vm2, %v2379_v8, 0.0  ;;  %v2384_v61 = vmul.f32 %v5545_v50, %v5545_v50 }
 0x253   : > { %v2587_v10 = vadd.f32 %v2586_v15, %v2585_v44  ;;  %v2242_v41 = vadd.f32 %v2241_v53, %v2240_v49  ;;  %v2610_v15 = vsel %vm1881_vm2, %v2380_v14, 0.0  ;;  %v5557_v44 = vld [vmem:[#allocation61_spill] sm:$0xff]  ;;  %v2393_v14 = vmul.f32 %v5554_v7, %v5554_v7 }
 0x254   : > { %v2253_v53 = vsel %vm1881_vm2, %v5557_v44, 0.0  ;;  %v2396_v7 = vmul.f32 %v5557_v44, %v5557_v44 }
 0x255   : > { %v2589_v17 = vadd.f32 %v2588_v62, %v2587_v10  ;;  %v2244_v43 = vadd.f32 %v2243_v13, %v2242_v41  ;;  %v2612_v62 = vsel %vm1881_vm2, %v2381_v60, 0.0  ;;  %v5558_v41 = vld [vmem:[#allocation67_spill] sm:$0xff]  ;;  %v2385_v13 = vmul.f32 %v5546_v6, %v5546_v6  ;;  %v5563_v60 = vld [vmem:[#allocation73_spill] sm:$0xff] }
 0x256   : > { %v2388_v6 = vmul.f32 %v5549_v36, %v5549_v36  ;;  %v2636_v2 = vsel %vm1881_vm2, %v2393_v14, 0.0 }
 0x257   : > { %v2591_v25 = vadd.f32 %v2590_v22, %v2589_v17  ;;  %v2246_v58 = vadd.f32 %v2245_v5, %v2244_v43  ;;  %v2255_v17 = vsel %vm1881_vm2, %v5558_v41, 0.0  ;;  %v2620_v5 = vsel %vm1881_vm2, %v2385_v13, 0.0 }
 0x258   : > { %v2626_v9 = vsel %vm1881_vm2, %v2388_v6, 0.0  ;;  %v2399_v13 = vmul.f32 %v5560_v48, %v5560_v48 }
 0x259   : > { %v2593_v3 = vadd.f32 %v2592_v12, %v2591_v25  ;;  %v2248_v0 = vadd.f32 %v2247_v11, %v2246_v58  ;;  %v2618_v25 = vsel %vm1881_vm2, %v2384_v61, 0.0  ;;  %v2389_v58 = vmul.f32 %v5550_v30, %v5550_v30 }
 0x25a   : > { %v2392_v30 = vmul.f32 %v5553_v56, %v5553_v56 }
 0x25b   : > { %v2595_v16 = vadd.f32 %v2594_v55, %v2593_v3  ;;  %v2250_v19 = vadd.f32 %v2249_v31, %v2248_v0  ;;  %v5559_v55 = vld [vmem:[#allocation65_spill] sm:$0xff]  ;;  %v2387_v3 = vmul.f32 %v5548_v54, %v5548_v54  ;;  %v2390_v54 = vmul.f32 %v5551_v35, %v5551_v35 }
 0x25c   : > { %v2257_v43 = vsel %vm1881_vm2, %v5559_v55, 0.0  ;;  %v2628_v0 = vsel %vm1881_vm2, %v2389_v58, 0.0 }
 0x25d   : > { %v2597_v20 = vadd.f32 %v2596_v29, %v2595_v16  ;;  %v2252_v49 = vadd.f32 %v2251_v38, %v2250_v19  ;;  %v2622_v29 = vsel %vm1881_vm2, %v2386_v24, 0.0  ;;  %v2630_v31 = vsel %vm1881_vm2, %v2390_v54, 0.0 }
 0x25f   : > { %v2599_v59 = vadd.f32 %v2598_v1, %v2597_v20  ;;  %v2254_v22 = vadd.f32 %v2253_v53, %v2252_v49  ;;  %v2259_v1 = vsel %vm1881_vm2, %v5560_v48, 0.0  ;;  %v2624_v20 = vsel %vm1881_vm2, %v2387_v3, 0.0  ;;  %v5564_v53 = vld [vmem:[#allocation79_spill] sm:$0xff] }
 0x260   : > { %v2267_v39 = vsel %vm1881_vm2, %v5564_v53, 0.0  ;;  %v2402_v3 = vmul.f32 %v5563_v60, %v5563_v60 }
 0x261   : > { %v2601_v4 = vadd.f32 %v2600_v45, %v2599_v59  ;;  %v2256_v52 = vadd.f32 %v2255_v17, %v2254_v22  ;;  %v5561_v59 = vld [vmem:[#allocation69_spill] sm:$0xff] }
 0x262   : > { %v2261_v32 = vsel %vm1881_vm2, %v5561_v59, 0.0 }
 0x263   : > { %v2603_v27 = vadd.f32 %v2602_v51, %v2601_v4  ;;  %v2258_v16 = vadd.f32 %v2257_v43, %v2256_v52  ;;  %v2391_v51 = vmul.f32 %v5552_v63, %v5552_v63  ;;  %v2394_v63 = vmul.f32 %v5555_v46, %v5555_v46 }
 0x265   : > { %v2605_v40 = vadd.f32 %v2604_v42, %v2603_v27  ;;  %v2260_v45 = vadd.f32 %v2259_v1, %v2258_v16  ;;  %v5562_v42 = vld [vmem:[#allocation75_spill] sm:$0xff]  ;;  %v2638_v49 = vsel %vm1881_vm2, %v2394_v63, 0.0  ;;  %v2654_v1 = vsel %vm1881_vm2, %v2402_v3, 0.0 }
 0x266   : > { %v2263_v27 = vsel %vm1881_vm2, %v5562_v42, 0.0 }
 0x267   : > { %v2607_v26 = vadd.f32 %v2606_v23, %v2605_v40  ;;  %v2262_v8 = vadd.f32 %v2261_v32, %v2260_v45  ;;  %v2632_v23 = vsel %vm1881_vm2, %v2391_v51, 0.0  ;;  %v2634_v40 = vsel %vm1881_vm2, %v2392_v30, 0.0 }
 0x269   : > { %v2609_v34 = vadd.f32 %v2608_v47, %v2607_v26  ;;  %v2264_v38 = vadd.f32 %v2263_v27, %v2262_v8  ;;  %v2265_v47 = vsel %vm1881_vm2, %v5563_v60, 0.0  ;;  %v2395_v26 = vmul.f32 %v5556_v37, %v5556_v37  ;;  %v2666_v27 = vld [vmem:[%s5253_s6] sm:$0x3] }
 0x26a   : > { %v2398_v37 = vmul.f32 %v5559_v55, %v5559_v55  ;;  %v2648_v55 = vsel %vm1881_vm2, %v2399_v13, 0.0 }
 0x26b   : > { %v2611_v10 = vadd.f32 %v2610_v15, %v2609_v34  ;;  %v2266_v34 = vadd.f32 %v2265_v47, %v2264_v38 }
 0x26c   : > { %v2646_v24 = vsel %vm1881_vm2, %v2398_v37, 0.0 }
 0x26d   : > { %v2613_v18 = vadd.f32 %v2612_v62, %v2611_v10  ;;  %v2397_v62 = vmul.f32 %v5558_v41, %v5558_v41  ;;  %v2640_v10 = vsel %vm1881_vm2, %v2395_v26, 0.0  ;;  %v2268_v22 = vadd.f32 %v2267_v39, %v2266_v34 }
 0x26e   : > { %v2400_v41 = vmul.f32 %v5561_v59, %v5561_v59 }
 0x26f   : > { %v2615_v12 = vadd.f32 %v2614_v28, %v2613_v18  ;;  %v2642_v28 = vsel %vm1881_vm2, %v2396_v7, 0.0  ;;  %v5565_v18 = vld [vmem:[#allocation77_spill] sm:$0xff] }
 0x270   : > { %v2269_v17 = vsel %vm1881_vm2, %v5565_v18, 0.0  ;;  %v2404_v48 = vmul.f32 %v5565_v18, %v5565_v18 }
 0x271   : > { %v2617_v50 = vadd.f32 %v2616_v21, %v2615_v12  ;;  %v2644_v21 = vsel %vm1881_vm2, %v2397_v62, 0.0 }
 0x273   : > { %v2619_v33 = vadd.f32 %v2618_v25, %v2617_v50  ;;  %v2270_v25 = vadd.f32 %v2269_v17, %v2268_v22  ;;  %v2401_v50 = vmul.f32 %v5562_v42, %v5562_v42 }
 0x275   : > { %v2621_v57 = vadd.f32 %v2620_v5, %v2619_v33  ;;  %v2650_v5 = vsel %vm1881_vm2, %v2400_v41, 0.0  ;;  %v2271_v33 = vrot.slane %v2270_v25, 4  ;;  %v2652_v16 = vsel %vm1881_vm2, %v2401_v50, 0.0 }
 0x277   : > { %v2623_v11 = vadd.f32 %v2622_v29, %v2621_v57  ;;  %v2403_v29 = vmul.f32 %v5564_v53, %v5564_v53  ;;  %v2272_v58 = vadd.f32 %v2271_v33, %v2270_v25 }
 0x279   : > { %v2625_v36 = vadd.f32 %v2624_v20, %v2623_v11  ;;  %v2656_v11 = vsel %vm1881_vm2, %v2403_v29, 0.0  ;;  %v2273_v45 = vrot.slane %v2272_v58, 2 }
 0x27b   : > { %v2627_v4 = vadd.f32 %v2626_v9, %v2625_v36  ;;  %v2658_v9 = vsel %vm1881_vm2, %v2404_v48, 0.0  ;;  %v2274_v32 = vadd.f32 %v2273_v45, %v2272_v58 }
 0x27d   : > { %v2629_v35 = vadd.f32 %v2628_v0, %v2627_v4  ;;  %v2275_v4 = vrot.slane %v2274_v32, 1 }
 0x27f   : > { %v2631_v19 = vadd.f32 %v2630_v31, %v2629_v35  ;;  %v2276_v8 = vadd.f32 %v2275_v4, %v2274_v32 }
 0x281   : > { %v2633_v56 = vadd.f32 %v2632_v23, %v2631_v19 }
 0x283   : > { %v2635_v15 = vadd.f32 %v2634_v40, %v2633_v56 }
 0x285   : > { %v2637_v46 = vadd.f32 %v2636_v2, %v2635_v15 }
 0x287   : > { %v2639_v61 = vadd.f32 %v2638_v49, %v2637_v46 }
 0x289   : > { %v2641_v44 = vadd.f32 %v2640_v10, %v2639_v61 }
 0x28b   : > { %v2643_v12 = vadd.f32 %v2642_v28, %v2641_v44 }
 0x28d   : > { %v2645_v52 = vadd.f32 %v2644_v21, %v2643_v12 }
 0x28f   : > { %v2647_v43 = vadd.f32 %v2646_v24, %v2645_v52 }
 0x291   : > { %v2649_v6 = vadd.f32 %v2648_v55, %v2647_v43 }
 0x293   : > { %v2651_v57 = vadd.f32 %v2650_v5, %v2649_v6 }
 0x295   : > { %v2653_v20 = vadd.f32 %v2652_v16, %v2651_v57 }
 0x297   : > { %v2655_v54 = vadd.f32 %v2654_v1, %v2653_v20 }
 0x299   : > { %v2657_v36 = vadd.f32 %v2656_v11, %v2655_v54 }
 0x29b   : > { %v2659_v59 = vadd.f32 %v2658_v9, %v2657_v36 }
 0x29d   : > { %v2660_v51 = vrot.slane %v2659_v59, 4 }
 0x29f   : > { %v2661_v0 = vadd.f32 %v2660_v51, %v2659_v59 }
 0x2a1   : > { %v2662_v30 = vrot.slane %v2661_v0, 2 }
 0x2a3   : > { %v2663_v31 = vadd.f32 %v2662_v30, %v2661_v0 }
 0x2a5   : > { %v2664_v35 = vrot.slane %v2663_v31, 1 }
 0x2a7   : > { %v2665_v42 = vadd.f32 %v2664_v35, %v2663_v31 }
 0x2a9   : > { %v2668_v14 = vsel %vm2667_vm4, %v2276_v8, %v2665_v42 }
 0x2aa   : > { %v2669_v23 = vadd.f32 %v2668_v14, %v2666_v27 }
 0x2ac   : > { %2671 = vst.msk [vmem:[%s5253_s6] sm:$0x3] %vm2670_vm5, %v2669_v23 }
 0x2ad PF: > { %s17_s21 = sadd.s32 1, %s3220_s21  }
 0x2ae   : > { %p14_p5 = scmp.ge.s32.totalorder %s17_s21, 4  }
 0x2b0   :  { %16 = sbr.rel (!%p14_p5) target bundleno = 1 (0x1), region = 82 }

</bundles_post_ra>
